<compile_context>
chip_gen: v7x
topology: tpu7x:2x2x1
jax: 0.10.0
libtpu: 0.0.40
codegen_flags: <defaults>
</compile_context>

<pallas_src>
import jax
import jax.numpy as jnp
from jax.experimental import pallas as pl
from jax.experimental.pallas import tpu as pltpu

H1, H2, H3 = 2048, 1024, 512
OUT = 1


def _round_up(n, m):
    return (n + m - 1) // m * m


def mlp_kernel(x_ref,
               w1_ref, b1_ref,
               w2_ref, b2_ref,
               w3_ref, b3_ref,
               w4_ref, b4_ref,
               o_ref):
    # fc1 + ReLU  (bf16 operands on the MXU, f32 accumulation)
    h = jnp.dot(x_ref[...].astype(jnp.bfloat16), w1_ref[...],
                preferred_element_type=jnp.float32)
    h = jnp.maximum(h + b1_ref[...], 0.0)
    # fc2 + ReLU
    h = jnp.dot(h.astype(jnp.bfloat16), w2_ref[...],
                preferred_element_type=jnp.float32)
    h = jnp.maximum(h + b2_ref[...], 0.0)
    # fc3 + ReLU
    h = jnp.dot(h.astype(jnp.bfloat16), w3_ref[...],
                preferred_element_type=jnp.float32)
    h = jnp.maximum(h + b3_ref[...], 0.0)
    # fc4: out_features == 1 -> VPU broadcast-multiply + XLU lane reduction
    # (avoids a 1-lane MXU matmul).  w4_ref is the weight column laid out as a
    # (1, H3) row.
    z = jnp.sum(h * w4_ref[...], axis=-1, keepdims=True) + b4_ref[...]
    # Numerically-stable sigmoid: sigmoid(z) = s if z>=0 else 1-s,
    # where s = 1 / (1 + exp(-|z|)).  exp + approx reciprocal run on the EUP.
    e = jnp.exp(-jnp.abs(z))
    sig = pl.reciprocal(1.0 + e, approx=True)
    o_ref[...] = jnp.where(z >= 0, sig, 1.0 - sig)


def mlp_forward(x, params, *, block_b=256):
    """x: (B, input_size) float32; params: weights (in, out), biases (1, out), all f32."""
    B, F = x.shape

    # Weight bytes are the binding resource -> stream the big matrices as bf16.
    w1 = params["w1"].astype(jnp.bfloat16)
    w2 = params["w2"].astype(jnp.bfloat16)
    w3 = params["w3"].astype(jnp.bfloat16)
    # fc4 column (H3, 1) -> (1, H3) row for the in-kernel reduction; tiny, keep f32.
    w4 = params["w4"].reshape(1, H3).astype(jnp.float32)
    b1, b2, b3 = params["b1"], params["b2"], params["b3"]
    b4 = params["b4"].reshape(1, 1)

    # Batch tiling: amortize the one-time weight DMA over many rows per tile.
    # TB is a multiple of 8 (sublane granularity), capped at block_b.
    TB = min(block_b, _round_up(B, 8))
    Bp = _round_up(B, TB)
    if Bp != B:
        x = jnp.pad(x, ((0, Bp - B), (0, 0)))
    grid = (Bp // TB,)

    def const(shape):
        # Constant block index: Pallas fetches this block once; it stays resident
        # in VMEM for the whole grid.
        return pl.BlockSpec(shape, lambda i: (0, 0))

    # Advisory cost hint for the XLA scheduler.
    flops = 2 * Bp * (F * H1 + H1 * H2 + H2 * H3 + H3)
    bytes_accessed = (x.size * 4 + Bp * OUT * 4
                      + w1.size * 2 + w2.size * 2 + w3.size * 2 + w4.size * 4
                      + (b1.size + b2.size + b3.size + b4.size) * 4)
    cost = pl.CostEstimate(flops=flops, transcendentals=Bp,
                           bytes_accessed=bytes_accessed)

    out = pl.pallas_call(
        mlp_kernel,
        out_shape=jax.ShapeDtypeStruct((Bp, OUT), jnp.float32),
        grid_spec=pltpu.PrefetchScalarGridSpec(
            num_scalar_prefetch=0,
            grid=grid,
            in_specs=[
                pl.BlockSpec((TB, F), lambda i: (i, 0)),   # x: tiled over batch
                const((F, H1)), const((1, H1)),            # w1, b1
                const((H1, H2)), const((1, H2)),           # w2, b2
                const((H2, H3)), const((1, H3)),           # w3, b3
                const((1, H3)), const((1, 1)),             # w4 (as row), b4
            ],
            out_specs=pl.BlockSpec((TB, OUT), lambda i: (i, 0)),
        ),
        compiler_params=pltpu.CompilerParams(
            dimension_semantics=("parallel",),   # batch tiles are independent
            vmem_limit_bytes=32 << 20,           # ~5.3 MiB bf16 weights + act buffers
        ),
        cost_estimate=cost,
    )(x, w1, b1, w2, b2, w3, b3, w4, b4)
    return out[:B]


def init_params(key, input_size):
    """Deterministic init mimicking PyTorch nn.Linear default: U(-1/sqrt(fan_in), 1/sqrt(fan_in))."""
    dims = [(input_size, H1), (H1, H2), (H2, H3), (H3, OUT)]
    params = {}
    keys = jax.random.split(key, 2 * len(dims))
    for idx, (fan_in, fan_out) in enumerate(dims):
        bound = 1.0 / jnp.sqrt(jnp.float32(fan_in))
        w = jax.random.uniform(keys[2 * idx], (fan_in, fan_out),
                               dtype=jnp.float32, minval=-bound, maxval=bound)
        b = jax.random.uniform(keys[2 * idx + 1], (1, fan_out),
                               dtype=jnp.float32, minval=-bound, maxval=bound)
        params[f"w{idx + 1}"] = w
        params[f"b{idx + 1}"] = b
    return params


def mlp_reference(x, p):
    # Full-precision f32 reference (kernel uses bf16 weights, hence the loose tol).
    h = jnp.maximum(x @ p["w1"] + p["b1"], 0.0)
    h = jnp.maximum(h @ p["w2"] + p["b2"], 0.0)
    h = jnp.maximum(h @ p["w3"] + p["b3"], 0.0)
    z = h @ p["w4"] + p["b4"]
    return jax.nn.sigmoid(z)


if __name__ == "__main__":
    key = jax.random.PRNGKey(0)
    k_x, k_p = jax.random.split(key)

    batch = 8
    input_size = 32  # synthetic "len(dataset[0][0])"

    x = jax.random.normal(k_x, (batch, input_size), dtype=jnp.float32)
    params = init_params(k_p, input_size)

    out = jax.block_until_ready(mlp_forward(x, params))
    ref = mlp_reference(x, params)

    assert out.shape == (batch, 1), out.shape
    max_err = float(jnp.max(jnp.abs(out - ref)))
    # Kernel streams w1/w2/w3 in bf16 (f32 accumulation); sigmoid output is in
    # [0, 1], so a 2e-2 absolute tolerance vs the f32 reference is conservative.
    assert max_err < 2e-2, max_err

    print("KERNEL_OK")
</pallas_src>

<mosaic_0001>
module attributes {stable_mosaic.version = 11 : i64} {
  func.func @mlp_kernel(%arg0: i32, %arg1: memref<8x32xf32, #tpu.memory_space<vmem>>, %arg2: memref<32x2048xbf16, #tpu.memory_space<vmem>>, %arg3: memref<1x2048xf32, #tpu.memory_space<vmem>>, %arg4: memref<2048x1024xbf16, #tpu.memory_space<vmem>>, %arg5: memref<1x1024xf32, #tpu.memory_space<vmem>>, %arg6: memref<1024x512xbf16, #tpu.memory_space<vmem>>, %arg7: memref<1x512xf32, #tpu.memory_space<vmem>>, %arg8: memref<1x512xf32, #tpu.memory_space<vmem>>, %arg9: memref<1x1xf32, #tpu.memory_space<vmem>>, %arg10: memref<8x1xf32, #tpu.memory_space<vmem>>) attributes {dimension_semantics = [#tpu.dimension_semantics<parallel>], iteration_bounds = array<i64: 1>, scalar_prefetch = 0 : i64, scratch_operands = 0 : i64, tpu.core_type = #tpu.core_type<tc>, window_params = [{transform_indices = @transform_0, window_bounds = array<i64: 8, 32>}, {pipeline_mode = #tpu.pipeline_mode<synchronous>, transform_indices = @transform_1, window_bounds = array<i64: 32, 2048>}, {pipeline_mode = #tpu.pipeline_mode<synchronous>, transform_indices = @transform_2, window_bounds = array<i64: 1, 2048>}, {pipeline_mode = #tpu.pipeline_mode<synchronous>, transform_indices = @transform_3, window_bounds = array<i64: 2048, 1024>}, {pipeline_mode = #tpu.pipeline_mode<synchronous>, transform_indices = @transform_4, window_bounds = array<i64: 1, 1024>}, {pipeline_mode = #tpu.pipeline_mode<synchronous>, transform_indices = @transform_5, window_bounds = array<i64: 1024, 512>}, {pipeline_mode = #tpu.pipeline_mode<synchronous>, transform_indices = @transform_6, window_bounds = array<i64: 1, 512>}, {pipeline_mode = #tpu.pipeline_mode<synchronous>, transform_indices = @transform_7, window_bounds = array<i64: 1, 512>}, {pipeline_mode = #tpu.pipeline_mode<synchronous>, transform_indices = @transform_8, window_bounds = array<i64: 1, 1>}, {transform_indices = @transform_9, window_bounds = array<i64: 8, 1>}]} {
    %c0 = arith.constant 0 : index
    %c0_0 = arith.constant 0 : index
    %0 = vector.load %arg1[%c0, %c0_0] : memref<8x32xf32, #tpu.memory_space<vmem>>, vector<8x32xf32>
    %1 = arith.truncf %0 : vector<8x32xf32> to vector<8x32xbf16>
    %c0_1 = arith.constant 0 : index
    %c0_2 = arith.constant 0 : index
    %2 = vector.load %arg2[%c0_1, %c0_2] : memref<32x2048xbf16, #tpu.memory_space<vmem>>, vector<32x2048xbf16>
    %cst = arith.constant dense<0.000000e+00> : vector<8x2048xf32>
    %3 = tpu.matmul %1, %2, %cst {dimension_numbers = #tpu.dot_dimension_numbers<[1], [0], [0], [1], [0, 0, 1, 1], [], []>} : vector<8x32xbf16>, vector<32x2048xbf16>, vector<8x2048xf32> -> vector<8x2048xf32>
    %c0_3 = arith.constant 0 : index
    %c0_4 = arith.constant 0 : index
    %4 = vector.load %arg3[%c0_3, %c0_4] : memref<1x2048xf32, #tpu.memory_space<vmem>>, vector<1x2048xf32>
    %5 = vector.broadcast %4 : vector<1x2048xf32> to vector<8x2048xf32>
    %6 = arith.addf %3, %5 : vector<8x2048xf32>
    %cst_5 = arith.constant 0.000000e+00 : f32
    %7 = vector.broadcast %cst_5 : f32 to vector<8x2048xf32>
    %8 = arith.maximumf %6, %7 : vector<8x2048xf32>
    %9 = arith.truncf %8 : vector<8x2048xf32> to vector<8x2048xbf16>
    %c0_6 = arith.constant 0 : index
    %c0_7 = arith.constant 0 : index
    %10 = vector.load %arg4[%c0_6, %c0_7] : memref<2048x1024xbf16, #tpu.memory_space<vmem>>, vector<2048x1024xbf16>
    %cst_8 = arith.constant dense<0.000000e+00> : vector<8x1024xf32>
    %11 = tpu.matmul %9, %10, %cst_8 {dimension_numbers = #tpu.dot_dimension_numbers<[1], [0], [0], [1], [0, 0, 1, 1], [], []>} : vector<8x2048xbf16>, vector<2048x1024xbf16>, vector<8x1024xf32> -> vector<8x1024xf32>
    %c0_9 = arith.constant 0 : index
    %c0_10 = arith.constant 0 : index
    %12 = vector.load %arg5[%c0_9, %c0_10] : memref<1x1024xf32, #tpu.memory_space<vmem>>, vector<1x1024xf32>
    %13 = vector.broadcast %12 : vector<1x1024xf32> to vector<8x1024xf32>
    %14 = arith.addf %11, %13 : vector<8x1024xf32>
    %cst_11 = arith.constant 0.000000e+00 : f32
    %15 = vector.broadcast %cst_11 : f32 to vector<8x1024xf32>
    %16 = arith.maximumf %14, %15 : vector<8x1024xf32>
    %17 = arith.truncf %16 : vector<8x1024xf32> to vector<8x1024xbf16>
    %c0_12 = arith.constant 0 : index
    %c0_13 = arith.constant 0 : index
    %18 = vector.load %arg6[%c0_12, %c0_13] : memref<1024x512xbf16, #tpu.memory_space<vmem>>, vector<1024x512xbf16>
    %cst_14 = arith.constant dense<0.000000e+00> : vector<8x512xf32>
    %19 = tpu.matmul %17, %18, %cst_14 {dimension_numbers = #tpu.dot_dimension_numbers<[1], [0], [0], [1], [0, 0, 1, 1], [], []>} : vector<8x1024xbf16>, vector<1024x512xbf16>, vector<8x512xf32> -> vector<8x512xf32>
    %c0_15 = arith.constant 0 : index
    %c0_16 = arith.constant 0 : index
    %20 = vector.load %arg7[%c0_15, %c0_16] : memref<1x512xf32, #tpu.memory_space<vmem>>, vector<1x512xf32>
    %21 = vector.broadcast %20 : vector<1x512xf32> to vector<8x512xf32>
    %22 = arith.addf %19, %21 : vector<8x512xf32>
    %cst_17 = arith.constant 0.000000e+00 : f32
    %23 = vector.broadcast %cst_17 : f32 to vector<8x512xf32>
    %24 = arith.maximumf %22, %23 : vector<8x512xf32>
    %c0_18 = arith.constant 0 : index
    %c0_19 = arith.constant 0 : index
    %25 = vector.load %arg8[%c0_18, %c0_19] : memref<1x512xf32, #tpu.memory_space<vmem>>, vector<1x512xf32>
    %26 = vector.broadcast %25 : vector<1x512xf32> to vector<8x512xf32>
    %27 = arith.mulf %24, %26 : vector<8x512xf32>
    %cst_20 = arith.constant dense<0.000000e+00> : vector<8xf32>
    %28 = vector.multi_reduction <add>, %27, %cst_20 [1] : vector<8x512xf32> to vector<8xf32>
    %29 = vector.shape_cast %28 : vector<8xf32> to vector<8x1xf32>
    %c0_21 = arith.constant 0 : index
    %c0_22 = arith.constant 0 : index
    %30 = vector.load %arg9[%c0_21, %c0_22] : memref<1x1xf32, #tpu.memory_space<vmem>>, vector<1x1xf32>
    %31 = vector.broadcast %30 : vector<1x1xf32> to vector<8x1xf32>
    %32 = arith.addf %29, %31 : vector<8x1xf32>
    %33 = math.absf %32 : vector<8x1xf32>
    %cst_23 = arith.constant 0.000000e+00 : f32
    %34 = vector.broadcast %cst_23 : f32 to vector<8x1xf32>
    %35 = arith.subf %34, %33 : vector<8x1xf32>
    %36 = math.exp %35 : vector<8x1xf32>
    %cst_24 = arith.constant 1.000000e+00 : f32
    %37 = vector.broadcast %cst_24 : f32 to vector<8x1xf32>
    %38 = arith.addf %37, %36 : vector<8x1xf32>
    %39 = tpu.reciprocal %38 {approx = true} : vector<8x1xf32> -> vector<8x1xf32>
    %cst_25 = arith.constant 0.000000e+00 : f32
    %40 = vector.broadcast %cst_25 : f32 to vector<8x1xf32>
    %41 = arith.cmpf oge, %32, %40 : vector<8x1xf32>
    %cst_26 = arith.constant 1.000000e+00 : f32
    %42 = vector.broadcast %cst_26 : f32 to vector<8x1xf32>
    %43 = arith.subf %42, %39 : vector<8x1xf32>
    %44 = arith.select %41, %39, %43 : vector<8x1xi1>, vector<8x1xf32>
    %c0_27 = arith.constant 0 : index
    %c0_28 = arith.constant 0 : index
    %45 = vector.load %arg10[%c0_27, %c0_28] : memref<8x1xf32, #tpu.memory_space<vmem>>, vector<8x1xf32>
    tpu.vector_store %arg10[%c0_27, %c0_28], %44 {strides = array<i32>} : memref<8x1xf32, #tpu.memory_space<vmem>>, vector<8x1xf32>,
    return
  }
  func.func @transform_0(%arg0: i32) -> (i32, i32) {
    %c0_i32 = arith.constant 0 : i32
    %c0_i32_0 = arith.constant 0 : i32
    return %arg0, %c0_i32 : i32, i32
  }
  func.func @transform_1(%arg0: i32) -> (i32, i32) {
    %c0_i32 = arith.constant 0 : i32
    %c0_i32_0 = arith.constant 0 : i32
    %c0_i32_1 = arith.constant 0 : i32
    return %c0_i32, %c0_i32_0 : i32, i32
  }
  func.func @transform_2(%arg0: i32) -> (i32, i32) {
    %c0_i32 = arith.constant 0 : i32
    %c0_i32_0 = arith.constant 0 : i32
    %c0_i32_1 = arith.constant 0 : i32
    return %c0_i32, %c0_i32_0 : i32, i32
  }
  func.func @transform_3(%arg0: i32) -> (i32, i32) {
    %c0_i32 = arith.constant 0 : i32
    %c0_i32_0 = arith.constant 0 : i32
    %c0_i32_1 = arith.constant 0 : i32
    return %c0_i32, %c0_i32_0 : i32, i32
  }
  func.func @transform_4(%arg0: i32) -> (i32, i32) {
    %c0_i32 = arith.constant 0 : i32
    %c0_i32_0 = arith.constant 0 : i32
    %c0_i32_1 = arith.constant 0 : i32
    return %c0_i32, %c0_i32_0 : i32, i32
  }
  func.func @transform_5(%arg0: i32) -> (i32, i32) {
    %c0_i32 = arith.constant 0 : i32
    %c0_i32_0 = arith.constant 0 : i32
    %c0_i32_1 = arith.constant 0 : i32
    return %c0_i32, %c0_i32_0 : i32, i32
  }
  func.func @transform_6(%arg0: i32) -> (i32, i32) {
    %c0_i32 = arith.constant 0 : i32
    %c0_i32_0 = arith.constant 0 : i32
    %c0_i32_1 = arith.constant 0 : i32
    return %c0_i32, %c0_i32_0 : i32, i32
  }
  func.func @transform_7(%arg0: i32) -> (i32, i32) {
    %c0_i32 = arith.constant 0 : i32
    %c0_i32_0 = arith.constant 0 : i32
    %c0_i32_1 = arith.constant 0 : i32
    return %c0_i32, %c0_i32_0 : i32, i32
  }
  func.func @transform_8(%arg0: i32) -> (i32, i32) {
    %c0_i32 = arith.constant 0 : i32
    %c0_i32_0 = arith.constant 0 : i32
    %c0_i32_1 = arith.constant 0 : i32
    return %c0_i32, %c0_i32_0 : i32, i32
  }
  func.func @transform_9(%arg0: i32) -> (i32, i32) {
    %c0_i32 = arith.constant 0 : i32
    %c0_i32_0 = arith.constant 0 : i32
    return %arg0, %c0_i32 : i32, i32
  }
}

</mosaic_0001>

<bundles_post_ra>
// kernel: tpu_custom_call.1
= control target key start
LH: loop header
LB: loop body
LE: loop exit
PB: predicated region body
PF: predicated region fallthrough
CT: control target
= control target key end

     0   :  { %s12731_s0 = inlined_call_operand.hbm [shape: f32[8,32], index: 0, kind: input, shape index: {}]   ;;  %s12732_s1 = inlined_call_operand.hbm [shape: bf16[32,2048], index: 1, kind: input, shape index: {}]   ;;  %s12733_s2 = inlined_call_operand.hbm [shape: f32[1,2048], index: 2, kind: input, shape index: {}]   ;;  %s12734_s3 = inlined_call_operand.hbm [shape: bf16[2048,1024], index: 3, kind: input, shape index: {}]   ;;  %s12735_s4 = inlined_call_operand.hbm [shape: f32[1,1024], index: 4, kind: input, shape index: {}]   ;;  %s12736_s5 = inlined_call_operand.hbm [shape: bf16[1024,512], index: 5, kind: input, shape index: {}]   ;;  %s12737_s6 = inlined_call_operand.hbm [shape: f32[1,512], index: 6, kind: input, shape index: {}]   ;;  %s12738_s7 = inlined_call_operand.hbm [shape: f32[1,512], index: 7, kind: input, shape index: {}]   ;;  %s12739_s8 = inlined_call_operand.<no memory space> [shape: f32[1,1], index: 8, kind: input, shape index: {}]   ;;  %s12740_s9 = inlined_call_operand.vmem [shape: f32[8,1], index: 9, kind: output, shape index: {}]  }
   0x1   :  { %v14_v0 = vstv %s12739_s8 }
   0x2   :  { %15 = vst [vmem:[#allocation2] sm:$0x1] %v14_v0 }
   0x3   :  { %16 = vsyncpa [#allocation4], 0 }
   0x4   :  { %17 = vsyncpa [#allocation6], 0 }
   0x5   :  { %18 = vsyncpa [#allocation9], 0 }
   0x6   :  { %19 = vsyncpa [#allocation12], 0 }
   0x7   :  { %20 = vsyncpa [#allocation15], 0  ;;  %s12300_s11 = smov [#allocation5]   ;;  %s12114_s15 = scalar_lea.hbm %s12732_s1, 4096 }
   0x8   :  { %s36_s12 = sshll.u32 %s12300_s11, 4  ;;  %p12115_p0 = scmp.ne.s32.totalorder %s12732_s1, %s12114_s15  ;;  %s37_s12 = int_to_ptr.vmem [resolvable:$true] %s36_s12 }
   0x9   :  { %p12118_p1 = scmp.lt.u32.totalorder %s12114_s15, %s12732_s1 }
   0xb   :  { %p12120_p2 = pnand %p12118_p1, %p12115_p0 }
   0xd   :  { %12123 = shalt.err (!%p12120_p2)
}
   0xe   :  { %s12124_s8 = scalar_lea.vmem %s37_s12, 4096  ;;  %p12129_p4 = scmp.lt.s32.totalorder %s37_s12, %s37_s12 }
   0xf   :  { %p12125_p3 = scmp.ne.s32.totalorder %s37_s12, %s12124_s8  ;;  %p12130_p5 = scmp.lt.s32.totalorder %s12124_s8, %s12124_s8 }
  0x11   :  { %p12131_p6 = por %p12130_p5, %p12129_p4 }
  0x13   :  { %p12132_p7 = pnand %p12131_p6, %p12125_p3 }
  0x15   :  { %12135 = shalt.err (!%p12132_p7)
}
  0x16   :  { %s12301_s20 = smov 1024   ;;  %s12302_s21 = smov 64  }
  0x17   :  { %42 = dma.hbm_to_vmem [thread:$0]  %s12732_s1, 4096, %s37_s12, [#allocation6], %s12301_s20, %s12301_s20, %s12302_s21  }
  0x18   :  { %s12303_s24 = smov [#allocation8]   ;;  %s12136_s28 = scalar_lea.hbm %s12734_s3, 131072 }
  0x19   :  { %s58_s25 = sshll.u32 %s12303_s24, 4  ;;  %p12137_p8 = scmp.ne.s32.totalorder %s12734_s3, %s12136_s28  ;;  %s59_s25 = int_to_ptr.vmem [resolvable:$true] %s58_s25 }
  0x1a   :  { %p12140_p9 = scmp.lt.u32.totalorder %s12136_s28, %s12734_s3 }
  0x1c   :  { %p12142_p10 = pnand %p12140_p9, %p12137_p8 }
  0x1e   :  { %12145 = shalt.err (!%p12142_p10)
}
  0x1f   :  { %s12146_s13 = scalar_lea.vmem %s59_s25, 131072  ;;  %p12151_p12 = scmp.lt.s32.totalorder %s59_s25, %s59_s25 }
  0x20   :  { %p12147_p11 = scmp.ne.s32.totalorder %s59_s25, %s12146_s13  ;;  %p12152_p13 = scmp.lt.s32.totalorder %s12146_s13, %s12146_s13 }
  0x22   :  { %p12153_p0 = por %p12152_p13, %p12151_p12 }
  0x24   :  { %p12154_p1 = pnand %p12153_p0, %p12147_p11 }
  0x26   :  { %12157 = shalt.err (!%p12154_p1)
}
  0x27   :  { %s12304_s1 = smov 512   ;;  %s12305_s12 = smov 32  }
  0x28   :  { %64 = dma.hbm_to_vmem [thread:$0]  %s12734_s3, 131072, %s59_s25, [#allocation9], %s12304_s1, %s12304_s1, %s12305_s12  }
  0x29   :  { %s12306_s16 = smov [#allocation11]   ;;  %s12158_s8 = scalar_lea.hbm %s12736_s5, 32768 }
  0x2a   :  { %s80_s17 = sshll.u32 %s12306_s16, 4  ;;  %p12159_p2 = scmp.ne.s32.totalorder %s12736_s5, %s12158_s8  ;;  %s81_s17 = int_to_ptr.vmem [resolvable:$true] %s80_s17 }
  0x2b   :  { %p12162_p3 = scmp.lt.u32.totalorder %s12158_s8, %s12736_s5 }
  0x2d   :  { %p12164_p4 = pnand %p12162_p3, %p12159_p2 }
  0x2f   :  { %12167 = shalt.err (!%p12164_p4)
}
  0x30   :  { %s12168_s24 = scalar_lea.vmem %s81_s17, 32768  ;;  %p12173_p6 = scmp.lt.s32.totalorder %s81_s17, %s81_s17 }
  0x31   :  { %p12169_p5 = scmp.ne.s32.totalorder %s81_s17, %s12168_s24  ;;  %p12174_p7 = scmp.lt.s32.totalorder %s12168_s24, %s12168_s24 }
  0x33   :  { %p12175_p8 = por %p12174_p7, %p12173_p6 }
  0x35   :  { %p12176_p9 = pnand %p12175_p8, %p12169_p5 }
  0x37   :  { %12179 = shalt.err (!%p12176_p9)
}
  0x38   :  { %s12307_s3 = smov 256   ;;  %s12308_s25 = smov 16  }
  0x39   :  { %86 = dma.hbm_to_vmem [thread:$0]  %s12736_s5, 32768, %s81_s17, [#allocation12], %s12307_s3, %s12307_s3, %s12308_s25  }
  0x3a   :  { %s12309_s28 = smov [#allocation3]   ;;  %s12310_s30 = smov [#allocation7]  }
  0x3b   :  { %s27_s29 = sshll.u32 %s12309_s28, 4  ;;  %s49_s10 = sshll.u32 %s12310_s30, 4  ;;  %s28_s29 = int_to_ptr.vmem [resolvable:$true] %s27_s29  ;;  %s50_s10 = int_to_ptr.vmem [resolvable:$true] %s49_s10 }
  0x3c   :  { %s12180_s1 = scalar_lea.hbm %s12731_s0, 128 }
  0x3d   :  { %p12181_p10 = scmp.ne.s32.totalorder %s12731_s0, %s12180_s1  ;;  %p12184_p11 = scmp.lt.u32.totalorder %s12180_s1, %s12731_s0 }
  0x3f   :  { %p12186_p12 = pnand %p12184_p11, %p12181_p10 }
  0x41   :  { %12189 = shalt.err (!%p12186_p12)
}
  0x42   :  { %s12190_s5 = scalar_lea.vmem %s28_s29, 128  ;;  %p12195_p0 = scmp.lt.s32.totalorder %s28_s29, %s28_s29 }
  0x43   :  { %p12191_p13 = scmp.ne.s32.totalorder %s28_s29, %s12190_s5  ;;  %p12196_p1 = scmp.lt.s32.totalorder %s12190_s5, %s12190_s5 }
  0x45   :  { %p12197_p2 = por %p12196_p1, %p12195_p0 }
  0x47   :  { %p12198_p3 = pnand %p12197_p2, %p12191_p13 }
  0x49   :  { %12201 = shalt.err (!%p12198_p3)
}
  0x4a   :  { %30 = dma.hbm_to_vmem [thread:$0]  %s12731_s0, 128, %s28_s29, [#allocation4]  }
  0x4b   :  { %s12202_s20 = scalar_lea.hbm %s12733_s2, 256 }
  0x4c   :  { %p12203_p4 = scmp.ne.s32.totalorder %s12733_s2, %s12202_s20  ;;  %p12206_p5 = scmp.lt.u32.totalorder %s12202_s20, %s12733_s2 }
  0x4e   :  { %p12208_p6 = pnand %p12206_p5, %p12203_p4 }
  0x50   :  { %12211 = shalt.err (!%p12208_p6)
}
  0x51   :  { %s12212_s3 = scalar_lea.vmem %s50_s10, 256  ;;  %p12217_p8 = scmp.lt.s32.totalorder %s50_s10, %s50_s10 }
  0x52   :  { %p12213_p7 = scmp.ne.s32.totalorder %s50_s10, %s12212_s3  ;;  %p12218_p9 = scmp.lt.s32.totalorder %s12212_s3, %s12212_s3 }
  0x54   :  { %p12219_p10 = por %p12218_p9, %p12217_p8 }
  0x56   :  { %p12220_p11 = pnand %p12219_p10, %p12213_p7 }
  0x58   :  { %12223 = shalt.err (!%p12220_p11)
}
  0x59   :  { %52 = dma.hbm_to_vmem [thread:$0]  %s12733_s2, 256, %s50_s10, [#allocation6]  }
  0x5a   :  { %s12311_s26 = smov [#allocation10]   ;;  %s12312_s28 = smov [#allocation13]  }
  0x5b   :  { %s71_s27 = sshll.u32 %s12311_s26, 4  ;;  %s93_s29 = sshll.u32 %s12312_s28, 4  ;;  %s72_s27 = int_to_ptr.vmem [resolvable:$true] %s71_s27  ;;  %s94_s29 = int_to_ptr.vmem [resolvable:$true] %s93_s29 }
  0x5c   :  { %s12224_s13 = scalar_lea.hbm %s12735_s4, 128 }
  0x5d   :  { %p12225_p12 = scmp.ne.s32.totalorder %s12735_s4, %s12224_s13  ;;  %p12228_p13 = scmp.lt.u32.totalorder %s12224_s13, %s12735_s4 }
  0x5f   :  { %p12230_p0 = pnand %p12228_p13, %p12225_p12 }
  0x61   :  { %12233 = shalt.err (!%p12230_p0)
}
  0x62   :  { %s12234_s2 = scalar_lea.vmem %s72_s27, 128  ;;  %p12239_p2 = scmp.lt.s32.totalorder %s72_s27, %s72_s27 }
  0x63   :  { %p12235_p1 = scmp.ne.s32.totalorder %s72_s27, %s12234_s2  ;;  %p12240_p3 = scmp.lt.s32.totalorder %s12234_s2, %s12234_s2 }
  0x65   :  { %p12241_p4 = por %p12240_p3, %p12239_p2 }
  0x67   :  { %p12242_p5 = pnand %p12241_p4, %p12235_p1 }
  0x69   :  { %12245 = shalt.err (!%p12242_p5)
}
  0x6a   :  { %74 = dma.hbm_to_vmem [thread:$0]  %s12735_s4, 128, %s72_s27, [#allocation9]  }
  0x6b   :  { %s12246_s18 = scalar_lea.hbm %s12737_s6, 64 }
  0x6c   :  { %p12247_p6 = scmp.ne.s32.totalorder %s12737_s6, %s12246_s18  ;;  %p12250_p7 = scmp.lt.u32.totalorder %s12246_s18, %s12737_s6 }
  0x6e   :  { %p12252_p8 = pnand %p12250_p7, %p12247_p6 }
  0x70   :  { %12255 = shalt.err (!%p12252_p8)
}
  0x71   :  { %s12256_s22 = scalar_lea.vmem %s94_s29, 64  ;;  %p12261_p10 = scmp.lt.s32.totalorder %s94_s29, %s94_s29 }
  0x72   :  { %p12257_p9 = scmp.ne.s32.totalorder %s94_s29, %s12256_s22  ;;  %p12262_p11 = scmp.lt.s32.totalorder %s12256_s22, %s12256_s22 }
  0x74   :  { %p12263_p12 = por %p12262_p11, %p12261_p10 }
  0x76   :  { %p12264_p13 = pnand %p12263_p12, %p12257_p9 }
  0x78   :  { %12267 = shalt.err (!%p12264_p13)
}
  0x79   :  { %96 = dma.hbm_to_vmem [thread:$0]  %s12737_s6, 64, %s94_s29, [#allocation12]  }
  0x7a   :  { %s12313_s24 = smov [#allocation14]   ;;  %s12268_s26 = scalar_lea.hbm %s12738_s7, 64 }
  0x7b   :  { %s103_s3 = sshll.u32 %s12313_s24, 4  ;;  %p12269_p0 = scmp.ne.s32.totalorder %s12738_s7, %s12268_s26  ;;  %s104_s3 = int_to_ptr.vmem [resolvable:$true] %s103_s3 }
  0x7c   :  { %p12272_p1 = scmp.lt.u32.totalorder %s12268_s26, %s12738_s7 }
  0x7e   :  { %p12274_p2 = pnand %p12272_p1, %p12269_p0 }
  0x80   :  { %12277 = shalt.err (!%p12274_p2)
}
  0x81   :  { %s12278_s13 = scalar_lea.vmem %s104_s3, 64  ;;  %p12283_p4 = scmp.lt.s32.totalorder %s104_s3, %s104_s3 }
  0x82   :  { %p12279_p3 = scmp.ne.s32.totalorder %s104_s3, %s12278_s13  ;;  %p12284_p5 = scmp.lt.s32.totalorder %s12278_s13, %s12278_s13 }
  0x84   :  { %p12285_p6 = por %p12284_p5, %p12283_p4 }
  0x86   :  { %p12286_p7 = pnand %p12285_p6, %p12279_p3 }
  0x88   :  { %12289 = shalt.err (!%p12286_p7)
}
  0x89   :  { %106 = dma.hbm_to_vmem [thread:$0]  %s12738_s7, 64, %s104_s3, [#allocation15]  }
  0x8a   :  { %12290 = dma.done.wait [#allocation4], 128  }
  0x8b   :  { %12291 = vsyncadd [#allocation4], 4294967168 }
  0x8c   :  { %12292 = dma.done.wait [#allocation6], 4352  }
  0x8d   :  { %12293 = vsyncadd [#allocation6], 4294962944 }
  0x8e   :  { %12294 = dma.done.wait [#allocation9], 131200  }
  0x8f   :  { %12295 = vsyncadd [#allocation9], 4294836096 }
  0x90   :  { %12296 = dma.done.wait [#allocation12], 32832  }
  0x91   :  { %12297 = vsyncadd [#allocation12], 4294934464 }
  0x92   :  { %12298 = dma.done.wait [#allocation15], 64  }
  0x93   :  { %12299 = vsyncadd [#allocation15], 4294967232  ;;  %v12314_v1 = vmov 0   ;;  %v136_v2 = vld [vmem:[#allocation5] sm:$0xff]  ;;  %v137_v8 = vld [vmem:[#allocation5 + $0x8] sm:$0xff]  ;;  %vm412_vm0 = vcmask 261120  }
  0x94   :  { %448 = vmatprep.mubr.bf16.mxu0 %v12314_v1  ;;  %489 = vmatprep.mubr.bf16.mxu1 %v12314_v1  ;;  %v144_v3 = vld [vmem:[#allocation5 + $0x40] sm:$0xff]  ;;  %v145_v10 = vld [vmem:[#allocation5 + $0x48] sm:$0xff]  ;;  %v138_v16 = vld [vmem:[#allocation5 + $0x10] sm:$0xff]  ;;  %vm10228_vm1 = vcmask 7168  }
  0x95   :  { %v152_v4 = vld [vmem:[#allocation5 + $0x80] sm:$0xff]  ;;  %v10240_v5 = vcombine.high %v136_v2, %v144_v3  ;;  %v10239_v6 = vcombine.low %v136_v2, %v144_v3  ;;  %v153_v11 = vld [vmem:[#allocation5 + $0x88] sm:$0xff]  ;;  %v10242_v13 = vcombine.high %v137_v8, %v145_v10  ;;  %v10241_v14 = vcombine.low %v137_v8, %v145_v10  ;;  %v146_v17 = vld [vmem:[#allocation5 + $0x50] sm:$0xff] }
  0x96   :  { %v160_v7 = vld [vmem:[#allocation5 + $0xc0] sm:$0xff]  ;;  %v161_v12 = vld [vmem:[#allocation5 + $0xc8] sm:$0xff]  ;;  %v134_v19 = vld [vmem:[#allocation3] sm:$0xff]  ;;  %v10244_v22 = vcombine.high %v138_v16, %v146_v17  ;;  %v10243_v28 = vcombine.low %v138_v16, %v146_v17 }
  0x97   :  { %v10256_v9 = vcombine.high %v152_v4, %v160_v7  ;;  %416 = vmatprep.subr.bf16.mxu0 %v10240_v5  ;;  %v10258_v15 = vcombine.high %v153_v11, %v161_v12  ;;  %v10255_v18 = vcombine.low %v152_v4, %v160_v7  ;;  %v139_v20 = vld [vmem:[#allocation5 + $0x18] sm:$0xff]  ;;  %457 = vmatprep.subr.bf16.mxu1 %v10242_v13  ;;  %v154_v24 = vld [vmem:[#allocation5 + $0x90] sm:$0xff]  ;;  %v140_v33 = vld [vmem:[#allocation5 + $0x20] sm:$0xff] }
  0x98   :  { %417 = vmatpush1.bf16.msra.mxu0 %v10239_v6  ;;  %v147_v21 = vld [vmem:[#allocation5 + $0x58] sm:$0xff]  ;;  %458 = vmatpush1.bf16.msra.mxu1 %v10241_v14  ;;  %v10257_v23 = vcombine.low %v153_v11, %v161_v12  ;;  %v162_v25 = vld [vmem:[#allocation5 + $0xd0] sm:$0xff]  ;;  %v12466_v26 = vpack.c.bf16 %v134_v19, %v134_v19  ;;  %v148_v34 = vld [vmem:[#allocation5 + $0x60] sm:$0xff] }
  0x99   :  { %418 = vmatprep.subr.bf16.mxu0 %v10256_v9  ;;  %459 = vmatprep.subr.bf16.mxu1 %v10258_v15  ;;  %v10246_v27 = vcombine.high %v139_v20, %v147_v21  ;;  %v155_v29 = vld [vmem:[#allocation5 + $0x98] sm:$0xff]  ;;  %v10260_v31 = vcombine.high %v154_v24, %v162_v25  ;;  %v10245_v32 = vcombine.low %v139_v20, %v147_v21  ;;  %v141_v37 = vld [vmem:[#allocation5 + $0x28] sm:$0xff]  ;;  %v156_v41 = vld [vmem:[#allocation5 + $0xa0] sm:$0xff] }
  0x9a   :  { %v163_v30 = vld [vmem:[#allocation5 + $0xd8] sm:$0xff]  ;;  %v10259_v36 = vcombine.low %v154_v24, %v162_v25  ;;  %v149_v38 = vld [vmem:[#allocation5 + $0x68] sm:$0xff]  ;;  %v10248_v39 = vcombine.high %v140_v33, %v148_v34  ;;  %v164_v42 = vld [vmem:[#allocation5 + $0xe0] sm:$0xff]  ;;  %v10247_v44 = vcombine.low %v140_v33, %v148_v34 }
  0x9b   :  { %v10262_v35 = vcombine.high %v155_v29, %v163_v30  ;;  %v10261_v40 = vcombine.low %v155_v29, %v163_v30  ;;  %v10250_v43 = vcombine.high %v141_v37, %v149_v38  ;;  %v157_v45 = vld [vmem:[#allocation5 + $0xa8] sm:$0xff]  ;;  %v10264_v47 = vcombine.high %v156_v41, %v164_v42  ;;  %v142_v49 = vld [vmem:[#allocation5 + $0x30] sm:$0xff]  ;;  %v143_v53 = vld [vmem:[#allocation5 + $0x38] sm:$0xff] }
  0x9c   :  { %419 = vmatpush1.bf16.msra.mxu0 %v10255_v18  ;;  %460 = vmatpush1.bf16.msra.mxu1 %v10257_v23  ;;  %v165_v46 = vld [vmem:[#allocation5 + $0xe8] sm:$0xff]  ;;  %v10249_v48 = vcombine.low %v141_v37, %v149_v38  ;;  %v150_v50 = vld [vmem:[#allocation5 + $0x70] sm:$0xff]  ;;  %v10263_v52 = vcombine.low %v156_v41, %v164_v42  ;;  %v151_v54 = vld [vmem:[#allocation5 + $0x78] sm:$0xff] }
  0x9d   :  { %498 = vmatprep.subr.bf16.mxu0 %v10244_v22  ;;  %539 = vmatprep.subr.bf16.mxu1 %v10246_v27  ;;  %v10266_v51 = vcombine.high %v157_v45, %v165_v46  ;;  %v10252_v55 = vcombine.high %v142_v49, %v150_v50  ;;  %v10265_v56 = vcombine.low %v157_v45, %v165_v46  ;;  %v158_v57 = vld [vmem:[#allocation5 + $0xb0] sm:$0xff]  ;;  %v159_v61 = vld [vmem:[#allocation5 + $0xb8] sm:$0xff] }
  0x9e   :  { %v166_v58 = vld [vmem:[#allocation5 + $0xf0] sm:$0xff]  ;;  %v10254_v59 = vcombine.high %v143_v53, %v151_v54  ;;  %v10251_v60 = vcombine.low %v142_v49, %v150_v50  ;;  %v167_v62 = vld [vmem:[#allocation5 + $0xf8] sm:$0xff]  ;;  %v10253_v0 = vcombine.low %v143_v53, %v151_v54 }
  0x9f   :  { %10271 = vmatmul.mubr.msk.bf16.vlgmr.msra.gmra.mrb[0].mxu0 %vm412_vm0, %v12466_v26  ;;  %10272 = vmatmul.mubr.msk.bf16.vlgmr.msra.gmra.mrb[0].mxu1 %vm412_vm0, %v12466_v26  ;;  %v10268_v63 = vcombine.high %v158_v57, %v166_v58  ;;  %v776_v2 = vld [vmem:[#allocation8] sm:$0xff]  ;;  %v10270_v4 = vcombine.high %v159_v61, %v167_v62  ;;  %v10267_v5 = vcombine.low %v158_v57, %v166_v58  ;;  %v777_v6 = vld [vmem:[#allocation8 + $0x8] sm:$0xff] }
  0xa0   :  { %499 = vmatpush1.bf16.msra.mxu0 %v10243_v28  ;;  %530 = vmatprep.mubr.bf16.mxu0 %v12314_v1  ;;  %v780_v3 = vld [vmem:[#allocation8 + $0x20] sm:$0xff]  ;;  %v781_v7 = vld [vmem:[#allocation8 + $0x28] sm:$0xff]  ;;  %v10269_v11 = vcombine.low %v159_v61, %v167_v62 }
  0xa1   :  { %500 = vmatprep.subr.bf16.mxu0 %v10260_v31  ;;  %540 = vmatpush1.bf16.msra.mxu1 %v10245_v32  ;;  %v10280_v8 = vcombine.high %v776_v2, %v780_v3  ;;  %v784_v9 = vld [vmem:[#allocation8 + $0x40] sm:$0xff]  ;;  %v785_v12 = vld [vmem:[#allocation8 + $0x48] sm:$0xff]  ;;  %v10282_v14 = vcombine.high %v777_v6, %v781_v7  ;;  %v10279_v15 = vcombine.low %v776_v2, %v780_v3 }
  0xa2   :  { %571 = vmatprep.mubr.bf16.mxu1 %v12314_v1  ;;  %541 = vmatprep.subr.bf16.mxu1 %v10262_v35  ;;  %v788_v10 = vld [vmem:[#allocation8 + $0x60] sm:$0xff]  ;;  %v789_v13 = vld [vmem:[#allocation8 + $0x68] sm:$0xff]  ;;  %v10281_v19 = vcombine.low %v777_v6, %v781_v7 }
  0xa3   :  { %v792_v16 = vld [vmem:[#allocation8 + $0x80] sm:$0xff]  ;;  %v10288_v18 = vcombine.high %v784_v9, %v788_v10  ;;  %v793_v20 = vld [vmem:[#allocation8 + $0x88] sm:$0xff]  ;;  %v10290_v22 = vcombine.high %v785_v12, %v789_v13  ;;  %v10289_v27 = vcombine.low %v785_v12, %v789_v13 }
  0xa4   :  { %501 = vmatpush1.bf16.msra.mxu0 %v10259_v36  ;;  %v796_v17 = vld [vmem:[#allocation8 + $0xa0] sm:$0xff]  ;;  %v797_v21 = vld [vmem:[#allocation8 + $0xa8] sm:$0xff] }
  0xa5   :  { %580 = vmatprep.subr.bf16.mxu0 %v10248_v39  ;;  %542 = vmatpush1.bf16.msra.mxu1 %v10261_v40  ;;  %v800_v23 = vld [vmem:[#allocation8 + $0xc0] sm:$0xff]  ;;  %v10296_v25 = vcombine.high %v792_v16, %v796_v17  ;;  %v801_v28 = vld [vmem:[#allocation8 + $0xc8] sm:$0xff]  ;;  %v10298_v30 = vcombine.high %v793_v20, %v797_v21  ;;  %v10295_v31 = vcombine.low %v792_v16, %v796_v17 }
  0xa6   :  { %621 = vmatprep.subr.bf16.mxu1 %v10250_v43  ;;  %v804_v24 = vld [vmem:[#allocation8 + $0xe0] sm:$0xff]  ;;  %v805_v29 = vld [vmem:[#allocation8 + $0xe8] sm:$0xff]  ;;  %v10297_v35 = vcombine.low %v793_v20, %v797_v21 }
  0xa7   :  { %10273 = vmatmul.mubr.msk.bf16.vlgmr.msra.gmra.mrb[4].mxu0 %vm412_vm0, %v12466_v26  ;;  %v808_v32 = vld [vmem:[#allocation8 + $0x100] sm:$0xff]  ;;  %v10304_v34 = vcombine.high %v800_v23, %v804_v24  ;;  %v809_v36 = vld [vmem:[#allocation8 + $0x108] sm:$0xff]  ;;  %v10303_v38 = vcombine.low %v800_v23, %v804_v24  ;;  %v10305_v42 = vcombine.low %v801_v28, %v805_v29 }
  0xa8   :  { %581 = vmatpush1.bf16.msra.mxu0 %v10247_v44  ;;  %612 = vmatprep.mubr.bf16.mxu0 %v12314_v1  ;;  %v812_v33 = vld [vmem:[#allocation8 + $0x120] sm:$0xff]  ;;  %v813_v37 = vld [vmem:[#allocation8 + $0x128] sm:$0xff] }
  0xa9   :  { %10274 = vmatmul.mubr.msk.bf16.vlgmr.msra.gmra.mrb[4].mxu1 %vm412_vm0, %v12466_v26  ;;  %582 = vmatprep.subr.bf16.mxu0 %v10264_v47  ;;  %v816_v39 = vld [vmem:[#allocation8 + $0x140] sm:$0xff]  ;;  %v10312_v41 = vcombine.high %v808_v32, %v812_v33  ;;  %v817_v43 = vld [vmem:[#allocation8 + $0x148] sm:$0xff]  ;;  %v10314_v45 = vcombine.high %v809_v36, %v813_v37  ;;  %v10311_v46 = vcombine.low %v808_v32, %v812_v33 }
  0xaa   :  { %622 = vmatpush1.bf16.msra.mxu1 %v10249_v48  ;;  %653 = vmatprep.mubr.bf16.mxu1 %v12314_v1  ;;  %v820_v40 = vld [vmem:[#allocation8 + $0x160] sm:$0xff]  ;;  %v821_v44 = vld [vmem:[#allocation8 + $0x168] sm:$0xff]  ;;  %v10313_v50 = vcombine.low %v809_v36, %v813_v37 }
  0xab   :  { %623 = vmatprep.subr.bf16.mxu1 %v10266_v51  ;;  %v824_v47 = vld [vmem:[#allocation8 + $0x180] sm:$0xff]  ;;  %v10320_v49 = vcombine.high %v816_v39, %v820_v40  ;;  %v825_v51 = vld [vmem:[#allocation8 + $0x188] sm:$0xff]  ;;  %v10322_v53 = vcombine.high %v817_v43, %v821_v44  ;;  %v10319_v54 = vcombine.low %v816_v39, %v820_v40  ;;  %v10321_v58 = vcombine.low %v817_v43, %v821_v44 }
  0xac   :  { %583 = vmatpush1.bf16.msra.mxu0 %v10263_v52  ;;  %v828_v48 = vld [vmem:[#allocation8 + $0x1a0] sm:$0xff]  ;;  %v829_v52 = vld [vmem:[#allocation8 + $0x1a8] sm:$0xff] }
  0xad   :  { %662 = vmatprep.subr.bf16.mxu0 %v10252_v55  ;;  %v832_v55 = vld [vmem:[#allocation8 + $0x1c0] sm:$0xff]  ;;  %v10328_v57 = vcombine.high %v824_v47, %v828_v48  ;;  %v10330_v61 = vcombine.high %v825_v51, %v829_v52  ;;  %v10327_v62 = vcombine.low %v824_v47, %v828_v48  ;;  %v10329_v3 = vcombine.low %v825_v51, %v829_v52  ;;  %v849_v12 = vld [vmem:[#allocation8 + $0x248] sm:$0xff] }
  0xae   :  { %624 = vmatpush1.bf16.msra.mxu1 %v10265_v56  ;;  %v836_v56 = vld [vmem:[#allocation8 + $0x1e0] sm:$0xff]  ;;  %v853_v13 = vld [vmem:[#allocation8 + $0x268] sm:$0xff] }
  0xaf   :  { %10275 = vmatmul.mubr.msk.bf16.vlgmr.msra.gmra.mrb[8].mxu0 %vm412_vm0, %v12466_v26  ;;  %703 = vmatprep.subr.bf16.mxu1 %v10254_v59  ;;  %v833_v59 = vld [vmem:[#allocation8 + $0x1c8] sm:$0xff]  ;;  %v10336_v2 = vcombine.high %v832_v55, %v836_v56  ;;  %v10335_v7 = vcombine.low %v832_v55, %v836_v56  ;;  %v856_v16 = vld [vmem:[#allocation8 + $0x280] sm:$0xff] }
  0xb0   :  { %663 = vmatpush1.bf16.msra.mxu0 %v10251_v60  ;;  %694 = vmatprep.mubr.bf16.mxu0 %v12314_v1  ;;  %v837_v60 = vld [vmem:[#allocation8 + $0x1e8] sm:$0xff]  ;;  %v860_v17 = vld [vmem:[#allocation8 + $0x2a0] sm:$0xff] }
  0xb1   :  { %10276 = vmatmul.mubr.msk.bf16.vlgmr.msra.gmra.mrb[8].mxu1 %vm412_vm0, %v12466_v26  ;;  %664 = vmatprep.subr.bf16.mxu0 %v10268_v63  ;;  %v840_v63 = vld [vmem:[#allocation8 + $0x200] sm:$0xff]  ;;  %v10338_v6 = vcombine.high %v833_v59, %v837_v60  ;;  %v857_v20 = vld [vmem:[#allocation8 + $0x288] sm:$0xff] }
  0xb2   :  { %704 = vmatpush1.bf16.msra.mxu1 %v10253_v0  ;;  %735 = vmatprep.mubr.bf16.mxu1 %v12314_v1  ;;  %v10287_v1 = vcombine.low %v784_v9, %v788_v10  ;;  %v844_v0 = vld [vmem:[#allocation8 + $0x220] sm:$0xff]  ;;  %v861_v21 = vld [vmem:[#allocation8 + $0x2a8] sm:$0xff] }
  0xb3   :  { %705 = vmatprep.subr.bf16.mxu1 %v10270_v4  ;;  %v841_v4 = vld [vmem:[#allocation8 + $0x208] sm:$0xff]  ;;  %v852_v9 = vld [vmem:[#allocation8 + $0x260] sm:$0xff]  ;;  %v10344_v10 = vcombine.high %v840_v63, %v844_v0 }
  0xb4   :  { %665 = vmatpush1.bf16.msra.mxu0 %v10267_v5  ;;  %v845_v5 = vld [vmem:[#allocation8 + $0x228] sm:$0xff]  ;;  %v864_v23 = vld [vmem:[#allocation8 + $0x2c0] sm:$0xff] }
  0xb5   :  { %6962 = vmatprep.subr.bf16.mxu0 %v10280_v8  ;;  %v848_v8 = vld [vmem:[#allocation8 + $0x240] sm:$0xff]  ;;  %v873_v36 = vld [vmem:[#allocation8 + $0x308] sm:$0xff] }
  0xb6   :  { %706 = vmatpush1.bf16.msra.mxu1 %v10269_v11  ;;  %v10337_v11 = vcombine.low %v833_v59, %v837_v60  ;;  %v868_v24 = vld [vmem:[#allocation8 + $0x2e0] sm:$0xff]  ;;  %v877_v37 = vld [vmem:[#allocation8 + $0x328] sm:$0xff] }
  0xb7   :  { %10277 = vmatmul.mubr.msk.bf16.vlgmr.msra.gmra.mrb[12].mxu0 %vm412_vm0, %v12466_v26  ;;  %7290 = vmatprep.subr.bf16.mxu1 %v10282_v14  ;;  %v10346_v14 = vcombine.high %v841_v4, %v845_v5  ;;  %v872_v32 = vld [vmem:[#allocation8 + $0x300] sm:$0xff]  ;;  %v881_v43 = vld [vmem:[#allocation8 + $0x348] sm:$0xff]  ;;  %v10377_v48 = vcombine.low %v873_v36, %v877_v37 }
  0xb8   :  { %6963 = vmatpush1.bf16.msra.mxu0 %v10279_v15  ;;  %v10343_v15 = vcombine.low %v840_v63, %v844_v0  ;;  %v876_v33 = vld [vmem:[#allocation8 + $0x320] sm:$0xff]  ;;  %v885_v44 = vld [vmem:[#allocation8 + $0x368] sm:$0xff] }
  0xb9   :  { %10278 = vmatmul.mubr.msk.bf16.vlgmr.msra.gmra.mrb[12].mxu1 %vm412_vm0, %v12466_v26  ;;  %6964 = vmatprep.subr.bf16.mxu0 %v10288_v18  ;;  %v10306_v26 = vcombine.high %v801_v28, %v805_v29  ;;  %v10352_v18 = vcombine.high %v848_v8, %v852_v9  ;;  %v865_v28 = vld [vmem:[#allocation8 + $0x2c8] sm:$0xff]  ;;  %v880_v39 = vld [vmem:[#allocation8 + $0x340] sm:$0xff]  ;;  %v10385_v51 = vcombine.low %v881_v43, %v885_v44 }
  0xba   :  { %7291 = vmatpush1.bf16.msra.mxu1 %v10281_v19  ;;  %v10345_v19 = vcombine.low %v841_v4, %v845_v5  ;;  %v869_v29 = vld [vmem:[#allocation8 + $0x2e8] sm:$0xff]  ;;  %v884_v40 = vld [vmem:[#allocation8 + $0x360] sm:$0xff] }
  0xbb   :  { %7292 = vmatprep.subr.bf16.mxu1 %v10290_v22  ;;  %v10354_v22 = vcombine.high %v849_v12, %v853_v13  ;;  %v10384_v47 = vcombine.high %v880_v39, %v884_v40  ;;  %v888_v52 = vld [vmem:[#allocation8 + $0x380] sm:$0xff]  ;;  %v893_v56 = vld [vmem:[#allocation8 + $0x3a8] sm:$0xff] }
  0xbc   :  { %6965 = vmatpush1.bf16.msra.mxu0 %v10287_v1  ;;  %v10351_v1 = vcombine.low %v848_v8, %v852_v9  ;;  %v896_v60 = vld [vmem:[#allocation8 + $0x3c0] sm:$0xff]  ;;  %v901_v0 = vld [vmem:[#allocation8 + $0x3e8] sm:$0xff] }
  0xbd   :  { %6966 = vmatprep.subr.bf16.mxu0 %v10296_v25  ;;  %v10360_v25 = vcombine.high %v856_v16, %v860_v17  ;;  %v904_v5 = vld [vmem:[#allocation8 + $0x400] sm:$0xff]  ;;  %v909_v9 = vld [vmem:[#allocation8 + $0x428] sm:$0xff] }
  0xbe   :  { %7293 = vmatpush1.bf16.msra.mxu1 %v10289_v27  ;;  %v10353_v27 = vcombine.low %v849_v12, %v853_v13  ;;  %v172_v13 = vlaneseq }
  0xbf   :  { %7294 = vmatprep.subr.bf16.mxu1 %v10298_v30  ;;  %v10362_v30 = vcombine.high %v857_v20, %v861_v21 }
  0xc0   :  { %6967 = vmatpush1.bf16.msra.mxu0 %v10295_v31  ;;  %v10359_v31 = vcombine.low %v856_v16, %v860_v17  ;;  %v12495_v16 = vld [vmem:[#allocation7] sm:$0xff] }
  0xc1   :  { %6968 = vmatprep.subr.bf16.mxu0 %v10304_v34  ;;  %v10368_v34 = vcombine.high %v864_v23, %v868_v24 }
  0xc2   :  { %7295 = vmatpush1.bf16.msra.mxu1 %v10297_v35  ;;  %v10361_v35 = vcombine.low %v857_v20, %v861_v21 }
  0xc3   :  { %7296 = vmatprep.subr.bf16.mxu1 %v10306_v26  ;;  %v10370_v26 = vcombine.high %v865_v28, %v869_v29 }
  0xc4   :  { %6969 = vmatpush1.bf16.msra.mxu0 %v10303_v38  ;;  %v10367_v38 = vcombine.low %v864_v23, %v868_v24 }
  0xc5   :  { %6970 = vmatprep.subr.bf16.mxu0 %v10312_v41  ;;  %v10376_v41 = vcombine.high %v872_v32, %v876_v33 }
  0xc6   :  { %7297 = vmatpush1.bf16.msra.mxu1 %v10305_v42  ;;  %v10369_v42 = vcombine.low %v865_v28, %v869_v29 }
  0xc7   :  { %7298 = vmatprep.subr.bf16.mxu1 %v10314_v45  ;;  %v10378_v45 = vcombine.high %v873_v36, %v877_v37 }
  0xc8   :  { %6971 = vmatpush1.bf16.msra.mxu0 %v10311_v46  ;;  %v10375_v46 = vcombine.low %v872_v32, %v876_v33  ;;  %v916_v33 = vld [vmem:[#allocation8 + $0x460] sm:$0xff] }
  0xc9   :  { %6972 = vmatprep.subr.bf16.mxu0 %v10320_v49  ;;  %v10386_v49 = vcombine.high %v881_v43, %v885_v44  ;;  %v920_v43 = vld [vmem:[#allocation8 + $0x480] sm:$0xff] }
  0xca   :  { %7299 = vmatpush1.bf16.msra.mxu1 %v10313_v50  ;;  %v10383_v50 = vcombine.low %v880_v39, %v884_v40  ;;  %v924_v44 = vld [vmem:[#allocation8 + $0x4a0] sm:$0xff] }
  0xcb   :  { %7300 = vmatprep.subr.bf16.mxu1 %v10322_v53  ;;  %v892_v53 = vld [vmem:[#allocation8 + $0x3a0] sm:$0xff] }
  0xcc   :  { %6973 = vmatpush1.bf16.msra.mxu0 %v10319_v54  ;;  %v889_v54 = vld [vmem:[#allocation8 + $0x388] sm:$0xff]  ;;  %v10392_v55 = vcombine.high %v888_v52, %v892_v53 }
  0xcd   :  { %6974 = vmatprep.subr.bf16.mxu0 %v10328_v57  ;;  %v10391_v57 = vcombine.low %v888_v52, %v892_v53  ;;  %v10394_v59 = vcombine.high %v889_v54, %v893_v56  ;;  %v10424_v53 = vcombine.high %v920_v43, %v924_v44 }
  0xce   :  { %7301 = vmatpush1.bf16.msra.mxu1 %v10321_v58  ;;  %v10393_v58 = vcombine.low %v889_v54, %v893_v56 }
  0xcf   :  { %7302 = vmatprep.subr.bf16.mxu1 %v10330_v61  ;;  %v900_v61 = vld [vmem:[#allocation8 + $0x3e0] sm:$0xff] }
  0xd0   :  { %6975 = vmatpush1.bf16.msra.mxu0 %v10327_v62  ;;  %v897_v62 = vld [vmem:[#allocation8 + $0x3c8] sm:$0xff]  ;;  %v10400_v63 = vcombine.high %v896_v60, %v900_v61 }
  0xd1   :  { %6976 = vmatprep.subr.bf16.mxu0 %v10336_v2  ;;  %v10399_v2 = vcombine.low %v896_v60, %v900_v61  ;;  %v10402_v4 = vcombine.high %v897_v62, %v901_v0  ;;  %v10423_v60 = vcombine.low %v920_v43, %v924_v44  ;;  %v960_v44 = vld [vmem:[#allocation8 + $0x5c0] sm:$0xff] }
  0xd2   :  { %7303 = vmatpush1.bf16.msra.mxu1 %v10329_v3  ;;  %v10401_v3 = vcombine.low %v897_v62, %v901_v0  ;;  %v936_v0 = vld [vmem:[#allocation8 + $0x500] sm:$0xff] }
  0xd3   :  { %7304 = vmatprep.subr.bf16.mxu1 %v10338_v6  ;;  %v908_v6 = vld [vmem:[#allocation8 + $0x420] sm:$0xff] }
  0xd4   :  { %6977 = vmatpush1.bf16.msra.mxu0 %v10335_v7  ;;  %v905_v7 = vld [vmem:[#allocation8 + $0x408] sm:$0xff]  ;;  %v10408_v8 = vcombine.high %v904_v5, %v908_v6 }
  0xd5   :  { %6978 = vmatprep.subr.bf16.mxu0 %v10344_v10  ;;  %v10407_v10 = vcombine.low %v904_v5, %v908_v6  ;;  %v10410_v12 = vcombine.high %v905_v7, %v909_v9 }
  0xd6   :  { %7305 = vmatpush1.bf16.msra.mxu1 %v10337_v11  ;;  %v10409_v11 = vcombine.low %v905_v7, %v909_v9 }
  0xd7   :  { %7306 = vmatprep.subr.bf16.mxu1 %v10346_v14  ;;  %v12490_v14 = vshrl.u32 %v172_v13, 7  ;;  %v948_v13 = vld [vmem:[#allocation8 + $0x560] sm:$0xff] }
  0xd8   :  { %6979 = vmatpush1.bf16.msra.mxu0 %v10343_v15 }
  0xd9   :  { %6980 = vmatprep.subr.bf16.mxu0 %v10352_v18  ;;  %v12493_v15 = vsub.s32 0, %v12490_v14  ;;  %v12498_v17 = vsub.s32 1, %v12490_v14  ;;  %v12501_v18 = vsub.s32 3, %v12490_v14 }
  0xda   :  { %7307 = vmatpush1.bf16.msra.mxu1 %v10345_v19 }
  0xdb   :  { %7308 = vmatprep.subr.bf16.mxu1 %v10354_v22  ;;  %v175_v19 = vrot.slane %v12495_v16, %v12493_v15  ;;  %v179_v20 = vrot.slane %v12495_v16, %v12498_v17  ;;  %v187_v22 = vrot.slane %v12495_v16, %v12501_v18 }
  0xdc   :  { %6981 = vmatpush1.bf16.msra.mxu0 %v10351_v1 }
  0xdd   :  { %6982 = vmatprep.subr.bf16.mxu0 %v10360_v25 }
  0xde   :  { %7309 = vmatpush1.bf16.msra.mxu1 %v10353_v27 }
  0xdf   :  { %7310 = vmatprep.subr.bf16.mxu1 %v10362_v30  ;;  %v912_v30 = vld [vmem:[#allocation8 + $0x440] sm:$0xff] }
  0xe0   :  { %6983 = vmatpush1.bf16.msra.mxu0 %v10359_v31 }
  0xe1   :  { %6984 = vmatprep.subr.bf16.mxu0 %v10368_v34  ;;  %v913_v34 = vld [vmem:[#allocation8 + $0x448] sm:$0xff] }
  0xe2   :  { %7311 = vmatpush1.bf16.msra.mxu1 %v10361_v35  ;;  %v917_v35 = vld [vmem:[#allocation8 + $0x468] sm:$0xff] }
  0xe3   :  { %7312 = vmatprep.subr.bf16.mxu1 %v10370_v26 }
  0xe4   :  { %6985 = vmatpush1.bf16.msra.mxu0 %v10367_v38 }
  0xe5   :  { %6986 = vmatprep.subr.bf16.mxu0 %v10376_v41  ;;  %v10416_v41 = vcombine.high %v912_v30, %v916_v33 }
  0xe6   :  { %7313 = vmatpush1.bf16.msra.mxu1 %v10369_v42  ;;  %v10418_v42 = vcombine.high %v913_v34, %v917_v35 }
  0xe7   :  { %7314 = vmatprep.subr.bf16.mxu1 %v10378_v45  ;;  %v921_v45 = vld [vmem:[#allocation8 + $0x488] sm:$0xff] }
  0xe8   :  { %6987 = vmatpush1.bf16.msra.mxu0 %v10375_v46  ;;  %v925_v46 = vld [vmem:[#allocation8 + $0x4a8] sm:$0xff] }
  0xe9   :  { %6988 = vmatprep.subr.bf16.mxu0 %v10384_v47  ;;  %v10426_v54 = vcombine.high %v921_v45, %v925_v46  ;;  %v10425_v61 = vcombine.low %v921_v45, %v925_v46  ;;  %v964_v46 = vld [vmem:[#allocation8 + $0x5e0] sm:$0xff] }
  0xea   :  { %7315 = vmatpush1.bf16.msra.mxu1 %v10377_v48 }
  0xeb   :  { %7316 = vmatprep.subr.bf16.mxu1 %v10386_v49 }
  0xec   :  { %6989 = vmatpush1.bf16.msra.mxu0 %v10383_v50  ;;  %v10415_v50 = vcombine.low %v912_v30, %v916_v33  ;;  %v957_v33 = vld [vmem:[#allocation8 + $0x5a8] sm:$0xff] }
  0xed   :  { %6990 = vmatprep.subr.bf16.mxu0 %v10392_v55  ;;  %v928_v55 = vld [vmem:[#allocation8 + $0x4c0] sm:$0xff] }
  0xee   :  { %7317 = vmatpush1.bf16.msra.mxu1 %v10385_v51  ;;  %v10417_v51 = vcombine.low %v913_v34, %v917_v35  ;;  %v12539_v34 = vsub.s32 5, %v12490_v14 }
  0xef   :  { %7318 = vmatprep.subr.bf16.mxu1 %v10394_v59  ;;  %v933_v59 = vld [vmem:[#allocation8 + $0x4e8] sm:$0xff] }
  0xf0   :  { %6991 = vmatpush1.bf16.msra.mxu0 %v10391_v57  ;;  %v932_v57 = vld [vmem:[#allocation8 + $0x4e0] sm:$0xff] }
  0xf1   :  { %6992 = vmatprep.subr.bf16.mxu0 %v10400_v63  ;;  %v10432_v62 = vcombine.high %v928_v55, %v932_v57  ;;  %v10431_v6 = vcombine.low %v928_v55, %v932_v57 }
  0xf2   :  { %7319 = vmatpush1.bf16.msra.mxu1 %v10393_v58  ;;  %v929_v58 = vld [vmem:[#allocation8 + $0x4c8] sm:$0xff] }
  0xf3   :  { %7320 = vmatprep.subr.bf16.mxu1 %v10402_v4  ;;  %v10434_v63 = vcombine.high %v929_v58, %v933_v59  ;;  %v941_v4 = vld [vmem:[#allocation8 + $0x528] sm:$0xff]  ;;  %v10433_v7 = vcombine.low %v929_v58, %v933_v59  ;;  %v968_v58 = vld [vmem:[#allocation8 + $0x600] sm:$0xff] }
  0xf4   :  { %6993 = vmatpush1.bf16.msra.mxu0 %v10399_v2  ;;  %v940_v2 = vld [vmem:[#allocation8 + $0x520] sm:$0xff] }
  0xf5   :  { %7003 = vmatprep.subr.bf16.mxu0 %v10408_v8  ;;  %v10440_v9 = vcombine.high %v936_v0, %v940_v2  ;;  %v972_v59 = vld [vmem:[#allocation8 + $0x620] sm:$0xff] }
  0xf6   :  { %7321 = vmatpush1.bf16.msra.mxu1 %v10401_v3  ;;  %v937_v3 = vld [vmem:[#allocation8 + $0x508] sm:$0xff] }
  0xf7   :  { %7331 = vmatprep.subr.bf16.mxu1 %v10410_v12 }
 0x172   :  { %v450_v21 = vpop.f32.mrb[0].mxu0  ;;  %v12509_v27 = vpop.f32.mrb[0].mxu1 }
 0x173   :  { %v451_v1 = vadd.f32 %v450_v21, %v175_v19  ;;  %v452_v23 = vpop.f32.mrb[1].mxu0  ;;  %v493_v31 = vpop.f32.mrb[1].mxu1  ;;  %v945_v19 = vld [vmem:[#allocation8 + $0x548] sm:$0xff] }
 0x174   :  { %v453_v24 = vadd.f32 %v452_v23, %v179_v20  ;;  %v454_v25 = vpop.f32.mrb[2].mxu0  ;;  %v494_v36 = vadd.f32 %v493_v31, %v187_v22  ;;  %v495_v37 = vpop.f32.mrb[2].mxu1  ;;  %v949_v20 = vld [vmem:[#allocation8 + $0x568] sm:$0xff]  ;;  %v12532_v22 = vsub.s32 4, %v12490_v14  ;;  %v10441_v23 = vcombine.low %v937_v3, %v941_v4  ;;  %v956_v31 = vld [vmem:[#allocation8 + $0x5a0] sm:$0xff] }
 0x175   :  { %v744_v28 = vmax.f32 %v451_v1, 0.0  ;;  %v455_v29 = vpop.f32.mrb[3].mxu0  ;;  %v496_v26 = vpop.f32.mrb[3].mxu1  ;;  %v10439_v1 = vcombine.low %v936_v0, %v940_v2  ;;  %v10472_v0 = vcombine.high %v968_v58, %v972_v59 }
 0x176   :  { %v745_v32 = vmax.f32 %v453_v24, 0.0  ;;  %v747_v39 = vmax.f32 %v494_v36, 0.0  ;;  %v12534_v24 = vld [vmem:[#allocation7 + $0x8] sm:$0xff]  ;;  %v952_v29 = vld [vmem:[#allocation8 + $0x580] sm:$0xff]  ;;  %v10449_v26 = vcombine.low %v945_v19, %v949_v20 }
 0x177   :  { %v12513_v40 = vpack.c.bf16 %v744_v28, %v744_v28  ;;  %v10450_v28 = vcombine.high %v945_v19, %v949_v20  ;;  %v223_v30 = vrot.slane %v12534_v24, %v12532_v22  ;;  %v984_v19 = vld [vmem:[#allocation8 + $0x680] sm:$0xff] }
 0x178   :  { %v12511_v38 = vpack.c.bf16 %v745_v32, %v745_v32  ;;  %v12517_v47 = vpack.c.bf16 %v747_v39, %v747_v39  ;;  %v953_v32 = vld [vmem:[#allocation8 + $0x588] sm:$0xff]  ;;  %v227_v39 = vrot.slane %v12534_v24, %v12539_v34 }
 0x179   :  { %v10458_v43 = vcombine.high %v953_v32, %v957_v33  ;;  %v10457_v55 = vcombine.low %v953_v32, %v957_v33  ;;  %v992_v33 = vld [vmem:[#allocation8 + $0x6c0] sm:$0xff] }
 0x17a   :  { %6994 = vmatprep.mubr.bf16.mxu0 %v12511_v38  ;;  %7322 = vmatprep.mubr.bf16.mxu1 %v12511_v38  ;;  %v12519_v48 = vpop.f32.mrb[4].mxu0 }
 0x17b   :  { %6995 = vmatmul.mubr.bf16.vlgmr.msra.gmra.mrb[16].mxu0 %v12513_v40  ;;  %7323 = vmatmul.mubr.bf16.vlgmr.msra.gmra.mrb[16].mxu1 %v12513_v40  ;;  %v12523_v49 = vpop.f32.mrb[5].mxu0 }
 0x17c   :  { %7004 = vmatpush1.bf16.msra.mxu0 %v10407_v10  ;;  %7332 = vmatpush1.bf16.msra.mxu1 %v10409_v11  ;;  %v536_v52 = vpop.f32.mrb[6].mxu0  ;;  %v10442_v10 = vcombine.high %v937_v3, %v941_v4  ;;  %v944_v11 = vld [vmem:[#allocation8 + $0x540] sm:$0xff] }
 0x17d   :  { %7005 = vmatprep.subr.bf16.mxu0 %v10416_v41  ;;  %7333 = vmatprep.subr.bf16.mxu1 %v10418_v42  ;;  %v537_v56 = vpop.f32.mrb[7].mxu0  ;;  %v10448_v25 = vcombine.high %v944_v11, %v948_v13  ;;  %v10447_v37 = vcombine.low %v944_v11, %v948_v13  ;;  %v10456_v42 = vcombine.high %v952_v29, %v956_v31  ;;  %v976_v3 = vld [vmem:[#allocation8 + $0x640] sm:$0xff]  ;;  %v12547_v11 = vpop.f32.mrb[4].mxu1 }
 0x17e   :  { %7035 = vmatprep.mubr.bf16.mxu0 %v12517_v47  ;;  %7363 = vmatprep.mubr.bf16.mxu1 %v12517_v47  ;;  %v10464_v56 = vcombine.high %v960_v44, %v964_v46  ;;  %v980_v4 = vld [vmem:[#allocation8 + $0x660] sm:$0xff]  ;;  %v12549_v20 = vpop.f32.mrb[5].mxu1 }
 0x180   :  { %7006 = vmatpush1.bf16.msra.mxu0 %v10415_v50  ;;  %7334 = vmatpush1.bf16.msra.mxu1 %v10417_v51  ;;  %v961_v50 = vld [vmem:[#allocation8 + $0x5c8] sm:$0xff] }
 0x181   :  { %7007 = vmatprep.subr.bf16.mxu0 %v10424_v53  ;;  %7335 = vmatprep.subr.bf16.mxu1 %v10426_v54  ;;  %v965_v51 = vld [vmem:[#allocation8 + $0x5e8] sm:$0xff]  ;;  %v10455_v54 = vcombine.low %v952_v29, %v956_v31  ;;  %v10479_v29 = vcombine.low %v976_v3, %v980_v4 }
 0x182   :  { %v12527_v5 = vpop.f32.mrb[8].mxu0  ;;  %v10466_v57 = vcombine.high %v961_v50, %v965_v51 }
 0x183   :  { %v12529_v8 = vpop.f32.mrb[9].mxu0 }
 0x184   :  { %7008 = vmatpush1.bf16.msra.mxu0 %v10423_v60  ;;  %7336 = vmatpush1.bf16.msra.mxu1 %v10425_v61  ;;  %v618_v12 = vpop.f32.mrb[10].mxu0  ;;  %v969_v60 = vld [vmem:[#allocation8 + $0x608] sm:$0xff] }
 0x185   :  { %7009 = vmatprep.subr.bf16.mxu0 %v10432_v62  ;;  %7337 = vmatprep.subr.bf16.mxu1 %v10434_v63  ;;  %v619_v21 = vpop.f32.mrb[11].mxu0  ;;  %v973_v61 = vld [vmem:[#allocation8 + $0x628] sm:$0xff]  ;;  %v10463_v62 = vcombine.low %v960_v44, %v964_v46  ;;  %v10465_v63 = vcombine.low %v961_v50, %v965_v51  ;;  %v10480_v12 = vcombine.high %v976_v3, %v980_v4  ;;  %v1000_v50 = vld [vmem:[#allocation8 + $0x700] sm:$0xff] }
 0x186   :  { %v10474_v2 = vcombine.high %v969_v60, %v973_v61  ;;  %v988_v21 = vld [vmem:[#allocation8 + $0x6a0] sm:$0xff]  ;;  %v219_v51 = vrot.slane %v12534_v24, %v12501_v18  ;;  %v1009_v4 = vld [vmem:[#allocation8 + $0x748] sm:$0xff] }
 0x187   :  { %v10488_v31 = vcombine.high %v984_v19, %v988_v21  ;;  %v1012_v3 = vld [vmem:[#allocation8 + $0x760] sm:$0xff] }
 0x188   :  { %7010 = vmatpush1.bf16.msra.mxu0 %v10431_v6  ;;  %7338 = vmatpush1.bf16.msra.mxu1 %v10433_v7  ;;  %v977_v6 = vld [vmem:[#allocation8 + $0x648] sm:$0xff] }
 0x189   :  { %7011 = vmatprep.subr.bf16.mxu0 %v10440_v9  ;;  %7339 = vmatprep.subr.bf16.mxu1 %v10442_v10  ;;  %v981_v7 = vld [vmem:[#allocation8 + $0x668] sm:$0xff]  ;;  %v10471_v9 = vcombine.low %v968_v58, %v972_v59  ;;  %v10473_v10 = vcombine.low %v969_v60, %v973_v61 }
 0x18a   :  { %v696_v35 = vpop.f32.mrb[12].mxu0  ;;  %v10482_v13 = vcombine.high %v977_v6, %v981_v7 }
 0x18b   :  { %v12541_v36 = vadd.f32 %v696_v35, %v223_v30  ;;  %v698_v41 = vpop.f32.mrb[13].mxu0  ;;  %v10481_v30 = vcombine.low %v977_v6, %v981_v7  ;;  %v996_v35 = vld [vmem:[#allocation8 + $0x6e0] sm:$0xff]  ;;  %v1013_v6 = vld [vmem:[#allocation8 + $0x768] sm:$0xff]  ;;  %v12563_v7 = vsub.s32 6, %v12490_v14 }
 0x18c   :  { %7012 = vmatpush1.bf16.msra.mxu0 %v10439_v1  ;;  %7340 = vmatpush1.bf16.msra.mxu1 %v10441_v23  ;;  %v700_v45 = vpop.f32.mrb[14].mxu0  ;;  %v12545_v52 = vadd.f32 %v698_v41, %v227_v39  ;;  %v985_v1 = vld [vmem:[#allocation8 + $0x688] sm:$0xff]  ;;  %v12552_v39 = vsub.s32 2, %v12490_v14  ;;  %v10487_v41 = vcombine.low %v984_v19, %v988_v21  ;;  %v10495_v61 = vcombine.low %v992_v33, %v996_v35 }
 0x18d   :  { %7013 = vmatprep.subr.bf16.mxu0 %v10448_v25  ;;  %7341 = vmatprep.subr.bf16.mxu1 %v10450_v28  ;;  %v701_v53 = vpop.f32.mrb[15].mxu0  ;;  %v989_v23 = vld [vmem:[#allocation8 + $0x6a8] sm:$0xff]  ;;  %v577_v25 = vpop.f32.mrb[6].mxu1  ;;  %v10496_v45 = vcombine.high %v992_v33, %v996_v35 }
 0x18e   :  { %v578_v28 = vpop.f32.mrb[7].mxu1  ;;  %v10490_v32 = vcombine.high %v985_v1, %v989_v23  ;;  %v1016_v25 = vld [vmem:[#allocation8 + $0x780] sm:$0xff]  ;;  %v183_v35 = vrot.slane %v12495_v16, %v12552_v39 }
 0x18f   :  { %v655_v44 = vpop.f32.mrb[8].mxu1 }
 0x190   :  { %7014 = vmatpush1.bf16.msra.mxu0 %v10447_v37  ;;  %7342 = vmatpush1.bf16.msra.mxu1 %v10449_v26  ;;  %v993_v37 = vld [vmem:[#allocation8 + $0x6c8] sm:$0xff]  ;;  %v657_v53 = vpop.f32.mrb[9].mxu1 }
 0x191   :  { %7015 = vmatprep.subr.bf16.mxu0 %v10456_v42  ;;  %7343 = vmatprep.subr.bf16.mxu1 %v10458_v43  ;;  %v997_v26 = vld [vmem:[#allocation8 + $0x6e8] sm:$0xff]  ;;  %v10489_v42 = vcombine.low %v985_v1, %v989_v23  ;;  %v215_v43 = vrot.slane %v12534_v24, %v12552_v39  ;;  %v659_v58 = vpop.f32.mrb[10].mxu1  ;;  %v12560_v59 = vadd.f32 %v657_v53, %v219_v51 }
 0x192   :  { %v10498_v46 = vcombine.high %v993_v37, %v997_v26  ;;  %v660_v60 = vpop.f32.mrb[11].mxu1  ;;  %v10514_v23 = vcombine.high %v1009_v4, %v1013_v6  ;;  %v492_v51 = vadd.f32 %v12509_v27, %v183_v35  ;;  %v1032_v58 = vld [vmem:[#allocation8 + $0x800] sm:$0xff] }
 0x193   :  { %v737_v19 = vpop.f32.mrb[12].mxu1  ;;  %v1036_v60 = vld [vmem:[#allocation8 + $0x820] sm:$0xff] }
 0x194   :  { %7016 = vmatpush1.bf16.msra.mxu0 %v10455_v54  ;;  %7344 = vmatpush1.bf16.msra.mxu1 %v10457_v55  ;;  %v1004_v54 = vld [vmem:[#allocation8 + $0x720] sm:$0xff]  ;;  %v1001_v55 = vld [vmem:[#allocation8 + $0x708] sm:$0xff]  ;;  %v739_v28 = vpop.f32.mrb[13].mxu1  ;;  %v10536_v27 = vcombine.high %v1032_v58, %v1036_v60 }
 0x195   :  { %7017 = vmatprep.subr.bf16.mxu0 %v10464_v56  ;;  %7345 = vmatprep.subr.bf16.mxu1 %v10466_v57  ;;  %v1005_v56 = vld [vmem:[#allocation8 + $0x728] sm:$0xff]  ;;  %v12558_v57 = vadd.f32 %v655_v44, %v215_v43  ;;  %v741_v33 = vpop.f32.mrb[14].mxu1  ;;  %v1024_v43 = vld [vmem:[#allocation8 + $0x7c0] sm:$0xff] }
 0x196   :  { %v1028_v44 = vld [vmem:[#allocation8 + $0x7e0] sm:$0xff] }
 0x198   :  { %7018 = vmatpush1.bf16.msra.mxu0 %v10463_v62  ;;  %7346 = vmatpush1.bf16.msra.mxu1 %v10465_v63  ;;  %v10497_v62 = vcombine.low %v993_v37, %v997_v26  ;;  %v10504_v63 = vcombine.high %v1000_v50, %v1004_v54  ;;  %v742_v37 = vpop.f32.mrb[15].mxu1  ;;  %v10513_v26 = vcombine.low %v1009_v4, %v1013_v6  ;;  %v1040_v6 = vld [vmem:[#allocation8 + $0x840] sm:$0xff] }
 0x199   :  { %7019 = vmatprep.subr.bf16.mxu0 %v10472_v0  ;;  %7347 = vmatprep.subr.bf16.mxu1 %v10474_v2  ;;  %v10506_v0 = vcombine.high %v1001_v55, %v1005_v56  ;;  %v1008_v2 = vld [vmem:[#allocation8 + $0x740] sm:$0xff] }
 0x19a   :  { %v10512_v1 = vcombine.high %v1008_v2, %v1012_v3 }
 0x19c   :  { %7020 = vmatpush1.bf16.msra.mxu0 %v10471_v9  ;;  %7348 = vmatpush1.bf16.msra.mxu1 %v10473_v10  ;;  %v12566_v9 = vsub.s32 7, %v12490_v14  ;;  %v10503_v10 = vcombine.low %v1000_v50, %v1004_v54  ;;  %v1017_v14 = vld [vmem:[#allocation8 + $0x788] sm:$0xff]  ;;  %v195_v50 = vrot.slane %v12495_v16, %v12539_v34 }
 0x19d   :  { %7021 = vmatprep.subr.bf16.mxu0 %v10480_v12  ;;  %7349 = vmatprep.subr.bf16.mxu1 %v10482_v13  ;;  %v10505_v12 = vcombine.low %v1001_v55, %v1005_v56  ;;  %v231_v13 = vrot.slane %v12534_v24, %v12563_v7  ;;  %v10528_v55 = vcombine.high %v1024_v43, %v1028_v44 }
 0x19e   :  { %v235_v21 = vrot.slane %v12534_v24, %v12566_v9  ;;  %v10511_v24 = vcombine.low %v1008_v2, %v1012_v3  ;;  %v10527_v2 = vcombine.low %v1024_v43, %v1028_v44  ;;  %v1057_v43 = vld [vmem:[#allocation8 + $0x8c8] sm:$0xff] }
 0x19f   :  { %v1061_v44 = vld [vmem:[#allocation8 + $0x8e8] sm:$0xff] }
 0x1a0   :  { %7022 = vmatpush1.bf16.msra.mxu0 %v10479_v29  ;;  %7350 = vmatpush1.bf16.msra.mxu1 %v10481_v30  ;;  %v1020_v29 = vld [vmem:[#allocation8 + $0x7a0] sm:$0xff]  ;;  %v1021_v30 = vld [vmem:[#allocation8 + $0x7a8] sm:$0xff] }
 0x1a1   :  { %7023 = vmatprep.subr.bf16.mxu0 %v10488_v31  ;;  %7351 = vmatprep.subr.bf16.mxu1 %v10490_v32  ;;  %v12572_v31 = vadd.f32 %v737_v19, %v231_v13  ;;  %v12574_v32 = vadd.f32 %v739_v28, %v235_v21  ;;  %v10519_v53 = vcombine.low %v1016_v25, %v1020_v29  ;;  %v1045_v13 = vld [vmem:[#allocation8 + $0x868] sm:$0xff]  ;;  %v1048_v28 = vld [vmem:[#allocation8 + $0x880] sm:$0xff] }
 0x1a2   :  { %v10521_v54 = vcombine.low %v1017_v14, %v1021_v30 }
 0x1a4   :  { %7024 = vmatpush1.bf16.msra.mxu0 %v10487_v41  ;;  %7352 = vmatpush1.bf16.msra.mxu1 %v10489_v42  ;;  %v10520_v41 = vcombine.high %v1016_v25, %v1020_v29  ;;  %v10522_v42 = vcombine.high %v1017_v14, %v1021_v30  ;;  %v1052_v29 = vld [vmem:[#allocation8 + $0x8a0] sm:$0xff]  ;;  %v1049_v14 = vld [vmem:[#allocation8 + $0x888] sm:$0xff] }
 0x1a5   :  { %7025 = vmatprep.subr.bf16.mxu0 %v10496_v45  ;;  %7353 = vmatprep.subr.bf16.mxu1 %v10498_v46  ;;  %v1025_v45 = vld [vmem:[#allocation8 + $0x7c8] sm:$0xff] }
 0x1a6   :  { %v1029_v46 = vld [vmem:[#allocation8 + $0x7e8] sm:$0xff] }
 0x1a7   :  { %v10530_v56 = vcombine.high %v1025_v45, %v1029_v46  ;;  %v10529_v3 = vcombine.low %v1025_v45, %v1029_v46  ;;  %v1053_v30 = vld [vmem:[#allocation8 + $0x8a8] sm:$0xff]  ;;  %v10551_v45 = vcombine.low %v1048_v28, %v1052_v29 }
 0x1a8   :  { %7026 = vmatpush1.bf16.msra.mxu0 %v10495_v61  ;;  %7354 = vmatpush1.bf16.msra.mxu1 %v10497_v62  ;;  %v1033_v61 = vld [vmem:[#allocation8 + $0x808] sm:$0xff]  ;;  %v10553_v46 = vcombine.low %v1049_v14, %v1053_v30 }
 0x1a9   :  { %7027 = vmatprep.subr.bf16.mxu0 %v10504_v63  ;;  %7355 = vmatprep.subr.bf16.mxu1 %v10506_v0  ;;  %v1037_v62 = vld [vmem:[#allocation8 + $0x828] sm:$0xff]  ;;  %v535_v63 = vadd.f32 %v12523_v49, %v195_v50  ;;  %v746_v0 = vmax.f32 %v492_v51, 0.0  ;;  %v10562_v51 = vcombine.high %v1057_v43, %v1061_v44 }
 0x1aa   :  { %v10538_v4 = vcombine.high %v1033_v61, %v1037_v62  ;;  %v10537_v49 = vcombine.low %v1033_v61, %v1037_v62 }
 0x1ab   :  { %v749_v19 = vmax.f32 %v535_v63, 0.0  ;;  %v12582_v21 = vpack.c.bf16 %v746_v0, %v746_v0  ;;  %v1072_v63 = vld [vmem:[#allocation8 + $0x940] sm:$0xff] }
 0x1ac   :  { %7028 = vmatpush1.bf16.msra.mxu0 %v10503_v10  ;;  %7356 = vmatpush1.bf16.msra.mxu1 %v10505_v12  ;;  %v1044_v10 = vld [vmem:[#allocation8 + $0x860] sm:$0xff]  ;;  %v1041_v12 = vld [vmem:[#allocation8 + $0x848] sm:$0xff] }
 0x1ad   :  { %7029 = vmatprep.subr.bf16.mxu0 %v10512_v1  ;;  %7357 = vmatprep.subr.bf16.mxu1 %v10514_v23  ;;  %v10535_v1 = vcombine.low %v1032_v58, %v1036_v60  ;;  %v10544_v23 = vcombine.high %v1040_v6, %v1044_v10  ;;  %v10546_v25 = vcombine.high %v1041_v12, %v1045_v13  ;;  %v1076_v0 = vld [vmem:[#allocation8 + $0x960] sm:$0xff] }
 0x1ae   :  { %v12584_v33 = vpack.c.bf16 %v749_v19, %v749_v19  ;;  %v10543_v35 = vcombine.low %v1040_v6, %v1044_v10  ;;  %v10545_v37 = vcombine.low %v1041_v12, %v1045_v13  ;;  %v10561_v60 = vcombine.low %v1057_v43, %v1061_v44  ;;  %v1080_v12 = vld [vmem:[#allocation8 + $0x980] sm:$0xff]  ;;  %v1081_v19 = vld [vmem:[#allocation8 + $0x988] sm:$0xff] }
 0x1af   :  { %v10576_v6 = vcombine.high %v1072_v63, %v1076_v0  ;;  %v1084_v13 = vld [vmem:[#allocation8 + $0x9a0] sm:$0xff]  ;;  %v1097_v44 = vld [vmem:[#allocation8 + $0xa08] sm:$0xff] }
 0x1b0   :  { %7030 = vmatpush1.bf16.msra.mxu0 %v10511_v24  ;;  %7358 = vmatpush1.bf16.msra.mxu1 %v10513_v26  ;;  %v10552_v24 = vcombine.high %v1048_v28, %v1052_v29  ;;  %v10554_v26 = vcombine.high %v1049_v14, %v1053_v30  ;;  %v1088_v29 = vld [vmem:[#allocation8 + $0x9c0] sm:$0xff]  ;;  %v1089_v30 = vld [vmem:[#allocation8 + $0x9c8] sm:$0xff] }
 0x1b1   :  { %7031 = vmatprep.subr.bf16.mxu0 %v10520_v41  ;;  %7359 = vmatprep.subr.bf16.mxu1 %v10522_v42  ;;  %v1056_v41 = vld [vmem:[#allocation8 + $0x8c0] sm:$0xff] }
 0x1b2   :  { %v1060_v42 = vld [vmem:[#allocation8 + $0x8e0] sm:$0xff] }
 0x1b3   :  { %v10560_v50 = vcombine.high %v1056_v41, %v1060_v42  ;;  %v10559_v58 = vcombine.low %v1056_v41, %v1060_v42  ;;  %v1092_v14 = vld [vmem:[#allocation8 + $0x9e0] sm:$0xff] }
 0x1b4   :  { %7032 = vmatpush1.bf16.msra.mxu0 %v10519_v53  ;;  %7360 = vmatpush1.bf16.msra.mxu1 %v10521_v54  ;;  %v1064_v53 = vld [vmem:[#allocation8 + $0x900] sm:$0xff] }
 0x1b5   :  { %7033 = vmatprep.subr.bf16.mxu0 %v10528_v55  ;;  %7361 = vmatprep.subr.bf16.mxu1 %v10530_v56  ;;  %v1068_v54 = vld [vmem:[#allocation8 + $0x920] sm:$0xff]  ;;  %v1065_v55 = vld [vmem:[#allocation8 + $0x908] sm:$0xff] }
 0x1b6   :  { %v1069_v56 = vld [vmem:[#allocation8 + $0x928] sm:$0xff]  ;;  %v10568_v61 = vcombine.high %v1064_v53, %v1068_v54  ;;  %v1096_v42 = vld [vmem:[#allocation8 + $0xa00] sm:$0xff] }
 0x1b7   :  { %v10570_v62 = vcombine.high %v1065_v55, %v1069_v56  ;;  %v1100_v43 = vld [vmem:[#allocation8 + $0xa20] sm:$0xff] }
 0x1b8   :  { %7034 = vmatpush1.bf16.msra.mxu0 %v10527_v2  ;;  %7362 = vmatpush1.bf16.msra.mxu1 %v10529_v3  ;;  %v1073_v2 = vld [vmem:[#allocation8 + $0x948] sm:$0xff] }
 0x1b9   :  { %7044 = vmatprep.subr.bf16.mxu0 %v10536_v27  ;;  %7372 = vmatprep.subr.bf16.mxu1 %v10538_v4  ;;  %v1077_v3 = vld [vmem:[#allocation8 + $0x968] sm:$0xff]  ;;  %v10567_v27 = vcombine.low %v1064_v53, %v1068_v54  ;;  %v10569_v4 = vcombine.low %v1065_v55, %v1069_v56  ;;  %v1104_v54 = vld [vmem:[#allocation8 + $0xa40] sm:$0xff] }
 0x1ba   :  { %v10578_v10 = vcombine.high %v1073_v2, %v1077_v3  ;;  %v1108_v55 = vld [vmem:[#allocation8 + $0xa60] sm:$0xff]  ;;  %v1105_v56 = vld [vmem:[#allocation8 + $0xa48] sm:$0xff] }
 0x1bb   :  { %7036 = vmatmul.mubr.bf16.vlgmr.msra.gmra.mrb[16].mxu0 %v12582_v21  ;;  %7364 = vmatmul.mubr.bf16.vlgmr.msra.gmra.mrb[16].mxu1 %v12582_v21 }
 0x1bc   :  { %7045 = vmatpush1.bf16.msra.mxu0 %v10535_v1  ;;  %7373 = vmatpush1.bf16.msra.mxu1 %v10537_v49  ;;  %v1085_v1 = vld [vmem:[#allocation8 + $0x9a8] sm:$0xff]  ;;  %v10575_v49 = vcombine.low %v1072_v63, %v1076_v0  ;;  %v1112_v0 = vld [vmem:[#allocation8 + $0xa80] sm:$0xff] }
 0x1bd   :  { %7046 = vmatprep.subr.bf16.mxu0 %v10544_v23  ;;  %7374 = vmatprep.subr.bf16.mxu1 %v10546_v25  ;;  %v10577_v23 = vcombine.low %v1073_v2, %v1077_v3  ;;  %v10584_v25 = vcombine.high %v1080_v12, %v1084_v13  ;;  %v10586_v28 = vcombine.high %v1081_v19, %v1085_v1  ;;  %v1116_v2 = vld [vmem:[#allocation8 + $0xaa0] sm:$0xff]  ;;  %v1113_v3 = vld [vmem:[#allocation8 + $0xa88] sm:$0xff] }
 0x1be   :  { %7076 = vmatprep.mubr.bf16.mxu0 %v12584_v33  ;;  %7404 = vmatprep.mubr.bf16.mxu1 %v12584_v33 }
 0x1c0   :  { %7047 = vmatpush1.bf16.msra.mxu0 %v10543_v35  ;;  %7375 = vmatpush1.bf16.msra.mxu1 %v10545_v37  ;;  %v1093_v35 = vld [vmem:[#allocation8 + $0x9e8] sm:$0xff]  ;;  %v10583_v37 = vcombine.low %v1080_v12, %v1084_v13  ;;  %v1120_v13 = vld [vmem:[#allocation8 + $0xac0] sm:$0xff] }
 0x1c1   :  { %7048 = vmatprep.subr.bf16.mxu0 %v10552_v24  ;;  %7376 = vmatprep.subr.bf16.mxu1 %v10554_v26  ;;  %v10585_v24 = vcombine.low %v1081_v19, %v1085_v1  ;;  %v10592_v26 = vcombine.high %v1088_v29, %v1092_v14  ;;  %v10594_v41 = vcombine.high %v1089_v30, %v1093_v35  ;;  %v1124_v19 = vld [vmem:[#allocation8 + $0xae0] sm:$0xff]  ;;  %v1121_v1 = vld [vmem:[#allocation8 + $0xac8] sm:$0xff] }
 0x1c4   :  { %7049 = vmatpush1.bf16.msra.mxu0 %v10551_v45  ;;  %7377 = vmatpush1.bf16.msra.mxu1 %v10553_v46  ;;  %v1101_v45 = vld [vmem:[#allocation8 + $0xa28] sm:$0xff]  ;;  %v10591_v46 = vcombine.low %v1088_v29, %v1092_v14  ;;  %v1128_v14 = vld [vmem:[#allocation8 + $0xb00] sm:$0xff] }
 0x1c5   :  { %7050 = vmatprep.subr.bf16.mxu0 %v10560_v50  ;;  %7378 = vmatprep.subr.bf16.mxu1 %v10562_v51  ;;  %v10593_v50 = vcombine.low %v1089_v30, %v1093_v35  ;;  %v10600_v51 = vcombine.high %v1096_v42, %v1100_v43  ;;  %v10602_v53 = vcombine.high %v1097_v44, %v1101_v45  ;;  %v1132_v30 = vld [vmem:[#allocation8 + $0xb20] sm:$0xff]  ;;  %v1129_v35 = vld [vmem:[#allocation8 + $0xb08] sm:$0xff] }
 0x1c8   :  { %7051 = vmatpush1.bf16.msra.mxu0 %v10559_v58  ;;  %7379 = vmatpush1.bf16.msra.mxu1 %v10561_v60  ;;  %v1109_v58 = vld [vmem:[#allocation8 + $0xa68] sm:$0xff]  ;;  %v10599_v60 = vcombine.low %v1096_v42, %v1100_v43  ;;  %v1136_v43 = vld [vmem:[#allocation8 + $0xb40] sm:$0xff] }
 0x1c9   :  { %7052 = vmatprep.subr.bf16.mxu0 %v10568_v61  ;;  %7380 = vmatprep.subr.bf16.mxu1 %v10570_v62  ;;  %v10601_v61 = vcombine.low %v1097_v44, %v1101_v45  ;;  %v10608_v62 = vcombine.high %v1104_v54, %v1108_v55  ;;  %v10610_v63 = vcombine.high %v1105_v56, %v1109_v58  ;;  %v1140_v44 = vld [vmem:[#allocation8 + $0xb60] sm:$0xff]  ;;  %v1137_v45 = vld [vmem:[#allocation8 + $0xb48] sm:$0xff] }
 0x1cc   :  { %7053 = vmatpush1.bf16.msra.mxu0 %v10567_v27  ;;  %7381 = vmatpush1.bf16.msra.mxu1 %v10569_v4  ;;  %v1117_v27 = vld [vmem:[#allocation8 + $0xaa8] sm:$0xff]  ;;  %v10607_v4 = vcombine.low %v1104_v54, %v1108_v55  ;;  %v1144_v55 = vld [vmem:[#allocation8 + $0xb80] sm:$0xff] }
 0x1cd   :  { %7054 = vmatprep.subr.bf16.mxu0 %v10576_v6  ;;  %7382 = vmatprep.subr.bf16.mxu1 %v10578_v10  ;;  %v10609_v6 = vcombine.low %v1105_v56, %v1109_v58  ;;  %v10616_v10 = vcombine.high %v1112_v0, %v1116_v2  ;;  %v10618_v12 = vcombine.high %v1113_v3, %v1117_v27  ;;  %v1148_v56 = vld [vmem:[#allocation8 + $0xba0] sm:$0xff]  ;;  %v1145_v58 = vld [vmem:[#allocation8 + $0xb88] sm:$0xff] }
 0x1d0   :  { %7055 = vmatpush1.bf16.msra.mxu0 %v10575_v49  ;;  %7383 = vmatpush1.bf16.msra.mxu1 %v10577_v23  ;;  %v1125_v49 = vld [vmem:[#allocation8 + $0xae8] sm:$0xff]  ;;  %v10615_v23 = vcombine.low %v1112_v0, %v1116_v2  ;;  %v10648_v0 = vcombine.high %v1144_v55, %v1148_v56 }
 0x1d1   :  { %7056 = vmatprep.subr.bf16.mxu0 %v10584_v25  ;;  %7384 = vmatprep.subr.bf16.mxu1 %v10586_v28  ;;  %v10617_v25 = vcombine.low %v1113_v3, %v1117_v27  ;;  %v10624_v28 = vcombine.high %v1120_v13, %v1124_v19  ;;  %v10626_v29 = vcombine.high %v1121_v1, %v1125_v49  ;;  %v1152_v3 = vld [vmem:[#allocation8 + $0xbc0] sm:$0xff] }
 0x1d2   :  { %v1156_v27 = vld [vmem:[#allocation8 + $0xbe0] sm:$0xff] }
 0x1d4   :  { %7057 = vmatpush1.bf16.msra.mxu0 %v10583_v37  ;;  %7385 = vmatpush1.bf16.msra.mxu1 %v10585_v24  ;;  %v1133_v37 = vld [vmem:[#allocation8 + $0xb28] sm:$0xff]  ;;  %v10623_v24 = vcombine.low %v1120_v13, %v1124_v19  ;;  %v10647_v13 = vcombine.low %v1144_v55, %v1148_v56 }
 0x1d5   :  { %7058 = vmatprep.subr.bf16.mxu0 %v10592_v26  ;;  %7386 = vmatprep.subr.bf16.mxu1 %v10594_v41  ;;  %v10625_v26 = vcombine.low %v1121_v1, %v1125_v49  ;;  %v10632_v41 = vcombine.high %v1128_v14, %v1132_v30  ;;  %v10634_v42 = vcombine.high %v1129_v35, %v1133_v37  ;;  %v1181_v55 = vld [vmem:[#allocation8 + $0xca8] sm:$0xff] }
 0x1d6   :  { %v10656_v1 = vcombine.high %v1152_v3, %v1156_v27 }
 0x1d8   :  { %7059 = vmatpush1.bf16.msra.mxu0 %v10591_v46  ;;  %7387 = vmatpush1.bf16.msra.mxu1 %v10593_v50  ;;  %v1141_v46 = vld [vmem:[#allocation8 + $0xb68] sm:$0xff]  ;;  %v10631_v50 = vcombine.low %v1128_v14, %v1132_v30 }
 0x1d9   :  { %7060 = vmatprep.subr.bf16.mxu0 %v10600_v51  ;;  %7388 = vmatprep.subr.bf16.mxu1 %v10602_v53  ;;  %v10633_v51 = vcombine.low %v1129_v35, %v1133_v37  ;;  %v10640_v53 = vcombine.high %v1136_v43, %v1140_v44  ;;  %v10642_v54 = vcombine.high %v1137_v45, %v1141_v46 }
 0x1dc   :  { %7061 = vmatpush1.bf16.msra.mxu0 %v10599_v60  ;;  %7389 = vmatpush1.bf16.msra.mxu1 %v10601_v61  ;;  %v1149_v60 = vld [vmem:[#allocation8 + $0xba8] sm:$0xff]  ;;  %v191_v61 = vrot.slane %v12495_v16, %v12532_v22 }
 0x1dd   :  { %7062 = vmatprep.subr.bf16.mxu0 %v10608_v62  ;;  %7390 = vmatprep.subr.bf16.mxu1 %v10610_v63  ;;  %v10639_v62 = vcombine.low %v1136_v43, %v1140_v44  ;;  %v10641_v63 = vcombine.low %v1137_v45, %v1141_v46  ;;  %v10650_v2 = vcombine.high %v1145_v58, %v1149_v60 }
 0x1de   :  { %v10649_v19 = vcombine.low %v1145_v58, %v1149_v60 }
 0x1e0   :  { %7063 = vmatpush1.bf16.msra.mxu0 %v10607_v4  ;;  %7391 = vmatpush1.bf16.msra.mxu1 %v10609_v6  ;;  %v1153_v4 = vld [vmem:[#allocation8 + $0xbc8] sm:$0xff] }
 0x1e1   :  { %7064 = vmatprep.subr.bf16.mxu0 %v10616_v10  ;;  %7392 = vmatprep.subr.bf16.mxu1 %v10618_v12  ;;  %v1157_v6 = vld [vmem:[#allocation8 + $0xbe8] sm:$0xff]  ;;  %v203_v10 = vrot.slane %v12495_v16, %v12566_v9  ;;  %v533_v12 = vadd.f32 %v12519_v48, %v191_v61  ;;  %v10655_v16 = vcombine.low %v1152_v3, %v1156_v27 }
 0x1e2   :  { %v10658_v49 = vcombine.high %v1153_v4, %v1157_v6  ;;  %v10657_v35 = vcombine.low %v1153_v4, %v1157_v6  ;;  %v1189_v3 = vld [vmem:[#allocation8 + $0xce8] sm:$0xff] }
 0x1e3   :  { %v576_v14 = vadd.f32 %v12549_v20, %v203_v10  ;;  %v748_v30 = vmax.f32 %v533_v12, 0.0  ;;  %v1192_v12 = vld [vmem:[#allocation8 + $0xd00] sm:$0xff] }
 0x1e4   :  { %7065 = vmatpush1.bf16.msra.mxu0 %v10615_v23  ;;  %7393 = vmatpush1.bf16.msra.mxu1 %v10617_v25  ;;  %v1160_v23 = vld [vmem:[#allocation8 + $0xc00] sm:$0xff] }
 0x1e5   :  { %7066 = vmatprep.subr.bf16.mxu0 %v10624_v28  ;;  %7394 = vmatprep.subr.bf16.mxu1 %v10626_v29  ;;  %v1164_v25 = vld [vmem:[#allocation8 + $0xc20] sm:$0xff]  ;;  %v1161_v28 = vld [vmem:[#allocation8 + $0xc08] sm:$0xff]  ;;  %v751_v43 = vmax.f32 %v576_v14, 0.0  ;;  %v12596_v44 = vpack.c.bf16 %v748_v30, %v748_v30 }
 0x1e6   :  { %v1165_v29 = vld [vmem:[#allocation8 + $0xc28] sm:$0xff]  ;;  %v10664_v48 = vcombine.high %v1160_v23, %v1164_v25  ;;  %v10663_v45 = vcombine.low %v1160_v23, %v1164_v25  ;;  %v1204_v14 = vld [vmem:[#allocation8 + $0xd60] sm:$0xff] }
 0x1e7   :  { %v10666_v37 = vcombine.high %v1161_v28, %v1165_v29  ;;  %v10665_v20 = vcombine.low %v1161_v28, %v1165_v29  ;;  %v12598_v56 = vpack.c.bf16 %v751_v43, %v751_v43  ;;  %v1200_v29 = vld [vmem:[#allocation8 + $0xd40] sm:$0xff]  ;;  %v1201_v30 = vld [vmem:[#allocation8 + $0xd48] sm:$0xff] }
 0x1e8   :  { %7067 = vmatpush1.bf16.msra.mxu0 %v10623_v24  ;;  %7395 = vmatpush1.bf16.msra.mxu1 %v10625_v26  ;;  %v1168_v24 = vld [vmem:[#allocation8 + $0xc40] sm:$0xff]  ;;  %v1213_v43 = vld [vmem:[#allocation8 + $0xda8] sm:$0xff] }
 0x1e9   :  { %7068 = vmatprep.subr.bf16.mxu0 %v10632_v41  ;;  %7396 = vmatprep.subr.bf16.mxu1 %v10634_v42  ;;  %v1172_v26 = vld [vmem:[#allocation8 + $0xc60] sm:$0xff]  ;;  %v1169_v41 = vld [vmem:[#allocation8 + $0xc48] sm:$0xff] }
 0x1ea   :  { %v1173_v42 = vld [vmem:[#allocation8 + $0xc68] sm:$0xff]  ;;  %v10672_v46 = vcombine.high %v1168_v24, %v1172_v26  ;;  %v10671_v58 = vcombine.low %v1168_v24, %v1172_v26  ;;  %v1208_v26 = vld [vmem:[#allocation8 + $0xd80] sm:$0xff] }
 0x1eb   :  { %v10673_v60 = vcombine.low %v1169_v41, %v1173_v42 }
 0x1ec   :  { %7069 = vmatpush1.bf16.msra.mxu0 %v10631_v50  ;;  %7397 = vmatpush1.bf16.msra.mxu1 %v10633_v51  ;;  %v10674_v50 = vcombine.high %v1169_v41, %v1173_v42  ;;  %v1176_v51 = vld [vmem:[#allocation8 + $0xc80] sm:$0xff]  ;;  %v1209_v42 = vld [vmem:[#allocation8 + $0xd88] sm:$0xff] }
 0x1ed   :  { %7070 = vmatprep.subr.bf16.mxu0 %v10640_v53  ;;  %7398 = vmatprep.subr.bf16.mxu1 %v10642_v54  ;;  %v1180_v53 = vld [vmem:[#allocation8 + $0xca0] sm:$0xff]  ;;  %v1177_v54 = vld [vmem:[#allocation8 + $0xc88] sm:$0xff] }
 0x1ee   :  { %v10680_v61 = vcombine.high %v1176_v51, %v1180_v53  ;;  %v10679_v27 = vcombine.low %v1176_v51, %v1180_v53  ;;  %v10681_v4 = vcombine.low %v1177_v54, %v1181_v55  ;;  %v1212_v41 = vld [vmem:[#allocation8 + $0xda0] sm:$0xff] }
 0x1ef   :  { %v1216_v51 = vld [vmem:[#allocation8 + $0xdc0] sm:$0xff] }
 0x1f0   :  { %7071 = vmatpush1.bf16.msra.mxu0 %v10639_v62  ;;  %7399 = vmatpush1.bf16.msra.mxu1 %v10641_v63  ;;  %v10682_v62 = vcombine.high %v1177_v54, %v1181_v55  ;;  %v1184_v63 = vld [vmem:[#allocation8 + $0xcc0] sm:$0xff]  ;;  %v1217_v54 = vld [vmem:[#allocation8 + $0xdc8] sm:$0xff] }
 0x1f1   :  { %7072 = vmatprep.subr.bf16.mxu0 %v10648_v0  ;;  %7400 = vmatprep.subr.bf16.mxu1 %v10650_v2  ;;  %v1188_v0 = vld [vmem:[#allocation8 + $0xce0] sm:$0xff]  ;;  %v1185_v2 = vld [vmem:[#allocation8 + $0xcc8] sm:$0xff] }
 0x1f2   :  { %v10688_v6 = vcombine.high %v1184_v63, %v1188_v0  ;;  %v10690_v10 = vcombine.high %v1185_v2, %v1189_v3  ;;  %v10689_v23 = vcombine.low %v1185_v2, %v1189_v3  ;;  %v1220_v53 = vld [vmem:[#allocation8 + $0xde0] sm:$0xff]  ;;  %v1221_v55 = vld [vmem:[#allocation8 + $0xde8] sm:$0xff] }
 0x1f3   :  { %v1225_v2 = vld [vmem:[#allocation8 + $0xe08] sm:$0xff] }
 0x1f4   :  { %7073 = vmatpush1.bf16.msra.mxu0 %v10647_v13  ;;  %7401 = vmatpush1.bf16.msra.mxu1 %v10649_v19  ;;  %v1196_v13 = vld [vmem:[#allocation8 + $0xd20] sm:$0xff]  ;;  %v1193_v19 = vld [vmem:[#allocation8 + $0xd08] sm:$0xff] }
 0x1f5   :  { %7074 = vmatprep.subr.bf16.mxu0 %v10656_v1  ;;  %7402 = vmatprep.subr.bf16.mxu1 %v10658_v49  ;;  %v1197_v1 = vld [vmem:[#allocation8 + $0xd28] sm:$0xff]  ;;  %v10687_v49 = vcombine.low %v1184_v63, %v1188_v0  ;;  %v10696_v25 = vcombine.high %v1192_v12, %v1196_v13  ;;  %v1224_v63 = vld [vmem:[#allocation8 + $0xe00] sm:$0xff] }
 0x1f6   :  { %v10698_v28 = vcombine.high %v1193_v19, %v1197_v1  ;;  %v1228_v0 = vld [vmem:[#allocation8 + $0xe20] sm:$0xff]  ;;  %v1229_v3 = vld [vmem:[#allocation8 + $0xe28] sm:$0xff] }
 0x1f8   :  { %7075 = vmatpush1.bf16.msra.mxu0 %v10655_v16  ;;  %7403 = vmatpush1.bf16.msra.mxu1 %v10657_v35  ;;  %v1205_v16 = vld [vmem:[#allocation8 + $0xd68] sm:$0xff]  ;;  %v10695_v35 = vcombine.low %v1192_v12, %v1196_v13  ;;  %v1232_v12 = vld [vmem:[#allocation8 + $0xe40] sm:$0xff] }
 0x1f9   :  { %7085 = vmatprep.subr.bf16.mxu0 %v10664_v48  ;;  %7413 = vmatprep.subr.bf16.mxu1 %v10666_v37  ;;  %v10697_v48 = vcombine.low %v1193_v19, %v1197_v1  ;;  %v10704_v37 = vcombine.high %v1200_v29, %v1204_v14  ;;  %v10706_v24 = vcombine.high %v1201_v30, %v1205_v16  ;;  %v1236_v13 = vld [vmem:[#allocation8 + $0xe60] sm:$0xff]  ;;  %v1233_v19 = vld [vmem:[#allocation8 + $0xe48] sm:$0xff] }
 0x1fa   :  { %v1237_v1 = vld [vmem:[#allocation8 + $0xe68] sm:$0xff] }
 0x1fb   :  { %7077 = vmatmul.mubr.bf16.vlgmr.msra.gmra.mrb[16].mxu0 %v12596_v44  ;;  %7405 = vmatmul.mubr.bf16.vlgmr.msra.gmra.mrb[16].mxu1 %v12596_v44 }
 0x1fc   :  { %7086 = vmatpush1.bf16.msra.mxu0 %v10663_v45  ;;  %7414 = vmatpush1.bf16.msra.mxu1 %v10665_v20  ;;  %v10703_v45 = vcombine.low %v1200_v29, %v1204_v14  ;;  %v10705_v20 = vcombine.low %v1201_v30, %v1205_v16  ;;  %v1240_v29 = vld [vmem:[#allocation8 + $0xe80] sm:$0xff]  ;;  %v1241_v30 = vld [vmem:[#allocation8 + $0xe88] sm:$0xff] }
 0x1fd   :  { %7087 = vmatprep.subr.bf16.mxu0 %v10672_v46  ;;  %7415 = vmatprep.subr.bf16.mxu1 %v10674_v50  ;;  %v10712_v46 = vcombine.high %v1208_v26, %v1212_v41  ;;  %v10714_v50 = vcombine.high %v1209_v42, %v1213_v43  ;;  %v1244_v14 = vld [vmem:[#allocation8 + $0xea0] sm:$0xff]  ;;  %v1245_v16 = vld [vmem:[#allocation8 + $0xea8] sm:$0xff] }
 0x1fe   :  { %7117 = vmatprep.mubr.bf16.mxu0 %v12598_v56  ;;  %7445 = vmatprep.mubr.bf16.mxu1 %v12598_v56 }
 0x200   :  { %7088 = vmatpush1.bf16.msra.mxu0 %v10671_v58  ;;  %7416 = vmatpush1.bf16.msra.mxu1 %v10673_v60  ;;  %v10711_v58 = vcombine.low %v1208_v26, %v1212_v41  ;;  %v10713_v60 = vcombine.low %v1209_v42, %v1213_v43  ;;  %v1248_v26 = vld [vmem:[#allocation8 + $0xec0] sm:$0xff]  ;;  %v1249_v42 = vld [vmem:[#allocation8 + $0xec8] sm:$0xff] }
 0x201   :  { %7089 = vmatprep.subr.bf16.mxu0 %v10680_v61  ;;  %7417 = vmatprep.subr.bf16.mxu1 %v10682_v62  ;;  %v10720_v61 = vcombine.high %v1216_v51, %v1220_v53  ;;  %v10722_v62 = vcombine.high %v1217_v54, %v1221_v55  ;;  %v1252_v41 = vld [vmem:[#allocation8 + $0xee0] sm:$0xff]  ;;  %v1253_v43 = vld [vmem:[#allocation8 + $0xee8] sm:$0xff] }
 0x204   :  { %7090 = vmatpush1.bf16.msra.mxu0 %v10679_v27  ;;  %7418 = vmatpush1.bf16.msra.mxu1 %v10681_v4  ;;  %v10719_v27 = vcombine.low %v1216_v51, %v1220_v53  ;;  %v10721_v4 = vcombine.low %v1217_v54, %v1221_v55  ;;  %v1256_v51 = vld [vmem:[#allocation8 + $0xf00] sm:$0xff]  ;;  %v1257_v54 = vld [vmem:[#allocation8 + $0xf08] sm:$0xff] }
 0x205   :  { %7091 = vmatprep.subr.bf16.mxu0 %v10688_v6  ;;  %7419 = vmatprep.subr.bf16.mxu1 %v10690_v10  ;;  %v10728_v6 = vcombine.high %v1224_v63, %v1228_v0  ;;  %v10730_v10 = vcombine.high %v1225_v2, %v1229_v3  ;;  %v1260_v53 = vld [vmem:[#allocation8 + $0xf20] sm:$0xff]  ;;  %v1261_v55 = vld [vmem:[#allocation8 + $0xf28] sm:$0xff] }
 0x208   :  { %7092 = vmatpush1.bf16.msra.mxu0 %v10687_v49  ;;  %7420 = vmatpush1.bf16.msra.mxu1 %v10689_v23  ;;  %v10727_v49 = vcombine.low %v1224_v63, %v1228_v0  ;;  %v10729_v23 = vcombine.low %v1225_v2, %v1229_v3  ;;  %v1264_v63 = vld [vmem:[#allocation8 + $0xf40] sm:$0xff]  ;;  %v1265_v2 = vld [vmem:[#allocation8 + $0xf48] sm:$0xff] }
 0x209   :  { %7093 = vmatprep.subr.bf16.mxu0 %v10696_v25  ;;  %7421 = vmatprep.subr.bf16.mxu1 %v10698_v28  ;;  %v10736_v25 = vcombine.high %v1232_v12, %v1236_v13  ;;  %v10738_v28 = vcombine.high %v1233_v19, %v1237_v1  ;;  %v1268_v0 = vld [vmem:[#allocation8 + $0xf60] sm:$0xff]  ;;  %v1269_v3 = vld [vmem:[#allocation8 + $0xf68] sm:$0xff] }
 0x20c   :  { %7094 = vmatpush1.bf16.msra.mxu0 %v10695_v35  ;;  %7422 = vmatpush1.bf16.msra.mxu1 %v10697_v48  ;;  %v10735_v35 = vcombine.low %v1232_v12, %v1236_v13  ;;  %v10737_v48 = vcombine.low %v1233_v19, %v1237_v1  ;;  %v1272_v12 = vld [vmem:[#allocation8 + $0xf80] sm:$0xff]  ;;  %v1273_v19 = vld [vmem:[#allocation8 + $0xf88] sm:$0xff] }
 0x20d   :  { %7095 = vmatprep.subr.bf16.mxu0 %v10704_v37  ;;  %7423 = vmatprep.subr.bf16.mxu1 %v10706_v24  ;;  %v10744_v37 = vcombine.high %v1240_v29, %v1244_v14  ;;  %v10746_v24 = vcombine.high %v1241_v30, %v1245_v16  ;;  %v1276_v13 = vld [vmem:[#allocation8 + $0xfa0] sm:$0xff]  ;;  %v1277_v1 = vld [vmem:[#allocation8 + $0xfa8] sm:$0xff] }
 0x210   :  { %7096 = vmatpush1.bf16.msra.mxu0 %v10703_v45  ;;  %7424 = vmatpush1.bf16.msra.mxu1 %v10705_v20  ;;  %v10743_v45 = vcombine.low %v1240_v29, %v1244_v14  ;;  %v10745_v20 = vcombine.low %v1241_v30, %v1245_v16  ;;  %v10776_v29 = vcombine.high %v1272_v12, %v1276_v13  ;;  %v1280_v30 = vld [vmem:[#allocation8 + $0xfc0] sm:$0xff]  ;;  %v12605_v16 = vld [vmem:[#allocation7 + $0x8] sm:$0xff] }
 0x211   :  { %7097 = vmatprep.subr.bf16.mxu0 %v10712_v46  ;;  %7425 = vmatprep.subr.bf16.mxu1 %v10714_v50  ;;  %v10752_v46 = vcombine.high %v1248_v26, %v1252_v41  ;;  %v10754_v50 = vcombine.high %v1249_v42, %v1253_v43  ;;  %v10778_v14 = vcombine.high %v1273_v19, %v1277_v1 }
 0x214   :  { %7098 = vmatpush1.bf16.msra.mxu0 %v10711_v58  ;;  %7426 = vmatpush1.bf16.msra.mxu1 %v10713_v60  ;;  %v10751_v58 = vcombine.low %v1248_v26, %v1252_v41  ;;  %v10753_v60 = vcombine.low %v1249_v42, %v1253_v43  ;;  %v10775_v26 = vcombine.low %v1272_v12, %v1276_v13  ;;  %v1304_v12 = vld [vmem:[#allocation8 + $0x1080] sm:$0xff] }
 0x215   :  { %7099 = vmatprep.subr.bf16.mxu0 %v10720_v61  ;;  %7427 = vmatprep.subr.bf16.mxu1 %v10722_v62  ;;  %v10760_v61 = vcombine.high %v1256_v51, %v1260_v53  ;;  %v10762_v62 = vcombine.high %v1257_v54, %v1261_v55  ;;  %v10777_v41 = vcombine.low %v1273_v19, %v1277_v1  ;;  %v1308_v13 = vld [vmem:[#allocation8 + $0x10a0] sm:$0xff]  ;;  %v1305_v19 = vld [vmem:[#allocation8 + $0x1088] sm:$0xff] }
 0x216   :  { %v1309_v1 = vld [vmem:[#allocation8 + $0x10a8] sm:$0xff] }
 0x218   :  { %7100 = vmatpush1.bf16.msra.mxu0 %v10719_v27  ;;  %7428 = vmatpush1.bf16.msra.mxu1 %v10721_v4  ;;  %v10759_v27 = vcombine.low %v1256_v51, %v1260_v53  ;;  %v10761_v4 = vcombine.low %v1257_v54, %v1261_v55  ;;  %v1289_v51 = vld [vmem:[#allocation8 + $0x1008] sm:$0xff] }
 0x219   :  { %7101 = vmatprep.subr.bf16.mxu0 %v10728_v6  ;;  %7429 = vmatprep.subr.bf16.mxu1 %v10730_v10  ;;  %v10768_v6 = vcombine.high %v1264_v63, %v1268_v0  ;;  %v10770_v10 = vcombine.high %v1265_v2, %v1269_v3  ;;  %v1293_v53 = vld [vmem:[#allocation8 + $0x1028] sm:$0xff] }
 0x21c   :  { %7102 = vmatpush1.bf16.msra.mxu0 %v10727_v49  ;;  %7430 = vmatpush1.bf16.msra.mxu1 %v10729_v23  ;;  %v10767_v49 = vcombine.low %v1264_v63, %v1268_v0  ;;  %v10769_v23 = vcombine.low %v1265_v2, %v1269_v3  ;;  %v1300_v63 = vld [vmem:[#allocation8 + $0x1060] sm:$0xff]  ;;  %v1297_v0 = vld [vmem:[#allocation8 + $0x1048] sm:$0xff] }
 0x21d   :  { %7103 = vmatprep.subr.bf16.mxu0 %v10736_v25  ;;  %7431 = vmatprep.subr.bf16.mxu1 %v10738_v28  ;;  %v12111_v25 = vld [vmem:[#allocation7] sm:$0xff]  ;;  %v1301_v2 = vld [vmem:[#allocation8 + $0x1068] sm:$0xff] }
 0x21e   :  { %v199_v28 = vrot.slane %v12111_v25, %v12563_v7  ;;  %v10808_v25 = vcombine.high %v1304_v12, %v1308_v13 }
 0x220   :  { %7104 = vmatpush1.bf16.msra.mxu0 %v10735_v35  ;;  %7432 = vmatpush1.bf16.msra.mxu1 %v10737_v48  ;;  %v211_v35 = vrot.slane %v12605_v16, %v12498_v17  ;;  %v1284_v48 = vld [vmem:[#allocation8 + $0xfe0] sm:$0xff]  ;;  %v574_v42 = vadd.f32 %v12547_v11, %v199_v28  ;;  %v10810_v28 = vcombine.high %v1305_v19, %v1309_v1 }
 0x221   :  { %7105 = vmatprep.subr.bf16.mxu0 %v10744_v37  ;;  %7433 = vmatprep.subr.bf16.mxu1 %v10746_v24  ;;  %v1281_v37 = vld [vmem:[#allocation8 + $0xfc8] sm:$0xff]  ;;  %v10784_v43 = vcombine.high %v1280_v30, %v1284_v48  ;;  %v10783_v54 = vcombine.low %v1280_v30, %v1284_v48  ;;  %v10807_v48 = vcombine.low %v1304_v12, %v1308_v13  ;;  %v1344_v13 = vld [vmem:[#allocation8 + $0x11c0] sm:$0xff] }
 0x222   :  { %v1285_v24 = vld [vmem:[#allocation8 + $0xfe8] sm:$0xff] }
 0x223   :  { %v10785_v55 = vcombine.low %v1281_v37, %v1285_v24  ;;  %v1313_v30 = vld [vmem:[#allocation8 + $0x10c8] sm:$0xff] }
 0x224   :  { %7106 = vmatpush1.bf16.msra.mxu0 %v10743_v45  ;;  %7434 = vmatpush1.bf16.msra.mxu1 %v10745_v20  ;;  %v10786_v45 = vcombine.high %v1281_v37, %v1285_v24  ;;  %v1288_v20 = vld [vmem:[#allocation8 + $0x1000] sm:$0xff]  ;;  %v10809_v37 = vcombine.low %v1305_v19, %v1309_v1  ;;  %v1345_v1 = vld [vmem:[#allocation8 + $0x11c8] sm:$0xff] }
 0x225   :  { %7107 = vmatprep.subr.bf16.mxu0 %v10752_v46  ;;  %7435 = vmatprep.subr.bf16.mxu1 %v10754_v50  ;;  %v617_v46 = vadd.f32 %v12529_v8, %v211_v35  ;;  %v1292_v50 = vld [vmem:[#allocation8 + $0x1020] sm:$0xff]  ;;  %v1317_v35 = vld [vmem:[#allocation8 + $0x10e8] sm:$0xff] }
 0x226   :  { %v10791_v8 = vcombine.low %v1288_v20, %v1292_v50  ;;  %v1348_v19 = vld [vmem:[#allocation8 + $0x11e0] sm:$0xff] }
 0x227   :  { %v753_v11 = vmax.f32 %v617_v46, 0.0  ;;  %v10817_v46 = vcombine.low %v1313_v30, %v1317_v35 }
 0x228   :  { %7108 = vmatpush1.bf16.msra.mxu0 %v10751_v58  ;;  %7436 = vmatpush1.bf16.msra.mxu1 %v10753_v60  ;;  %v750_v58 = vmax.f32 %v574_v42, 0.0  ;;  %v10792_v60 = vcombine.high %v1288_v20, %v1292_v50  ;;  %v1324_v42 = vld [vmem:[#allocation8 + $0x1120] sm:$0xff] }
 0x229   :  { %7109 = vmatprep.subr.bf16.mxu0 %v10760_v61  ;;  %7437 = vmatprep.subr.bf16.mxu1 %v10762_v62  ;;  %v10794_v61 = vcombine.high %v1289_v51, %v1293_v53  ;;  %v1296_v62 = vld [vmem:[#allocation8 + $0x1040] sm:$0xff] }
 0x22a   :  { %v12611_v3 = vpack.c.bf16 %v750_v58, %v750_v58  ;;  %v1333_v58 = vld [vmem:[#allocation8 + $0x1168] sm:$0xff] }
 0x22c   :  { %7110 = vmatpush1.bf16.msra.mxu0 %v10759_v27  ;;  %7438 = vmatpush1.bf16.msra.mxu1 %v10761_v4  ;;  %v10793_v27 = vcombine.low %v1289_v51, %v1293_v53  ;;  %v12613_v4 = vpack.c.bf16 %v753_v11, %v753_v11  ;;  %v1328_v53 = vld [vmem:[#allocation8 + $0x1140] sm:$0xff] }
 0x22d   :  { %7111 = vmatprep.subr.bf16.mxu0 %v10768_v6  ;;  %7439 = vmatprep.subr.bf16.mxu1 %v10770_v10  ;;  %v10800_v6 = vcombine.high %v1296_v62, %v1300_v63  ;;  %v10802_v10 = vcombine.high %v1297_v0, %v1301_v2 }
 0x230   :  { %7112 = vmatpush1.bf16.msra.mxu0 %v10767_v49  ;;  %7440 = vmatpush1.bf16.msra.mxu1 %v10769_v23  ;;  %v10799_v49 = vcombine.low %v1296_v62, %v1300_v63  ;;  %v10801_v23 = vcombine.low %v1297_v0, %v1301_v2  ;;  %v1336_v63 = vld [vmem:[#allocation8 + $0x1180] sm:$0xff]  ;;  %v1337_v2 = vld [vmem:[#allocation8 + $0x1188] sm:$0xff] }
 0x231   :  { %7113 = vmatprep.subr.bf16.mxu0 %v10776_v29  ;;  %7441 = vmatprep.subr.bf16.mxu1 %v10778_v14  ;;  %v1312_v29 = vld [vmem:[#allocation8 + $0x10c0] sm:$0xff] }
 0x232   :  { %v1316_v14 = vld [vmem:[#allocation8 + $0x10e0] sm:$0xff] }
 0x233   :  { %v10816_v24 = vcombine.high %v1312_v29, %v1316_v14  ;;  %v10815_v20 = vcombine.low %v1312_v29, %v1316_v14  ;;  %v1340_v0 = vld [vmem:[#allocation8 + $0x11a0] sm:$0xff] }
 0x234   :  { %7114 = vmatpush1.bf16.msra.mxu0 %v10775_v26  ;;  %7442 = vmatpush1.bf16.msra.mxu1 %v10777_v41  ;;  %v10818_v26 = vcombine.high %v1313_v30, %v1317_v35  ;;  %v1320_v41 = vld [vmem:[#allocation8 + $0x1100] sm:$0xff]  ;;  %v1353_v35 = vld [vmem:[#allocation8 + $0x1208] sm:$0xff] }
 0x235   :  { %7115 = vmatprep.subr.bf16.mxu0 %v10784_v43  ;;  %7443 = vmatprep.subr.bf16.mxu1 %v10786_v45  ;;  %v1321_v43 = vld [vmem:[#allocation8 + $0x1108] sm:$0xff]  ;;  %v10824_v50 = vcombine.high %v1320_v41, %v1324_v42  ;;  %v1352_v14 = vld [vmem:[#allocation8 + $0x1200] sm:$0xff] }
 0x236   :  { %v1325_v45 = vld [vmem:[#allocation8 + $0x1128] sm:$0xff]  ;;  %v1356_v30 = vld [vmem:[#allocation8 + $0x1220] sm:$0xff] }
 0x237   :  { %v10826_v51 = vcombine.high %v1321_v43, %v1325_v45 }
 0x238   :  { %7116 = vmatpush1.bf16.msra.mxu0 %v10783_v54  ;;  %7444 = vmatpush1.bf16.msra.mxu1 %v10785_v55  ;;  %v1332_v54 = vld [vmem:[#allocation8 + $0x1160] sm:$0xff]  ;;  %v1329_v55 = vld [vmem:[#allocation8 + $0x1148] sm:$0xff] }
 0x239   :  { %7126 = vmatprep.subr.bf16.mxu0 %v10792_v60  ;;  %7454 = vmatprep.subr.bf16.mxu1 %v10794_v61  ;;  %v10823_v60 = vcombine.low %v1320_v41, %v1324_v42  ;;  %v10825_v61 = vcombine.low %v1321_v43, %v1325_v45  ;;  %v10832_v11 = vcombine.high %v1328_v53, %v1332_v54  ;;  %v1360_v42 = vld [vmem:[#allocation8 + $0x1240] sm:$0xff]  ;;  %v1361_v45 = vld [vmem:[#allocation8 + $0x1248] sm:$0xff] }
 0x23a   :  { %v10834_v62 = vcombine.high %v1329_v55, %v1333_v58  ;;  %v1364_v43 = vld [vmem:[#allocation8 + $0x1260] sm:$0xff] }
 0x23b   :  { %7118 = vmatmul.mubr.bf16.vlgmr.msra.gmra.mrb[16].mxu0 %v12611_v3  ;;  %7446 = vmatmul.mubr.bf16.vlgmr.msra.gmra.mrb[16].mxu1 %v12611_v3 }
 0x23c   :  { %7127 = vmatpush1.bf16.msra.mxu0 %v10791_v8  ;;  %7158 = vmatprep.mubr.bf16.mxu0 %v12613_v4  ;;  %v1341_v8 = vld [vmem:[#allocation8 + $0x11a8] sm:$0xff] }
 0x23d   :  { %7455 = vmatpush1.bf16.msra.mxu1 %v10793_v27  ;;  %7486 = vmatprep.mubr.bf16.mxu1 %v12613_v4  ;;  %v10831_v27 = vcombine.low %v1328_v53, %v1332_v54  ;;  %v10842_v12 = vcombine.high %v1337_v2, %v1341_v8  ;;  %v1368_v54 = vld [vmem:[#allocation8 + $0x1280] sm:$0xff] }
 0x23e   :  { %7128 = vmatprep.subr.bf16.mxu0 %v10800_v6  ;;  %7456 = vmatprep.subr.bf16.mxu1 %v10802_v10  ;;  %v10833_v6 = vcombine.low %v1329_v55, %v1333_v58  ;;  %v10840_v10 = vcombine.high %v1336_v63, %v1340_v0  ;;  %v1372_v55 = vld [vmem:[#allocation8 + $0x12a0] sm:$0xff]  ;;  %v1369_v58 = vld [vmem:[#allocation8 + $0x1288] sm:$0xff] }
 0x240   :  { %7129 = vmatpush1.bf16.msra.mxu0 %v10799_v49  ;;  %v1349_v49 = vld [vmem:[#allocation8 + $0x11e8] sm:$0xff] }
 0x241   :  { %7457 = vmatpush1.bf16.msra.mxu1 %v10801_v23  ;;  %7130 = vmatprep.subr.bf16.mxu0 %v10808_v25  ;;  %v10839_v23 = vcombine.low %v1336_v63, %v1340_v0  ;;  %v10841_v25 = vcombine.low %v1337_v2, %v1341_v8  ;;  %v10850_v29 = vcombine.high %v1345_v1, %v1349_v49  ;;  %v1376_v0 = vld [vmem:[#allocation8 + $0x12c0] sm:$0xff]  ;;  %v1377_v8 = vld [vmem:[#allocation8 + $0x12c8] sm:$0xff] }
 0x242   :  { %7458 = vmatprep.subr.bf16.mxu1 %v10810_v28  ;;  %v10848_v28 = vcombine.high %v1344_v13, %v1348_v19  ;;  %v1380_v2 = vld [vmem:[#allocation8 + $0x12e0] sm:$0xff] }
 0x244   :  { %7131 = vmatpush1.bf16.msra.mxu0 %v10807_v48  ;;  %v1357_v48 = vld [vmem:[#allocation8 + $0x1228] sm:$0xff] }
 0x245   :  { %7459 = vmatpush1.bf16.msra.mxu1 %v10809_v37  ;;  %7132 = vmatprep.subr.bf16.mxu0 %v10816_v24  ;;  %v10847_v37 = vcombine.low %v1344_v13, %v1348_v19  ;;  %v10849_v24 = vcombine.low %v1345_v1, %v1349_v49  ;;  %v10858_v41 = vcombine.high %v1353_v35, %v1357_v48  ;;  %v1384_v19 = vld [vmem:[#allocation8 + $0x1300] sm:$0xff]  ;;  %v1385_v49 = vld [vmem:[#allocation8 + $0x1308] sm:$0xff] }
 0x246   :  { %7460 = vmatprep.subr.bf16.mxu1 %v10818_v26  ;;  %v10856_v26 = vcombine.high %v1352_v14, %v1356_v30  ;;  %v1388_v1 = vld [vmem:[#allocation8 + $0x1320] sm:$0xff] }
 0x248   :  { %7133 = vmatpush1.bf16.msra.mxu0 %v10815_v20  ;;  %v1365_v20 = vld [vmem:[#allocation8 + $0x1268] sm:$0xff] }
 0x249   :  { %7461 = vmatpush1.bf16.msra.mxu1 %v10817_v46  ;;  %7134 = vmatprep.subr.bf16.mxu0 %v10824_v50  ;;  %v10855_v46 = vcombine.low %v1352_v14, %v1356_v30  ;;  %v10857_v50 = vcombine.low %v1353_v35, %v1357_v48  ;;  %v10866_v53 = vcombine.high %v1361_v45, %v1365_v20  ;;  %v1392_v30 = vld [vmem:[#allocation8 + $0x1340] sm:$0xff]  ;;  %v1393_v48 = vld [vmem:[#allocation8 + $0x1348] sm:$0xff] }
 0x24a   :  { %7462 = vmatprep.subr.bf16.mxu1 %v10826_v51  ;;  %v10864_v51 = vcombine.high %v1360_v42, %v1364_v43  ;;  %v1396_v35 = vld [vmem:[#allocation8 + $0x1360] sm:$0xff] }
 0x24c   :  { %7135 = vmatpush1.bf16.msra.mxu0 %v10823_v60  ;;  %v1373_v60 = vld [vmem:[#allocation8 + $0x12a8] sm:$0xff] }
 0x24d   :  { %7463 = vmatpush1.bf16.msra.mxu1 %v10825_v61  ;;  %7136 = vmatprep.subr.bf16.mxu0 %v10832_v11  ;;  %v10863_v61 = vcombine.low %v1360_v42, %v1364_v43  ;;  %v10865_v11 = vcombine.low %v1361_v45, %v1365_v20  ;;  %v10874_v63 = vcombine.high %v1369_v58, %v1373_v60  ;;  %v1400_v43 = vld [vmem:[#allocation8 + $0x1380] sm:$0xff]  ;;  %v1401_v20 = vld [vmem:[#allocation8 + $0x1388] sm:$0xff] }
 0x24e   :  { %7464 = vmatprep.subr.bf16.mxu1 %v10834_v62  ;;  %v10872_v62 = vcombine.high %v1368_v54, %v1372_v55  ;;  %v1404_v45 = vld [vmem:[#allocation8 + $0x13a0] sm:$0xff] }
 0x250   :  { %7137 = vmatpush1.bf16.msra.mxu0 %v10831_v27  ;;  %v1381_v27 = vld [vmem:[#allocation8 + $0x12e8] sm:$0xff] }
 0x251   :  { %7465 = vmatpush1.bf16.msra.mxu1 %v10833_v6  ;;  %7138 = vmatprep.subr.bf16.mxu0 %v10840_v10  ;;  %v10871_v6 = vcombine.low %v1368_v54, %v1372_v55  ;;  %v10873_v10 = vcombine.low %v1369_v58, %v1373_v60  ;;  %v10882_v13 = vcombine.high %v1377_v8, %v1381_v27  ;;  %v1408_v58 = vld [vmem:[#allocation8 + $0x13c0] sm:$0xff] }
 0x252   :  { %7466 = vmatprep.subr.bf16.mxu1 %v10842_v12  ;;  %v10880_v12 = vcombine.high %v1376_v0, %v1380_v2  ;;  %v10904_v54 = vcombine.high %v1400_v43, %v1404_v45  ;;  %v1412_v60 = vld [vmem:[#allocation8 + $0x13e0] sm:$0xff] }
 0x254   :  { %7139 = vmatpush1.bf16.msra.mxu0 %v10839_v23  ;;  %v1389_v23 = vld [vmem:[#allocation8 + $0x1328] sm:$0xff] }
 0x255   :  { %7467 = vmatpush1.bf16.msra.mxu1 %v10841_v25  ;;  %7140 = vmatprep.subr.bf16.mxu0 %v10848_v28  ;;  %v10879_v25 = vcombine.low %v1376_v0, %v1380_v2  ;;  %v10881_v28 = vcombine.low %v1377_v8, %v1381_v27  ;;  %v10890_v14 = vcombine.high %v1385_v49, %v1389_v23  ;;  %v1416_v8 = vld [vmem:[#allocation8 + $0x1400] sm:$0xff] }
 0x256   :  { %7468 = vmatprep.subr.bf16.mxu1 %v10850_v29  ;;  %v10888_v29 = vcombine.high %v1384_v19, %v1388_v1  ;;  %v10912_v2 = vcombine.high %v1408_v58, %v1412_v60  ;;  %v1420_v27 = vld [vmem:[#allocation8 + $0x1420] sm:$0xff] }
 0x258   :  { %7141 = vmatpush1.bf16.msra.mxu0 %v10847_v37  ;;  %v1397_v37 = vld [vmem:[#allocation8 + $0x1368] sm:$0xff] }
 0x259   :  { %7469 = vmatpush1.bf16.msra.mxu1 %v10849_v24  ;;  %7142 = vmatprep.subr.bf16.mxu0 %v10856_v26  ;;  %v10887_v24 = vcombine.low %v1384_v19, %v1388_v1  ;;  %v10889_v26 = vcombine.low %v1385_v49, %v1389_v23  ;;  %v10898_v42 = vcombine.high %v1393_v48, %v1397_v37  ;;  %v1424_v23 = vld [vmem:[#allocation8 + $0x1440] sm:$0xff] }
 0x25a   :  { %7470 = vmatprep.subr.bf16.mxu1 %v10858_v41  ;;  %v10896_v41 = vcombine.high %v1392_v30, %v1396_v35  ;;  %v10920_v1 = vcombine.high %v1416_v8, %v1420_v27 }
 0x25c   :  { %7143 = vmatpush1.bf16.msra.mxu0 %v10855_v46  ;;  %v1405_v46 = vld [vmem:[#allocation8 + $0x13a8] sm:$0xff] }
 0x25d   :  { %7471 = vmatpush1.bf16.msra.mxu1 %v10857_v50  ;;  %7144 = vmatprep.subr.bf16.mxu0 %v10864_v51  ;;  %v10895_v50 = vcombine.low %v1392_v30, %v1396_v35  ;;  %v207_v51 = vrot.slane %v12605_v16, %v12493_v15  ;;  %v10906_v55 = vcombine.high %v1401_v20, %v1405_v46 }
 0x25e   :  { %7472 = vmatprep.subr.bf16.mxu1 %v10866_v53  ;;  %v10897_v53 = vcombine.low %v1393_v48, %v1397_v37  ;;  %v10905_v0 = vcombine.low %v1401_v20, %v1405_v46  ;;  %v1432_v37 = vld [vmem:[#allocation8 + $0x1480] sm:$0xff] }
 0x260   :  { %7145 = vmatpush1.bf16.msra.mxu0 %v10863_v61  ;;  %v1409_v61 = vld [vmem:[#allocation8 + $0x13c8] sm:$0xff] }
 0x261   :  { %7473 = vmatpush1.bf16.msra.mxu1 %v10865_v11  ;;  %7146 = vmatprep.subr.bf16.mxu0 %v10872_v62  ;;  %v1413_v11 = vld [vmem:[#allocation8 + $0x13e8] sm:$0xff]  ;;  %v10903_v62 = vcombine.low %v1400_v43, %v1404_v45 }
 0x262   :  { %7474 = vmatprep.subr.bf16.mxu1 %v10874_v63  ;;  %v615_v63 = vadd.f32 %v12527_v5, %v207_v51  ;;  %v10914_v16 = vcombine.high %v1409_v61, %v1413_v11  ;;  %v10913_v19 = vcombine.low %v1409_v61, %v1413_v11  ;;  %v755_v5 = vmax.f32 %v12560_v59, 0.0  ;;  %v1444_v51 = vld [vmem:[#allocation8 + $0x14e0] sm:$0xff] }
 0x263   :  { %v1448_v11 = vld [vmem:[#allocation8 + $0x1500] sm:$0xff] }
 0x264   :  { %7147 = vmatpush1.bf16.msra.mxu0 %v10871_v6  ;;  %v1417_v6 = vld [vmem:[#allocation8 + $0x1408] sm:$0xff] }
 0x265   :  { %7475 = vmatpush1.bf16.msra.mxu1 %v10873_v10  ;;  %7148 = vmatprep.subr.bf16.mxu0 %v10880_v12  ;;  %v1421_v10 = vld [vmem:[#allocation8 + $0x1428] sm:$0xff]  ;;  %v10911_v12 = vcombine.low %v1408_v58, %v1412_v60 }
 0x266   :  { %7476 = vmatprep.subr.bf16.mxu1 %v10882_v13  ;;  %v752_v13 = vmax.f32 %v615_v63, 0.0  ;;  %v10922_v49 = vcombine.high %v1417_v6, %v1421_v10  ;;  %v10921_v35 = vcombine.low %v1417_v6, %v1421_v10  ;;  %v1449_v63 = vld [vmem:[#allocation8 + $0x1508] sm:$0xff]  ;;  %v1456_v6 = vld [vmem:[#allocation8 + $0x1540] sm:$0xff] }
 0x267   :  { %v1460_v10 = vld [vmem:[#allocation8 + $0x1560] sm:$0xff] }
 0x268   :  { %7149 = vmatpush1.bf16.msra.mxu0 %v10879_v25  ;;  %v1428_v25 = vld [vmem:[#allocation8 + $0x1460] sm:$0xff]  ;;  %v12623_v30 = vpack.c.bf16 %v752_v13, %v752_v13  ;;  %v1461_v13 = vld [vmem:[#allocation8 + $0x1568] sm:$0xff] }
 0x269   :  { %7477 = vmatpush1.bf16.msra.mxu1 %v10881_v28  ;;  %7150 = vmatprep.subr.bf16.mxu0 %v10888_v29  ;;  %v10919_v28 = vcombine.low %v1416_v8, %v1420_v27  ;;  %v1425_v29 = vld [vmem:[#allocation8 + $0x1448] sm:$0xff]  ;;  %v10928_v48 = vcombine.high %v1424_v23, %v1428_v25  ;;  %v10927_v43 = vcombine.low %v1424_v23, %v1428_v25  ;;  %v1464_v23 = vld [vmem:[#allocation8 + $0x1580] sm:$0xff] }
 0x26a   :  { %7478 = vmatprep.subr.bf16.mxu1 %v10890_v14  ;;  %v1429_v14 = vld [vmem:[#allocation8 + $0x1468] sm:$0xff]  ;;  %v1468_v25 = vld [vmem:[#allocation8 + $0x15a0] sm:$0xff] }
 0x26b   :  { %v10930_v59 = vcombine.high %v1425_v29, %v1429_v14  ;;  %v10929_v45 = vcombine.low %v1425_v29, %v1429_v14  ;;  %v1469_v29 = vld [vmem:[#allocation8 + $0x15a8] sm:$0xff]  ;;  %v10959_v14 = vcombine.low %v1456_v6, %v1460_v10 }
 0x26c   :  { %7151 = vmatpush1.bf16.msra.mxu0 %v10887_v24  ;;  %v1436_v24 = vld [vmem:[#allocation8 + $0x14a0] sm:$0xff] }
 0x26d   :  { %7479 = vmatpush1.bf16.msra.mxu1 %v10889_v26  ;;  %7152 = vmatprep.subr.bf16.mxu0 %v10896_v41  ;;  %v12625_v26 = vpack.c.bf16 %v755_v5, %v755_v5  ;;  %v1433_v41 = vld [vmem:[#allocation8 + $0x1488] sm:$0xff]  ;;  %v10936_v20 = vcombine.high %v1432_v37, %v1436_v24 }
 0x26e   :  { %7480 = vmatprep.subr.bf16.mxu1 %v10898_v42  ;;  %v1437_v42 = vld [vmem:[#allocation8 + $0x14a8] sm:$0xff] }
 0x26f   :  { %v10938_v46 = vcombine.high %v1433_v41, %v1437_v42  ;;  %v10937_v58 = vcombine.low %v1433_v41, %v1437_v42  ;;  %v1473_v41 = vld [vmem:[#allocation8 + $0x15c8] sm:$0xff] }
 0x270   :  { %7153 = vmatpush1.bf16.msra.mxu0 %v10895_v50  ;;  %v1440_v50 = vld [vmem:[#allocation8 + $0x14c0] sm:$0xff]  ;;  %v1477_v42 = vld [vmem:[#allocation8 + $0x15e8] sm:$0xff] }
 0x271   :  { %7481 = vmatpush1.bf16.msra.mxu1 %v10897_v53  ;;  %7154 = vmatprep.subr.bf16.mxu0 %v10904_v54  ;;  %v1441_v53 = vld [vmem:[#allocation8 + $0x14c8] sm:$0xff]  ;;  %v10944_v60 = vcombine.high %v1440_v50, %v1444_v51 }
 0x272   :  { %7482 = vmatprep.subr.bf16.mxu1 %v10906_v55  ;;  %v1445_v54 = vld [vmem:[#allocation8 + $0x14e8] sm:$0xff]  ;;  %v10935_v55 = vcombine.low %v1432_v37, %v1436_v24  ;;  %v1472_v24 = vld [vmem:[#allocation8 + $0x15c0] sm:$0xff] }
 0x273   :  { %v10946_v61 = vcombine.high %v1441_v53, %v1445_v54 }
 0x274   :  { %7155 = vmatpush1.bf16.msra.mxu0 %v10903_v62  ;;  %v1452_v62 = vld [vmem:[#allocation8 + $0x1520] sm:$0xff] }
 0x275   :  { %7483 = vmatpush1.bf16.msra.mxu1 %v10905_v0  ;;  %7156 = vmatprep.subr.bf16.mxu0 %v10912_v2  ;;  %v1453_v0 = vld [vmem:[#allocation8 + $0x1528] sm:$0xff]  ;;  %v10943_v2 = vcombine.low %v1440_v50, %v1444_v51  ;;  %v10952_v8 = vcombine.high %v1448_v11, %v1452_v62  ;;  %v1480_v50 = vld [vmem:[#allocation8 + $0x1600] sm:$0xff] }
 0x276   :  { %7484 = vmatprep.subr.bf16.mxu1 %v10914_v16  ;;  %v10945_v16 = vcombine.low %v1441_v53, %v1445_v54  ;;  %v10954_v27 = vcombine.high %v1449_v63, %v1453_v0  ;;  %v1484_v51 = vld [vmem:[#allocation8 + $0x1620] sm:$0xff]  ;;  %v1481_v53 = vld [vmem:[#allocation8 + $0x1608] sm:$0xff] }
 0x277   :  { %v1485_v54 = vld [vmem:[#allocation8 + $0x1628] sm:$0xff] }
 0x278   :  { %7157 = vmatpush1.bf16.msra.mxu0 %v10911_v12  ;;  %v1457_v12 = vld [vmem:[#allocation8 + $0x1548] sm:$0xff] }
 0x279   :  { %7485 = vmatpush1.bf16.msra.mxu1 %v10913_v19  ;;  %7167 = vmatprep.subr.bf16.mxu0 %v10920_v1  ;;  %v10951_v19 = vcombine.low %v1448_v11, %v1452_v62  ;;  %v10953_v1 = vcombine.low %v1449_v63, %v1453_v0  ;;  %v10962_v5 = vcombine.high %v1457_v12, %v1461_v13  ;;  %v1488_v11 = vld [vmem:[#allocation8 + $0x1640] sm:$0xff]  ;;  %v1489_v63 = vld [vmem:[#allocation8 + $0x1648] sm:$0xff] }
 0x27a   :  { %7495 = vmatprep.subr.bf16.mxu1 %v10922_v49  ;;  %v10960_v49 = vcombine.high %v1456_v6, %v1460_v10  ;;  %v1492_v62 = vld [vmem:[#allocation8 + $0x1660] sm:$0xff]  ;;  %v1493_v0 = vld [vmem:[#allocation8 + $0x1668] sm:$0xff] }
 0x27b   :  { %7159 = vmatmul.mubr.bf16.vlgmr.msra.gmra.mrb[16].mxu0 %v12623_v30  ;;  %v1496_v6 = vld [vmem:[#allocation8 + $0x1680] sm:$0xff] }
 0x27c   :  { %7487 = vmatmul.mubr.bf16.vlgmr.msra.gmra.mrb[16].mxu1 %v12623_v30  ;;  %7168 = vmatpush1.bf16.msra.mxu0 %v10919_v28  ;;  %v1465_v28 = vld [vmem:[#allocation8 + $0x1588] sm:$0xff]  ;;  %v1500_v10 = vld [vmem:[#allocation8 + $0x16a0] sm:$0xff] }
 0x27d   :  { %7199 = vmatprep.mubr.bf16.mxu0 %v12625_v26  ;;  %7496 = vmatpush1.bf16.msra.mxu1 %v10921_v35  ;;  %v10961_v35 = vcombine.low %v1457_v12, %v1461_v13  ;;  %v10970_v37 = vcombine.high %v1465_v28, %v1469_v29  ;;  %v1497_v12 = vld [vmem:[#allocation8 + $0x1688] sm:$0xff] }
 0x27e   :  { %7527 = vmatprep.mubr.bf16.mxu1 %v12625_v26  ;;  %7169 = vmatprep.subr.bf16.mxu0 %v10928_v48  ;;  %v10968_v48 = vcombine.high %v1464_v23, %v1468_v25  ;;  %v1501_v13 = vld [vmem:[#allocation8 + $0x16a8] sm:$0xff] }
 0x27f   :  { %7497 = vmatprep.subr.bf16.mxu1 %v10930_v59  ;;  %v1476_v59 = vld [vmem:[#allocation8 + $0x15e0] sm:$0xff] }
 0x280   :  { %7170 = vmatpush1.bf16.msra.mxu0 %v10927_v43  ;;  %v10967_v43 = vcombine.low %v1464_v23, %v1468_v25  ;;  %v1504_v23 = vld [vmem:[#allocation8 + $0x16c0] sm:$0xff] }
 0x281   :  { %7498 = vmatpush1.bf16.msra.mxu1 %v10929_v45  ;;  %7171 = vmatprep.subr.bf16.mxu0 %v10936_v20  ;;  %v10969_v45 = vcombine.low %v1465_v28, %v1469_v29  ;;  %v10976_v20 = vcombine.high %v1472_v24, %v1476_v59  ;;  %v1508_v25 = vld [vmem:[#allocation8 + $0x16e0] sm:$0xff]  ;;  %v1505_v28 = vld [vmem:[#allocation8 + $0x16c8] sm:$0xff] }
 0x282   :  { %7499 = vmatprep.subr.bf16.mxu1 %v10938_v46  ;;  %v10978_v46 = vcombine.high %v1473_v41, %v1477_v42  ;;  %v1509_v29 = vld [vmem:[#allocation8 + $0x16e8] sm:$0xff] }
 0x284   :  { %7172 = vmatpush1.bf16.msra.mxu0 %v10935_v55  ;;  %v10975_v55 = vcombine.low %v1472_v24, %v1476_v59  ;;  %v1512_v24 = vld [vmem:[#allocation8 + $0x1700] sm:$0xff] }
 0x285   :  { %7500 = vmatpush1.bf16.msra.mxu1 %v10937_v58  ;;  %7173 = vmatprep.subr.bf16.mxu0 %v10944_v60  ;;  %v10977_v58 = vcombine.low %v1473_v41, %v1477_v42  ;;  %v10984_v60 = vcombine.high %v1480_v50, %v1484_v51  ;;  %v1516_v59 = vld [vmem:[#allocation8 + $0x1720] sm:$0xff]  ;;  %v1513_v41 = vld [vmem:[#allocation8 + $0x1708] sm:$0xff] }
 0x286   :  { %7501 = vmatprep.subr.bf16.mxu1 %v10946_v61  ;;  %v10986_v61 = vcombine.high %v1481_v53, %v1485_v54  ;;  %v1517_v42 = vld [vmem:[#allocation8 + $0x1728] sm:$0xff] }
 0x288   :  { %7174 = vmatpush1.bf16.msra.mxu0 %v10943_v2  ;;  %v10983_v2 = vcombine.low %v1480_v50, %v1484_v51  ;;  %v1520_v50 = vld [vmem:[#allocation8 + $0x1740] sm:$0xff] }
 0x289   :  { %7502 = vmatpush1.bf16.msra.mxu1 %v10945_v16  ;;  %7175 = vmatprep.subr.bf16.mxu0 %v10952_v8  ;;  %v10985_v16 = vcombine.low %v1481_v53, %v1485_v54  ;;  %v10992_v8 = vcombine.high %v1488_v11, %v1492_v62  ;;  %v1524_v51 = vld [vmem:[#allocation8 + $0x1760] sm:$0xff]  ;;  %v1521_v53 = vld [vmem:[#allocation8 + $0x1748] sm:$0xff] }
 0x28a   :  { %7503 = vmatprep.subr.bf16.mxu1 %v10954_v27  ;;  %v10994_v27 = vcombine.high %v1489_v63, %v1493_v0  ;;  %v1525_v54 = vld [vmem:[#allocation8 + $0x1768] sm:$0xff] }
 0x28c   :  { %7176 = vmatpush1.bf16.msra.mxu0 %v10951_v19  ;;  %v10991_v19 = vcombine.low %v1488_v11, %v1492_v62  ;;  %v1528_v11 = vld [vmem:[#allocation8 + $0x1780] sm:$0xff] }
 0x28d   :  { %7504 = vmatpush1.bf16.msra.mxu1 %v10953_v1  ;;  %7177 = vmatprep.subr.bf16.mxu0 %v10960_v49  ;;  %v10993_v1 = vcombine.low %v1489_v63, %v1493_v0  ;;  %v11000_v49 = vcombine.high %v1496_v6, %v1500_v10  ;;  %v1532_v62 = vld [vmem:[#allocation8 + $0x17a0] sm:$0xff]  ;;  %v1529_v63 = vld [vmem:[#allocation8 + $0x1788] sm:$0xff] }
 0x28e   :  { %7505 = vmatprep.subr.bf16.mxu1 %v10962_v5  ;;  %v11002_v5 = vcombine.high %v1497_v12, %v1501_v13  ;;  %v1533_v0 = vld [vmem:[#allocation8 + $0x17a8] sm:$0xff] }
 0x290   :  { %7178 = vmatpush1.bf16.msra.mxu0 %v10959_v14  ;;  %v10999_v14 = vcombine.low %v1496_v6, %v1500_v10  ;;  %v1536_v6 = vld [vmem:[#allocation8 + $0x17c0] sm:$0xff] }
 0x291   :  { %7506 = vmatpush1.bf16.msra.mxu1 %v10961_v35  ;;  %7179 = vmatprep.subr.bf16.mxu0 %v10968_v48  ;;  %v11001_v35 = vcombine.low %v1497_v12, %v1501_v13  ;;  %v11008_v48 = vcombine.high %v1504_v23, %v1508_v25  ;;  %v1540_v10 = vld [vmem:[#allocation8 + $0x17e0] sm:$0xff]  ;;  %v1537_v12 = vld [vmem:[#allocation8 + $0x17c8] sm:$0xff] }
 0x292   :  { %7507 = vmatprep.subr.bf16.mxu1 %v10970_v37  ;;  %v11010_v37 = vcombine.high %v1505_v28, %v1509_v29  ;;  %v1541_v13 = vld [vmem:[#allocation8 + $0x17e8] sm:$0xff] }
 0x294   :  { %7180 = vmatpush1.bf16.msra.mxu0 %v10967_v43  ;;  %v11007_v43 = vcombine.low %v1504_v23, %v1508_v25  ;;  %v1544_v23 = vld [vmem:[#allocation8 + $0x1800] sm:$0xff] }
 0x295   :  { %7508 = vmatpush1.bf16.msra.mxu1 %v10969_v45  ;;  %7181 = vmatprep.subr.bf16.mxu0 %v10976_v20  ;;  %v11009_v45 = vcombine.low %v1505_v28, %v1509_v29  ;;  %v11016_v20 = vcombine.high %v1512_v24, %v1516_v59  ;;  %v1548_v25 = vld [vmem:[#allocation8 + $0x1820] sm:$0xff]  ;;  %v1545_v28 = vld [vmem:[#allocation8 + $0x1808] sm:$0xff] }
 0x296   :  { %7509 = vmatprep.subr.bf16.mxu1 %v10978_v46  ;;  %v11018_v46 = vcombine.high %v1513_v41, %v1517_v42  ;;  %v1549_v29 = vld [vmem:[#allocation8 + $0x1828] sm:$0xff] }
 0x298   :  { %7182 = vmatpush1.bf16.msra.mxu0 %v10975_v55  ;;  %v11015_v55 = vcombine.low %v1512_v24, %v1516_v59  ;;  %v11050_v24 = vcombine.high %v1545_v28, %v1549_v29  ;;  %v757_v59 = vmax.f32 %v12545_v52, 0.0 }
 0x299   :  { %7510 = vmatpush1.bf16.msra.mxu1 %v10977_v58  ;;  %7183 = vmatprep.subr.bf16.mxu0 %v10984_v60  ;;  %v11017_v58 = vcombine.low %v1513_v41, %v1517_v42  ;;  %v11024_v60 = vcombine.high %v1520_v50, %v1524_v51  ;;  %v1552_v41 = vld [vmem:[#allocation8 + $0x1840] sm:$0xff] }
 0x29a   :  { %7511 = vmatprep.subr.bf16.mxu1 %v10986_v61  ;;  %v11026_v61 = vcombine.high %v1521_v53, %v1525_v54  ;;  %v1556_v42 = vld [vmem:[#allocation8 + $0x1860] sm:$0xff] }
 0x29c   :  { %7184 = vmatpush1.bf16.msra.mxu0 %v10983_v2  ;;  %v11023_v2 = vcombine.low %v1520_v50, %v1524_v51  ;;  %v11049_v50 = vcombine.low %v1545_v28, %v1549_v29  ;;  %v1560_v51 = vld [vmem:[#allocation8 + $0x1880] sm:$0xff] }
 0x29d   :  { %7512 = vmatpush1.bf16.msra.mxu1 %v10985_v16  ;;  %7185 = vmatprep.subr.bf16.mxu0 %v10992_v8  ;;  %v11025_v16 = vcombine.low %v1521_v53, %v1525_v54  ;;  %v11032_v8 = vcombine.high %v1528_v11, %v1532_v62  ;;  %v1564_v53 = vld [vmem:[#allocation8 + $0x18a0] sm:$0xff]  ;;  %v12635_v54 = vpack.c.bf16 %v757_v59, %v757_v59 }
 0x29e   :  { %7513 = vmatprep.subr.bf16.mxu1 %v10994_v27  ;;  %v11034_v27 = vcombine.high %v1529_v63, %v1533_v0  ;;  %v1584_v28 = vld [vmem:[#allocation8 + $0x1940] sm:$0xff] }
 0x29f   :  { %v1588_v29 = vld [vmem:[#allocation8 + $0x1960] sm:$0xff] }
 0x2a0   :  { %7186 = vmatpush1.bf16.msra.mxu0 %v10991_v19  ;;  %v11031_v19 = vcombine.low %v1528_v11, %v1532_v62  ;;  %v11064_v11 = vcombine.high %v1560_v51, %v1564_v53 }
 0x2a1   :  { %7514 = vmatpush1.bf16.msra.mxu1 %v10993_v1  ;;  %7187 = vmatprep.subr.bf16.mxu0 %v11000_v49  ;;  %v11033_v1 = vcombine.low %v1529_v63, %v1533_v0  ;;  %v11040_v49 = vcombine.high %v1536_v6, %v1540_v10  ;;  %v1568_v63 = vld [vmem:[#allocation8 + $0x18c0] sm:$0xff] }
 0x2a2   :  { %7515 = vmatprep.subr.bf16.mxu1 %v11002_v5  ;;  %v11042_v5 = vcombine.high %v1537_v12, %v1541_v13  ;;  %v1572_v0 = vld [vmem:[#allocation8 + $0x18e0] sm:$0xff] }
 0x2a4   :  { %7188 = vmatpush1.bf16.msra.mxu0 %v10999_v14  ;;  %v11039_v14 = vcombine.low %v1536_v6, %v1540_v10  ;;  %v11072_v6 = vcombine.high %v1568_v63, %v1572_v0 }
 0x2a5   :  { %7516 = vmatpush1.bf16.msra.mxu1 %v11001_v35  ;;  %7189 = vmatprep.subr.bf16.mxu0 %v11008_v48  ;;  %v754_v35 = vmax.f32 %v12558_v57, 0.0  ;;  %v11041_v48 = vcombine.low %v1537_v12, %v1541_v13  ;;  %v11056_v57 = vcombine.high %v1552_v41, %v1556_v42  ;;  %v1576_v12 = vld [vmem:[#allocation8 + $0x1900] sm:$0xff] }
 0x2a6   :  { %7517 = vmatprep.subr.bf16.mxu1 %v11010_v37  ;;  %v11048_v37 = vcombine.high %v1544_v23, %v1548_v25  ;;  %v1580_v13 = vld [vmem:[#allocation8 + $0x1920] sm:$0xff] }
 0x2a8   :  { %7190 = vmatpush1.bf16.msra.mxu0 %v11007_v43  ;;  %v11047_v43 = vcombine.low %v1544_v23, %v1548_v25  ;;  %v11080_v23 = vcombine.high %v1576_v12, %v1580_v13 }
 0x2a9   :  { %7518 = vmatpush1.bf16.msra.mxu1 %v11009_v45  ;;  %7191 = vmatprep.subr.bf16.mxu0 %v11016_v20  ;;  %v1553_v45 = vld [vmem:[#allocation8 + $0x1848] sm:$0xff] }
 0x2aa   :  { %7519 = vmatprep.subr.bf16.mxu1 %v11018_v46  ;;  %v1557_v20 = vld [vmem:[#allocation8 + $0x1868] sm:$0xff]  ;;  %v12633_v46 = vpack.c.bf16 %v754_v35, %v754_v35 }
 0x2ab   :  { %v11058_v52 = vcombine.high %v1553_v45, %v1557_v20  ;;  %v1589_v35 = vld [vmem:[#allocation8 + $0x1968] sm:$0xff] }
 0x2ac   :  { %7192 = vmatpush1.bf16.msra.mxu0 %v11015_v55  ;;  %v1561_v55 = vld [vmem:[#allocation8 + $0x1888] sm:$0xff] }
 0x2ad   :  { %7520 = vmatpush1.bf16.msra.mxu1 %v11017_v58  ;;  %7193 = vmatprep.subr.bf16.mxu0 %v11024_v60  ;;  %v1565_v58 = vld [vmem:[#allocation8 + $0x18a8] sm:$0xff]  ;;  %v11055_v60 = vcombine.low %v1552_v41, %v1556_v42  ;;  %v1592_v41 = vld [vmem:[#allocation8 + $0x1980] sm:$0xff] }
 0x2ae   :  { %7521 = vmatprep.subr.bf16.mxu1 %v11026_v61  ;;  %v11057_v61 = vcombine.low %v1553_v45, %v1557_v20  ;;  %v11066_v62 = vcombine.high %v1561_v55, %v1565_v58  ;;  %v1596_v42 = vld [vmem:[#allocation8 + $0x19a0] sm:$0xff]  ;;  %v1597_v45 = vld [vmem:[#allocation8 + $0x19a8] sm:$0xff]  ;;  %v11087_v20 = vcombine.low %v1584_v28, %v1588_v29 }
 0x2b0   :  { %7194 = vmatpush1.bf16.msra.mxu0 %v11023_v2  ;;  %v1569_v2 = vld [vmem:[#allocation8 + $0x18c8] sm:$0xff] }
 0x2b1   :  { %7522 = vmatpush1.bf16.msra.mxu1 %v11025_v16  ;;  %7195 = vmatprep.subr.bf16.mxu0 %v11032_v8  ;;  %v1573_v16 = vld [vmem:[#allocation8 + $0x18e8] sm:$0xff]  ;;  %v11063_v8 = vcombine.low %v1560_v51, %v1564_v53  ;;  %v1600_v53 = vld [vmem:[#allocation8 + $0x19c0] sm:$0xff] }
 0x2b2   :  { %7523 = vmatprep.subr.bf16.mxu1 %v11034_v27  ;;  %v11065_v27 = vcombine.low %v1561_v55, %v1565_v58  ;;  %v11074_v10 = vcombine.high %v1569_v2, %v1573_v16  ;;  %v1601_v55 = vld [vmem:[#allocation8 + $0x19c8] sm:$0xff] }
 0x2b3   :  { %v1605_v58 = vld [vmem:[#allocation8 + $0x19e8] sm:$0xff] }
 0x2b4   :  { %7196 = vmatpush1.bf16.msra.mxu0 %v11031_v19  ;;  %v1577_v19 = vld [vmem:[#allocation8 + $0x1908] sm:$0xff] }
 0x2b5   :  { %7524 = vmatpush1.bf16.msra.mxu1 %v11033_v1  ;;  %7197 = vmatprep.subr.bf16.mxu0 %v11040_v49  ;;  %v1581_v1 = vld [vmem:[#allocation8 + $0x1928] sm:$0xff]  ;;  %v11071_v49 = vcombine.low %v1568_v63, %v1572_v0  ;;  %v1608_v63 = vld [vmem:[#allocation8 + $0x1a00] sm:$0xff] }
 0x2b6   :  { %7525 = vmatprep.subr.bf16.mxu1 %v11042_v5  ;;  %v11073_v5 = vcombine.low %v1569_v2, %v1573_v16  ;;  %v11082_v25 = vcombine.high %v1577_v19, %v1581_v1  ;;  %v1612_v0 = vld [vmem:[#allocation8 + $0x1a20] sm:$0xff]  ;;  %v1609_v2 = vld [vmem:[#allocation8 + $0x1a08] sm:$0xff] }
 0x2b7   :  { %v1613_v16 = vld [vmem:[#allocation8 + $0x1a28] sm:$0xff] }
 0x2b8   :  { %7198 = vmatpush1.bf16.msra.mxu0 %v11039_v14  ;;  %v1585_v14 = vld [vmem:[#allocation8 + $0x1948] sm:$0xff] }
 0x2b9   :  { %7526 = vmatpush1.bf16.msra.mxu1 %v11041_v48  ;;  %7208 = vmatprep.subr.bf16.mxu0 %v11048_v37  ;;  %v11079_v48 = vcombine.low %v1576_v12, %v1580_v13  ;;  %v11081_v37 = vcombine.low %v1577_v19, %v1581_v1  ;;  %v11090_v59 = vcombine.high %v1585_v14, %v1589_v35  ;;  %v1616_v12 = vld [vmem:[#allocation8 + $0x1a40] sm:$0xff]  ;;  %v1617_v19 = vld [vmem:[#allocation8 + $0x1a48] sm:$0xff] }
 0x2ba   :  { %7536 = vmatprep.subr.bf16.mxu1 %v11050_v24  ;;  %v11088_v24 = vcombine.high %v1584_v28, %v1588_v29  ;;  %v1620_v13 = vld [vmem:[#allocation8 + $0x1a60] sm:$0xff]  ;;  %v1621_v1 = vld [vmem:[#allocation8 + $0x1a68] sm:$0xff] }
 0x2bb   :  { %7200 = vmatmul.mubr.bf16.vlgmr.msra.gmra.mrb[16].mxu0 %v12633_v46  ;;  %v1624_v28 = vld [vmem:[#allocation8 + $0x1a80] sm:$0xff] }
 0x2bc   :  { %7528 = vmatmul.mubr.bf16.vlgmr.msra.gmra.mrb[16].mxu1 %v12633_v46  ;;  %7209 = vmatpush1.bf16.msra.mxu0 %v11047_v43  ;;  %v1593_v43 = vld [vmem:[#allocation8 + $0x1988] sm:$0xff]  ;;  %v1628_v29 = vld [vmem:[#allocation8 + $0x1aa0] sm:$0xff] }
 0x2bd   :  { %7240 = vmatprep.mubr.bf16.mxu0 %v12635_v54  ;;  %7537 = vmatpush1.bf16.msra.mxu1 %v11049_v50  ;;  %v11089_v50 = vcombine.low %v1585_v14, %v1589_v35  ;;  %v11098_v51 = vcombine.high %v1593_v43, %v1597_v45  ;;  %v1625_v14 = vld [vmem:[#allocation8 + $0x1a88] sm:$0xff] }
 0x2be   :  { %7568 = vmatprep.mubr.bf16.mxu1 %v12635_v54  ;;  %7210 = vmatprep.subr.bf16.mxu0 %v11056_v57  ;;  %v11096_v57 = vcombine.high %v1592_v41, %v1596_v42  ;;  %v1629_v35 = vld [vmem:[#allocation8 + $0x1aa8] sm:$0xff] }
 0x2bf   :  { %7538 = vmatprep.subr.bf16.mxu1 %v11058_v52  ;;  %v1604_v52 = vld [vmem:[#allocation8 + $0x19e0] sm:$0xff] }
 0x2c0   :  { %7211 = vmatpush1.bf16.msra.mxu0 %v11055_v60  ;;  %v11095_v60 = vcombine.low %v1592_v41, %v1596_v42  ;;  %v1632_v41 = vld [vmem:[#allocation8 + $0x1ac0] sm:$0xff] }
 0x2c1   :  { %7539 = vmatpush1.bf16.msra.mxu1 %v11057_v61  ;;  %7212 = vmatprep.subr.bf16.mxu0 %v11064_v11  ;;  %v11097_v61 = vcombine.low %v1593_v43, %v1597_v45  ;;  %v11104_v11 = vcombine.high %v1600_v53, %v1604_v52  ;;  %v1636_v42 = vld [vmem:[#allocation8 + $0x1ae0] sm:$0xff]  ;;  %v1633_v43 = vld [vmem:[#allocation8 + $0x1ac8] sm:$0xff] }
 0x2c2   :  { %7540 = vmatprep.subr.bf16.mxu1 %v11066_v62  ;;  %v11106_v62 = vcombine.high %v1601_v55, %v1605_v58  ;;  %v1637_v45 = vld [vmem:[#allocation8 + $0x1ae8] sm:$0xff] }
 0x2c4   :  { %7213 = vmatpush1.bf16.msra.mxu0 %v11063_v8  ;;  %v11103_v8 = vcombine.low %v1600_v53, %v1604_v52  ;;  %v1640_v53 = vld [vmem:[#allocation8 + $0x1b00] sm:$0xff] }
 0x2c5   :  { %7541 = vmatpush1.bf16.msra.mxu1 %v11065_v27  ;;  %7214 = vmatprep.subr.bf16.mxu0 %v11072_v6  ;;  %v11105_v27 = vcombine.low %v1601_v55, %v1605_v58  ;;  %v11112_v6 = vcombine.high %v1608_v63, %v1612_v0  ;;  %v1644_v52 = vld [vmem:[#allocation8 + $0x1b20] sm:$0xff]  ;;  %v1641_v55 = vld [vmem:[#allocation8 + $0x1b08] sm:$0xff] }
 0x2c6   :  { %7542 = vmatprep.subr.bf16.mxu1 %v11074_v10  ;;  %v11114_v10 = vcombine.high %v1609_v2, %v1613_v16  ;;  %v1645_v58 = vld [vmem:[#allocation8 + $0x1b28] sm:$0xff] }
 0x2c8   :  { %7215 = vmatpush1.bf16.msra.mxu0 %v11071_v49  ;;  %v11111_v49 = vcombine.low %v1608_v63, %v1612_v0  ;;  %v1648_v63 = vld [vmem:[#allocation8 + $0x1b40] sm:$0xff] }
 0x2c9   :  { %7543 = vmatpush1.bf16.msra.mxu1 %v11073_v5  ;;  %7216 = vmatprep.subr.bf16.mxu0 %v11080_v23  ;;  %v11113_v5 = vcombine.low %v1609_v2, %v1613_v16  ;;  %v11120_v23 = vcombine.high %v1616_v12, %v1620_v13  ;;  %v1652_v0 = vld [vmem:[#allocation8 + $0x1b60] sm:$0xff]  ;;  %v1649_v2 = vld [vmem:[#allocation8 + $0x1b48] sm:$0xff] }
 0x2ca   :  { %7544 = vmatprep.subr.bf16.mxu1 %v11082_v25  ;;  %v11122_v25 = vcombine.high %v1617_v19, %v1621_v1  ;;  %v1653_v16 = vld [vmem:[#allocation8 + $0x1b68] sm:$0xff] }
 0x2cc   :  { %7217 = vmatpush1.bf16.msra.mxu0 %v11079_v48  ;;  %v11119_v48 = vcombine.low %v1616_v12, %v1620_v13  ;;  %v1656_v12 = vld [vmem:[#allocation8 + $0x1b80] sm:$0xff] }
 0x2cd   :  { %7545 = vmatpush1.bf16.msra.mxu1 %v11081_v37  ;;  %7218 = vmatprep.subr.bf16.mxu0 %v11088_v24  ;;  %v11121_v37 = vcombine.low %v1617_v19, %v1621_v1  ;;  %v11128_v24 = vcombine.high %v1624_v28, %v1628_v29  ;;  %v1660_v13 = vld [vmem:[#allocation8 + $0x1ba0] sm:$0xff]  ;;  %v1657_v19 = vld [vmem:[#allocation8 + $0x1b88] sm:$0xff] }
 0x2ce   :  { %7546 = vmatprep.subr.bf16.mxu1 %v11090_v59  ;;  %v11130_v59 = vcombine.high %v1625_v14, %v1629_v35  ;;  %v1661_v1 = vld [vmem:[#allocation8 + $0x1ba8] sm:$0xff] }
 0x2d0   :  { %7219 = vmatpush1.bf16.msra.mxu0 %v11087_v20  ;;  %v11127_v20 = vcombine.low %v1624_v28, %v1628_v29  ;;  %v1664_v28 = vld [vmem:[#allocation8 + $0x1bc0] sm:$0xff] }
 0x2d1   :  { %7547 = vmatpush1.bf16.msra.mxu1 %v11089_v50  ;;  %7220 = vmatprep.subr.bf16.mxu0 %v11096_v57  ;;  %v11129_v50 = vcombine.low %v1625_v14, %v1629_v35  ;;  %v11136_v57 = vcombine.high %v1632_v41, %v1636_v42  ;;  %v1668_v29 = vld [vmem:[#allocation8 + $0x1be0] sm:$0xff]  ;;  %v1665_v14 = vld [vmem:[#allocation8 + $0x1bc8] sm:$0xff] }
 0x2d2   :  { %7548 = vmatprep.subr.bf16.mxu1 %v11098_v51  ;;  %v11138_v51 = vcombine.high %v1633_v43, %v1637_v45  ;;  %v1669_v35 = vld [vmem:[#allocation8 + $0x1be8] sm:$0xff] }
 0x2d4   :  { %7221 = vmatpush1.bf16.msra.mxu0 %v11095_v60  ;;  %v11135_v60 = vcombine.low %v1632_v41, %v1636_v42  ;;  %v1672_v41 = vld [vmem:[#allocation8 + $0x1c00] sm:$0xff] }
 0x2d5   :  { %7549 = vmatpush1.bf16.msra.mxu1 %v11097_v61  ;;  %7222 = vmatprep.subr.bf16.mxu0 %v11104_v11  ;;  %v11137_v61 = vcombine.low %v1633_v43, %v1637_v45  ;;  %v11144_v11 = vcombine.high %v1640_v53, %v1644_v52  ;;  %v1676_v42 = vld [vmem:[#allocation8 + $0x1c20] sm:$0xff]  ;;  %v1673_v43 = vld [vmem:[#allocation8 + $0x1c08] sm:$0xff] }
 0x2d6   :  { %7550 = vmatprep.subr.bf16.mxu1 %v11106_v62  ;;  %v11146_v62 = vcombine.high %v1641_v55, %v1645_v58  ;;  %v1677_v45 = vld [vmem:[#allocation8 + $0x1c28] sm:$0xff] }
 0x2d8   :  { %7223 = vmatpush1.bf16.msra.mxu0 %v11103_v8  ;;  %v11143_v8 = vcombine.low %v1640_v53, %v1644_v52  ;;  %v11178_v53 = vcombine.high %v1673_v43, %v1677_v45  ;;  %v759_v52 = vmax.f32 %v12574_v32, 0.0 }
 0x2d9   :  { %7551 = vmatpush1.bf16.msra.mxu1 %v11105_v27  ;;  %7224 = vmatprep.subr.bf16.mxu0 %v11112_v6  ;;  %v11145_v27 = vcombine.low %v1641_v55, %v1645_v58  ;;  %v11152_v6 = vcombine.high %v1648_v63, %v1652_v0  ;;  %v1680_v55 = vld [vmem:[#allocation8 + $0x1c40] sm:$0xff] }
 0x2da   :  { %7552 = vmatprep.subr.bf16.mxu1 %v11114_v10  ;;  %v11154_v10 = vcombine.high %v1649_v2, %v1653_v16  ;;  %v1684_v58 = vld [vmem:[#allocation8 + $0x1c60] sm:$0xff] }
 0x2dc   :  { %7225 = vmatpush1.bf16.msra.mxu0 %v11111_v49  ;;  %v11151_v49 = vcombine.low %v1648_v63, %v1652_v0  ;;  %v11177_v63 = vcombine.low %v1673_v43, %v1677_v45  ;;  %v1688_v0 = vld [vmem:[#allocation8 + $0x1c80] sm:$0xff] }
 0x2dd   :  { %7553 = vmatpush1.bf16.msra.mxu1 %v11113_v5  ;;  %7226 = vmatprep.subr.bf16.mxu0 %v11120_v23  ;;  %v11153_v5 = vcombine.low %v1649_v2, %v1653_v16  ;;  %v11160_v23 = vcombine.high %v1656_v12, %v1660_v13  ;;  %v1692_v2 = vld [vmem:[#allocation8 + $0x1ca0] sm:$0xff]  ;;  %v12645_v16 = vpack.c.bf16 %v759_v52, %v759_v52 }
 0x2de   :  { %7554 = vmatprep.subr.bf16.mxu1 %v11122_v25  ;;  %v11162_v25 = vcombine.high %v1657_v19, %v1661_v1  ;;  %v1712_v43 = vld [vmem:[#allocation8 + $0x1d40] sm:$0xff] }
 0x2df   :  { %v1716_v45 = vld [vmem:[#allocation8 + $0x1d60] sm:$0xff] }
 0x2e0   :  { %7227 = vmatpush1.bf16.msra.mxu0 %v11119_v48  ;;  %v11159_v48 = vcombine.low %v1656_v12, %v1660_v13  ;;  %v11192_v12 = vcombine.high %v1688_v0, %v1692_v2 }
 0x2e1   :  { %7555 = vmatpush1.bf16.msra.mxu1 %v11121_v37  ;;  %7228 = vmatprep.subr.bf16.mxu0 %v11128_v24  ;;  %v11161_v37 = vcombine.low %v1657_v19, %v1661_v1  ;;  %v11168_v24 = vcombine.high %v1664_v28, %v1668_v29  ;;  %v1696_v19 = vld [vmem:[#allocation8 + $0x1cc0] sm:$0xff] }
 0x2e2   :  { %7556 = vmatprep.subr.bf16.mxu1 %v11130_v59  ;;  %v11170_v59 = vcombine.high %v1665_v14, %v1669_v35  ;;  %v1700_v1 = vld [vmem:[#allocation8 + $0x1ce0] sm:$0xff] }
 0x2e4   :  { %7229 = vmatpush1.bf16.msra.mxu0 %v11127_v20  ;;  %v11167_v20 = vcombine.low %v1664_v28, %v1668_v29  ;;  %v11200_v28 = vcombine.high %v1696_v19, %v1700_v1 }
 0x2e5   :  { %7557 = vmatpush1.bf16.msra.mxu1 %v11129_v50  ;;  %7230 = vmatprep.subr.bf16.mxu0 %v11136_v57  ;;  %v756_v50 = vmax.f32 %v12541_v36, 0.0  ;;  %v11169_v57 = vcombine.low %v1665_v14, %v1669_v35  ;;  %v11184_v36 = vcombine.high %v1680_v55, %v1684_v58  ;;  %v1704_v14 = vld [vmem:[#allocation8 + $0x1d00] sm:$0xff] }
 0x2e6   :  { %7558 = vmatprep.subr.bf16.mxu1 %v11138_v51  ;;  %v11176_v51 = vcombine.high %v1672_v41, %v1676_v42  ;;  %v1708_v35 = vld [vmem:[#allocation8 + $0x1d20] sm:$0xff] }
 0x2e8   :  { %7231 = vmatpush1.bf16.msra.mxu0 %v11135_v60  ;;  %v11175_v60 = vcombine.low %v1672_v41, %v1676_v42  ;;  %v11208_v41 = vcombine.high %v1704_v14, %v1708_v35 }
 0x2e9   :  { %7559 = vmatpush1.bf16.msra.mxu1 %v11137_v61  ;;  %7232 = vmatprep.subr.bf16.mxu0 %v11144_v11  ;;  %v1681_v61 = vld [vmem:[#allocation8 + $0x1c48] sm:$0xff] }
 0x2ea   :  { %7560 = vmatprep.subr.bf16.mxu1 %v11146_v62  ;;  %v1685_v11 = vld [vmem:[#allocation8 + $0x1c68] sm:$0xff]  ;;  %v12643_v62 = vpack.c.bf16 %v756_v50, %v756_v50 }
 0x2eb   :  { %v11186_v32 = vcombine.high %v1681_v61, %v1685_v11  ;;  %v1717_v50 = vld [vmem:[#allocation8 + $0x1d68] sm:$0xff] }
 0x2ec   :  { %7233 = vmatpush1.bf16.msra.mxu0 %v11143_v8  ;;  %v1689_v8 = vld [vmem:[#allocation8 + $0x1c88] sm:$0xff] }
 0x2ed   :  { %7561 = vmatpush1.bf16.msra.mxu1 %v11145_v27  ;;  %7234 = vmatprep.subr.bf16.mxu0 %v11152_v6  ;;  %v1693_v27 = vld [vmem:[#allocation8 + $0x1ca8] sm:$0xff]  ;;  %v11183_v6 = vcombine.low %v1680_v55, %v1684_v58  ;;  %v1720_v55 = vld [vmem:[#allocation8 + $0x1d80] sm:$0xff] }
 0x2ee   :  { %7562 = vmatprep.subr.bf16.mxu1 %v11154_v10  ;;  %v11185_v10 = vcombine.low %v1681_v61, %v1685_v11  ;;  %v11194_v13 = vcombine.high %v1689_v8, %v1693_v27  ;;  %v1724_v58 = vld [vmem:[#allocation8 + $0x1da0] sm:$0xff]  ;;  %v1725_v61 = vld [vmem:[#allocation8 + $0x1da8] sm:$0xff]  ;;  %v11215_v11 = vcombine.low %v1712_v43, %v1716_v45 }
 0x2f0   :  { %7235 = vmatpush1.bf16.msra.mxu0 %v11151_v49  ;;  %v1697_v49 = vld [vmem:[#allocation8 + $0x1cc8] sm:$0xff] }
 0x2f1   :  { %7563 = vmatpush1.bf16.msra.mxu1 %v11153_v5  ;;  %7236 = vmatprep.subr.bf16.mxu0 %v11160_v23  ;;  %v1701_v5 = vld [vmem:[#allocation8 + $0x1ce8] sm:$0xff]  ;;  %v11191_v23 = vcombine.low %v1688_v0, %v1692_v2  ;;  %v1728_v2 = vld [vmem:[#allocation8 + $0x1dc0] sm:$0xff] }
 0x2f2   :  { %7564 = vmatprep.subr.bf16.mxu1 %v11162_v25  ;;  %v11193_v25 = vcombine.low %v1689_v8, %v1693_v27  ;;  %v11202_v29 = vcombine.high %v1697_v49, %v1701_v5  ;;  %v1729_v8 = vld [vmem:[#allocation8 + $0x1dc8] sm:$0xff] }
 0x2f3   :  { %v1733_v27 = vld [vmem:[#allocation8 + $0x1de8] sm:$0xff] }
 0x2f4   :  { %7237 = vmatpush1.bf16.msra.mxu0 %v11159_v48  ;;  %v1705_v48 = vld [vmem:[#allocation8 + $0x1d08] sm:$0xff] }
 0x2f5   :  { %7565 = vmatpush1.bf16.msra.mxu1 %v11161_v37  ;;  %7238 = vmatprep.subr.bf16.mxu0 %v11168_v24  ;;  %v1709_v37 = vld [vmem:[#allocation8 + $0x1d28] sm:$0xff]  ;;  %v11199_v24 = vcombine.low %v1696_v19, %v1700_v1  ;;  %v1736_v19 = vld [vmem:[#allocation8 + $0x1e00] sm:$0xff] }
 0x2f6   :  { %7566 = vmatprep.subr.bf16.mxu1 %v11170_v59  ;;  %v11201_v59 = vcombine.low %v1697_v49, %v1701_v5  ;;  %v11210_v42 = vcombine.high %v1705_v48, %v1709_v37  ;;  %v1740_v1 = vld [vmem:[#allocation8 + $0x1e20] sm:$0xff]  ;;  %v1737_v49 = vld [vmem:[#allocation8 + $0x1e08] sm:$0xff] }
 0x2f7   :  { %v1741_v5 = vld [vmem:[#allocation8 + $0x1e28] sm:$0xff] }
 0x2f8   :  { %7239 = vmatpush1.bf16.msra.mxu0 %v11167_v20  ;;  %v1713_v20 = vld [vmem:[#allocation8 + $0x1d48] sm:$0xff] }
 0x2f9   :  { %7567 = vmatpush1.bf16.msra.mxu1 %v11169_v57  ;;  %7249 = vmatprep.subr.bf16.mxu0 %v11176_v51  ;;  %v11207_v57 = vcombine.low %v1704_v14, %v1708_v35  ;;  %v11209_v51 = vcombine.low %v1705_v48, %v1709_v37  ;;  %v11218_v52 = vcombine.high %v1713_v20, %v1717_v50  ;;  %v1744_v14 = vld [vmem:[#allocation8 + $0x1e40] sm:$0xff]  ;;  %v1745_v48 = vld [vmem:[#allocation8 + $0x1e48] sm:$0xff] }
 0x2fa   :  { %7577 = vmatprep.subr.bf16.mxu1 %v11178_v53  ;;  %v11216_v53 = vcombine.high %v1712_v43, %v1716_v45  ;;  %v1748_v35 = vld [vmem:[#allocation8 + $0x1e60] sm:$0xff]  ;;  %v1749_v37 = vld [vmem:[#allocation8 + $0x1e68] sm:$0xff] }
 0x2fb   :  { %7241 = vmatmul.mubr.bf16.vlgmr.msra.gmra.mrb[16].mxu0 %v12643_v62  ;;  %v1752_v43 = vld [vmem:[#allocation8 + $0x1e80] sm:$0xff] }
 0x2fc   :  { %7569 = vmatmul.mubr.bf16.vlgmr.msra.gmra.mrb[16].mxu1 %v12643_v62  ;;  %7250 = vmatpush1.bf16.msra.mxu0 %v11175_v60  ;;  %v1721_v60 = vld [vmem:[#allocation8 + $0x1d88] sm:$0xff]  ;;  %v1756_v45 = vld [vmem:[#allocation8 + $0x1ea0] sm:$0xff] }
 0x2fd   :  { %7281 = vmatprep.mubr.bf16.mxu0 %v12645_v16  ;;  %7578 = vmatpush1.bf16.msra.mxu1 %v11177_v63  ;;  %v11217_v63 = vcombine.low %v1713_v20, %v1717_v50  ;;  %v11226_v0 = vcombine.high %v1721_v60, %v1725_v61  ;;  %v1753_v20 = vld [vmem:[#allocation8 + $0x1e88] sm:$0xff] }
 0x2fe   :  { %7609 = vmatprep.mubr.bf16.mxu1 %v12645_v16  ;;  %7251 = vmatprep.subr.bf16.mxu0 %v11184_v36  ;;  %v11224_v36 = vcombine.high %v1720_v55, %v1724_v58  ;;  %v1757_v50 = vld [vmem:[#allocation8 + $0x1ea8] sm:$0xff] }
 0x2ff   :  { %7579 = vmatprep.subr.bf16.mxu1 %v11186_v32  ;;  %v1732_v32 = vld [vmem:[#allocation8 + $0x1de0] sm:$0xff] }
 0x300   :  { %7252 = vmatpush1.bf16.msra.mxu0 %v11183_v6  ;;  %v11223_v6 = vcombine.low %v1720_v55, %v1724_v58  ;;  %v1760_v55 = vld [vmem:[#allocation8 + $0x1ec0] sm:$0xff] }
 0x301   :  { %7580 = vmatpush1.bf16.msra.mxu1 %v11185_v10  ;;  %7253 = vmatprep.subr.bf16.mxu0 %v11192_v12  ;;  %v11225_v10 = vcombine.low %v1721_v60, %v1725_v61  ;;  %v11232_v12 = vcombine.high %v1728_v2, %v1732_v32  ;;  %v1764_v58 = vld [vmem:[#allocation8 + $0x1ee0] sm:$0xff]  ;;  %v1761_v60 = vld [vmem:[#allocation8 + $0x1ec8] sm:$0xff] }
 0x302   :  { %7581 = vmatprep.subr.bf16.mxu1 %v11194_v13  ;;  %v11234_v13 = vcombine.high %v1729_v8, %v1733_v27  ;;  %v1765_v61 = vld [vmem:[#allocation8 + $0x1ee8] sm:$0xff] }
 0x304   :  { %7254 = vmatpush1.bf16.msra.mxu0 %v11191_v23  ;;  %v11231_v23 = vcombine.low %v1728_v2, %v1732_v32  ;;  %v1768_v2 = vld [vmem:[#allocation8 + $0x1f00] sm:$0xff] }
 0x305   :  { %7582 = vmatpush1.bf16.msra.mxu1 %v11193_v25  ;;  %7255 = vmatprep.subr.bf16.mxu0 %v11200_v28  ;;  %v11233_v25 = vcombine.low %v1729_v8, %v1733_v27  ;;  %v11240_v28 = vcombine.high %v1736_v19, %v1740_v1  ;;  %v1772_v32 = vld [vmem:[#allocation8 + $0x1f20] sm:$0xff]  ;;  %v1769_v8 = vld [vmem:[#allocation8 + $0x1f08] sm:$0xff] }
 0x306   :  { %7583 = vmatprep.subr.bf16.mxu1 %v11202_v29  ;;  %v11242_v29 = vcombine.high %v1737_v49, %v1741_v5  ;;  %v1773_v27 = vld [vmem:[#allocation8 + $0x1f28] sm:$0xff] }
 0x308   :  { %7256 = vmatpush1.bf16.msra.mxu0 %v11199_v24  ;;  %v11239_v24 = vcombine.low %v1736_v19, %v1740_v1  ;;  %v1776_v19 = vld [vmem:[#allocation8 + $0x1f40] sm:$0xff] }
 0x309   :  { %7584 = vmatpush1.bf16.msra.mxu1 %v11201_v59  ;;  %7257 = vmatprep.subr.bf16.mxu0 %v11208_v41  ;;  %v11241_v59 = vcombine.low %v1737_v49, %v1741_v5  ;;  %v11248_v41 = vcombine.high %v1744_v14, %v1748_v35  ;;  %v1780_v1 = vld [vmem:[#allocation8 + $0x1f60] sm:$0xff]  ;;  %v1777_v49 = vld [vmem:[#allocation8 + $0x1f48] sm:$0xff] }
 0x30a   :  { %7585 = vmatprep.subr.bf16.mxu1 %v11210_v42  ;;  %v11250_v42 = vcombine.high %v1745_v48, %v1749_v37  ;;  %v1781_v5 = vld [vmem:[#allocation8 + $0x1f68] sm:$0xff] }
 0x30c   :  { %7258 = vmatpush1.bf16.msra.mxu0 %v11207_v57  ;;  %v11247_v57 = vcombine.low %v1744_v14, %v1748_v35  ;;  %v1784_v14 = vld [vmem:[#allocation8 + $0x1f80] sm:$0xff] }
 0x30d   :  { %7586 = vmatpush1.bf16.msra.mxu1 %v11209_v51  ;;  %7259 = vmatprep.subr.bf16.mxu0 %v11216_v53  ;;  %v11249_v51 = vcombine.low %v1745_v48, %v1749_v37  ;;  %v11256_v53 = vcombine.high %v1752_v43, %v1756_v45  ;;  %v1788_v35 = vld [vmem:[#allocation8 + $0x1fa0] sm:$0xff]  ;;  %v1785_v48 = vld [vmem:[#allocation8 + $0x1f88] sm:$0xff] }
 0x30e   :  { %7587 = vmatprep.subr.bf16.mxu1 %v11218_v52  ;;  %v11258_v52 = vcombine.high %v1753_v20, %v1757_v50  ;;  %v1789_v37 = vld [vmem:[#allocation8 + $0x1fa8] sm:$0xff] }
 0x310   :  { %7260 = vmatpush1.bf16.msra.mxu0 %v11215_v11  ;;  %v11255_v11 = vcombine.low %v1752_v43, %v1756_v45  ;;  %v1792_v43 = vld [vmem:[#allocation8 + $0x1fc0] sm:$0xff] }
 0x311   :  { %7588 = vmatpush1.bf16.msra.mxu1 %v11217_v63  ;;  %7261 = vmatprep.subr.bf16.mxu0 %v11224_v36  ;;  %v11257_v63 = vcombine.low %v1753_v20, %v1757_v50  ;;  %v11264_v36 = vcombine.high %v1760_v55, %v1764_v58  ;;  %v1796_v45 = vld [vmem:[#allocation8 + $0x1fe0] sm:$0xff]  ;;  %v1793_v20 = vld [vmem:[#allocation8 + $0x1fc8] sm:$0xff] }
 0x312   :  { %7589 = vmatprep.subr.bf16.mxu1 %v11226_v0  ;;  %v11266_v0 = vcombine.high %v1761_v60, %v1765_v61  ;;  %v1797_v50 = vld [vmem:[#allocation8 + $0x1fe8] sm:$0xff] }
 0x314   :  { %7262 = vmatpush1.bf16.msra.mxu0 %v11223_v6  ;;  %v11263_v6 = vcombine.low %v1760_v55, %v1764_v58  ;;  %v778_v55 = vld [vmem:[#allocation8 + $0x10] sm:$0xff] }
 0x315   :  { %7590 = vmatpush1.bf16.msra.mxu1 %v11225_v10  ;;  %7263 = vmatprep.subr.bf16.mxu0 %v11232_v12  ;;  %v11265_v10 = vcombine.low %v1761_v60, %v1765_v61  ;;  %v11272_v12 = vcombine.high %v1768_v2, %v1772_v32  ;;  %v782_v58 = vld [vmem:[#allocation8 + $0x30] sm:$0xff]  ;;  %v779_v60 = vld [vmem:[#allocation8 + $0x18] sm:$0xff] }
 0x316   :  { %7591 = vmatprep.subr.bf16.mxu1 %v11234_v13  ;;  %v11274_v13 = vcombine.high %v1769_v8, %v1773_v27  ;;  %v783_v61 = vld [vmem:[#allocation8 + $0x38] sm:$0xff] }
 0x318   :  { %7264 = vmatpush1.bf16.msra.mxu0 %v11231_v23  ;;  %v11271_v23 = vcombine.low %v1768_v2, %v1772_v32  ;;  %v10286_v2 = vcombine.high %v779_v60, %v783_v61  ;;  %v786_v32 = vld [vmem:[#allocation8 + $0x50] sm:$0xff] }
 0x319   :  { %7592 = vmatpush1.bf16.msra.mxu1 %v11233_v25  ;;  %7265 = vmatprep.subr.bf16.mxu0 %v11240_v28  ;;  %v11273_v25 = vcombine.low %v1769_v8, %v1773_v27  ;;  %v11280_v28 = vcombine.high %v1776_v19, %v1780_v1  ;;  %v790_v8 = vld [vmem:[#allocation8 + $0x70] sm:$0xff]  ;;  %v10283_v27 = vcombine.low %v778_v55, %v782_v58 }
 0x31a   :  { %7593 = vmatprep.subr.bf16.mxu1 %v11242_v29  ;;  %v11282_v29 = vcombine.high %v1777_v49, %v1781_v5 }
 0x31c   :  { %7266 = vmatpush1.bf16.msra.mxu0 %v11239_v24  ;;  %v11279_v24 = vcombine.low %v1776_v19, %v1780_v1  ;;  %v10292_v19 = vcombine.high %v786_v32, %v790_v8  ;;  %v798_v1 = vld [vmem:[#allocation8 + $0xb0] sm:$0xff] }
 0x31d   :  { %7594 = vmatpush1.bf16.msra.mxu1 %v11241_v59  ;;  %7267 = vmatprep.subr.bf16.mxu0 %v11248_v41  ;;  %v11281_v59 = vcombine.low %v1777_v49, %v1781_v5  ;;  %v11288_v41 = vcombine.high %v1784_v14, %v1788_v35  ;;  %v795_v5 = vld [vmem:[#allocation8 + $0x98] sm:$0xff] }
 0x31e   :  { %7595 = vmatprep.subr.bf16.mxu1 %v11250_v42  ;;  %v11290_v42 = vcombine.high %v1785_v48, %v1789_v37 }
 0x320   :  { %7268 = vmatpush1.bf16.msra.mxu0 %v11247_v57  ;;  %v11287_v57 = vcombine.low %v1784_v14, %v1788_v35  ;;  %v802_v35 = vld [vmem:[#allocation8 + $0xd0] sm:$0xff] }
 0x321   :  { %7596 = vmatpush1.bf16.msra.mxu1 %v11249_v51  ;;  %7269 = vmatprep.subr.bf16.mxu0 %v11256_v53  ;;  %v11289_v51 = vcombine.low %v1785_v48, %v1789_v37  ;;  %v11296_v53 = vcombine.high %v1792_v43, %v1796_v45  ;;  %v806_v48 = vld [vmem:[#allocation8 + $0xf0] sm:$0xff]  ;;  %v803_v37 = vld [vmem:[#allocation8 + $0xd8] sm:$0xff] }
 0x322   :  { %7597 = vmatprep.subr.bf16.mxu1 %v11258_v52  ;;  %v11298_v52 = vcombine.high %v1793_v20, %v1797_v50 }
 0x324   :  { %7270 = vmatpush1.bf16.msra.mxu0 %v11255_v11  ;;  %v11295_v11 = vcombine.low %v1792_v43, %v1796_v45  ;;  %v810_v45 = vld [vmem:[#allocation8 + $0x110] sm:$0xff] }
 0x325   :  { %7598 = vmatpush1.bf16.msra.mxu1 %v11257_v63  ;;  %7271 = vmatprep.subr.bf16.mxu0 %v11264_v36  ;;  %v758_v63 = vmax.f32 %v12572_v31, 0.0  ;;  %v11297_v36 = vcombine.low %v1793_v20, %v1797_v50  ;;  %v794_v31 = vld [vmem:[#allocation8 + $0x90] sm:$0xff]  ;;  %v811_v50 = vld [vmem:[#allocation8 + $0x118] sm:$0xff] }
 0x326   :  { %7599 = vmatprep.subr.bf16.mxu1 %v11266_v0  ;;  %v10284_v0 = vcombine.high %v778_v55, %v782_v58  ;;  %v814_v20 = vld [vmem:[#allocation8 + $0x130] sm:$0xff] }
 0x327   :  { %v818_v55 = vld [vmem:[#allocation8 + $0x150] sm:$0xff] }
 0x328   :  { %7272 = vmatpush1.bf16.msra.mxu0 %v11263_v6  ;;  %v787_v6 = vld [vmem:[#allocation8 + $0x58] sm:$0xff]  ;;  %v822_v58 = vld [vmem:[#allocation8 + $0x170] sm:$0xff] }
 0x329   :  { %7600 = vmatpush1.bf16.msra.mxu1 %v11265_v10  ;;  %7273 = vmatprep.subr.bf16.mxu0 %v11272_v12  ;;  %v791_v10 = vld [vmem:[#allocation8 + $0x78] sm:$0xff]  ;;  %v12652_v12 = vpack.c.bf16 %v758_v63, %v758_v63 }
 0x32a   :  { %7601 = vmatprep.subr.bf16.mxu1 %v11274_v13  ;;  %v10285_v13 = vcombine.low %v779_v60, %v783_v61  ;;  %v10294_v49 = vcombine.high %v787_v6, %v791_v10  ;;  %v819_v60 = vld [vmem:[#allocation8 + $0x158] sm:$0xff] }
 0x32b   :  { %v823_v61 = vld [vmem:[#allocation8 + $0x178] sm:$0xff] }
 0x32c   :  { %7274 = vmatpush1.bf16.msra.mxu0 %v11271_v23  ;;  %v799_v23 = vld [vmem:[#allocation8 + $0xb8] sm:$0xff] }
 0x32d   :  { %7602 = vmatpush1.bf16.msra.mxu1 %v11273_v25  ;;  %7275 = vmatprep.subr.bf16.mxu0 %v11280_v28  ;;  %v10291_v25 = vcombine.low %v786_v32, %v790_v8  ;;  %v10293_v28 = vcombine.low %v787_v6, %v791_v10  ;;  %v10302_v14 = vcombine.high %v795_v5, %v799_v23  ;;  %v830_v32 = vld [vmem:[#allocation8 + $0x1b0] sm:$0xff]  ;;  %v827_v8 = vld [vmem:[#allocation8 + $0x198] sm:$0xff] }
 0x32e   :  { %7603 = vmatprep.subr.bf16.mxu1 %v11282_v29  ;;  %v10300_v29 = vcombine.high %v794_v31, %v798_v1  ;;  %v10323_v6 = vcombine.low %v818_v55, %v822_v58  ;;  %v10325_v10 = vcombine.low %v819_v60, %v823_v61 }
 0x330   :  { %7276 = vmatpush1.bf16.msra.mxu0 %v11279_v24  ;;  %v807_v24 = vld [vmem:[#allocation8 + $0xf8] sm:$0xff] }
 0x331   :  { %7604 = vmatpush1.bf16.msra.mxu1 %v11281_v59  ;;  %7277 = vmatprep.subr.bf16.mxu0 %v11288_v41  ;;  %v10299_v59 = vcombine.low %v794_v31, %v798_v1  ;;  %v10301_v41 = vcombine.low %v795_v5, %v799_v23  ;;  %v10310_v43 = vcombine.high %v803_v37, %v807_v24  ;;  %v834_v31 = vld [vmem:[#allocation8 + $0x1d0] sm:$0xff]  ;;  %v839_v5 = vld [vmem:[#allocation8 + $0x1f8] sm:$0xff] }
 0x332   :  { %7605 = vmatprep.subr.bf16.mxu1 %v11290_v42  ;;  %v10308_v42 = vcombine.high %v802_v35, %v806_v48  ;;  %v838_v1 = vld [vmem:[#allocation8 + $0x1f0] sm:$0xff] }
 0x334   :  { %7278 = vmatpush1.bf16.msra.mxu0 %v11287_v57  ;;  %v815_v57 = vld [vmem:[#allocation8 + $0x138] sm:$0xff] }
 0x335   :  { %7606 = vmatpush1.bf16.msra.mxu1 %v11289_v51  ;;  %7279 = vmatprep.subr.bf16.mxu0 %v11296_v53  ;;  %v10309_v51 = vcombine.low %v803_v37, %v807_v24  ;;  %v10316_v53 = vcombine.high %v810_v45, %v814_v20  ;;  %v10317_v63 = vcombine.low %v811_v50, %v815_v57  ;;  %v847_v37 = vld [vmem:[#allocation8 + $0x238] sm:$0xff] }
 0x336   :  { %7607 = vmatprep.subr.bf16.mxu1 %v11298_v52  ;;  %v10318_v52 = vcombine.high %v811_v50, %v815_v57  ;;  %v10339_v24 = vcombine.low %v834_v31, %v838_v1  ;;  %v855_v50 = vld [vmem:[#allocation8 + $0x278] sm:$0xff] }
 0x338   :  { %7280 = vmatpush1.bf16.msra.mxu0 %v11295_v11  ;;  %v10315_v11 = vcombine.low %v810_v45, %v814_v20  ;;  %v854_v45 = vld [vmem:[#allocation8 + $0x270] sm:$0xff]  ;;  %v851_v20 = vld [vmem:[#allocation8 + $0x258] sm:$0xff] }
 0x339   :  { %7608 = vmatpush1.bf16.msra.mxu1 %v11297_v36  ;;  %7618 = vmatprep.subr.bf16.mxu0 %v10284_v0  ;;  %v10324_v36 = vcombine.high %v818_v55, %v822_v58  ;;  %v10326_v0 = vcombine.high %v819_v60, %v823_v61  ;;  %v862_v55 = vld [vmem:[#allocation8 + $0x2b0] sm:$0xff]  ;;  %v859_v58 = vld [vmem:[#allocation8 + $0x298] sm:$0xff] }
 0x33a   :  { %7946 = vmatprep.subr.bf16.mxu1 %v10286_v2  ;;  %v826_v2 = vld [vmem:[#allocation8 + $0x190] sm:$0xff]  ;;  %v863_v60 = vld [vmem:[#allocation8 + $0x2b8] sm:$0xff] }
 0x33b   :  { %7282 = vmatmul.mubr.bf16.vlgmr.msra.gmra.mrb[16].mxu0 %v12652_v12  ;;  %v10331_v23 = vcombine.low %v826_v2, %v830_v32 }
 0x33c   :  { %7610 = vmatmul.mubr.bf16.vlgmr.msra.gmra.mrb[16].mxu1 %v12652_v12  ;;  %7619 = vmatpush1.bf16.msra.mxu0 %v10283_v27  ;;  %v831_v27 = vld [vmem:[#allocation8 + $0x1b8] sm:$0xff] }
 0x33d   :  { %7650 = vmatprep.mubr.bf16.mxu0 %v12511_v38  ;;  %7947 = vmatpush1.bf16.msra.mxu1 %v10285_v13  ;;  %v10332_v13 = vcombine.high %v826_v2, %v830_v32  ;;  %v870_v2 = vld [vmem:[#allocation8 + $0x2f0] sm:$0xff]  ;;  %v867_v32 = vld [vmem:[#allocation8 + $0x2d8] sm:$0xff] }
 0x33e   :  { %7978 = vmatprep.mubr.bf16.mxu1 %v12511_v38  ;;  %7620 = vmatprep.subr.bf16.mxu0 %v10292_v19  ;;  %v10307_v38 = vcombine.low %v802_v35, %v806_v48  ;;  %v10334_v19 = vcombine.high %v827_v8, %v831_v27  ;;  %v846_v35 = vld [vmem:[#allocation8 + $0x230] sm:$0xff]  ;;  %v843_v48 = vld [vmem:[#allocation8 + $0x218] sm:$0xff] }
 0x33f   :  { %7948 = vmatprep.subr.bf16.mxu1 %v10294_v49  ;;  %v835_v49 = vld [vmem:[#allocation8 + $0x1d8] sm:$0xff] }
 0x340   :  { %7621 = vmatpush1.bf16.msra.mxu0 %v10291_v25  ;;  %v10333_v25 = vcombine.low %v827_v8, %v831_v27  ;;  %v871_v8 = vld [vmem:[#allocation8 + $0x2f8] sm:$0xff] }
 0x341   :  { %7949 = vmatpush1.bf16.msra.mxu1 %v10293_v28  ;;  %7622 = vmatprep.subr.bf16.mxu0 %v10300_v29  ;;  %v10340_v28 = vcombine.high %v834_v31, %v838_v1  ;;  %v10342_v29 = vcombine.high %v835_v49, %v839_v5  ;;  %v878_v31 = vld [vmem:[#allocation8 + $0x330] sm:$0xff]  ;;  %v875_v1 = vld [vmem:[#allocation8 + $0x318] sm:$0xff] }
 0x342   :  { %7950 = vmatprep.subr.bf16.mxu1 %v10302_v14  ;;  %v842_v14 = vld [vmem:[#allocation8 + $0x210] sm:$0xff] }
 0x343   :  { %v10347_v57 = vcombine.low %v842_v14, %v846_v35 }
 0x344   :  { %7623 = vmatpush1.bf16.msra.mxu0 %v10299_v59  ;;  %v10341_v59 = vcombine.low %v835_v49, %v839_v5  ;;  %v879_v49 = vld [vmem:[#allocation8 + $0x338] sm:$0xff] }
 0x345   :  { %7951 = vmatpush1.bf16.msra.mxu1 %v10301_v41  ;;  %7624 = vmatprep.subr.bf16.mxu0 %v10308_v42  ;;  %v10348_v41 = vcombine.high %v842_v14, %v846_v35  ;;  %v10350_v42 = vcombine.high %v843_v48, %v847_v37  ;;  %v886_v14 = vld [vmem:[#allocation8 + $0x370] sm:$0xff]  ;;  %v883_v35 = vld [vmem:[#allocation8 + $0x358] sm:$0xff] }
 0x346   :  { %7952 = vmatprep.subr.bf16.mxu1 %v10310_v43  ;;  %v850_v43 = vld [vmem:[#allocation8 + $0x250] sm:$0xff] }
 0x347   :  { %v10355_v61 = vcombine.low %v850_v43, %v854_v45 }
 0x348   :  { %7625 = vmatpush1.bf16.msra.mxu0 %v10307_v38  ;;  %v10349_v38 = vcombine.low %v843_v48, %v847_v37  ;;  %v887_v48 = vld [vmem:[#allocation8 + $0x378] sm:$0xff] }
 0x349   :  { %7953 = vmatpush1.bf16.msra.mxu1 %v10309_v51  ;;  %7626 = vmatprep.subr.bf16.mxu0 %v10316_v53  ;;  %v10356_v51 = vcombine.high %v850_v43, %v854_v45  ;;  %v10358_v53 = vcombine.high %v851_v20, %v855_v50  ;;  %v894_v43 = vld [vmem:[#allocation8 + $0x3b0] sm:$0xff]  ;;  %v891_v45 = vld [vmem:[#allocation8 + $0x398] sm:$0xff] }
 0x34a   :  { %7954 = vmatprep.subr.bf16.mxu1 %v10318_v52  ;;  %v858_v52 = vld [vmem:[#allocation8 + $0x290] sm:$0xff] }
 0x34b   :  { %v10363_v27 = vcombine.low %v858_v52, %v862_v55 }
 0x34c   :  { %7627 = vmatpush1.bf16.msra.mxu0 %v10315_v11  ;;  %v10357_v11 = vcombine.low %v851_v20, %v855_v50  ;;  %v895_v20 = vld [vmem:[#allocation8 + $0x3b8] sm:$0xff] }
 0x34d   :  { %7955 = vmatpush1.bf16.msra.mxu1 %v10317_v63  ;;  %7628 = vmatprep.subr.bf16.mxu0 %v10324_v36  ;;  %v10364_v63 = vcombine.high %v858_v52, %v862_v55  ;;  %v10366_v36 = vcombine.high %v859_v58, %v863_v60  ;;  %v902_v52 = vld [vmem:[#allocation8 + $0x3f0] sm:$0xff]  ;;  %v899_v55 = vld [vmem:[#allocation8 + $0x3d8] sm:$0xff] }
 0x34e   :  { %7956 = vmatprep.subr.bf16.mxu1 %v10326_v0  ;;  %v866_v0 = vld [vmem:[#allocation8 + $0x2d0] sm:$0xff] }
 0x34f   :  { %v10371_v5 = vcombine.low %v866_v0, %v870_v2 }
 0x350   :  { %7629 = vmatpush1.bf16.msra.mxu0 %v10323_v6  ;;  %v10365_v6 = vcombine.low %v859_v58, %v863_v60  ;;  %v903_v58 = vld [vmem:[#allocation8 + $0x3f8] sm:$0xff] }
 0x351   :  { %7957 = vmatpush1.bf16.msra.mxu1 %v10325_v10  ;;  %7630 = vmatprep.subr.bf16.mxu0 %v10332_v13  ;;  %v10372_v10 = vcombine.high %v866_v0, %v870_v2  ;;  %v10374_v13 = vcombine.high %v867_v32, %v871_v8  ;;  %v910_v0 = vld [vmem:[#allocation8 + $0x430] sm:$0xff]  ;;  %v907_v2 = vld [vmem:[#allocation8 + $0x418] sm:$0xff] }
 0x352   :  { %7958 = vmatprep.subr.bf16.mxu1 %v10334_v19  ;;  %v874_v19 = vld [vmem:[#allocation8 + $0x310] sm:$0xff] }
 0x353   :  { %v10379_v37 = vcombine.low %v874_v19, %v878_v31 }
 0x354   :  { %7631 = vmatpush1.bf16.msra.mxu0 %v10331_v23  ;;  %v10373_v23 = vcombine.low %v867_v32, %v871_v8  ;;  %v911_v32 = vld [vmem:[#allocation8 + $0x438] sm:$0xff] }
 0x355   :  { %7959 = vmatpush1.bf16.msra.mxu1 %v10333_v25  ;;  %7632 = vmatprep.subr.bf16.mxu0 %v10340_v28  ;;  %v10380_v25 = vcombine.high %v874_v19, %v878_v31  ;;  %v10382_v28 = vcombine.high %v875_v1, %v879_v49  ;;  %v918_v19 = vld [vmem:[#allocation8 + $0x470] sm:$0xff] }
 0x356   :  { %7960 = vmatprep.subr.bf16.mxu1 %v10342_v29  ;;  %v882_v29 = vld [vmem:[#allocation8 + $0x350] sm:$0xff] }
 0x357   :  { %v10387_v50 = vcombine.low %v882_v29, %v886_v14 }
 0x358   :  { %7633 = vmatpush1.bf16.msra.mxu0 %v10339_v24  ;;  %v10381_v24 = vcombine.low %v875_v1, %v879_v49  ;;  %v915_v1 = vld [vmem:[#allocation8 + $0x458] sm:$0xff] }
 0x359   :  { %7961 = vmatpush1.bf16.msra.mxu1 %v10341_v59  ;;  %7634 = vmatprep.subr.bf16.mxu0 %v10348_v41  ;;  %v10388_v59 = vcombine.high %v882_v29, %v886_v14  ;;  %v10390_v41 = vcombine.high %v883_v35, %v887_v48  ;;  %v919_v49 = vld [vmem:[#allocation8 + $0x478] sm:$0xff] }
 0x35a   :  { %7962 = vmatprep.subr.bf16.mxu1 %v10350_v42  ;;  %v890_v42 = vld [vmem:[#allocation8 + $0x390] sm:$0xff]  ;;  %v10422_v29 = vcombine.high %v915_v1, %v919_v49  ;;  %v923_v14 = vld [vmem:[#allocation8 + $0x498] sm:$0xff] }
 0x35b   :  { %v10395_v60 = vcombine.low %v890_v42, %v894_v43 }
 0x35c   :  { %7635 = vmatpush1.bf16.msra.mxu0 %v10347_v57  ;;  %v10389_v57 = vcombine.low %v883_v35, %v887_v48  ;;  %v927_v35 = vld [vmem:[#allocation8 + $0x4b8] sm:$0xff] }
 0x35d   :  { %7963 = vmatpush1.bf16.msra.mxu1 %v10349_v38  ;;  %7636 = vmatprep.subr.bf16.mxu0 %v10356_v51  ;;  %v10396_v38 = vcombine.high %v890_v42, %v894_v43  ;;  %v10398_v51 = vcombine.high %v891_v45, %v895_v20  ;;  %v934_v42 = vld [vmem:[#allocation8 + $0x4f0] sm:$0xff]  ;;  %v931_v43 = vld [vmem:[#allocation8 + $0x4d8] sm:$0xff] }
 0x35e   :  { %7964 = vmatprep.subr.bf16.mxu1 %v10358_v53  ;;  %v898_v53 = vld [vmem:[#allocation8 + $0x3d0] sm:$0xff] }
 0x35f   :  { %v10403_v8 = vcombine.low %v898_v53, %v902_v52 }
 0x360   :  { %7637 = vmatpush1.bf16.msra.mxu0 %v10355_v61  ;;  %v10397_v61 = vcombine.low %v891_v45, %v895_v20  ;;  %v935_v45 = vld [vmem:[#allocation8 + $0x4f8] sm:$0xff] }
 0x361   :  { %7965 = vmatpush1.bf16.msra.mxu1 %v10357_v11  ;;  %7638 = vmatprep.subr.bf16.mxu0 %v10364_v63  ;;  %v10404_v11 = vcombine.high %v898_v53, %v902_v52  ;;  %v10406_v63 = vcombine.high %v899_v55, %v903_v58  ;;  %v939_v53 = vld [vmem:[#allocation8 + $0x518] sm:$0xff] }
 0x362   :  { %7966 = vmatprep.subr.bf16.mxu1 %v10366_v36  ;;  %v906_v36 = vld [vmem:[#allocation8 + $0x410] sm:$0xff]  ;;  %v943_v52 = vld [vmem:[#allocation8 + $0x538] sm:$0xff] }
 0x363   :  { %v10411_v31 = vcombine.low %v906_v36, %v910_v0 }
 0x364   :  { %7639 = vmatpush1.bf16.msra.mxu0 %v10363_v27  ;;  %v10405_v27 = vcombine.low %v899_v55, %v903_v58  ;;  %v10437_v55 = vcombine.low %v931_v43, %v935_v45 }
 0x365   :  { %7967 = vmatpush1.bf16.msra.mxu1 %v10365_v6  ;;  %7640 = vmatprep.subr.bf16.mxu0 %v10372_v10  ;;  %v10412_v6 = vcombine.high %v906_v36, %v910_v0  ;;  %v10414_v10 = vcombine.high %v907_v2, %v911_v32  ;;  %v951_v36 = vld [vmem:[#allocation8 + $0x578] sm:$0xff] }
 0x366   :  { %7968 = vmatprep.subr.bf16.mxu1 %v10374_v13  ;;  %v914_v13 = vld [vmem:[#allocation8 + $0x450] sm:$0xff] }
 0x367   :  { %v10419_v48 = vcombine.low %v914_v13, %v918_v19 }
 0x368   :  { %7641 = vmatpush1.bf16.msra.mxu0 %v10371_v5  ;;  %v10413_v5 = vcombine.low %v907_v2, %v911_v32  ;;  %v10445_v2 = vcombine.low %v939_v53, %v943_v52 }
 0x369   :  { %7969 = vmatpush1.bf16.msra.mxu1 %v10373_v23  ;;  %7642 = vmatprep.subr.bf16.mxu0 %v10380_v25  ;;  %v10420_v23 = vcombine.high %v914_v13, %v918_v19  ;;  %v922_v25 = vld [vmem:[#allocation8 + $0x490] sm:$0xff]  ;;  %v959_v13 = vld [vmem:[#allocation8 + $0x5b8] sm:$0xff] }
 0x36a   :  { %7970 = vmatprep.subr.bf16.mxu1 %v10382_v28  ;;  %v926_v28 = vld [vmem:[#allocation8 + $0x4b0] sm:$0xff] }
 0x36b   :  { %v10427_v20 = vcombine.low %v922_v25, %v926_v28 }
 0x36c   :  { %7643 = vmatpush1.bf16.msra.mxu0 %v10379_v37  ;;  %v10421_v37 = vcombine.low %v915_v1, %v919_v49 }
 0x36d   :  { %7971 = vmatpush1.bf16.msra.mxu1 %v10381_v24  ;;  %7644 = vmatprep.subr.bf16.mxu0 %v10388_v59  ;;  %v10428_v24 = vcombine.high %v922_v25, %v926_v28  ;;  %v10430_v59 = vcombine.high %v923_v14, %v927_v35  ;;  %v963_v25 = vld [vmem:[#allocation8 + $0x5d8] sm:$0xff] }
 0x36e   :  { %7972 = vmatprep.subr.bf16.mxu1 %v10390_v41  ;;  %v930_v41 = vld [vmem:[#allocation8 + $0x4d0] sm:$0xff]  ;;  %v967_v28 = vld [vmem:[#allocation8 + $0x5f8] sm:$0xff] }
 0x370   :  { %7645 = vmatpush1.bf16.msra.mxu0 %v10387_v50  ;;  %v10436_v50 = vcombine.high %v930_v41, %v934_v42 }
 0x371   :  { %7973 = vmatpush1.bf16.msra.mxu1 %v10389_v57  ;;  %7646 = vmatprep.subr.bf16.mxu0 %v10396_v38  ;;  %v10438_v57 = vcombine.high %v931_v43, %v935_v45  ;;  %v938_v38 = vld [vmem:[#allocation8 + $0x510] sm:$0xff]  ;;  %v10469_v43 = vcombine.low %v963_v25, %v967_v28 }
 0x372   :  { %7974 = vmatprep.subr.bf16.mxu1 %v10398_v51  ;;  %v942_v51 = vld [vmem:[#allocation8 + $0x530] sm:$0xff] }
 0x373   :  { %v10444_v58 = vcombine.high %v938_v38, %v942_v51  ;;  %v10443_v0 = vcombine.low %v938_v38, %v942_v51  ;;  %v983_v38 = vld [vmem:[#allocation8 + $0x678] sm:$0xff] }
 0x374   :  { %7647 = vmatpush1.bf16.msra.mxu0 %v10395_v60  ;;  %v10446_v60 = vcombine.high %v939_v53, %v943_v52 }
 0x375   :  { %7975 = vmatpush1.bf16.msra.mxu1 %v10397_v61  ;;  %7648 = vmatprep.subr.bf16.mxu0 %v10404_v11  ;;  %v946_v61 = vld [vmem:[#allocation8 + $0x550] sm:$0xff] }
 0x376   :  { %7976 = vmatprep.subr.bf16.mxu1 %v10406_v63  ;;  %v950_v11 = vld [vmem:[#allocation8 + $0x570] sm:$0xff]  ;;  %v947_v63 = vld [vmem:[#allocation8 + $0x558] sm:$0xff] }
 0x377   :  { %v10452_v32 = vcombine.high %v946_v61, %v950_v11  ;;  %v10451_v19 = vcombine.low %v946_v61, %v950_v11  ;;  %v991_v61 = vld [vmem:[#allocation8 + $0x6b8] sm:$0xff] }
 0x378   :  { %7649 = vmatpush1.bf16.msra.mxu0 %v10403_v8  ;;  %v10454_v8 = vcombine.high %v947_v63, %v951_v36 }
 0x379   :  { %7977 = vmatpush1.bf16.msra.mxu1 %v10405_v27  ;;  %7659 = vmatprep.subr.bf16.mxu0 %v10412_v6  ;;  %v954_v27 = vld [vmem:[#allocation8 + $0x590] sm:$0xff] }
 0x37a   :  { %7987 = vmatprep.subr.bf16.mxu1 %v10414_v10  ;;  %v958_v6 = vld [vmem:[#allocation8 + $0x5b0] sm:$0xff]  ;;  %v955_v10 = vld [vmem:[#allocation8 + $0x598] sm:$0xff] }
 0x37b   :  { %7651 = vmatmul.mubr.bf16.vlgmr.msra.gmra.mrb[20].mxu0 %v12513_v40  ;;  %v10460_v1 = vcombine.high %v954_v27, %v958_v6  ;;  %v10462_v49 = vcombine.high %v955_v10, %v959_v13 }
 0x37c   :  { %7979 = vmatmul.mubr.bf16.vlgmr.msra.gmra.mrb[20].mxu1 %v12513_v40  ;;  %7660 = vmatpush1.bf16.msra.mxu0 %v10411_v31  ;;  %v10429_v40 = vcombine.low %v923_v14, %v927_v35  ;;  %v10453_v31 = vcombine.low %v947_v63, %v951_v36  ;;  %v10461_v14 = vcombine.low %v955_v10, %v959_v13 }
 0x37d   :  { %7691 = vmatprep.mubr.bf16.mxu0 %v12517_v47  ;;  %7988 = vmatpush1.bf16.msra.mxu1 %v10413_v5  ;;  %v962_v5 = vld [vmem:[#allocation8 + $0x5d0] sm:$0xff] }
 0x37e   :  { %8019 = vmatprep.mubr.bf16.mxu1 %v12517_v47  ;;  %7661 = vmatprep.subr.bf16.mxu0 %v10420_v23  ;;  %v10435_v47 = vcombine.low %v930_v41, %v934_v42  ;;  %v966_v23 = vld [vmem:[#allocation8 + $0x5f0] sm:$0xff]  ;;  %v975_v41 = vld [vmem:[#allocation8 + $0x638] sm:$0xff] }
 0x37f   :  { %7989 = vmatprep.subr.bf16.mxu1 %v10422_v29  ;;  %v10459_v29 = vcombine.low %v954_v27, %v958_v6  ;;  %v10468_v35 = vcombine.high %v962_v5, %v966_v23  ;;  %v10467_v42 = vcombine.low %v962_v5, %v966_v23  ;;  %v999_v27 = vld [vmem:[#allocation8 + $0x6f8] sm:$0xff] }
 0x380   :  { %7662 = vmatpush1.bf16.msra.mxu0 %v10419_v48  ;;  %v10470_v48 = vcombine.high %v963_v25, %v967_v28  ;;  %v1007_v5 = vld [vmem:[#allocation8 + $0x738] sm:$0xff] }
 0x381   :  { %7990 = vmatpush1.bf16.msra.mxu1 %v10421_v37  ;;  %7663 = vmatprep.subr.bf16.mxu0 %v10428_v24  ;;  %v970_v37 = vld [vmem:[#allocation8 + $0x610] sm:$0xff] }
 0x382   :  { %7991 = vmatprep.subr.bf16.mxu1 %v10430_v59  ;;  %v974_v24 = vld [vmem:[#allocation8 + $0x630] sm:$0xff]  ;;  %v971_v59 = vld [vmem:[#allocation8 + $0x618] sm:$0xff] }
 0x383   :  { %v10476_v45 = vcombine.high %v970_v37, %v974_v24  ;;  %v10475_v51 = vcombine.low %v970_v37, %v974_v24  ;;  %v10477_v53 = vcombine.low %v971_v59, %v975_v41  ;;  %v1015_v37 = vld [vmem:[#allocation8 + $0x778] sm:$0xff] }
 0x384   :  { %7664 = vmatpush1.bf16.msra.mxu0 %v10427_v20  ;;  %v10478_v20 = vcombine.high %v971_v59, %v975_v41 }
 0x385   :  { %7992 = vmatpush1.bf16.msra.mxu1 %v10429_v40  ;;  %7665 = vmatprep.subr.bf16.mxu0 %v10436_v50  ;;  %v978_v40 = vld [vmem:[#allocation8 + $0x650] sm:$0xff] }
 0x386   :  { %7993 = vmatprep.subr.bf16.mxu1 %v10438_v57  ;;  %v982_v50 = vld [vmem:[#allocation8 + $0x670] sm:$0xff]  ;;  %v979_v57 = vld [vmem:[#allocation8 + $0x658] sm:$0xff] }
 0x387   :  { %v10484_v52 = vcombine.high %v978_v40, %v982_v50  ;;  %v10483_v11 = vcombine.low %v978_v40, %v982_v50  ;;  %v10485_v63 = vcombine.low %v979_v57, %v983_v38  ;;  %v1023_v40 = vld [vmem:[#allocation8 + $0x7b8] sm:$0xff] }
 0x388   :  { %7666 = vmatpush1.bf16.msra.mxu0 %v10435_v47  ;;  %v10486_v47 = vcombine.high %v979_v57, %v983_v38 }
 0x389   :  { %7994 = vmatpush1.bf16.msra.mxu1 %v10437_v55  ;;  %7667 = vmatprep.subr.bf16.mxu0 %v10444_v58  ;;  %v986_v55 = vld [vmem:[#allocation8 + $0x690] sm:$0xff] }
 0x38a   :  { %7995 = vmatprep.subr.bf16.mxu1 %v10446_v60  ;;  %v990_v58 = vld [vmem:[#allocation8 + $0x6b0] sm:$0xff]  ;;  %v987_v60 = vld [vmem:[#allocation8 + $0x698] sm:$0xff] }
 0x38b   :  { %v10492_v36 = vcombine.high %v986_v55, %v990_v58  ;;  %v10491_v6 = vcombine.low %v986_v55, %v990_v58  ;;  %v10493_v10 = vcombine.low %v987_v60, %v991_v61  ;;  %v1031_v55 = vld [vmem:[#allocation8 + $0x7f8] sm:$0xff] }
 0x38c   :  { %7668 = vmatpush1.bf16.msra.mxu0 %v10443_v0  ;;  %v10494_v0 = vcombine.high %v987_v60, %v991_v61 }
 0x38d   :  { %7996 = vmatpush1.bf16.msra.mxu1 %v10445_v2  ;;  %7669 = vmatprep.subr.bf16.mxu0 %v10452_v32  ;;  %v994_v2 = vld [vmem:[#allocation8 + $0x6d0] sm:$0xff] }
 0x38e   :  { %7997 = vmatprep.subr.bf16.mxu1 %v10454_v8  ;;  %v998_v32 = vld [vmem:[#allocation8 + $0x6f0] sm:$0xff]  ;;  %v995_v8 = vld [vmem:[#allocation8 + $0x6d8] sm:$0xff] }
 0x38f   :  { %v10500_v13 = vcombine.high %v994_v2, %v998_v32  ;;  %v10499_v23 = vcombine.low %v994_v2, %v998_v32  ;;  %v10501_v25 = vcombine.low %v995_v8, %v999_v27  ;;  %v1039_v2 = vld [vmem:[#allocation8 + $0x838] sm:$0xff] }
 0x390   :  { %7670 = vmatpush1.bf16.msra.mxu0 %v10451_v19  ;;  %v10502_v19 = vcombine.high %v995_v8, %v999_v27 }
 0x391   :  { %7998 = vmatpush1.bf16.msra.mxu1 %v10453_v31  ;;  %7671 = vmatprep.subr.bf16.mxu0 %v10460_v1  ;;  %v1002_v31 = vld [vmem:[#allocation8 + $0x710] sm:$0xff] }
 0x392   :  { %7999 = vmatprep.subr.bf16.mxu1 %v10462_v49  ;;  %v1006_v1 = vld [vmem:[#allocation8 + $0x730] sm:$0xff]  ;;  %v1003_v49 = vld [vmem:[#allocation8 + $0x718] sm:$0xff] }
 0x393   :  { %v10508_v28 = vcombine.high %v1002_v31, %v1006_v1  ;;  %v10507_v24 = vcombine.low %v1002_v31, %v1006_v1  ;;  %v10509_v59 = vcombine.low %v1003_v49, %v1007_v5  ;;  %v1043_v31 = vld [vmem:[#allocation8 + $0x858] sm:$0xff] }
 0x394   :  { %7672 = vmatpush1.bf16.msra.mxu0 %v10459_v29  ;;  %v10510_v29 = vcombine.high %v1003_v49, %v1007_v5  ;;  %v1047_v1 = vld [vmem:[#allocation8 + $0x878] sm:$0xff] }
 0x395   :  { %8000 = vmatpush1.bf16.msra.mxu1 %v10461_v14  ;;  %7673 = vmatprep.subr.bf16.mxu0 %v10468_v35  ;;  %v1010_v14 = vld [vmem:[#allocation8 + $0x750] sm:$0xff] }
 0x396   :  { %8001 = vmatprep.subr.bf16.mxu1 %v10470_v48  ;;  %v1014_v35 = vld [vmem:[#allocation8 + $0x770] sm:$0xff]  ;;  %v1011_v48 = vld [vmem:[#allocation8 + $0x758] sm:$0xff] }
 0x397   :  { %v10516_v41 = vcombine.high %v1010_v14, %v1014_v35  ;;  %v10515_v50 = vcombine.low %v1010_v14, %v1014_v35  ;;  %v10517_v57 = vcombine.low %v1011_v48, %v1015_v37  ;;  %v1055_v14 = vld [vmem:[#allocation8 + $0x8b8] sm:$0xff] }
 0x398   :  { %7674 = vmatpush1.bf16.msra.mxu0 %v10467_v42  ;;  %v10518_v42 = vcombine.high %v1011_v48, %v1015_v37  ;;  %v10549_v48 = vcombine.low %v1043_v31, %v1047_v1 }
 0x399   :  { %8002 = vmatpush1.bf16.msra.mxu1 %v10469_v43  ;;  %7675 = vmatprep.subr.bf16.mxu0 %v10476_v45  ;;  %v1018_v43 = vld [vmem:[#allocation8 + $0x790] sm:$0xff] }
 0x39a   :  { %8003 = vmatprep.subr.bf16.mxu1 %v10478_v20  ;;  %v1022_v45 = vld [vmem:[#allocation8 + $0x7b0] sm:$0xff]  ;;  %v1019_v20 = vld [vmem:[#allocation8 + $0x798] sm:$0xff] }
 0x39b   :  { %v10524_v38 = vcombine.high %v1018_v43, %v1022_v45  ;;  %v10523_v58 = vcombine.low %v1018_v43, %v1022_v45  ;;  %v10525_v60 = vcombine.low %v1019_v20, %v1023_v40  ;;  %v1063_v43 = vld [vmem:[#allocation8 + $0x8f8] sm:$0xff] }
 0x39c   :  { %7676 = vmatpush1.bf16.msra.mxu0 %v10475_v51  ;;  %v10526_v51 = vcombine.high %v1019_v20, %v1023_v40 }
 0x39d   :  { %8004 = vmatpush1.bf16.msra.mxu1 %v10477_v53  ;;  %7677 = vmatprep.subr.bf16.mxu0 %v10484_v52  ;;  %v1026_v53 = vld [vmem:[#allocation8 + $0x7d0] sm:$0xff] }
 0x39e   :  { %8005 = vmatprep.subr.bf16.mxu1 %v10486_v47  ;;  %v1030_v52 = vld [vmem:[#allocation8 + $0x7f0] sm:$0xff]  ;;  %v1027_v47 = vld [vmem:[#allocation8 + $0x7d8] sm:$0xff] }
 0x39f   :  { %v10532_v61 = vcombine.high %v1026_v53, %v1030_v52  ;;  %v10531_v32 = vcombine.low %v1026_v53, %v1030_v52  ;;  %v10533_v8 = vcombine.low %v1027_v47, %v1031_v55 }
 0x3a0   :  { %7678 = vmatpush1.bf16.msra.mxu0 %v10483_v11  ;;  %v10534_v11 = vcombine.high %v1027_v47, %v1031_v55  ;;  %v1074_v55 = vld [vmem:[#allocation8 + $0x950] sm:$0xff] }
 0x3a1   :  { %8006 = vmatpush1.bf16.msra.mxu1 %v10485_v63  ;;  %7679 = vmatprep.subr.bf16.mxu0 %v10492_v36  ;;  %v1034_v63 = vld [vmem:[#allocation8 + $0x810] sm:$0xff] }
 0x3a2   :  { %8007 = vmatprep.subr.bf16.mxu1 %v10494_v0  ;;  %v1038_v36 = vld [vmem:[#allocation8 + $0x830] sm:$0xff]  ;;  %v1035_v0 = vld [vmem:[#allocation8 + $0x818] sm:$0xff] }
 0x3a3   :  { %v10540_v27 = vcombine.high %v1034_v63, %v1038_v36  ;;  %v10541_v49 = vcombine.low %v1035_v0, %v1039_v2 }
 0x3a4   :  { %7680 = vmatpush1.bf16.msra.mxu0 %v10491_v6  ;;  %v10542_v6 = vcombine.high %v1035_v0, %v1039_v2  ;;  %v1082_v2 = vld [vmem:[#allocation8 + $0x990] sm:$0xff] }
 0x3a5   :  { %8008 = vmatpush1.bf16.msra.mxu1 %v10493_v10  ;;  %7681 = vmatprep.subr.bf16.mxu0 %v10500_v13  ;;  %v1042_v10 = vld [vmem:[#allocation8 + $0x850] sm:$0xff] }
 0x3a6   :  { %8009 = vmatprep.subr.bf16.mxu1 %v10502_v19  ;;  %v1046_v13 = vld [vmem:[#allocation8 + $0x870] sm:$0xff]  ;;  %v10539_v19 = vcombine.low %v1034_v63, %v1038_v36 }
 0x3a7   :  { %v10548_v5 = vcombine.high %v1042_v10, %v1046_v13  ;;  %v10547_v35 = vcombine.low %v1042_v10, %v1046_v13 }
 0x3a8   :  { %7682 = vmatpush1.bf16.msra.mxu0 %v10499_v23  ;;  %v1050_v23 = vld [vmem:[#allocation8 + $0x890] sm:$0xff] }
 0x3a9   :  { %8010 = vmatpush1.bf16.msra.mxu1 %v10501_v25  ;;  %7683 = vmatprep.subr.bf16.mxu0 %v10508_v28  ;;  %v1054_v25 = vld [vmem:[#allocation8 + $0x8b0] sm:$0xff]  ;;  %v10550_v28 = vcombine.high %v1043_v31, %v1047_v1 }
 0x3aa   :  { %8011 = vmatprep.subr.bf16.mxu1 %v10510_v29  ;;  %v1051_v29 = vld [vmem:[#allocation8 + $0x898] sm:$0xff]  ;;  %v10556_v37 = vcombine.high %v1050_v23, %v1054_v25  ;;  %v10555_v45 = vcombine.low %v1050_v23, %v1054_v25  ;;  %v1090_v31 = vld [vmem:[#allocation8 + $0x9d0] sm:$0xff] }
 0x3ab   :  { %v1094_v1 = vld [vmem:[#allocation8 + $0x9f0] sm:$0xff] }
 0x3ac   :  { %7684 = vmatpush1.bf16.msra.mxu0 %v10507_v24  ;;  %v10558_v24 = vcombine.high %v1051_v29, %v1055_v14 }
 0x3ad   :  { %8012 = vmatpush1.bf16.msra.mxu1 %v10509_v59  ;;  %7685 = vmatprep.subr.bf16.mxu0 %v10516_v41  ;;  %v1058_v59 = vld [vmem:[#allocation8 + $0x8d0] sm:$0xff] }
 0x3ae   :  { %8013 = vmatprep.subr.bf16.mxu1 %v10518_v42  ;;  %v1062_v41 = vld [vmem:[#allocation8 + $0x8f0] sm:$0xff]  ;;  %v1059_v42 = vld [vmem:[#allocation8 + $0x8d8] sm:$0xff] }
 0x3af   :  { %v10564_v20 = vcombine.high %v1058_v59, %v1062_v41  ;;  %v10566_v40 = vcombine.high %v1059_v42, %v1063_v43  ;;  %v10565_v53 = vcombine.low %v1059_v42, %v1063_v43  ;;  %v1106_v43 = vld [vmem:[#allocation8 + $0xa50] sm:$0xff] }
 0x3b0   :  { %7686 = vmatpush1.bf16.msra.mxu0 %v10515_v50  ;;  %v1066_v50 = vld [vmem:[#allocation8 + $0x910] sm:$0xff] }
 0x3b1   :  { %8014 = vmatpush1.bf16.msra.mxu1 %v10517_v57  ;;  %7687 = vmatprep.subr.bf16.mxu0 %v10524_v38  ;;  %v1070_v57 = vld [vmem:[#allocation8 + $0x930] sm:$0xff]  ;;  %v1067_v38 = vld [vmem:[#allocation8 + $0x918] sm:$0xff] }
 0x3b2   :  { %8015 = vmatprep.subr.bf16.mxu1 %v10526_v51  ;;  %v1071_v51 = vld [vmem:[#allocation8 + $0x938] sm:$0xff]  ;;  %v10572_v52 = vcombine.high %v1066_v50, %v1070_v57 }
 0x3b3   :  { %v10574_v47 = vcombine.high %v1067_v38, %v1071_v51  ;;  %v10573_v63 = vcombine.low %v1067_v38, %v1071_v51  ;;  %v1114_v51 = vld [vmem:[#allocation8 + $0xa90] sm:$0xff] }
 0x3b4   :  { %7688 = vmatpush1.bf16.msra.mxu0 %v10523_v58  ;;  %v1078_v58 = vld [vmem:[#allocation8 + $0x970] sm:$0xff] }
 0x3b5   :  { %8016 = vmatpush1.bf16.msra.mxu1 %v10525_v60  ;;  %7689 = vmatprep.subr.bf16.mxu0 %v10532_v61  ;;  %v1075_v60 = vld [vmem:[#allocation8 + $0x958] sm:$0xff]  ;;  %v10580_v36 = vcombine.high %v1074_v55, %v1078_v58 }
 0x3b6   :  { %8017 = vmatprep.subr.bf16.mxu1 %v10534_v11  ;;  %v1079_v61 = vld [vmem:[#allocation8 + $0x978] sm:$0xff]  ;;  %v10571_v11 = vcombine.low %v1066_v50, %v1070_v57 }
 0x3b7   :  { %v10582_v0 = vcombine.high %v1075_v60, %v1079_v61  ;;  %v10581_v10 = vcombine.low %v1075_v60, %v1079_v61  ;;  %v1122_v61 = vld [vmem:[#allocation8 + $0xad0] sm:$0xff] }
 0x3b8   :  { %7690 = vmatpush1.bf16.msra.mxu0 %v10531_v32  ;;  %v1086_v32 = vld [vmem:[#allocation8 + $0x9b0] sm:$0xff] }
 0x3b9   :  { %8018 = vmatpush1.bf16.msra.mxu1 %v10533_v8  ;;  %7700 = vmatprep.subr.bf16.mxu0 %v10540_v27  ;;  %v1083_v8 = vld [vmem:[#allocation8 + $0x998] sm:$0xff]  ;;  %v10588_v13 = vcombine.high %v1082_v2, %v1086_v32  ;;  %v10587_v23 = vcombine.low %v1082_v2, %v1086_v32 }
 0x3ba   :  { %8028 = vmatprep.subr.bf16.mxu1 %v10542_v6  ;;  %v1087_v27 = vld [vmem:[#allocation8 + $0x9b8] sm:$0xff]  ;;  %v10579_v6 = vcombine.low %v1074_v55, %v1078_v58 }
 0x3bb   :  { %7692 = vmatmul.mubr.bf16.vlgmr.msra.gmra.mrb[20].mxu0 %v12582_v21  ;;  %v10589_v25 = vcombine.low %v1083_v8, %v1087_v27 }
 0x3bc   :  { %8020 = vmatmul.mubr.bf16.vlgmr.msra.gmra.mrb[20].mxu1 %v12582_v21  ;;  %7701 = vmatpush1.bf16.msra.mxu0 %v10539_v19  ;;  %v10557_v21 = vcombine.low %v1051_v29, %v1055_v14  ;;  %v10590_v19 = vcombine.high %v1083_v8, %v1087_v27  ;;  %v1098_v14 = vld [vmem:[#allocation8 + $0xa10] sm:$0xff] }
 0x3bd   :  { %7732 = vmatprep.mubr.bf16.mxu0 %v12584_v33  ;;  %8029 = vmatpush1.bf16.msra.mxu1 %v10541_v49  ;;  %v1091_v49 = vld [vmem:[#allocation8 + $0x9d8] sm:$0xff]  ;;  %v1130_v27 = vld [vmem:[#allocation8 + $0xb10] sm:$0xff] }
 0x3be   :  { %8060 = vmatprep.mubr.bf16.mxu1 %v12584_v33  ;;  %7702 = vmatprep.subr.bf16.mxu0 %v10548_v5  ;;  %v10563_v33 = vcombine.low %v1058_v59, %v1062_v41  ;;  %v1095_v5 = vld [vmem:[#allocation8 + $0x9f8] sm:$0xff] }
 0x3bf   :  { %8030 = vmatprep.subr.bf16.mxu1 %v10550_v28  ;;  %v10596_v28 = vcombine.high %v1090_v31, %v1094_v1  ;;  %v10598_v29 = vcombine.high %v1091_v49, %v1095_v5  ;;  %v10597_v59 = vcombine.low %v1091_v49, %v1095_v5  ;;  %v1138_v5 = vld [vmem:[#allocation8 + $0xb50] sm:$0xff] }
 0x3c0   :  { %7703 = vmatpush1.bf16.msra.mxu0 %v10547_v35  ;;  %v1102_v35 = vld [vmem:[#allocation8 + $0xa30] sm:$0xff] }
 0x3c1   :  { %8031 = vmatpush1.bf16.msra.mxu1 %v10549_v48  ;;  %7704 = vmatprep.subr.bf16.mxu0 %v10556_v37  ;;  %v1099_v48 = vld [vmem:[#allocation8 + $0xa18] sm:$0xff]  ;;  %v10604_v41 = vcombine.high %v1098_v14, %v1102_v35 }
 0x3c2   :  { %8032 = vmatprep.subr.bf16.mxu1 %v10558_v24  ;;  %v1103_v37 = vld [vmem:[#allocation8 + $0xa38] sm:$0xff]  ;;  %v10595_v24 = vcombine.low %v1090_v31, %v1094_v1 }
 0x3c3   :  { %v10606_v42 = vcombine.high %v1099_v48, %v1103_v37  ;;  %v10605_v50 = vcombine.low %v1099_v48, %v1103_v37  ;;  %v1146_v37 = vld [vmem:[#allocation8 + $0xb90] sm:$0xff] }
 0x3c4   :  { %7705 = vmatpush1.bf16.msra.mxu0 %v10555_v45  ;;  %v1110_v45 = vld [vmem:[#allocation8 + $0xa70] sm:$0xff] }
 0x3c5   :  { %8033 = vmatpush1.bf16.msra.mxu1 %v10557_v21  ;;  %7706 = vmatprep.subr.bf16.mxu0 %v10564_v20  ;;  %v1107_v21 = vld [vmem:[#allocation8 + $0xa58] sm:$0xff]  ;;  %v10612_v57 = vcombine.high %v1106_v43, %v1110_v45 }
 0x3c6   :  { %8034 = vmatprep.subr.bf16.mxu1 %v10566_v40  ;;  %v1111_v20 = vld [vmem:[#allocation8 + $0xa78] sm:$0xff]  ;;  %v10603_v40 = vcombine.low %v1098_v14, %v1102_v35 }
 0x3c7   :  { %v10614_v38 = vcombine.high %v1107_v21, %v1111_v20  ;;  %v10613_v55 = vcombine.low %v1107_v21, %v1111_v20  ;;  %v1154_v20 = vld [vmem:[#allocation8 + $0xbd0] sm:$0xff] }
 0x3c8   :  { %7707 = vmatpush1.bf16.msra.mxu0 %v10563_v33  ;;  %v1118_v33 = vld [vmem:[#allocation8 + $0xab0] sm:$0xff] }
 0x3c9   :  { %8035 = vmatpush1.bf16.msra.mxu1 %v10565_v53  ;;  %7708 = vmatprep.subr.bf16.mxu0 %v10572_v52  ;;  %v1115_v53 = vld [vmem:[#allocation8 + $0xa98] sm:$0xff]  ;;  %v10620_v58 = vcombine.high %v1114_v51, %v1118_v33 }
 0x3ca   :  { %8036 = vmatprep.subr.bf16.mxu1 %v10574_v47  ;;  %v1119_v52 = vld [vmem:[#allocation8 + $0xab8] sm:$0xff]  ;;  %v10611_v47 = vcombine.low %v1106_v43, %v1110_v45 }
 0x3cb   :  { %v10622_v60 = vcombine.high %v1115_v53, %v1119_v52  ;;  %v10621_v2 = vcombine.low %v1115_v53, %v1119_v52  ;;  %v1162_v52 = vld [vmem:[#allocation8 + $0xc10] sm:$0xff] }
 0x3cc   :  { %7709 = vmatpush1.bf16.msra.mxu0 %v10571_v11  ;;  %v1126_v11 = vld [vmem:[#allocation8 + $0xaf0] sm:$0xff] }
 0x3cd   :  { %8037 = vmatpush1.bf16.msra.mxu1 %v10573_v63  ;;  %7710 = vmatprep.subr.bf16.mxu0 %v10580_v36  ;;  %v1123_v63 = vld [vmem:[#allocation8 + $0xad8] sm:$0xff]  ;;  %v10628_v32 = vcombine.high %v1122_v61, %v1126_v11 }
 0x3ce   :  { %8038 = vmatprep.subr.bf16.mxu1 %v10582_v0  ;;  %v1127_v36 = vld [vmem:[#allocation8 + $0xaf8] sm:$0xff]  ;;  %v10619_v0 = vcombine.low %v1114_v51, %v1118_v33 }
 0x3cf   :  { %v10630_v8 = vcombine.high %v1123_v63, %v1127_v36  ;;  %v10629_v31 = vcombine.low %v1123_v63, %v1127_v36  ;;  %v1170_v36 = vld [vmem:[#allocation8 + $0xc50] sm:$0xff] }
 0x3d0   :  { %7711 = vmatpush1.bf16.msra.mxu0 %v10579_v6  ;;  %v1134_v6 = vld [vmem:[#allocation8 + $0xb30] sm:$0xff] }
 0x3d1   :  { %8039 = vmatpush1.bf16.msra.mxu1 %v10581_v10  ;;  %7712 = vmatprep.subr.bf16.mxu0 %v10588_v13  ;;  %v1131_v10 = vld [vmem:[#allocation8 + $0xb18] sm:$0xff]  ;;  %v10636_v1 = vcombine.high %v1130_v27, %v1134_v6 }
 0x3d2   :  { %8040 = vmatprep.subr.bf16.mxu1 %v10590_v19  ;;  %v1135_v13 = vld [vmem:[#allocation8 + $0xb38] sm:$0xff]  ;;  %v10627_v19 = vcombine.low %v1122_v61, %v1126_v11 }
 0x3d3   :  { %v10638_v49 = vcombine.high %v1131_v10, %v1135_v13  ;;  %v10637_v14 = vcombine.low %v1131_v10, %v1135_v13  ;;  %v1178_v10 = vld [vmem:[#allocation8 + $0xc90] sm:$0xff] }
 0x3d4   :  { %7713 = vmatpush1.bf16.msra.mxu0 %v10587_v23  ;;  %v1142_v23 = vld [vmem:[#allocation8 + $0xb70] sm:$0xff] }
 0x3d5   :  { %8041 = vmatpush1.bf16.msra.mxu1 %v10589_v25  ;;  %7714 = vmatprep.subr.bf16.mxu0 %v10596_v28  ;;  %v1139_v25 = vld [vmem:[#allocation8 + $0xb58] sm:$0xff]  ;;  %v10644_v35 = vcombine.high %v1138_v5, %v1142_v23  ;;  %v1182_v13 = vld [vmem:[#allocation8 + $0xcb0] sm:$0xff] }
 0x3d6   :  { %8042 = vmatprep.subr.bf16.mxu1 %v10598_v29  ;;  %v1143_v28 = vld [vmem:[#allocation8 + $0xb78] sm:$0xff]  ;;  %v10635_v29 = vcombine.low %v1130_v27, %v1134_v6 }
 0x3d7   :  { %v10646_v48 = vcombine.high %v1139_v25, %v1143_v28  ;;  %v10645_v43 = vcombine.low %v1139_v25, %v1143_v28  ;;  %v1186_v28 = vld [vmem:[#allocation8 + $0xcd0] sm:$0xff] }
 0x3d8   :  { %7715 = vmatpush1.bf16.msra.mxu0 %v10595_v24  ;;  %v1150_v24 = vld [vmem:[#allocation8 + $0xbb0] sm:$0xff] }
 0x3d9   :  { %8043 = vmatpush1.bf16.msra.mxu1 %v10597_v59  ;;  %7716 = vmatprep.subr.bf16.mxu0 %v10604_v41  ;;  %v1147_v59 = vld [vmem:[#allocation8 + $0xb98] sm:$0xff]  ;;  %v10652_v45 = vcombine.high %v1146_v37, %v1150_v24 }
 0x3da   :  { %8044 = vmatprep.subr.bf16.mxu1 %v10606_v42  ;;  %v1151_v41 = vld [vmem:[#allocation8 + $0xbb8] sm:$0xff]  ;;  %v10643_v42 = vcombine.low %v1138_v5, %v1142_v23  ;;  %v10684_v23 = vcombine.high %v1178_v10, %v1182_v13 }
 0x3db   :  { %v10654_v21 = vcombine.high %v1147_v59, %v1151_v41  ;;  %v10653_v51 = vcombine.low %v1147_v59, %v1151_v41  ;;  %v1194_v59 = vld [vmem:[#allocation8 + $0xd10] sm:$0xff] }
 0x3dc   :  { %7717 = vmatpush1.bf16.msra.mxu0 %v10603_v40  ;;  %v1158_v40 = vld [vmem:[#allocation8 + $0xbf0] sm:$0xff] }
 0x3dd   :  { %8045 = vmatpush1.bf16.msra.mxu1 %v10605_v50  ;;  %7718 = vmatprep.subr.bf16.mxu0 %v10612_v57  ;;  %v1155_v50 = vld [vmem:[#allocation8 + $0xbd8] sm:$0xff]  ;;  %v10660_v33 = vcombine.high %v1154_v20, %v1158_v40  ;;  %v1198_v41 = vld [vmem:[#allocation8 + $0xd30] sm:$0xff] }
 0x3de   :  { %8046 = vmatprep.subr.bf16.mxu1 %v10614_v38  ;;  %v1159_v57 = vld [vmem:[#allocation8 + $0xbf8] sm:$0xff]  ;;  %v10651_v38 = vcombine.low %v1146_v37, %v1150_v24 }
 0x3df   :  { %v10662_v53 = vcombine.high %v1155_v50, %v1159_v57  ;;  %v10661_v61 = vcombine.low %v1155_v50, %v1159_v57  ;;  %v1206_v50 = vld [vmem:[#allocation8 + $0xd70] sm:$0xff]  ;;  %v1203_v57 = vld [vmem:[#allocation8 + $0xd58] sm:$0xff] }
 0x3e0   :  { %7719 = vmatpush1.bf16.msra.mxu0 %v10611_v47  ;;  %v1166_v47 = vld [vmem:[#allocation8 + $0xc30] sm:$0xff] }
 0x3e1   :  { %8047 = vmatpush1.bf16.msra.mxu1 %v10613_v55  ;;  %7720 = vmatprep.subr.bf16.mxu0 %v10620_v58  ;;  %v1163_v55 = vld [vmem:[#allocation8 + $0xc18] sm:$0xff]  ;;  %v10668_v11 = vcombine.high %v1162_v52, %v1166_v47 }
 0x3e2   :  { %8048 = vmatprep.subr.bf16.mxu1 %v10622_v60  ;;  %v1167_v58 = vld [vmem:[#allocation8 + $0xc38] sm:$0xff]  ;;  %v10659_v60 = vcombine.low %v1154_v20, %v1158_v40  ;;  %v1202_v40 = vld [vmem:[#allocation8 + $0xd50] sm:$0xff] }
 0x3e3   :  { %v10670_v63 = vcombine.high %v1163_v55, %v1167_v58  ;;  %v10669_v27 = vcombine.low %v1163_v55, %v1167_v58  ;;  %v1214_v55 = vld [vmem:[#allocation8 + $0xdb0] sm:$0xff]  ;;  %v1211_v58 = vld [vmem:[#allocation8 + $0xd98] sm:$0xff] }
 0x3e4   :  { %7721 = vmatpush1.bf16.msra.mxu0 %v10619_v0  ;;  %v1174_v0 = vld [vmem:[#allocation8 + $0xc70] sm:$0xff] }
 0x3e5   :  { %8049 = vmatpush1.bf16.msra.mxu1 %v10621_v2  ;;  %7722 = vmatprep.subr.bf16.mxu0 %v10628_v32  ;;  %v10667_v2 = vcombine.low %v1162_v52, %v1166_v47  ;;  %v1171_v32 = vld [vmem:[#allocation8 + $0xc58] sm:$0xff]  ;;  %v10676_v6 = vcombine.high %v1170_v36, %v1174_v0  ;;  %v1210_v47 = vld [vmem:[#allocation8 + $0xd90] sm:$0xff] }
 0x3e6   :  { %8050 = vmatprep.subr.bf16.mxu1 %v10630_v8  ;;  %v1175_v8 = vld [vmem:[#allocation8 + $0xc78] sm:$0xff] }
 0x3e7   :  { %v10677_v5 = vcombine.low %v1171_v32, %v1175_v8 }
 0x3e8   :  { %7723 = vmatpush1.bf16.msra.mxu0 %v10627_v19  ;;  %v10678_v19 = vcombine.high %v1171_v32, %v1175_v8  ;;  %v1222_v32 = vld [vmem:[#allocation8 + $0xdf0] sm:$0xff] }
 0x3e9   :  { %8051 = vmatpush1.bf16.msra.mxu1 %v10629_v31  ;;  %7724 = vmatprep.subr.bf16.mxu0 %v10636_v1  ;;  %v1179_v31 = vld [vmem:[#allocation8 + $0xc98] sm:$0xff] }
 0x3ea   :  { %8052 = vmatprep.subr.bf16.mxu1 %v10638_v49  ;;  %v1183_v1 = vld [vmem:[#allocation8 + $0xcb8] sm:$0xff]  ;;  %v10675_v49 = vcombine.low %v1170_v36, %v1174_v0 }
 0x3eb   :  { %v10686_v25 = vcombine.high %v1179_v31, %v1183_v1 }
 0x3ec   :  { %7725 = vmatpush1.bf16.msra.mxu0 %v10635_v29  ;;  %v1190_v29 = vld [vmem:[#allocation8 + $0xcf0] sm:$0xff] }
 0x3ed   :  { %8053 = vmatpush1.bf16.msra.mxu1 %v10637_v14  ;;  %7726 = vmatprep.subr.bf16.mxu0 %v10644_v35  ;;  %v1187_v14 = vld [vmem:[#allocation8 + $0xcd8] sm:$0xff]  ;;  %v10692_v37 = vcombine.high %v1186_v28, %v1190_v29 }
 0x3ee   :  { %8054 = vmatprep.subr.bf16.mxu1 %v10646_v48  ;;  %v1191_v35 = vld [vmem:[#allocation8 + $0xcf8] sm:$0xff]  ;;  %v10683_v48 = vcombine.low %v1178_v10, %v1182_v13 }
 0x3ef   :  { %v10694_v24 = vcombine.high %v1187_v14, %v1191_v35  ;;  %v1223_v10 = vld [vmem:[#allocation8 + $0xdf8] sm:$0xff] }
 0x3f0   :  { %7727 = vmatpush1.bf16.msra.mxu0 %v10643_v42  ;;  %v1195_v42 = vld [vmem:[#allocation8 + $0xd18] sm:$0xff] }
 0x3f1   :  { %8055 = vmatpush1.bf16.msra.mxu1 %v10645_v43  ;;  %7728 = vmatprep.subr.bf16.mxu0 %v10652_v45  ;;  %v1199_v43 = vld [vmem:[#allocation8 + $0xd38] sm:$0xff]  ;;  %v10693_v45 = vcombine.low %v1187_v14, %v1191_v35  ;;  %v1230_v14 = vld [vmem:[#allocation8 + $0xe30] sm:$0xff] }
 0x3f2   :  { %8056 = vmatprep.subr.bf16.mxu1 %v10654_v21  ;;  %v10700_v21 = vcombine.high %v1194_v59, %v1198_v41  ;;  %v10702_v20 = vcombine.high %v1195_v42, %v1199_v43  ;;  %v1227_v35 = vld [vmem:[#allocation8 + $0xe18] sm:$0xff] }
 0x3f4   :  { %7729 = vmatpush1.bf16.msra.mxu0 %v10651_v38  ;;  %v1207_v38 = vld [vmem:[#allocation8 + $0xd78] sm:$0xff] }
 0x3f5   :  { %8057 = vmatpush1.bf16.msra.mxu1 %v10653_v51  ;;  %7730 = vmatprep.subr.bf16.mxu0 %v10660_v33  ;;  %v10699_v51 = vcombine.low %v1194_v59, %v1198_v41  ;;  %v10701_v33 = vcombine.low %v1195_v42, %v1199_v43  ;;  %v10710_v52 = vcombine.high %v1203_v57, %v1207_v38  ;;  %v1234_v41 = vld [vmem:[#allocation8 + $0xe50] sm:$0xff]  ;;  %v1235_v43 = vld [vmem:[#allocation8 + $0xe58] sm:$0xff] }
 0x3f6   :  { %8058 = vmatprep.subr.bf16.mxu1 %v10662_v53  ;;  %v10708_v53 = vcombine.high %v1202_v40, %v1206_v50  ;;  %v1238_v42 = vld [vmem:[#allocation8 + $0xe70] sm:$0xff] }
 0x3f8   :  { %7731 = vmatpush1.bf16.msra.mxu0 %v10659_v60  ;;  %v1215_v60 = vld [vmem:[#allocation8 + $0xdb8] sm:$0xff] }
 0x3f9   :  { %8059 = vmatpush1.bf16.msra.mxu1 %v10661_v61  ;;  %7741 = vmatprep.subr.bf16.mxu0 %v10668_v11  ;;  %v10707_v61 = vcombine.low %v1202_v40, %v1206_v50  ;;  %v10709_v11 = vcombine.low %v1203_v57, %v1207_v38  ;;  %v10718_v0 = vcombine.high %v1211_v58, %v1215_v60  ;;  %v1242_v50 = vld [vmem:[#allocation8 + $0xe90] sm:$0xff]  ;;  %v1243_v38 = vld [vmem:[#allocation8 + $0xe98] sm:$0xff] }
 0x3fa   :  { %8069 = vmatprep.subr.bf16.mxu1 %v10670_v63  ;;  %v10716_v63 = vcombine.high %v1210_v47, %v1214_v55  ;;  %v1246_v57 = vld [vmem:[#allocation8 + $0xeb0] sm:$0xff] }
 0x3fb   :  { %7733 = vmatmul.mubr.bf16.vlgmr.msra.gmra.mrb[20].mxu0 %v12596_v44 }
 0x3fc   :  { %8061 = vmatmul.mubr.bf16.vlgmr.msra.gmra.mrb[20].mxu1 %v12596_v44  ;;  %7742 = vmatpush1.bf16.msra.mxu0 %v10667_v2  ;;  %v10685_v44 = vcombine.low %v1179_v31, %v1183_v1  ;;  %v1218_v2 = vld [vmem:[#allocation8 + $0xdd0] sm:$0xff]  ;;  %v10715_v31 = vcombine.low %v1210_v47, %v1214_v55 }
 0x3fd   :  { %7773 = vmatprep.mubr.bf16.mxu0 %v12598_v56  ;;  %8070 = vmatpush1.bf16.msra.mxu1 %v10669_v27  ;;  %v1250_v55 = vld [vmem:[#allocation8 + $0xed0] sm:$0xff] }
 0x3fe   :  { %8101 = vmatprep.mubr.bf16.mxu1 %v12598_v56  ;;  %7743 = vmatprep.subr.bf16.mxu0 %v10676_v6  ;;  %v10691_v56 = vcombine.low %v1186_v28, %v1190_v29  ;;  %v1219_v6 = vld [vmem:[#allocation8 + $0xdd8] sm:$0xff]  ;;  %v1226_v29 = vld [vmem:[#allocation8 + $0xe10] sm:$0xff] }
 0x3ff   :  { %8071 = vmatprep.subr.bf16.mxu1 %v10678_v19  ;;  %v10726_v28 = vcombine.high %v1219_v6, %v1223_v10 }
 0x400   :  { %7744 = vmatpush1.bf16.msra.mxu0 %v10675_v49 }
 0x401   :  { %8072 = vmatpush1.bf16.msra.mxu1 %v10677_v5  ;;  %7745 = vmatprep.subr.bf16.mxu0 %v10684_v23  ;;  %v10717_v5 = vcombine.low %v1211_v58, %v1215_v60  ;;  %v10724_v23 = vcombine.high %v1218_v2, %v1222_v32  ;;  %v1254_v58 = vld [vmem:[#allocation8 + $0xef0] sm:$0xff]  ;;  %v1251_v60 = vld [vmem:[#allocation8 + $0xed8] sm:$0xff] }
 0x402   :  { %8073 = vmatprep.subr.bf16.mxu1 %v10686_v25 }
 0x404   :  { %7746 = vmatpush1.bf16.msra.mxu0 %v10683_v48  ;;  %v1231_v48 = vld [vmem:[#allocation8 + $0xe38] sm:$0xff] }
 0x405   :  { %8074 = vmatpush1.bf16.msra.mxu1 %v10685_v44  ;;  %7747 = vmatprep.subr.bf16.mxu0 %v10692_v37  ;;  %v10723_v44 = vcombine.low %v1218_v2, %v1222_v32  ;;  %v10725_v37 = vcombine.low %v1219_v6, %v1223_v10  ;;  %v10734_v59 = vcombine.high %v1227_v35, %v1231_v48  ;;  %v1258_v32 = vld [vmem:[#allocation8 + $0xf10] sm:$0xff]  ;;  %v1259_v10 = vld [vmem:[#allocation8 + $0xf18] sm:$0xff] }
 0x406   :  { %8075 = vmatprep.subr.bf16.mxu1 %v10694_v24  ;;  %v10732_v24 = vcombine.high %v1226_v29, %v1230_v14  ;;  %v1262_v6 = vld [vmem:[#allocation8 + $0xf30] sm:$0xff] }
 0x408   :  { %7748 = vmatpush1.bf16.msra.mxu0 %v10691_v56  ;;  %v1239_v56 = vld [vmem:[#allocation8 + $0xe78] sm:$0xff] }
 0x409   :  { %8076 = vmatpush1.bf16.msra.mxu1 %v10693_v45  ;;  %7749 = vmatprep.subr.bf16.mxu0 %v10700_v21  ;;  %v10731_v45 = vcombine.low %v1226_v29, %v1230_v14  ;;  %v10733_v21 = vcombine.low %v1227_v35, %v1231_v48  ;;  %v10742_v40 = vcombine.high %v1235_v43, %v1239_v56  ;;  %v1271_v29 = vld [vmem:[#allocation8 + $0xf78] sm:$0xff] }
 0x40a   :  { %8077 = vmatprep.subr.bf16.mxu1 %v10702_v20  ;;  %v10740_v20 = vcombine.high %v1234_v41, %v1238_v42  ;;  %v10763_v14 = vcombine.low %v1258_v32, %v1262_v6 }
 0x40c   :  { %7750 = vmatpush1.bf16.msra.mxu0 %v10699_v51  ;;  %v1247_v51 = vld [vmem:[#allocation8 + $0xeb8] sm:$0xff] }
 0x40d   :  { %8078 = vmatpush1.bf16.msra.mxu1 %v10701_v33  ;;  %7751 = vmatprep.subr.bf16.mxu0 %v10708_v53  ;;  %v10739_v33 = vcombine.low %v1234_v41, %v1238_v42  ;;  %v10741_v53 = vcombine.low %v1235_v43, %v1239_v56  ;;  %v10750_v47 = vcombine.high %v1243_v38, %v1247_v51  ;;  %v1279_v41 = vld [vmem:[#allocation8 + $0xfb8] sm:$0xff] }
 0x40e   :  { %v12670_v36 = vpop.f32.mrb[16].mxu0  ;;  %8079 = vmatprep.subr.bf16.mxu1 %v10710_v52  ;;  %v10748_v52 = vcombine.high %v1242_v50, %v1246_v57 }
 0x40f   :  { %v12672_v8 = vpop.f32.mrb[16].mxu1  ;;  %v12674_v27 = vpop.f32.mrb[17].mxu0 }
 0x410   :  { %v12676_v13 = vpop.f32.mrb[17].mxu1  ;;  %v7287_v19 = vpop.f32.mrb[18].mxu0  ;;  %7752 = vmatpush1.bf16.msra.mxu0 %v10707_v61  ;;  %v1255_v61 = vld [vmem:[#allocation8 + $0xef8] sm:$0xff] }
 0x411   :  { %v7615_v1 = vpop.f32.mrb[18].mxu1  ;;  %8080 = vmatpush1.bf16.msra.mxu1 %v10709_v11  ;;  %v7288_v49 = vpop.f32.mrb[19].mxu0  ;;  %7753 = vmatprep.subr.bf16.mxu0 %v10716_v63  ;;  %v10747_v11 = vcombine.low %v1242_v50, %v1246_v57  ;;  %v10749_v63 = vcombine.low %v1243_v38, %v1247_v51  ;;  %v10758_v2 = vcombine.high %v1251_v60, %v1255_v61  ;;  %v1263_v19 = vld [vmem:[#allocation8 + $0xf38] sm:$0xff] }
 0x412   :  { %v7616_v25 = vpop.f32.mrb[19].mxu1  ;;  %8081 = vmatprep.subr.bf16.mxu1 %v10718_v0  ;;  %v10756_v0 = vcombine.high %v1250_v55, %v1254_v58  ;;  %v10757_v1 = vcombine.low %v1251_v60, %v1255_v61  ;;  %v10764_v49 = vcombine.high %v1258_v32, %v1262_v6  ;;  %v10765_v35 = vcombine.low %v1259_v10, %v1263_v19  ;;  %v1287_v50 = vld [vmem:[#allocation8 + $0xff8] sm:$0xff] }
 0x413   :  { %v1270_v25 = vld [vmem:[#allocation8 + $0xf70] sm:$0xff]  ;;  %v1299_v32 = vld [vmem:[#allocation8 + $0x1058] sm:$0xff] }
 0x414   :  { %7754 = vmatpush1.bf16.msra.mxu0 %v10715_v31  ;;  %v10755_v31 = vcombine.low %v1250_v55, %v1254_v58  ;;  %v1295_v55 = vld [vmem:[#allocation8 + $0x1038] sm:$0xff] }
 0x415   :  { %8082 = vmatpush1.bf16.msra.mxu1 %v10717_v5  ;;  %7755 = vmatprep.subr.bf16.mxu0 %v10724_v23  ;;  %v10766_v5 = vcombine.high %v1259_v10, %v1263_v19  ;;  %v1266_v23 = vld [vmem:[#allocation8 + $0xf50] sm:$0xff]  ;;  %v1303_v6 = vld [vmem:[#allocation8 + $0x1078] sm:$0xff] }
 0x416   :  { %8083 = vmatprep.subr.bf16.mxu1 %v10726_v28  ;;  %v1267_v28 = vld [vmem:[#allocation8 + $0xf58] sm:$0xff]  ;;  %v10772_v48 = vcombine.high %v1266_v23, %v1270_v25  ;;  %v10771_v42 = vcombine.low %v1266_v23, %v1270_v25 }
 0x417   :  { %v10773_v43 = vcombine.low %v1267_v28, %v1271_v29  ;;  %v1311_v23 = vld [vmem:[#allocation8 + $0x10b8] sm:$0xff] }
 0x418   :  { %7756 = vmatpush1.bf16.msra.mxu0 %v10723_v44  ;;  %v10774_v44 = vcombine.high %v1267_v28, %v1271_v29  ;;  %v10805_v28 = vcombine.low %v1299_v32, %v1303_v6 }
 0x419   :  { %8084 = vmatpush1.bf16.msra.mxu1 %v10725_v37  ;;  %7757 = vmatprep.subr.bf16.mxu0 %v10732_v24  ;;  %v1274_v37 = vld [vmem:[#allocation8 + $0xf90] sm:$0xff] }
 0x41a   :  { %8085 = vmatprep.subr.bf16.mxu1 %v10734_v59  ;;  %v1278_v24 = vld [vmem:[#allocation8 + $0xfb0] sm:$0xff]  ;;  %v1275_v59 = vld [vmem:[#allocation8 + $0xf98] sm:$0xff] }
 0x41b   :  { %v10780_v56 = vcombine.high %v1274_v37, %v1278_v24  ;;  %v10779_v57 = vcombine.low %v1274_v37, %v1278_v24  ;;  %v10781_v38 = vcombine.low %v1275_v59, %v1279_v41  ;;  %v1319_v37 = vld [vmem:[#allocation8 + $0x10f8] sm:$0xff] }
 0x41c   :  { %7758 = vmatpush1.bf16.msra.mxu0 %v10731_v45  ;;  %v10782_v45 = vcombine.high %v1275_v59, %v1279_v41 }
 0x41d   :  { %8086 = vmatpush1.bf16.msra.mxu1 %v10733_v21  ;;  %7759 = vmatprep.subr.bf16.mxu0 %v10740_v20  ;;  %v1282_v21 = vld [vmem:[#allocation8 + $0xfd0] sm:$0xff] }
 0x41e   :  { %8087 = vmatprep.subr.bf16.mxu1 %v10742_v40  ;;  %v1286_v20 = vld [vmem:[#allocation8 + $0xff0] sm:$0xff]  ;;  %v1283_v40 = vld [vmem:[#allocation8 + $0xfd8] sm:$0xff] }
 0x41f   :  { %v10788_v51 = vcombine.high %v1282_v21, %v1286_v20  ;;  %v10787_v58 = vcombine.low %v1282_v21, %v1286_v20  ;;  %v10789_v60 = vcombine.low %v1283_v40, %v1287_v50 }
 0x420   :  { %7760 = vmatpush1.bf16.msra.mxu0 %v10739_v33  ;;  %v10790_v33 = vcombine.high %v1283_v40, %v1287_v50  ;;  %v1330_v50 = vld [vmem:[#allocation8 + $0x1150] sm:$0xff] }
 0x421   :  { %8088 = vmatpush1.bf16.msra.mxu1 %v10741_v53  ;;  %7761 = vmatprep.subr.bf16.mxu0 %v10748_v52  ;;  %v1290_v53 = vld [vmem:[#allocation8 + $0x1010] sm:$0xff] }
 0x422   :  { %8089 = vmatprep.subr.bf16.mxu1 %v10750_v47  ;;  %v1294_v52 = vld [vmem:[#allocation8 + $0x1030] sm:$0xff]  ;;  %v1291_v47 = vld [vmem:[#allocation8 + $0x1018] sm:$0xff] }
 0x423   :  { %v10796_v61 = vcombine.high %v1290_v53, %v1294_v52  ;;  %v10797_v10 = vcombine.low %v1291_v47, %v1295_v55 }
 0x424   :  { %7762 = vmatpush1.bf16.msra.mxu0 %v10747_v11  ;;  %v10798_v11 = vcombine.high %v1291_v47, %v1295_v55  ;;  %v1338_v55 = vld [vmem:[#allocation8 + $0x1190] sm:$0xff] }
 0x425   :  { %8090 = vmatpush1.bf16.msra.mxu1 %v10749_v63  ;;  %7763 = vmatprep.subr.bf16.mxu0 %v10756_v0  ;;  %v1298_v63 = vld [vmem:[#allocation8 + $0x1050] sm:$0xff] }
 0x426   :  { %8091 = vmatprep.subr.bf16.mxu1 %v10758_v2  ;;  %v1302_v0 = vld [vmem:[#allocation8 + $0x1070] sm:$0xff]  ;;  %v10795_v2 = vcombine.low %v1290_v53, %v1294_v52 }
 0x427   :  { %v10804_v19 = vcombine.high %v1298_v63, %v1302_v0  ;;  %v10803_v25 = vcombine.low %v1298_v63, %v1302_v0 }
 0x428   :  { %7764 = vmatpush1.bf16.msra.mxu0 %v10755_v31  ;;  %v1306_v31 = vld [vmem:[#allocation8 + $0x1090] sm:$0xff] }
 0x429   :  { %8092 = vmatpush1.bf16.msra.mxu1 %v10757_v1  ;;  %7765 = vmatprep.subr.bf16.mxu0 %v10764_v49  ;;  %v1310_v1 = vld [vmem:[#allocation8 + $0x10b0] sm:$0xff]  ;;  %v10806_v49 = vcombine.high %v1299_v32, %v1303_v6 }
 0x42a   :  { %8093 = vmatprep.subr.bf16.mxu1 %v10766_v5  ;;  %v1307_v5 = vld [vmem:[#allocation8 + $0x1098] sm:$0xff]  ;;  %v10812_v29 = vcombine.high %v1306_v31, %v1310_v1  ;;  %v10811_v24 = vcombine.low %v1306_v31, %v1310_v1  ;;  %v1346_v32 = vld [vmem:[#allocation8 + $0x11d0] sm:$0xff] }
 0x42b   :  { %v1350_v6 = vld [vmem:[#allocation8 + $0x11f0] sm:$0xff] }
 0x42c   :  { %7766 = vmatpush1.bf16.msra.mxu0 %v10763_v14  ;;  %v10814_v14 = vcombine.high %v1307_v5, %v1311_v23 }
 0x42d   :  { %8094 = vmatpush1.bf16.msra.mxu1 %v10765_v35  ;;  %7767 = vmatprep.subr.bf16.mxu0 %v10772_v48  ;;  %v1314_v35 = vld [vmem:[#allocation8 + $0x10d0] sm:$0xff] }
 0x42e   :  { %8095 = vmatprep.subr.bf16.mxu1 %v10774_v44  ;;  %v1318_v48 = vld [vmem:[#allocation8 + $0x10f0] sm:$0xff]  ;;  %v1315_v44 = vld [vmem:[#allocation8 + $0x10d8] sm:$0xff] }
 0x42f   :  { %v10820_v59 = vcombine.high %v1314_v35, %v1318_v48  ;;  %v10822_v41 = vcombine.high %v1315_v44, %v1319_v37  ;;  %v10821_v21 = vcombine.low %v1315_v44, %v1319_v37  ;;  %v1362_v37 = vld [vmem:[#allocation8 + $0x1250] sm:$0xff] }
 0x430   :  { %7768 = vmatpush1.bf16.msra.mxu0 %v10771_v42  ;;  %v1322_v42 = vld [vmem:[#allocation8 + $0x1110] sm:$0xff] }
 0x431   :  { %8096 = vmatpush1.bf16.msra.mxu1 %v10773_v43  ;;  %7769 = vmatprep.subr.bf16.mxu0 %v10780_v56  ;;  %v1326_v43 = vld [vmem:[#allocation8 + $0x1130] sm:$0xff]  ;;  %v1323_v56 = vld [vmem:[#allocation8 + $0x1118] sm:$0xff] }
 0x432   :  { %8097 = vmatprep.subr.bf16.mxu1 %v10782_v45  ;;  %v1327_v45 = vld [vmem:[#allocation8 + $0x1138] sm:$0xff]  ;;  %v10828_v20 = vcombine.high %v1322_v42, %v1326_v43 }
 0x433   :  { %v10830_v40 = vcombine.high %v1323_v56, %v1327_v45  ;;  %v10829_v53 = vcombine.low %v1323_v56, %v1327_v45  ;;  %v1370_v45 = vld [vmem:[#allocation8 + $0x1290] sm:$0xff] }
 0x434   :  { %7770 = vmatpush1.bf16.msra.mxu0 %v10779_v57  ;;  %v1334_v57 = vld [vmem:[#allocation8 + $0x1170] sm:$0xff] }
 0x435   :  { %8098 = vmatpush1.bf16.msra.mxu1 %v10781_v38  ;;  %7771 = vmatprep.subr.bf16.mxu0 %v10788_v51  ;;  %v1331_v38 = vld [vmem:[#allocation8 + $0x1158] sm:$0xff]  ;;  %v10836_v52 = vcombine.high %v1330_v50, %v1334_v57 }
 0x436   :  { %8099 = vmatprep.subr.bf16.mxu1 %v10790_v33  ;;  %v1335_v51 = vld [vmem:[#allocation8 + $0x1178] sm:$0xff]  ;;  %v10827_v33 = vcombine.low %v1322_v42, %v1326_v43 }
 0x437   :  { %v10838_v47 = vcombine.high %v1331_v38, %v1335_v51  ;;  %v10837_v63 = vcombine.low %v1331_v38, %v1335_v51  ;;  %v1378_v51 = vld [vmem:[#allocation8 + $0x12d0] sm:$0xff] }
 0x438   :  { %7772 = vmatpush1.bf16.msra.mxu0 %v10787_v58  ;;  %v1342_v58 = vld [vmem:[#allocation8 + $0x11b0] sm:$0xff] }
 0x439   :  { %8100 = vmatpush1.bf16.msra.mxu1 %v10789_v60  ;;  %7782 = vmatprep.subr.bf16.mxu0 %v10796_v61  ;;  %v1339_v60 = vld [vmem:[#allocation8 + $0x1198] sm:$0xff]  ;;  %v10844_v0 = vcombine.high %v1338_v55, %v1342_v58  ;;  %v10843_v31 = vcombine.low %v1338_v55, %v1342_v58 }
 0x43a   :  { %8110 = vmatprep.subr.bf16.mxu1 %v10798_v11  ;;  %v1343_v61 = vld [vmem:[#allocation8 + $0x11b8] sm:$0xff]  ;;  %v10835_v11 = vcombine.low %v1330_v50, %v1334_v57 }
 0x43b   :  { %7774 = vmatmul.mubr.bf16.vlgmr.msra.gmra.mrb[20].mxu0 %v12611_v3  ;;  %v10845_v1 = vcombine.low %v1339_v60, %v1343_v61 }
 0x43c   :  { %8102 = vmatmul.mubr.bf16.vlgmr.msra.gmra.mrb[20].mxu1 %v12611_v3  ;;  %7783 = vmatpush1.bf16.msra.mxu0 %v10795_v2  ;;  %v10813_v3 = vcombine.low %v1307_v5, %v1311_v23  ;;  %v10846_v2 = vcombine.high %v1339_v60, %v1343_v61  ;;  %v1354_v23 = vld [vmem:[#allocation8 + $0x1210] sm:$0xff] }
 0x43d   :  { %7814 = vmatprep.mubr.bf16.mxu0 %v12613_v4  ;;  %8111 = vmatpush1.bf16.msra.mxu1 %v10797_v10  ;;  %v1347_v10 = vld [vmem:[#allocation8 + $0x11d8] sm:$0xff]  ;;  %v1386_v61 = vld [vmem:[#allocation8 + $0x1310] sm:$0xff] }
 0x43e   :  { %8142 = vmatprep.mubr.bf16.mxu1 %v12613_v4  ;;  %7784 = vmatprep.subr.bf16.mxu0 %v10804_v19  ;;  %v10819_v4 = vcombine.low %v1314_v35, %v1318_v48  ;;  %v1351_v19 = vld [vmem:[#allocation8 + $0x11f8] sm:$0xff] }
 0x43f   :  { %8112 = vmatprep.subr.bf16.mxu1 %v10806_v49  ;;  %v10852_v49 = vcombine.high %v1346_v32, %v1350_v6  ;;  %v10854_v5 = vcombine.high %v1347_v10, %v1351_v19  ;;  %v10853_v35 = vcombine.low %v1347_v10, %v1351_v19  ;;  %v1394_v19 = vld [vmem:[#allocation8 + $0x1350] sm:$0xff] }
 0x440   :  { %7785 = vmatpush1.bf16.msra.mxu0 %v10803_v25  ;;  %v1358_v25 = vld [vmem:[#allocation8 + $0x1230] sm:$0xff] }
 0x441   :  { %8113 = vmatpush1.bf16.msra.mxu1 %v10805_v28  ;;  %7786 = vmatprep.subr.bf16.mxu0 %v10812_v29  ;;  %v1355_v28 = vld [vmem:[#allocation8 + $0x1218] sm:$0xff]  ;;  %v10860_v48 = vcombine.high %v1354_v23, %v1358_v25 }
 0x442   :  { %8114 = vmatprep.subr.bf16.mxu1 %v10814_v14  ;;  %v1359_v29 = vld [vmem:[#allocation8 + $0x1238] sm:$0xff]  ;;  %v10851_v14 = vcombine.low %v1346_v32, %v1350_v6 }
 0x443   :  { %v10862_v44 = vcombine.high %v1355_v28, %v1359_v29  ;;  %v10861_v42 = vcombine.low %v1355_v28, %v1359_v29  ;;  %v1402_v29 = vld [vmem:[#allocation8 + $0x1390] sm:$0xff] }
 0x444   :  { %7787 = vmatpush1.bf16.msra.mxu0 %v10811_v24  ;;  %v1366_v24 = vld [vmem:[#allocation8 + $0x1270] sm:$0xff] }
 0x445   :  { %8115 = vmatpush1.bf16.msra.mxu1 %v10813_v3  ;;  %7788 = vmatprep.subr.bf16.mxu0 %v10820_v59  ;;  %v1363_v3 = vld [vmem:[#allocation8 + $0x1258] sm:$0xff]  ;;  %v10868_v43 = vcombine.high %v1362_v37, %v1366_v24 }
 0x446   :  { %8116 = vmatprep.subr.bf16.mxu1 %v10822_v41  ;;  %v1367_v59 = vld [vmem:[#allocation8 + $0x1278] sm:$0xff]  ;;  %v10859_v41 = vcombine.low %v1354_v23, %v1358_v25 }
 0x447   :  { %v10870_v56 = vcombine.high %v1363_v3, %v1367_v59  ;;  %v10869_v50 = vcombine.low %v1363_v3, %v1367_v59  ;;  %v1410_v59 = vld [vmem:[#allocation8 + $0x13d0] sm:$0xff] }
 0x448   :  { %7789 = vmatpush1.bf16.msra.mxu0 %v10819_v4  ;;  %v1374_v4 = vld [vmem:[#allocation8 + $0x12b0] sm:$0xff] }
 0x449   :  { %8117 = vmatpush1.bf16.msra.mxu1 %v10821_v21  ;;  %7790 = vmatprep.subr.bf16.mxu0 %v10828_v20  ;;  %v1371_v21 = vld [vmem:[#allocation8 + $0x1298] sm:$0xff]  ;;  %v10876_v57 = vcombine.high %v1370_v45, %v1374_v4 }
 0x44a   :  { %8118 = vmatprep.subr.bf16.mxu1 %v10830_v40  ;;  %v1375_v20 = vld [vmem:[#allocation8 + $0x12b8] sm:$0xff]  ;;  %v10867_v40 = vcombine.low %v1362_v37, %v1366_v24 }
 0x44b   :  { %v10878_v38 = vcombine.high %v1371_v21, %v1375_v20  ;;  %v10877_v55 = vcombine.low %v1371_v21, %v1375_v20  ;;  %v1418_v20 = vld [vmem:[#allocation8 + $0x1410] sm:$0xff] }
 0x44c   :  { %7791 = vmatpush1.bf16.msra.mxu0 %v10827_v33  ;;  %v1382_v33 = vld [vmem:[#allocation8 + $0x12f0] sm:$0xff] }
 0x44d   :  { %8119 = vmatpush1.bf16.msra.mxu1 %v10829_v53  ;;  %7792 = vmatprep.subr.bf16.mxu0 %v10836_v52  ;;  %v1379_v53 = vld [vmem:[#allocation8 + $0x12d8] sm:$0xff]  ;;  %v10884_v58 = vcombine.high %v1378_v51, %v1382_v33 }
 0x44e   :  { %8120 = vmatprep.subr.bf16.mxu1 %v10838_v47  ;;  %v1383_v52 = vld [vmem:[#allocation8 + $0x12f8] sm:$0xff]  ;;  %v10875_v47 = vcombine.low %v1370_v45, %v1374_v4 }
 0x44f   :  { %v10886_v60 = vcombine.high %v1379_v53, %v1383_v52  ;;  %v10885_v32 = vcombine.low %v1379_v53, %v1383_v52  ;;  %v1426_v52 = vld [vmem:[#allocation8 + $0x1450] sm:$0xff] }
 0x450   :  { %7793 = vmatpush1.bf16.msra.mxu0 %v10835_v11  ;;  %v1390_v11 = vld [vmem:[#allocation8 + $0x1330] sm:$0xff] }
 0x451   :  { %8121 = vmatpush1.bf16.msra.mxu1 %v10837_v63  ;;  %7794 = vmatprep.subr.bf16.mxu0 %v10844_v0  ;;  %v1387_v63 = vld [vmem:[#allocation8 + $0x1318] sm:$0xff]  ;;  %v10892_v6 = vcombine.high %v1386_v61, %v1390_v11 }
 0x452   :  { %8122 = vmatprep.subr.bf16.mxu1 %v10846_v2  ;;  %v1391_v0 = vld [vmem:[#allocation8 + $0x1338] sm:$0xff]  ;;  %v10883_v2 = vcombine.low %v1378_v51, %v1382_v33 }
 0x453   :  { %v10894_v10 = vcombine.high %v1387_v63, %v1391_v0  ;;  %v10893_v23 = vcombine.low %v1387_v63, %v1391_v0  ;;  %v1434_v63 = vld [vmem:[#allocation8 + $0x1490] sm:$0xff] }
 0x454   :  { %7795 = vmatpush1.bf16.msra.mxu0 %v10843_v31  ;;  %v1398_v31 = vld [vmem:[#allocation8 + $0x1370] sm:$0xff] }
 0x455   :  { %8123 = vmatpush1.bf16.msra.mxu1 %v10845_v1  ;;  %7796 = vmatprep.subr.bf16.mxu0 %v10852_v49  ;;  %v1395_v1 = vld [vmem:[#allocation8 + $0x1358] sm:$0xff]  ;;  %v10900_v25 = vcombine.high %v1394_v19, %v1398_v31  ;;  %v1438_v0 = vld [vmem:[#allocation8 + $0x14b0] sm:$0xff] }
 0x456   :  { %8124 = vmatprep.subr.bf16.mxu1 %v10854_v5  ;;  %v1399_v49 = vld [vmem:[#allocation8 + $0x1378] sm:$0xff]  ;;  %v10891_v5 = vcombine.low %v1386_v61, %v1390_v11 }
 0x457   :  { %v10902_v28 = vcombine.high %v1395_v1, %v1399_v49  ;;  %v10901_v37 = vcombine.low %v1395_v1, %v1399_v49  ;;  %v1442_v49 = vld [vmem:[#allocation8 + $0x14d0] sm:$0xff] }
 0x458   :  { %7797 = vmatpush1.bf16.msra.mxu0 %v10851_v14  ;;  %v1406_v14 = vld [vmem:[#allocation8 + $0x13b0] sm:$0xff] }
 0x459   :  { %8125 = vmatpush1.bf16.msra.mxu1 %v10853_v35  ;;  %7798 = vmatprep.subr.bf16.mxu0 %v10860_v48  ;;  %v1403_v35 = vld [vmem:[#allocation8 + $0x1398] sm:$0xff]  ;;  %v10908_v24 = vcombine.high %v1402_v29, %v1406_v14 }
 0x45a   :  { %8126 = vmatprep.subr.bf16.mxu1 %v10862_v44  ;;  %v1407_v48 = vld [vmem:[#allocation8 + $0x13b8] sm:$0xff]  ;;  %v10899_v44 = vcombine.low %v1394_v19, %v1398_v31  ;;  %v10940_v31 = vcombine.high %v1434_v63, %v1438_v0 }
 0x45b   :  { %v10910_v3 = vcombine.high %v1403_v35, %v1407_v48  ;;  %v10909_v45 = vcombine.low %v1403_v35, %v1407_v48  ;;  %v1450_v35 = vld [vmem:[#allocation8 + $0x1510] sm:$0xff] }
 0x45c   :  { %7799 = vmatpush1.bf16.msra.mxu0 %v10859_v41  ;;  %v1414_v41 = vld [vmem:[#allocation8 + $0x13f0] sm:$0xff] }
 0x45d   :  { %8127 = vmatpush1.bf16.msra.mxu1 %v10861_v42  ;;  %7800 = vmatprep.subr.bf16.mxu0 %v10868_v43  ;;  %v1411_v42 = vld [vmem:[#allocation8 + $0x13d8] sm:$0xff]  ;;  %v10916_v4 = vcombine.high %v1410_v59, %v1414_v41  ;;  %v1454_v48 = vld [vmem:[#allocation8 + $0x1530] sm:$0xff] }
 0x45e   :  { %8128 = vmatprep.subr.bf16.mxu1 %v10870_v56  ;;  %v1415_v43 = vld [vmem:[#allocation8 + $0x13f8] sm:$0xff]  ;;  %v10907_v56 = vcombine.low %v1402_v29, %v1406_v14 }
 0x45f   :  { %v10918_v21 = vcombine.high %v1411_v42, %v1415_v43  ;;  %v10917_v51 = vcombine.low %v1411_v42, %v1415_v43  ;;  %v1462_v42 = vld [vmem:[#allocation8 + $0x1570] sm:$0xff]  ;;  %v1459_v43 = vld [vmem:[#allocation8 + $0x1558] sm:$0xff] }
 0x460   :  { %7801 = vmatpush1.bf16.msra.mxu0 %v10867_v40  ;;  %v1422_v40 = vld [vmem:[#allocation8 + $0x1430] sm:$0xff] }
 0x461   :  { %8129 = vmatpush1.bf16.msra.mxu1 %v10869_v50  ;;  %7802 = vmatprep.subr.bf16.mxu0 %v10876_v57  ;;  %v1419_v50 = vld [vmem:[#allocation8 + $0x1418] sm:$0xff]  ;;  %v10924_v33 = vcombine.high %v1418_v20, %v1422_v40 }
 0x462   :  { %8130 = vmatprep.subr.bf16.mxu1 %v10878_v38  ;;  %v1423_v57 = vld [vmem:[#allocation8 + $0x1438] sm:$0xff]  ;;  %v10915_v38 = vcombine.low %v1410_v59, %v1414_v41  ;;  %v1458_v41 = vld [vmem:[#allocation8 + $0x1550] sm:$0xff] }
 0x463   :  { %v10926_v53 = vcombine.high %v1419_v50, %v1423_v57  ;;  %v10925_v61 = vcombine.low %v1419_v50, %v1423_v57  ;;  %v1470_v50 = vld [vmem:[#allocation8 + $0x15b0] sm:$0xff]  ;;  %v1467_v57 = vld [vmem:[#allocation8 + $0x1598] sm:$0xff] }
 0x464   :  { %7803 = vmatpush1.bf16.msra.mxu0 %v10875_v47  ;;  %v1430_v47 = vld [vmem:[#allocation8 + $0x1470] sm:$0xff] }
 0x465   :  { %8131 = vmatpush1.bf16.msra.mxu1 %v10877_v55  ;;  %7804 = vmatprep.subr.bf16.mxu0 %v10884_v58  ;;  %v10923_v55 = vcombine.low %v1418_v20, %v1422_v40  ;;  %v1427_v58 = vld [vmem:[#allocation8 + $0x1458] sm:$0xff]  ;;  %v10932_v11 = vcombine.high %v1426_v52, %v1430_v47  ;;  %v1466_v40 = vld [vmem:[#allocation8 + $0x1590] sm:$0xff] }
 0x466   :  { %8132 = vmatprep.subr.bf16.mxu1 %v10886_v60  ;;  %v1431_v60 = vld [vmem:[#allocation8 + $0x1478] sm:$0xff] }
 0x467   :  { %v10933_v19 = vcombine.low %v1427_v58, %v1431_v60 }
 0x468   :  { %7805 = vmatpush1.bf16.msra.mxu0 %v10883_v2  ;;  %v10934_v2 = vcombine.high %v1427_v58, %v1431_v60  ;;  %v1475_v58 = vld [vmem:[#allocation8 + $0x15d8] sm:$0xff] }
 0x469   :  { %8133 = vmatpush1.bf16.msra.mxu1 %v10885_v32  ;;  %7806 = vmatprep.subr.bf16.mxu0 %v10892_v6  ;;  %v1435_v32 = vld [vmem:[#allocation8 + $0x1498] sm:$0xff] }
 0x46a   :  { %8134 = vmatprep.subr.bf16.mxu1 %v10894_v10  ;;  %v1439_v6 = vld [vmem:[#allocation8 + $0x14b8] sm:$0xff]  ;;  %v10931_v10 = vcombine.low %v1426_v52, %v1430_v47  ;;  %v1474_v47 = vld [vmem:[#allocation8 + $0x15d0] sm:$0xff] }
 0x46b   :  { %v10942_v1 = vcombine.high %v1435_v32, %v1439_v6  ;;  %v1479_v60 = vld [vmem:[#allocation8 + $0x15f8] sm:$0xff] }
 0x46c   :  { %7807 = vmatpush1.bf16.msra.mxu0 %v10891_v5  ;;  %v1446_v5 = vld [vmem:[#allocation8 + $0x14f0] sm:$0xff] }
 0x46d   :  { %8135 = vmatpush1.bf16.msra.mxu1 %v10893_v23  ;;  %7808 = vmatprep.subr.bf16.mxu0 %v10900_v25  ;;  %v1443_v23 = vld [vmem:[#allocation8 + $0x14d8] sm:$0xff]  ;;  %v10948_v29 = vcombine.high %v1442_v49, %v1446_v5 }
 0x46e   :  { %8136 = vmatprep.subr.bf16.mxu1 %v10902_v28  ;;  %v1447_v25 = vld [vmem:[#allocation8 + $0x14f8] sm:$0xff]  ;;  %v10939_v28 = vcombine.low %v1434_v63, %v1438_v0  ;;  %v10982_v0 = vcombine.high %v1475_v58, %v1479_v60 }
 0x46f   :  { %v10950_v14 = vcombine.high %v1443_v23, %v1447_v25 }
 0x470   :  { %7809 = vmatpush1.bf16.msra.mxu0 %v10899_v44  ;;  %v1451_v44 = vld [vmem:[#allocation8 + $0x1518] sm:$0xff] }
 0x471   :  { %8137 = vmatpush1.bf16.msra.mxu1 %v10901_v37  ;;  %7810 = vmatprep.subr.bf16.mxu0 %v10908_v24  ;;  %v1455_v37 = vld [vmem:[#allocation8 + $0x1538] sm:$0xff]  ;;  %v10949_v24 = vcombine.low %v1443_v23, %v1447_v25  ;;  %v1494_v23 = vld [vmem:[#allocation8 + $0x1670] sm:$0xff] }
 0x472   :  { %8138 = vmatprep.subr.bf16.mxu1 %v10910_v3  ;;  %v10956_v3 = vcombine.high %v1450_v35, %v1454_v48  ;;  %v10958_v59 = vcombine.high %v1451_v44, %v1455_v37  ;;  %v1491_v25 = vld [vmem:[#allocation8 + $0x1658] sm:$0xff] }
 0x474   :  { %7811 = vmatpush1.bf16.msra.mxu0 %v10907_v56  ;;  %v1463_v56 = vld [vmem:[#allocation8 + $0x1578] sm:$0xff] }
 0x475   :  { %8139 = vmatpush1.bf16.msra.mxu1 %v10909_v45  ;;  %7812 = vmatprep.subr.bf16.mxu0 %v10916_v4  ;;  %v10955_v45 = vcombine.low %v1450_v35, %v1454_v48  ;;  %v10957_v4 = vcombine.low %v1451_v44, %v1455_v37  ;;  %v10966_v20 = vcombine.high %v1459_v43, %v1463_v56  ;;  %v1498_v48 = vld [vmem:[#allocation8 + $0x1690] sm:$0xff]  ;;  %v1499_v37 = vld [vmem:[#allocation8 + $0x1698] sm:$0xff] }
 0x476   :  { %8140 = vmatprep.subr.bf16.mxu1 %v10918_v21  ;;  %v10964_v21 = vcombine.high %v1458_v41, %v1462_v42  ;;  %v1502_v44 = vld [vmem:[#allocation8 + $0x16b0] sm:$0xff] }
 0x478   :  { %7813 = vmatpush1.bf16.msra.mxu0 %v10915_v38  ;;  %v1471_v38 = vld [vmem:[#allocation8 + $0x15b8] sm:$0xff] }
 0x479   :  { %8141 = vmatpush1.bf16.msra.mxu1 %v10917_v51  ;;  %7823 = vmatprep.subr.bf16.mxu0 %v10924_v33  ;;  %v10963_v51 = vcombine.low %v1458_v41, %v1462_v42  ;;  %v10965_v33 = vcombine.low %v1459_v43, %v1463_v56  ;;  %v10974_v52 = vcombine.high %v1467_v57, %v1471_v38  ;;  %v1506_v42 = vld [vmem:[#allocation8 + $0x16d0] sm:$0xff]  ;;  %v1507_v56 = vld [vmem:[#allocation8 + $0x16d8] sm:$0xff] }
 0x47a   :  { %8151 = vmatprep.subr.bf16.mxu1 %v10926_v53  ;;  %v10972_v53 = vcombine.high %v1466_v40, %v1470_v50  ;;  %v1510_v43 = vld [vmem:[#allocation8 + $0x16f0] sm:$0xff] }
 0x47b   :  { %7815 = vmatmul.mubr.bf16.vlgmr.msra.gmra.mrb[20].mxu0 %v12623_v30 }
 0x47c   :  { %8143 = vmatmul.mubr.bf16.vlgmr.msra.gmra.mrb[20].mxu1 %v12623_v30  ;;  %7824 = vmatpush1.bf16.msra.mxu0 %v10923_v55  ;;  %v10941_v30 = vcombine.low %v1435_v32, %v1439_v6  ;;  %v1478_v55 = vld [vmem:[#allocation8 + $0x15f0] sm:$0xff]  ;;  %v1483_v6 = vld [vmem:[#allocation8 + $0x1618] sm:$0xff] }
 0x47d   :  { %7855 = vmatprep.mubr.bf16.mxu0 %v12625_v26  ;;  %8152 = vmatpush1.bf16.msra.mxu1 %v10925_v61  ;;  %v10971_v61 = vcombine.low %v1466_v40, %v1470_v50  ;;  %v10980_v63 = vcombine.high %v1474_v47, %v1478_v55  ;;  %v1486_v32 = vld [vmem:[#allocation8 + $0x1630] sm:$0xff] }
 0x47e   :  { %8183 = vmatprep.mubr.bf16.mxu1 %v12625_v26  ;;  %7825 = vmatprep.subr.bf16.mxu0 %v10932_v11  ;;  %v10947_v26 = vcombine.low %v1442_v49, %v1446_v5  ;;  %v10973_v11 = vcombine.low %v1467_v57, %v1471_v38  ;;  %v1490_v5 = vld [vmem:[#allocation8 + $0x1650] sm:$0xff]  ;;  %v1515_v38 = vld [vmem:[#allocation8 + $0x1718] sm:$0xff] }
 0x47f   :  { %8153 = vmatprep.subr.bf16.mxu1 %v10934_v2  ;;  %v1482_v2 = vld [vmem:[#allocation8 + $0x1610] sm:$0xff] }
 0x480   :  { %7826 = vmatpush1.bf16.msra.mxu0 %v10931_v10  ;;  %v1487_v10 = vld [vmem:[#allocation8 + $0x1638] sm:$0xff]  ;;  %v1514_v50 = vld [vmem:[#allocation8 + $0x1710] sm:$0xff] }
 0x481   :  { %8154 = vmatpush1.bf16.msra.mxu1 %v10933_v19  ;;  %7827 = vmatprep.subr.bf16.mxu0 %v10940_v31  ;;  %v10979_v19 = vcombine.low %v1474_v47, %v1478_v55  ;;  %v10981_v31 = vcombine.low %v1475_v58, %v1479_v60  ;;  %v10990_v49 = vcombine.high %v1483_v6, %v1487_v10  ;;  %v1518_v57 = vld [vmem:[#allocation8 + $0x1730] sm:$0xff]  ;;  %v1523_v60 = vld [vmem:[#allocation8 + $0x1758] sm:$0xff] }
 0x482   :  { %8155 = vmatprep.subr.bf16.mxu1 %v10942_v1  ;;  %v10988_v1 = vcombine.high %v1482_v2, %v1486_v32  ;;  %v1522_v55 = vld [vmem:[#allocation8 + $0x1750] sm:$0xff] }
 0x483   :  { %v1526_v58 = vld [vmem:[#allocation8 + $0x1770] sm:$0xff] }
 0x484   :  { %7828 = vmatpush1.bf16.msra.mxu0 %v10939_v28  ;;  %v1495_v28 = vld [vmem:[#allocation8 + $0x1678] sm:$0xff] }
 0x485   :  { %8156 = vmatpush1.bf16.msra.mxu1 %v10941_v30  ;;  %7829 = vmatprep.subr.bf16.mxu0 %v10948_v29  ;;  %v10987_v30 = vcombine.low %v1482_v2, %v1486_v32  ;;  %v10989_v29 = vcombine.low %v1483_v6, %v1487_v10  ;;  %v10998_v35 = vcombine.high %v1491_v25, %v1495_v28  ;;  %v1530_v32 = vld [vmem:[#allocation8 + $0x1790] sm:$0xff]  ;;  %v1531_v10 = vld [vmem:[#allocation8 + $0x1798] sm:$0xff] }
 0x486   :  { %8157 = vmatprep.subr.bf16.mxu1 %v10950_v14  ;;  %v10996_v14 = vcombine.high %v1490_v5, %v1494_v23  ;;  %v1534_v6 = vld [vmem:[#allocation8 + $0x17b0] sm:$0xff] }
 0x488   :  { %7830 = vmatpush1.bf16.msra.mxu0 %v10947_v26  ;;  %v1503_v26 = vld [vmem:[#allocation8 + $0x16b8] sm:$0xff] }
 0x489   :  { %8158 = vmatpush1.bf16.msra.mxu1 %v10949_v24  ;;  %7831 = vmatprep.subr.bf16.mxu0 %v10956_v3  ;;  %v10995_v24 = vcombine.low %v1490_v5, %v1494_v23  ;;  %v10997_v3 = vcombine.low %v1491_v25, %v1495_v28  ;;  %v11006_v41 = vcombine.high %v1499_v37, %v1503_v26  ;;  %v1538_v23 = vld [vmem:[#allocation8 + $0x17d0] sm:$0xff]  ;;  %v1539_v28 = vld [vmem:[#allocation8 + $0x17d8] sm:$0xff] }
 0x48a   :  { %8159 = vmatprep.subr.bf16.mxu1 %v10958_v59  ;;  %v11004_v59 = vcombine.high %v1498_v48, %v1502_v44  ;;  %v1542_v25 = vld [vmem:[#allocation8 + $0x17f0] sm:$0xff] }
 0x48c   :  { %7832 = vmatpush1.bf16.msra.mxu0 %v10955_v45  ;;  %v1511_v45 = vld [vmem:[#allocation8 + $0x16f8] sm:$0xff] }
 0x48d   :  { %8160 = vmatpush1.bf16.msra.mxu1 %v10957_v4  ;;  %7833 = vmatprep.subr.bf16.mxu0 %v10964_v21  ;;  %v11003_v4 = vcombine.low %v1498_v48, %v1502_v44  ;;  %v11005_v21 = vcombine.low %v1499_v37, %v1503_v26  ;;  %v11014_v40 = vcombine.high %v1507_v56, %v1511_v45  ;;  %v1546_v44 = vld [vmem:[#allocation8 + $0x1810] sm:$0xff]  ;;  %v1547_v26 = vld [vmem:[#allocation8 + $0x1818] sm:$0xff] }
 0x48e   :  { %8161 = vmatprep.subr.bf16.mxu1 %v10966_v20  ;;  %v11012_v20 = vcombine.high %v1506_v42, %v1510_v43  ;;  %v1550_v37 = vld [vmem:[#allocation8 + $0x1830] sm:$0xff] }
 0x490   :  { %7834 = vmatpush1.bf16.msra.mxu0 %v10963_v51  ;;  %v1519_v51 = vld [vmem:[#allocation8 + $0x1738] sm:$0xff] }
 0x491   :  { %8162 = vmatpush1.bf16.msra.mxu1 %v10965_v33  ;;  %7835 = vmatprep.subr.bf16.mxu0 %v10972_v53  ;;  %v11011_v33 = vcombine.low %v1506_v42, %v1510_v43  ;;  %v11013_v53 = vcombine.low %v1507_v56, %v1511_v45  ;;  %v11022_v47 = vcombine.high %v1515_v38, %v1519_v51  ;;  %v1554_v43 = vld [vmem:[#allocation8 + $0x1850] sm:$0xff] }
 0x492   :  { %8163 = vmatprep.subr.bf16.mxu1 %v10974_v52  ;;  %v11020_v52 = vcombine.high %v1514_v50, %v1518_v57  ;;  %v1558_v56 = vld [vmem:[#allocation8 + $0x1870] sm:$0xff]  ;;  %v11051_v45 = vcombine.low %v1546_v44, %v1550_v37 }
 0x494   :  { %7836 = vmatpush1.bf16.msra.mxu0 %v10971_v61  ;;  %v1527_v61 = vld [vmem:[#allocation8 + $0x1778] sm:$0xff] }
 0x495   :  { %8164 = vmatpush1.bf16.msra.mxu1 %v10973_v11  ;;  %7837 = vmatprep.subr.bf16.mxu0 %v10980_v63  ;;  %v11019_v11 = vcombine.low %v1514_v50, %v1518_v57  ;;  %v11021_v63 = vcombine.low %v1515_v38, %v1519_v51  ;;  %v11030_v2 = vcombine.high %v1523_v60, %v1527_v61  ;;  %v1562_v50 = vld [vmem:[#allocation8 + $0x1890] sm:$0xff]  ;;  %v1563_v51 = vld [vmem:[#allocation8 + $0x1898] sm:$0xff] }
 0x496   :  { %8165 = vmatprep.subr.bf16.mxu1 %v10982_v0  ;;  %v11028_v0 = vcombine.high %v1522_v55, %v1526_v58  ;;  %v1566_v57 = vld [vmem:[#allocation8 + $0x18b0] sm:$0xff] }
 0x498   :  { %7838 = vmatpush1.bf16.msra.mxu0 %v10979_v19  ;;  %v1535_v19 = vld [vmem:[#allocation8 + $0x17b8] sm:$0xff] }
 0x499   :  { %8166 = vmatpush1.bf16.msra.mxu1 %v10981_v31  ;;  %7839 = vmatprep.subr.bf16.mxu0 %v10988_v1  ;;  %v11027_v31 = vcombine.low %v1522_v55, %v1526_v58  ;;  %v11029_v1 = vcombine.low %v1523_v60, %v1527_v61  ;;  %v11038_v5 = vcombine.high %v1531_v10, %v1535_v19  ;;  %v1570_v58 = vld [vmem:[#allocation8 + $0x18d0] sm:$0xff]  ;;  %v1571_v61 = vld [vmem:[#allocation8 + $0x18d8] sm:$0xff] }
 0x49a   :  { %8167 = vmatprep.subr.bf16.mxu1 %v10990_v49  ;;  %v11036_v49 = vcombine.high %v1530_v32, %v1534_v6  ;;  %v1574_v60 = vld [vmem:[#allocation8 + $0x18f0] sm:$0xff] }
 0x49c   :  { %7840 = vmatpush1.bf16.msra.mxu0 %v10987_v30  ;;  %v1543_v30 = vld [vmem:[#allocation8 + $0x17f8] sm:$0xff] }
 0x49d   :  { %8168 = vmatpush1.bf16.msra.mxu1 %v10989_v29  ;;  %7841 = vmatprep.subr.bf16.mxu0 %v10996_v14  ;;  %v11035_v29 = vcombine.low %v1530_v32, %v1534_v6  ;;  %v11037_v14 = vcombine.low %v1531_v10, %v1535_v19  ;;  %v11046_v48 = vcombine.high %v1539_v28, %v1543_v30  ;;  %v1578_v32 = vld [vmem:[#allocation8 + $0x1910] sm:$0xff]  ;;  %v1579_v10 = vld [vmem:[#allocation8 + $0x1918] sm:$0xff] }
 0x49e   :  { %8169 = vmatprep.subr.bf16.mxu1 %v10998_v35  ;;  %v11044_v35 = vcombine.high %v1538_v23, %v1542_v25  ;;  %v1582_v6 = vld [vmem:[#allocation8 + $0x1930] sm:$0xff]  ;;  %v1583_v19 = vld [vmem:[#allocation8 + $0x1938] sm:$0xff] }
 0x4a0   :  { %7842 = vmatpush1.bf16.msra.mxu0 %v10995_v24  ;;  %v1551_v24 = vld [vmem:[#allocation8 + $0x1838] sm:$0xff] }
 0x4a1   :  { %8170 = vmatpush1.bf16.msra.mxu1 %v10997_v3  ;;  %7843 = vmatprep.subr.bf16.mxu0 %v11004_v59  ;;  %v11043_v3 = vcombine.low %v1538_v23, %v1542_v25  ;;  %v11045_v59 = vcombine.low %v1539_v28, %v1543_v30  ;;  %v11054_v42 = vcombine.high %v1547_v26, %v1551_v24  ;;  %v1590_v23 = vld [vmem:[#allocation8 + $0x1970] sm:$0xff]  ;;  %v1587_v25 = vld [vmem:[#allocation8 + $0x1958] sm:$0xff] }
 0x4a2   :  { %8171 = vmatprep.subr.bf16.mxu1 %v11006_v41  ;;  %v11052_v41 = vcombine.high %v1546_v44, %v1550_v37  ;;  %v1591_v28 = vld [vmem:[#allocation8 + $0x1978] sm:$0xff]  ;;  %v11083_v30 = vcombine.low %v1578_v32, %v1582_v6  ;;  %v1598_v44 = vld [vmem:[#allocation8 + $0x19b0] sm:$0xff] }
 0x4a3   :  { %v1595_v37 = vld [vmem:[#allocation8 + $0x1998] sm:$0xff] }
 0x4a4   :  { %7844 = vmatpush1.bf16.msra.mxu0 %v11003_v4  ;;  %v1555_v4 = vld [vmem:[#allocation8 + $0x1858] sm:$0xff] }
 0x4a5   :  { %8172 = vmatpush1.bf16.msra.mxu1 %v11005_v21  ;;  %7845 = vmatprep.subr.bf16.mxu0 %v11012_v20  ;;  %v1559_v21 = vld [vmem:[#allocation8 + $0x1878] sm:$0xff]  ;;  %v11053_v20 = vcombine.low %v1547_v26, %v1551_v24 }
 0x4a6   :  { %8173 = vmatprep.subr.bf16.mxu1 %v11014_v40  ;;  %v11060_v40 = vcombine.high %v1554_v43, %v1558_v56  ;;  %v11062_v38 = vcombine.high %v1555_v4, %v1559_v21  ;;  %v1599_v26 = vld [vmem:[#allocation8 + $0x19b8] sm:$0xff] }
 0x4a8   :  { %7846 = vmatpush1.bf16.msra.mxu0 %v11011_v33  ;;  %v1567_v33 = vld [vmem:[#allocation8 + $0x18b8] sm:$0xff] }
 0x4a9   :  { %8174 = vmatpush1.bf16.msra.mxu1 %v11013_v53  ;;  %7847 = vmatprep.subr.bf16.mxu0 %v11020_v52  ;;  %v11059_v53 = vcombine.low %v1554_v43, %v1558_v56  ;;  %v11061_v52 = vcombine.low %v1555_v4, %v1559_v21  ;;  %v11070_v55 = vcombine.high %v1563_v51, %v1567_v33  ;;  %v1606_v43 = vld [vmem:[#allocation8 + $0x19f0] sm:$0xff]  ;;  %v1603_v56 = vld [vmem:[#allocation8 + $0x19d8] sm:$0xff] }
 0x4aa   :  { %8175 = vmatprep.subr.bf16.mxu1 %v11022_v47  ;;  %v11068_v47 = vcombine.high %v1562_v50, %v1566_v57  ;;  %v11101_v21 = vcombine.low %v1595_v37, %v1599_v26 }
 0x4ac   :  { %7848 = vmatpush1.bf16.msra.mxu0 %v11019_v11  ;;  %v1575_v11 = vld [vmem:[#allocation8 + $0x18f8] sm:$0xff] }
 0x4ad   :  { %8176 = vmatpush1.bf16.msra.mxu1 %v11021_v63  ;;  %7849 = vmatprep.subr.bf16.mxu0 %v11028_v0  ;;  %v11067_v63 = vcombine.low %v1562_v50, %v1566_v57  ;;  %v11076_v0 = vcombine.high %v1570_v58, %v1574_v60  ;;  %v1610_v50 = vld [vmem:[#allocation8 + $0x1a10] sm:$0xff] }
 0x4ae   :  { %8177 = vmatprep.subr.bf16.mxu1 %v11030_v2  ;;  %v11078_v2 = vcombine.high %v1571_v61, %v1575_v11  ;;  %v1614_v57 = vld [vmem:[#allocation8 + $0x1a30] sm:$0xff] }
 0x4b0   :  { %7850 = vmatpush1.bf16.msra.mxu0 %v11027_v31  ;;  %v11077_v31 = vcombine.low %v1571_v61, %v1575_v11  ;;  %v1623_v61 = vld [vmem:[#allocation8 + $0x1a78] sm:$0xff]  ;;  %v11115_v11 = vcombine.low %v1610_v50, %v1614_v57 }
 0x4b1   :  { %8178 = vmatpush1.bf16.msra.mxu1 %v11029_v1  ;;  %7851 = vmatprep.subr.bf16.mxu0 %v11036_v49  ;;  %v11084_v1 = vcombine.high %v1578_v32, %v1582_v6  ;;  %v11086_v49 = vcombine.high %v1579_v10, %v1583_v19  ;;  %v1630_v32 = vld [vmem:[#allocation8 + $0x1ab0] sm:$0xff]  ;;  %v1627_v6 = vld [vmem:[#allocation8 + $0x1a98] sm:$0xff] }
 0x4b2   :  { %8179 = vmatprep.subr.bf16.mxu1 %v11038_v5  ;;  %v1586_v5 = vld [vmem:[#allocation8 + $0x1950] sm:$0xff] }
 0x4b3   :  { %v11091_v24 = vcombine.low %v1586_v5, %v1590_v23 }
 0x4b4   :  { %7852 = vmatpush1.bf16.msra.mxu0 %v11035_v29  ;;  %v11085_v29 = vcombine.low %v1579_v10, %v1583_v19  ;;  %v1631_v10 = vld [vmem:[#allocation8 + $0x1ab8] sm:$0xff] }
 0x4b5   :  { %8180 = vmatpush1.bf16.msra.mxu1 %v11037_v14  ;;  %7853 = vmatprep.subr.bf16.mxu0 %v11044_v35  ;;  %v11092_v14 = vcombine.high %v1586_v5, %v1590_v23  ;;  %v11094_v35 = vcombine.high %v1587_v25, %v1591_v28  ;;  %v1638_v5 = vld [vmem:[#allocation8 + $0x1af0] sm:$0xff]  ;;  %v1635_v23 = vld [vmem:[#allocation8 + $0x1ad8] sm:$0xff] }
 0x4b6   :  { %8181 = vmatprep.subr.bf16.mxu1 %v11046_v48  ;;  %v1594_v48 = vld [vmem:[#allocation8 + $0x1990] sm:$0xff] }
 0x4b7   :  { %v11099_v4 = vcombine.low %v1594_v48, %v1598_v44 }
 0x4b8   :  { %7854 = vmatpush1.bf16.msra.mxu0 %v11043_v3  ;;  %v11093_v3 = vcombine.low %v1587_v25, %v1591_v28  ;;  %v1639_v25 = vld [vmem:[#allocation8 + $0x1af8] sm:$0xff] }
 0x4b9   :  { %8182 = vmatpush1.bf16.msra.mxu1 %v11045_v59  ;;  %7864 = vmatprep.subr.bf16.mxu0 %v11052_v41  ;;  %v11100_v59 = vcombine.high %v1594_v48, %v1598_v44  ;;  %v11102_v41 = vcombine.high %v1595_v37, %v1599_v26  ;;  %v1646_v48 = vld [vmem:[#allocation8 + $0x1b30] sm:$0xff]  ;;  %v1643_v44 = vld [vmem:[#allocation8 + $0x1b18] sm:$0xff] }
 0x4ba   :  { %8192 = vmatprep.subr.bf16.mxu1 %v11054_v42  ;;  %v1602_v42 = vld [vmem:[#allocation8 + $0x19d0] sm:$0xff]  ;;  %v1647_v37 = vld [vmem:[#allocation8 + $0x1b38] sm:$0xff] }
 0x4bb   :  { %7856 = vmatmul.mubr.bf16.vlgmr.msra.gmra.mrb[20].mxu0 %v12633_v46 }
 0x4bc   :  { %8184 = vmatmul.mubr.bf16.vlgmr.msra.gmra.mrb[20].mxu1 %v12633_v46  ;;  %7865 = vmatpush1.bf16.msra.mxu0 %v11051_v45  ;;  %v11069_v46 = vcombine.low %v1563_v51, %v1567_v33  ;;  %v1607_v45 = vld [vmem:[#allocation8 + $0x19f8] sm:$0xff]  ;;  %v11107_v33 = vcombine.low %v1602_v42, %v1606_v43 }
 0x4bd   :  { %7896 = vmatprep.mubr.bf16.mxu0 %v12635_v54  ;;  %8193 = vmatpush1.bf16.msra.mxu1 %v11053_v20  ;;  %v11108_v20 = vcombine.high %v1602_v42, %v1606_v43  ;;  %v1615_v51 = vld [vmem:[#allocation8 + $0x1a38] sm:$0xff]  ;;  %v1654_v42 = vld [vmem:[#allocation8 + $0x1b70] sm:$0xff] }
 0x4be   :  { %8224 = vmatprep.mubr.bf16.mxu1 %v12635_v54  ;;  %7866 = vmatprep.subr.bf16.mxu0 %v11060_v40  ;;  %v11075_v54 = vcombine.low %v1570_v58, %v1574_v60  ;;  %v11110_v40 = vcombine.high %v1603_v56, %v1607_v45  ;;  %v1622_v58 = vld [vmem:[#allocation8 + $0x1a70] sm:$0xff]  ;;  %v1619_v60 = vld [vmem:[#allocation8 + $0x1a58] sm:$0xff] }
 0x4bf   :  { %8194 = vmatprep.subr.bf16.mxu1 %v11062_v38  ;;  %v1611_v38 = vld [vmem:[#allocation8 + $0x1a18] sm:$0xff] }
 0x4c0   :  { %7867 = vmatpush1.bf16.msra.mxu0 %v11059_v53  ;;  %v11109_v53 = vcombine.low %v1603_v56, %v1607_v45  ;;  %v1651_v43 = vld [vmem:[#allocation8 + $0x1b58] sm:$0xff] }
 0x4c1   :  { %8195 = vmatpush1.bf16.msra.mxu1 %v11061_v52  ;;  %7868 = vmatprep.subr.bf16.mxu0 %v11068_v47  ;;  %v11116_v52 = vcombine.high %v1610_v50, %v1614_v57  ;;  %v11118_v47 = vcombine.high %v1611_v38, %v1615_v51  ;;  %v1655_v56 = vld [vmem:[#allocation8 + $0x1b78] sm:$0xff]  ;;  %v1662_v50 = vld [vmem:[#allocation8 + $0x1bb0] sm:$0xff] }
 0x4c2   :  { %8196 = vmatprep.subr.bf16.mxu1 %v11070_v55  ;;  %v1618_v55 = vld [vmem:[#allocation8 + $0x1a50] sm:$0xff]  ;;  %v1659_v57 = vld [vmem:[#allocation8 + $0x1b98] sm:$0xff] }
 0x4c3   :  { %v11123_v19 = vcombine.low %v1618_v55, %v1622_v58 }
 0x4c4   :  { %7869 = vmatpush1.bf16.msra.mxu0 %v11067_v63  ;;  %v11117_v63 = vcombine.low %v1611_v38, %v1615_v51  ;;  %v1663_v38 = vld [vmem:[#allocation8 + $0x1bb8] sm:$0xff] }
 0x4c5   :  { %8197 = vmatpush1.bf16.msra.mxu1 %v11069_v46  ;;  %7870 = vmatprep.subr.bf16.mxu0 %v11076_v0  ;;  %v11124_v46 = vcombine.high %v1618_v55, %v1622_v58  ;;  %v11126_v0 = vcombine.high %v1619_v60, %v1623_v61  ;;  %v1670_v55 = vld [vmem:[#allocation8 + $0x1bf0] sm:$0xff]  ;;  %v1667_v58 = vld [vmem:[#allocation8 + $0x1bd8] sm:$0xff] }
 0x4c6   :  { %8198 = vmatprep.subr.bf16.mxu1 %v11078_v2  ;;  %v1626_v2 = vld [vmem:[#allocation8 + $0x1a90] sm:$0xff] }
 0x4c7   :  { %v11131_v28 = vcombine.low %v1626_v2, %v1630_v32 }
 0x4c8   :  { %7871 = vmatpush1.bf16.msra.mxu0 %v11075_v54  ;;  %v11125_v54 = vcombine.low %v1619_v60, %v1623_v61  ;;  %v1671_v60 = vld [vmem:[#allocation8 + $0x1bf8] sm:$0xff] }
 0x4c9   :  { %8199 = vmatpush1.bf16.msra.mxu1 %v11077_v31  ;;  %7872 = vmatprep.subr.bf16.mxu0 %v11084_v1  ;;  %v11132_v31 = vcombine.high %v1626_v2, %v1630_v32  ;;  %v11134_v1 = vcombine.high %v1627_v6, %v1631_v10  ;;  %v1678_v2 = vld [vmem:[#allocation8 + $0x1c30] sm:$0xff]  ;;  %v1675_v32 = vld [vmem:[#allocation8 + $0x1c18] sm:$0xff] }
 0x4ca   :  { %8200 = vmatprep.subr.bf16.mxu1 %v11086_v49  ;;  %v1634_v49 = vld [vmem:[#allocation8 + $0x1ad0] sm:$0xff] }
 0x4cb   :  { %v11139_v26 = vcombine.low %v1634_v49, %v1638_v5 }
 0x4cc   :  { %7873 = vmatpush1.bf16.msra.mxu0 %v11083_v30  ;;  %v11133_v30 = vcombine.low %v1627_v6, %v1631_v10  ;;  %v1679_v6 = vld [vmem:[#allocation8 + $0x1c38] sm:$0xff] }
 0x4cd   :  { %8201 = vmatpush1.bf16.msra.mxu1 %v11085_v29  ;;  %7874 = vmatprep.subr.bf16.mxu0 %v11092_v14  ;;  %v11140_v29 = vcombine.high %v1634_v49, %v1638_v5  ;;  %v11142_v14 = vcombine.high %v1635_v23, %v1639_v25  ;;  %v1686_v49 = vld [vmem:[#allocation8 + $0x1c70] sm:$0xff] }
 0x4ce   :  { %8202 = vmatprep.subr.bf16.mxu1 %v11094_v35  ;;  %v1642_v35 = vld [vmem:[#allocation8 + $0x1b10] sm:$0xff] }
 0x4cf   :  { %v11147_v45 = vcombine.low %v1642_v35, %v1646_v48 }
 0x4d0   :  { %7875 = vmatpush1.bf16.msra.mxu0 %v11091_v24  ;;  %v11141_v24 = vcombine.low %v1635_v23, %v1639_v25  ;;  %v1683_v23 = vld [vmem:[#allocation8 + $0x1c58] sm:$0xff] }
 0x4d1   :  { %8203 = vmatpush1.bf16.msra.mxu1 %v11093_v3  ;;  %7876 = vmatprep.subr.bf16.mxu0 %v11100_v59  ;;  %v11148_v3 = vcombine.high %v1642_v35, %v1646_v48  ;;  %v11150_v59 = vcombine.high %v1643_v44, %v1647_v37  ;;  %v1687_v25 = vld [vmem:[#allocation8 + $0x1c78] sm:$0xff] }
 0x4d2   :  { %8204 = vmatprep.subr.bf16.mxu1 %v11102_v41  ;;  %v1650_v41 = vld [vmem:[#allocation8 + $0x1b50] sm:$0xff]  ;;  %v11190_v35 = vcombine.high %v1683_v23, %v1687_v25  ;;  %v1691_v48 = vld [vmem:[#allocation8 + $0x1c98] sm:$0xff] }
 0x4d3   :  { %v11155_v51 = vcombine.low %v1650_v41, %v1654_v42 }
 0x4d4   :  { %7877 = vmatpush1.bf16.msra.mxu0 %v11099_v4  ;;  %v11149_v4 = vcombine.low %v1643_v44, %v1647_v37  ;;  %v1695_v44 = vld [vmem:[#allocation8 + $0x1cb8] sm:$0xff] }
 0x4d5   :  { %8205 = vmatpush1.bf16.msra.mxu1 %v11101_v21  ;;  %7878 = vmatprep.subr.bf16.mxu0 %v11108_v20  ;;  %v11156_v21 = vcombine.high %v1650_v41, %v1654_v42  ;;  %v11158_v20 = vcombine.high %v1651_v43, %v1655_v56  ;;  %v1702_v41 = vld [vmem:[#allocation8 + $0x1cf0] sm:$0xff]  ;;  %v1699_v42 = vld [vmem:[#allocation8 + $0x1cd8] sm:$0xff] }
 0x4d6   :  { %8206 = vmatprep.subr.bf16.mxu1 %v11110_v40  ;;  %v1658_v40 = vld [vmem:[#allocation8 + $0x1b90] sm:$0xff] }
 0x4d7   :  { %v11163_v61 = vcombine.low %v1658_v40, %v1662_v50 }
 0x4d8   :  { %7879 = vmatpush1.bf16.msra.mxu0 %v11107_v33  ;;  %v11157_v33 = vcombine.low %v1651_v43, %v1655_v56  ;;  %v1703_v43 = vld [vmem:[#allocation8 + $0x1cf8] sm:$0xff] }
 0x4d9   :  { %8207 = vmatpush1.bf16.msra.mxu1 %v11109_v53  ;;  %7880 = vmatprep.subr.bf16.mxu0 %v11116_v52  ;;  %v11164_v53 = vcombine.high %v1658_v40, %v1662_v50  ;;  %v11166_v52 = vcombine.high %v1659_v57, %v1663_v38  ;;  %v1707_v40 = vld [vmem:[#allocation8 + $0x1d18] sm:$0xff] }
 0x4da   :  { %8208 = vmatprep.subr.bf16.mxu1 %v11118_v47  ;;  %v1666_v47 = vld [vmem:[#allocation8 + $0x1bd0] sm:$0xff]  ;;  %v1711_v50 = vld [vmem:[#allocation8 + $0x1d38] sm:$0xff] }
 0x4db   :  { %v11171_v10 = vcombine.low %v1666_v47, %v1670_v55 }
 0x4dc   :  { %7881 = vmatpush1.bf16.msra.mxu0 %v11115_v11  ;;  %v11165_v11 = vcombine.low %v1659_v57, %v1663_v38  ;;  %v11205_v57 = vcombine.low %v1699_v42, %v1703_v43 }
 0x4dd   :  { %8209 = vmatpush1.bf16.msra.mxu1 %v11117_v63  ;;  %7882 = vmatprep.subr.bf16.mxu0 %v11124_v46  ;;  %v11172_v63 = vcombine.high %v1666_v47, %v1670_v55  ;;  %v11174_v46 = vcombine.high %v1667_v58, %v1671_v60  ;;  %v1719_v47 = vld [vmem:[#allocation8 + $0x1d78] sm:$0xff] }
 0x4de   :  { %8210 = vmatprep.subr.bf16.mxu1 %v11126_v0  ;;  %v1674_v0 = vld [vmem:[#allocation8 + $0x1c10] sm:$0xff] }
 0x4df   :  { %v11179_v5 = vcombine.low %v1674_v0, %v1678_v2 }
 0x4e0   :  { %7883 = vmatpush1.bf16.msra.mxu0 %v11123_v19  ;;  %v11173_v19 = vcombine.low %v1667_v58, %v1671_v60  ;;  %v11213_v58 = vcombine.low %v1707_v40, %v1711_v50 }
 0x4e1   :  { %8211 = vmatpush1.bf16.msra.mxu1 %v11125_v54  ;;  %7884 = vmatprep.subr.bf16.mxu0 %v11132_v31  ;;  %v11180_v54 = vcombine.high %v1674_v0, %v1678_v2  ;;  %v11182_v31 = vcombine.high %v1675_v32, %v1679_v6  ;;  %v1727_v0 = vld [vmem:[#allocation8 + $0x1db8] sm:$0xff] }
 0x4e2   :  { %8212 = vmatprep.subr.bf16.mxu1 %v11134_v1  ;;  %v1682_v1 = vld [vmem:[#allocation8 + $0x1c50] sm:$0xff] }
 0x4e3   :  { %v11187_v37 = vcombine.low %v1682_v1, %v1686_v49 }
 0x4e4   :  { %7885 = vmatpush1.bf16.msra.mxu0 %v11131_v28  ;;  %v11181_v28 = vcombine.low %v1675_v32, %v1679_v6 }
 0x4e5   :  { %8213 = vmatpush1.bf16.msra.mxu1 %v11133_v30  ;;  %7886 = vmatprep.subr.bf16.mxu0 %v11140_v29  ;;  %v11188_v30 = vcombine.high %v1682_v1, %v1686_v49  ;;  %v1690_v29 = vld [vmem:[#allocation8 + $0x1c90] sm:$0xff]  ;;  %v1735_v1 = vld [vmem:[#allocation8 + $0x1df8] sm:$0xff] }
 0x4e6   :  { %8214 = vmatprep.subr.bf16.mxu1 %v11142_v14  ;;  %v1694_v14 = vld [vmem:[#allocation8 + $0x1cb0] sm:$0xff] }
 0x4e7   :  { %v11195_v56 = vcombine.low %v1690_v29, %v1694_v14 }
 0x4e8   :  { %7887 = vmatpush1.bf16.msra.mxu0 %v11139_v26  ;;  %v11189_v26 = vcombine.low %v1683_v23, %v1687_v25 }
 0x4e9   :  { %8215 = vmatpush1.bf16.msra.mxu1 %v11141_v24  ;;  %7888 = vmatprep.subr.bf16.mxu0 %v11148_v3  ;;  %v11196_v24 = vcombine.high %v1690_v29, %v1694_v14  ;;  %v11198_v3 = vcombine.high %v1691_v48, %v1695_v44  ;;  %v1739_v29 = vld [vmem:[#allocation8 + $0x1e18] sm:$0xff] }
 0x4ea   :  { %8216 = vmatprep.subr.bf16.mxu1 %v11150_v59  ;;  %v1698_v59 = vld [vmem:[#allocation8 + $0x1cd0] sm:$0xff]  ;;  %v1743_v14 = vld [vmem:[#allocation8 + $0x1e38] sm:$0xff] }
 0x4ec   :  { %7889 = vmatpush1.bf16.msra.mxu0 %v11147_v45  ;;  %v11204_v45 = vcombine.high %v1698_v59, %v1702_v41 }
 0x4ed   :  { %8217 = vmatpush1.bf16.msra.mxu1 %v11149_v4  ;;  %7890 = vmatprep.subr.bf16.mxu0 %v11156_v21  ;;  %v11206_v4 = vcombine.high %v1699_v42, %v1703_v43  ;;  %v1706_v21 = vld [vmem:[#allocation8 + $0x1d10] sm:$0xff]  ;;  %v11245_v42 = vcombine.low %v1739_v29, %v1743_v14 }
 0x4ee   :  { %8218 = vmatprep.subr.bf16.mxu1 %v11158_v20  ;;  %v1710_v20 = vld [vmem:[#allocation8 + $0x1d30] sm:$0xff] }
 0x4ef   :  { %v11212_v38 = vcombine.high %v1706_v21, %v1710_v20  ;;  %v11211_v55 = vcombine.low %v1706_v21, %v1710_v20  ;;  %v1759_v21 = vld [vmem:[#allocation8 + $0x1eb8] sm:$0xff] }
 0x4f0   :  { %7891 = vmatpush1.bf16.msra.mxu0 %v11155_v51  ;;  %v11214_v51 = vcombine.high %v1707_v40, %v1711_v50 }
 0x4f1   :  { %8219 = vmatpush1.bf16.msra.mxu1 %v11157_v33  ;;  %7892 = vmatprep.subr.bf16.mxu0 %v11164_v53  ;;  %v1714_v33 = vld [vmem:[#allocation8 + $0x1d50] sm:$0xff] }
 0x4f2   :  { %8220 = vmatprep.subr.bf16.mxu1 %v11166_v52  ;;  %v1718_v53 = vld [vmem:[#allocation8 + $0x1d70] sm:$0xff]  ;;  %v1715_v52 = vld [vmem:[#allocation8 + $0x1d58] sm:$0xff] }
 0x4f3   :  { %v11220_v60 = vcombine.high %v1714_v33, %v1718_v53  ;;  %v11219_v2 = vcombine.low %v1714_v33, %v1718_v53  ;;  %v11221_v32 = vcombine.low %v1715_v52, %v1719_v47  ;;  %v1767_v33 = vld [vmem:[#allocation8 + $0x1ef8] sm:$0xff] }
 0x4f4   :  { %7893 = vmatpush1.bf16.msra.mxu0 %v11163_v61  ;;  %v11222_v61 = vcombine.high %v1715_v52, %v1719_v47 }
 0x4f5   :  { %8221 = vmatpush1.bf16.msra.mxu1 %v11165_v11  ;;  %7894 = vmatprep.subr.bf16.mxu0 %v11172_v63  ;;  %v1722_v11 = vld [vmem:[#allocation8 + $0x1d90] sm:$0xff] }
 0x4f6   :  { %8222 = vmatprep.subr.bf16.mxu1 %v11174_v46  ;;  %v1726_v63 = vld [vmem:[#allocation8 + $0x1db0] sm:$0xff]  ;;  %v1723_v46 = vld [vmem:[#allocation8 + $0x1d98] sm:$0xff] }
 0x4f7   :  { %v11228_v6 = vcombine.high %v1722_v11, %v1726_v63  ;;  %v11227_v49 = vcombine.low %v1722_v11, %v1726_v63  ;;  %v1775_v11 = vld [vmem:[#allocation8 + $0x1f38] sm:$0xff] }
 0x4f8   :  { %7895 = vmatpush1.bf16.msra.mxu0 %v11171_v10  ;;  %v11230_v10 = vcombine.high %v1723_v46, %v1727_v0 }
 0x4f9   :  { %8223 = vmatpush1.bf16.msra.mxu1 %v11173_v19  ;;  %7905 = vmatprep.subr.bf16.mxu0 %v11180_v54  ;;  %v1730_v19 = vld [vmem:[#allocation8 + $0x1dd0] sm:$0xff] }
 0x4fa   :  { %8233 = vmatprep.subr.bf16.mxu1 %v11182_v31  ;;  %v1734_v54 = vld [vmem:[#allocation8 + $0x1df0] sm:$0xff]  ;;  %v1731_v31 = vld [vmem:[#allocation8 + $0x1dd8] sm:$0xff] }
 0x4fb   :  { %7897 = vmatmul.mubr.bf16.vlgmr.msra.gmra.mrb[20].mxu0 %v12643_v62  ;;  %v11236_v23 = vcombine.high %v1730_v19, %v1734_v54  ;;  %v11238_v25 = vcombine.high %v1731_v31, %v1735_v1 }
 0x4fc   :  { %8225 = vmatmul.mubr.bf16.vlgmr.msra.gmra.mrb[20].mxu1 %v12643_v62  ;;  %7906 = vmatpush1.bf16.msra.mxu0 %v11179_v5  ;;  %v11197_v62 = vcombine.low %v1691_v48, %v1695_v44  ;;  %v11229_v5 = vcombine.low %v1723_v46, %v1727_v0  ;;  %v11237_v48 = vcombine.low %v1731_v31, %v1735_v1 }
 0x4fd   :  { %7937 = vmatprep.mubr.bf16.mxu0 %v12645_v16  ;;  %8234 = vmatpush1.bf16.msra.mxu1 %v11181_v28  ;;  %v1738_v28 = vld [vmem:[#allocation8 + $0x1e10] sm:$0xff] }
 0x4fe   :  { %8265 = vmatprep.mubr.bf16.mxu1 %v12645_v16  ;;  %7907 = vmatprep.subr.bf16.mxu0 %v11188_v30  ;;  %v11203_v16 = vcombine.low %v1698_v59, %v1702_v41  ;;  %v1742_v30 = vld [vmem:[#allocation8 + $0x1e30] sm:$0xff]  ;;  %v1751_v59 = vld [vmem:[#allocation8 + $0x1e78] sm:$0xff] }
 0x4ff   :  { %8235 = vmatprep.subr.bf16.mxu1 %v11190_v35  ;;  %v11235_v35 = vcombine.low %v1730_v19, %v1734_v54  ;;  %v11244_v44 = vcombine.high %v1738_v28, %v1742_v30  ;;  %v11243_v41 = vcombine.low %v1738_v28, %v1742_v30  ;;  %v1783_v19 = vld [vmem:[#allocation8 + $0x1f78] sm:$0xff]  ;;  %v12694_v30 = vld [vmem:[#allocation10] sm:$0xff] }
 0x500   :  { %7908 = vmatpush1.bf16.msra.mxu0 %v11187_v37  ;;  %v11246_v37 = vcombine.high %v1739_v29, %v1743_v14  ;;  %v1791_v28 = vld [vmem:[#allocation8 + $0x1fb8] sm:$0xff] }
 0x501   :  { %8236 = vmatpush1.bf16.msra.mxu1 %v11189_v26  ;;  %7909 = vmatprep.subr.bf16.mxu0 %v11196_v24  ;;  %v1746_v26 = vld [vmem:[#allocation8 + $0x1e50] sm:$0xff] }
 0x502   :  { %8237 = vmatprep.subr.bf16.mxu1 %v11198_v3  ;;  %v1750_v24 = vld [vmem:[#allocation8 + $0x1e70] sm:$0xff]  ;;  %v1747_v3 = vld [vmem:[#allocation8 + $0x1e58] sm:$0xff] }
 0x503   :  { %v11252_v43 = vcombine.high %v1746_v26, %v1750_v24  ;;  %v11251_v20 = vcombine.low %v1746_v26, %v1750_v24  ;;  %v11253_v40 = vcombine.low %v1747_v3, %v1751_v59  ;;  %v1809_v26 = vrot.slane %v12694_v30, %v12498_v17  ;;  %v1795_v24 = vld [vmem:[#allocation8 + $0x1fd8] sm:$0xff] }
 0x504   :  { %7910 = vmatpush1.bf16.msra.mxu0 %v11195_v56  ;;  %v11254_v56 = vcombine.high %v1747_v3, %v1751_v59  ;;  %v1799_v3 = vld [vmem:[#allocation8 + $0x1ff8] sm:$0xff] }
 0x505   :  { %8238 = vmatpush1.bf16.msra.mxu1 %v11197_v62  ;;  %7911 = vmatprep.subr.bf16.mxu0 %v11204_v45  ;;  %v1754_v62 = vld [vmem:[#allocation8 + $0x1e90] sm:$0xff] }
 0x506   :  { %8239 = vmatprep.subr.bf16.mxu1 %v11206_v4  ;;  %v1758_v45 = vld [vmem:[#allocation8 + $0x1eb0] sm:$0xff]  ;;  %v1755_v4 = vld [vmem:[#allocation8 + $0x1e98] sm:$0xff] }
 0x507   :  { %v11260_v50 = vcombine.high %v1754_v62, %v1758_v45  ;;  %v11259_v53 = vcombine.low %v1754_v62, %v1758_v45  ;;  %v11261_v52 = vcombine.low %v1755_v4, %v1759_v21  ;;  %v11301_v45 = vcombine.low %v1795_v24, %v1799_v3 }
 0x508   :  { %7912 = vmatpush1.bf16.msra.mxu0 %v11203_v16  ;;  %v11262_v16 = vcombine.high %v1755_v4, %v1759_v21  ;;  %v11725_v4 = vld [vmem:[#allocation11 + $0x4] ss:$16 sps:$4 sm:$0xff]   ;;  %v11728_v21 = vld [vmem:[#allocation11 + $0xc] ss:$16 sps:$4 sm:$0xff]  }
 0x509   :  { %8240 = vmatpush1.bf16.msra.mxu1 %v11205_v57  ;;  %7913 = vmatprep.subr.bf16.mxu0 %v11212_v38  ;;  %v1762_v57 = vld [vmem:[#allocation8 + $0x1ed0] sm:$0xff] }
 0x50a   :  { %8241 = vmatprep.subr.bf16.mxu1 %v11214_v51  ;;  %v1766_v38 = vld [vmem:[#allocation8 + $0x1ef0] sm:$0xff]  ;;  %v1763_v51 = vld [vmem:[#allocation8 + $0x1ed8] sm:$0xff] }
 0x50b   :  { %v11268_v47 = vcombine.high %v1762_v57, %v1766_v38  ;;  %v11267_v63 = vcombine.low %v1762_v57, %v1766_v38  ;;  %v11269_v46 = vcombine.low %v1763_v51, %v1767_v33  ;;  %v11729_v38 = vld [vmem:[#allocation11 + $0x20] ss:$16 sps:$4 sm:$0xff]  }
 0x50c   :  { %7914 = vmatpush1.bf16.msra.mxu0 %v11211_v55  ;;  %v11270_v55 = vcombine.high %v1763_v51, %v1767_v33  ;;  %v11732_v51 = vld [vmem:[#allocation11 + $0x28] ss:$16 sps:$4 sm:$0xff]   ;;  %v11737_v33 = vld [vmem:[#allocation11 + $0x44] ss:$16 sps:$4 sm:$0xff]  }
 0x50d   :  { %8242 = vmatpush1.bf16.msra.mxu1 %v11213_v58  ;;  %7915 = vmatprep.subr.bf16.mxu0 %v11220_v60  ;;  %v1770_v58 = vld [vmem:[#allocation8 + $0x1f10] sm:$0xff] }
 0x50e   :  { %8243 = vmatprep.subr.bf16.mxu1 %v11222_v61  ;;  %v1774_v60 = vld [vmem:[#allocation8 + $0x1f30] sm:$0xff]  ;;  %v1771_v61 = vld [vmem:[#allocation8 + $0x1f18] sm:$0xff] }
 0x50f   :  { %v11276_v0 = vcombine.high %v1770_v58, %v1774_v60  ;;  %v11275_v54 = vcombine.low %v1770_v58, %v1774_v60  ;;  %v11277_v31 = vcombine.low %v1771_v61, %v1775_v11  ;;  %v11746_v58 = vld [vmem:[#allocation11 + $0x6c] ss:$16 sps:$4 sm:$0xff]   ;;  %v11744_v60 = vld [vmem:[#allocation11 + $0x68] ss:$16 sps:$4 sm:$0xff]  }
 0x510   :  { %7916 = vmatpush1.bf16.msra.mxu0 %v11219_v2  ;;  %v11278_v2 = vcombine.high %v1771_v61, %v1775_v11  ;;  %v11749_v61 = vld [vmem:[#allocation11 + $0x84] ss:$16 sps:$4 sm:$0xff]   ;;  %v11752_v11 = vld [vmem:[#allocation11 + $0x8c] ss:$16 sps:$4 sm:$0xff]  }
 0x511   :  { %8244 = vmatpush1.bf16.msra.mxu1 %v11221_v32  ;;  %7917 = vmatprep.subr.bf16.mxu0 %v11228_v6  ;;  %v1778_v32 = vld [vmem:[#allocation8 + $0x1f50] sm:$0xff] }
 0x512   :  { %8245 = vmatprep.subr.bf16.mxu1 %v11230_v10  ;;  %v1782_v6 = vld [vmem:[#allocation8 + $0x1f70] sm:$0xff]  ;;  %v1779_v10 = vld [vmem:[#allocation8 + $0x1f58] sm:$0xff] }
 0x513   :  { %v11284_v1 = vcombine.high %v1778_v32, %v1782_v6  ;;  %v11283_v29 = vcombine.low %v1778_v32, %v1782_v6  ;;  %v11285_v14 = vcombine.low %v1779_v10, %v1783_v19  ;;  %v11753_v32 = vld [vmem:[#allocation11 + $0xa0] ss:$16 sps:$4 sm:$0xff]   ;;  %v11756_v6 = vld [vmem:[#allocation11 + $0xa8] ss:$16 sps:$4 sm:$0xff]  }
 0x514   :  { %7918 = vmatpush1.bf16.msra.mxu0 %v11227_v49  ;;  %v11286_v49 = vcombine.high %v1779_v10, %v1783_v19  ;;  %v11761_v10 = vld [vmem:[#allocation11 + $0xc4] ss:$16 sps:$4 sm:$0xff]   ;;  %v11764_v19 = vld [vmem:[#allocation11 + $0xcc] ss:$16 sps:$4 sm:$0xff]  }
 0x515   :  { %8246 = vmatpush1.bf16.msra.mxu1 %v11229_v5  ;;  %7919 = vmatprep.subr.bf16.mxu0 %v11236_v23  ;;  %v1786_v5 = vld [vmem:[#allocation8 + $0x1f90] sm:$0xff] }
 0x516   :  { %8247 = vmatprep.subr.bf16.mxu1 %v11238_v25  ;;  %v1790_v23 = vld [vmem:[#allocation8 + $0x1fb0] sm:$0xff]  ;;  %v1787_v25 = vld [vmem:[#allocation8 + $0x1f98] sm:$0xff] }
 0x517   :  { %v11291_v59 = vcombine.low %v1786_v5, %v1790_v23 }
 0x518   :  { %7920 = vmatpush1.bf16.msra.mxu0 %v11235_v35  ;;  %v11292_v35 = vcombine.high %v1786_v5, %v1790_v23  ;;  %v11765_v5 = vld [vmem:[#allocation11 + $0xe0] ss:$16 sps:$4 sm:$0xff]   ;;  %v11768_v23 = vld [vmem:[#allocation11 + $0xe8] ss:$16 sps:$4 sm:$0xff]  }
 0x519   :  { %8248 = vmatpush1.bf16.msra.mxu1 %v11237_v48  ;;  %7921 = vmatprep.subr.bf16.mxu0 %v11244_v44  ;;  %v11294_v48 = vcombine.high %v1787_v25, %v1791_v28  ;;  %v1794_v44 = vld [vmem:[#allocation8 + $0x1fd0] sm:$0xff] }
 0x51a   :  { %8249 = vmatprep.subr.bf16.mxu1 %v11246_v37  ;;  %v1798_v37 = vld [vmem:[#allocation8 + $0x1ff0] sm:$0xff] }
 0x51b   :  { %v11299_v62 = vcombine.low %v1794_v44, %v1798_v37 }
 0x51c   :  { %7922 = vmatpush1.bf16.msra.mxu0 %v11243_v41  ;;  %v11293_v41 = vcombine.low %v1787_v25, %v1791_v28  ;;  %v11773_v25 = vld [vmem:[#allocation11 + $0x104] ss:$16 sps:$4 sm:$0xff]   ;;  %v11776_v28 = vld [vmem:[#allocation11 + $0x10c] ss:$16 sps:$4 sm:$0xff]  }
 0x51d   :  { %8250 = vmatpush1.bf16.msra.mxu1 %v11245_v42  ;;  %7923 = vmatprep.subr.bf16.mxu0 %v11252_v43  ;;  %v11300_v42 = vcombine.high %v1794_v44, %v1798_v37  ;;  %v11302_v43 = vcombine.high %v1795_v24, %v1799_v3  ;;  %v11777_v44 = vld [vmem:[#allocation11 + $0x120] ss:$16 sps:$4 sm:$0xff]   ;;  %v11780_v37 = vld [vmem:[#allocation11 + $0x128] ss:$16 sps:$4 sm:$0xff]   ;;  %v11788_v24 = vld [vmem:[#allocation11 + $0x14c] ss:$16 sps:$4 sm:$0xff]  }
 0x51e   :  { %8251 = vmatprep.subr.bf16.mxu1 %v11254_v56  ;;  %v11561_v56 = vadd.f32 %v12674_v27, %v1809_v26  ;;  %v11734_v27 = vld [vmem:[#allocation11 + $0x2c] ss:$16 sps:$4 sm:$0xff]   ;;  %v11785_v26 = vld [vmem:[#allocation11 + $0x144] ss:$16 sps:$4 sm:$0xff]   ;;  %v11783_v3 = vld [vmem:[#allocation11 + $0x140] ss:$16 sps:$4 sm:$0xff]  }
 0x520   :  { %7924 = vmatpush1.bf16.msra.mxu0 %v11251_v20  ;;  %v8275_v20 = vmax.f32 %v11561_v56, 0.0  ;;  %v11792_v56 = vld [vmem:[#allocation11 + $0x168] ss:$16 sps:$4 sm:$0xff]  }
 0x521   :  { %8252 = vmatpush1.bf16.msra.mxu1 %v11253_v40  ;;  %7925 = vmatprep.subr.bf16.mxu0 %v11260_v50  ;;  %v11723_v40 = vld [vmem:[#allocation11] ss:$16 sps:$4 sm:$0xff]   ;;  %v11726_v50 = vld [vmem:[#allocation11 + $0x8] ss:$16 sps:$4 sm:$0xff]  }
 0x522   :  { %8253 = vmatprep.subr.bf16.mxu1 %v11262_v16  ;;  %v11731_v16 = vld [vmem:[#allocation11 + $0x24] ss:$16 sps:$4 sm:$0xff]   ;;  %v8283_v57 = vpack.c.bf16 %v8275_v20, %v8275_v20 }
 0x523   :  { %v11803_v20 = vld [vmem:[#allocation11 + $0x1a4] ss:$16 sps:$4 sm:$0xff]  }
 0x524   :  { %7926 = vmatpush1.bf16.msra.mxu0 %v11259_v53  ;;  %v11740_v53 = vld [vmem:[#allocation11 + $0x4c] ss:$16 sps:$4 sm:$0xff]  }
 0x525   :  { %8254 = vmatpush1.bf16.msra.mxu1 %v11261_v52  ;;  %7927 = vmatprep.subr.bf16.mxu0 %v11268_v47  ;;  %v11735_v52 = vld [vmem:[#allocation11 + $0x40] ss:$16 sps:$4 sm:$0xff]   ;;  %v11738_v47 = vld [vmem:[#allocation11 + $0x48] ss:$16 sps:$4 sm:$0xff]  }
 0x526   :  { %8255 = vmatprep.subr.bf16.mxu1 %v11270_v55  ;;  %v11743_v55 = vld [vmem:[#allocation11 + $0x64] ss:$16 sps:$4 sm:$0xff]  }
 0x528   :  { %7928 = vmatpush1.bf16.msra.mxu0 %v11267_v63  ;;  %v11747_v63 = vld [vmem:[#allocation11 + $0x80] ss:$16 sps:$4 sm:$0xff]  }
 0x529   :  { %8256 = vmatpush1.bf16.msra.mxu1 %v11269_v46  ;;  %7929 = vmatprep.subr.bf16.mxu0 %v11276_v0  ;;  %v11750_v46 = vld [vmem:[#allocation11 + $0x88] ss:$16 sps:$4 sm:$0xff]   ;;  %v11755_v0 = vld [vmem:[#allocation11 + $0xa4] ss:$16 sps:$4 sm:$0xff]  }
 0x52a   :  { %8257 = vmatprep.subr.bf16.mxu1 %v11278_v2  ;;  %v11758_v2 = vld [vmem:[#allocation11 + $0xac] ss:$16 sps:$4 sm:$0xff]  }
 0x52c   :  { %7930 = vmatpush1.bf16.msra.mxu0 %v11275_v54  ;;  %v11759_v54 = vld [vmem:[#allocation11 + $0xc0] ss:$16 sps:$4 sm:$0xff]  }
 0x52d   :  { %8258 = vmatpush1.bf16.msra.mxu1 %v11277_v31  ;;  %7931 = vmatprep.subr.bf16.mxu0 %v11284_v1  ;;  %v11762_v31 = vld [vmem:[#allocation11 + $0xc8] ss:$16 sps:$4 sm:$0xff]   ;;  %v11767_v1 = vld [vmem:[#allocation11 + $0xe4] ss:$16 sps:$4 sm:$0xff]  }
 0x52e   :  { %8259 = vmatprep.subr.bf16.mxu1 %v11286_v49  ;;  %v11770_v49 = vld [vmem:[#allocation11 + $0xec] ss:$16 sps:$4 sm:$0xff]  }
 0x530   :  { %7932 = vmatpush1.bf16.msra.mxu0 %v11283_v29  ;;  %v11771_v29 = vld [vmem:[#allocation11 + $0x100] ss:$16 sps:$4 sm:$0xff]  }
 0x531   :  { %8260 = vmatpush1.bf16.msra.mxu1 %v11285_v14  ;;  %7933 = vmatprep.subr.bf16.mxu0 %v11292_v35  ;;  %v11774_v14 = vld [vmem:[#allocation11 + $0x108] ss:$16 sps:$4 sm:$0xff]   ;;  %v11779_v35 = vld [vmem:[#allocation11 + $0x124] ss:$16 sps:$4 sm:$0xff]  }
 0x532   :  { %8261 = vmatprep.subr.bf16.mxu1 %v11294_v48  ;;  %v11782_v48 = vld [vmem:[#allocation11 + $0x12c] ss:$16 sps:$4 sm:$0xff]  }
 0x534   :  { %7934 = vmatpush1.bf16.msra.mxu0 %v11291_v59  ;;  %v11786_v59 = vld [vmem:[#allocation11 + $0x148] ss:$16 sps:$4 sm:$0xff]  }
 0x535   :  { %8262 = vmatpush1.bf16.msra.mxu1 %v11293_v41  ;;  %7935 = vmatprep.subr.bf16.mxu0 %v11300_v42  ;;  %v11791_v41 = vld [vmem:[#allocation11 + $0x164] ss:$16 sps:$4 sm:$0xff]   ;;  %v11794_v42 = vld [vmem:[#allocation11 + $0x16c] ss:$16 sps:$4 sm:$0xff]  }
 0x536   :  { %8263 = vmatprep.subr.bf16.mxu1 %v11302_v43  ;;  %v11789_v43 = vld [vmem:[#allocation11 + $0x160] ss:$16 sps:$4 sm:$0xff]  }
 0x538   :  { %7936 = vmatpush1.bf16.msra.mxu0 %v11299_v62  ;;  %v11797_v62 = vld [vmem:[#allocation11 + $0x184] ss:$16 sps:$4 sm:$0xff]  }
 0x539   :  { %8264 = vmatpush1.bf16.msra.mxu1 %v11301_v45  ;;  %9848 = vmatprep.subr.bf16.mxu0 %v11725_v4  ;;  %v11800_v45 = vld [vmem:[#allocation11 + $0x18c] ss:$16 sps:$4 sm:$0xff]   ;;  %v11795_v4 = vld [vmem:[#allocation11 + $0x180] ss:$16 sps:$4 sm:$0xff]  }
 0x53a   :  { %10012 = vmatprep.subr.bf16.mxu1 %v11728_v21  ;;  %v11798_v21 = vld [vmem:[#allocation11 + $0x188] ss:$16 sps:$4 sm:$0xff]  }
 0x53b   :  { %7938 = vmatmul.mubr.bf16.vlgmr.msra.gmra.mrb[20].mxu0 %v12652_v12 }
 0x53c   :  { %8266 = vmatmul.mubr.bf16.vlgmr.msra.gmra.mrb[20].mxu1 %v12652_v12  ;;  %9849 = vmatpush1.bf16.msra.mxu0 %v11723_v40  ;;  %v11741_v12 = vld [vmem:[#allocation11 + $0x60] ss:$16 sps:$4 sm:$0xff]   ;;  %v11806_v40 = vld [vmem:[#allocation11 + $0x1ac] ss:$16 sps:$4 sm:$0xff]  }
 0x53d   :  { %9880 = vmatprep.mubr.bf16.mxu0 %v8283_v57  ;;  %10013 = vmatpush1.bf16.msra.mxu1 %v11726_v50  ;;  %v11801_v50 = vld [vmem:[#allocation11 + $0x1a0] ss:$16 sps:$4 sm:$0xff]  }
 0x53e   :  { %10044 = vmatprep.mubr.bf16.mxu1 %v8283_v57  ;;  %9850 = vmatprep.subr.bf16.mxu0 %v11731_v16  ;;  %v1805_v16 = vrot.slane %v12694_v30, %v12493_v15  ;;  %v11804_v57 = vld [vmem:[#allocation11 + $0x1a8] ss:$16 sps:$4 sm:$0xff]  }
 0x53f   :  { %10014 = vmatprep.subr.bf16.mxu1 %v11734_v27  ;;  %v11809_v27 = vld [vmem:[#allocation11 + $0x1c4] ss:$16 sps:$4 sm:$0xff]  }
 0x540   :  { %9851 = vmatpush1.bf16.msra.mxu0 %v11729_v38  ;;  %v11812_v38 = vld [vmem:[#allocation11 + $0x1cc] ss:$16 sps:$4 sm:$0xff]  }
 0x541   :  { %10015 = vmatpush1.bf16.msra.mxu1 %v11732_v51  ;;  %9852 = vmatprep.subr.bf16.mxu0 %v11737_v33  ;;  %v1817_v51 = vrot.slane %v12694_v30, %v12501_v18  ;;  %v11807_v33 = vld [vmem:[#allocation11 + $0x1c0] ss:$16 sps:$4 sm:$0xff]  }
 0x542   :  { %10016 = vmatprep.subr.bf16.mxu1 %v11740_v53  ;;  %v11560_v53 = vadd.f32 %v12670_v36, %v1805_v16  ;;  %v11819_v36 = vld [vmem:[#allocation11 + $0x200] ss:$16 sps:$4 sm:$0xff]   ;;  %v11878_v16 = vld [vmem:[#allocation11 + $0x32c] ss:$16 sps:$4 sm:$0xff]  }
 0x544   :  { %9853 = vmatpush1.bf16.msra.mxu0 %v11735_v52  ;;  %v11810_v52 = vld [vmem:[#allocation11 + $0x1c8] ss:$16 sps:$4 sm:$0xff]  }
 0x545   :  { %10017 = vmatpush1.bf16.msra.mxu1 %v11738_v47  ;;  %9854 = vmatprep.subr.bf16.mxu0 %v11743_v55  ;;  %v11815_v47 = vld [vmem:[#allocation11 + $0x1e4] ss:$16 sps:$4 sm:$0xff]   ;;  %v11818_v55 = vld [vmem:[#allocation11 + $0x1ec] ss:$16 sps:$4 sm:$0xff]  }
 0x546   :  { %10018 = vmatprep.subr.bf16.mxu1 %v11746_v58  ;;  %v11563_v58 = vadd.f32 %v12676_v13, %v1817_v51  ;;  %v11830_v13 = vld [vmem:[#allocation11 + $0x22c] ss:$16 sps:$4 sm:$0xff]  }
 0x547   :  { %v11884_v51 = vld [vmem:[#allocation11 + $0x34c] ss:$16 sps:$4 sm:$0xff]  }
 0x548   :  { %9855 = vmatpush1.bf16.msra.mxu0 %v11741_v12  ;;  %v11813_v12 = vld [vmem:[#allocation11 + $0x1e0] ss:$16 sps:$4 sm:$0xff]  }
 0x549   :  { %10019 = vmatpush1.bf16.msra.mxu1 %v11744_v60  ;;  %9856 = vmatprep.subr.bf16.mxu0 %v11749_v61  ;;  %v8274_v60 = vmax.f32 %v11560_v53, 0.0  ;;  %v11816_v61 = vld [vmem:[#allocation11 + $0x1e8] ss:$16 sps:$4 sm:$0xff]  }
 0x54a   :  { %10020 = vmatprep.subr.bf16.mxu1 %v11752_v11  ;;  %v11821_v11 = vld [vmem:[#allocation11 + $0x204] ss:$16 sps:$4 sm:$0xff]   ;;  %v11882_v53 = vld [vmem:[#allocation11 + $0x348] ss:$16 sps:$4 sm:$0xff]  }
 0x54c   :  { %9857 = vmatpush1.bf16.msra.mxu0 %v11747_v63  ;;  %v11824_v63 = vld [vmem:[#allocation11 + $0x20c] ss:$16 sps:$4 sm:$0xff]  }
 0x54d   :  { %10021 = vmatpush1.bf16.msra.mxu1 %v11750_v46  ;;  %9858 = vmatprep.subr.bf16.mxu0 %v11755_v0  ;;  %v8277_v46 = vmax.f32 %v11563_v58, 0.0  ;;  %v8282_v0 = vpack.c.bf16 %v8274_v60, %v8274_v60  ;;  %v11888_v58 = vld [vmem:[#allocation11 + $0x368] ss:$16 sps:$4 sm:$0xff]   ;;  %v11896_v60 = vld [vmem:[#allocation11 + $0x38c] ss:$16 sps:$4 sm:$0xff]  }
 0x54e   :  { %10022 = vmatprep.subr.bf16.mxu1 %v11758_v2  ;;  %v11822_v2 = vld [vmem:[#allocation11 + $0x208] ss:$16 sps:$4 sm:$0xff]  }
 0x550   :  { %9859 = vmatpush1.bf16.msra.mxu0 %v11753_v32  ;;  %v11827_v32 = vld [vmem:[#allocation11 + $0x224] ss:$16 sps:$4 sm:$0xff]  }
 0x551   :  { %10023 = vmatpush1.bf16.msra.mxu1 %v11756_v6  ;;  %9860 = vmatprep.subr.bf16.mxu0 %v11761_v10  ;;  %v8285_v6 = vpack.c.bf16 %v8277_v46, %v8277_v46  ;;  %v11825_v10 = vld [vmem:[#allocation11 + $0x220] ss:$16 sps:$4 sm:$0xff]   ;;  %v11902_v46 = vld [vmem:[#allocation11 + $0x3ac] ss:$16 sps:$4 sm:$0xff]  }
 0x552   :  { %10024 = vmatprep.subr.bf16.mxu1 %v11764_v19  ;;  %v11828_v19 = vld [vmem:[#allocation11 + $0x228] ss:$16 sps:$4 sm:$0xff]  }
 0x554   :  { %9861 = vmatpush1.bf16.msra.mxu0 %v11759_v54  ;;  %v11833_v54 = vld [vmem:[#allocation11 + $0x244] ss:$16 sps:$4 sm:$0xff]  }
 0x555   :  { %10025 = vmatpush1.bf16.msra.mxu1 %v11762_v31  ;;  %9862 = vmatprep.subr.bf16.mxu0 %v11767_v1  ;;  %v11836_v31 = vld [vmem:[#allocation11 + $0x24c] ss:$16 sps:$4 sm:$0xff]   ;;  %v11831_v1 = vld [vmem:[#allocation11 + $0x240] ss:$16 sps:$4 sm:$0xff]  }
 0x556   :  { %10026 = vmatprep.subr.bf16.mxu1 %v11770_v49  ;;  %v11834_v49 = vld [vmem:[#allocation11 + $0x248] ss:$16 sps:$4 sm:$0xff]  }
 0x558   :  { %9863 = vmatpush1.bf16.msra.mxu0 %v11765_v5  ;;  %v11839_v5 = vld [vmem:[#allocation11 + $0x264] ss:$16 sps:$4 sm:$0xff]  }
 0x559   :  { %10027 = vmatpush1.bf16.msra.mxu1 %v11768_v23  ;;  %9864 = vmatprep.subr.bf16.mxu0 %v11773_v25  ;;  %v11842_v23 = vld [vmem:[#allocation11 + $0x26c] ss:$16 sps:$4 sm:$0xff]   ;;  %v11837_v25 = vld [vmem:[#allocation11 + $0x260] ss:$16 sps:$4 sm:$0xff]  }
 0x55a   :  { %10028 = vmatprep.subr.bf16.mxu1 %v11776_v28  ;;  %v11840_v28 = vld [vmem:[#allocation11 + $0x268] ss:$16 sps:$4 sm:$0xff]  }
 0x55c   :  { %9865 = vmatpush1.bf16.msra.mxu0 %v11771_v29  ;;  %v11845_v29 = vld [vmem:[#allocation11 + $0x284] ss:$16 sps:$4 sm:$0xff]  }
 0x55d   :  { %10029 = vmatpush1.bf16.msra.mxu1 %v11774_v14  ;;  %9866 = vmatprep.subr.bf16.mxu0 %v11779_v35  ;;  %v11848_v14 = vld [vmem:[#allocation11 + $0x28c] ss:$16 sps:$4 sm:$0xff]   ;;  %v11843_v35 = vld [vmem:[#allocation11 + $0x280] ss:$16 sps:$4 sm:$0xff]  }
 0x55e   :  { %10030 = vmatprep.subr.bf16.mxu1 %v11782_v48  ;;  %v11846_v48 = vld [vmem:[#allocation11 + $0x288] ss:$16 sps:$4 sm:$0xff]  }
 0x560   :  { %9867 = vmatpush1.bf16.msra.mxu0 %v11777_v44  ;;  %v11851_v44 = vld [vmem:[#allocation11 + $0x2a4] ss:$16 sps:$4 sm:$0xff]  }
 0x561   :  { %10031 = vmatpush1.bf16.msra.mxu1 %v11780_v37  ;;  %9868 = vmatprep.subr.bf16.mxu0 %v11785_v26  ;;  %v11854_v37 = vld [vmem:[#allocation11 + $0x2ac] ss:$16 sps:$4 sm:$0xff]   ;;  %v11849_v26 = vld [vmem:[#allocation11 + $0x2a0] ss:$16 sps:$4 sm:$0xff]  }
 0x562   :  { %10032 = vmatprep.subr.bf16.mxu1 %v11788_v24  ;;  %v11852_v24 = vld [vmem:[#allocation11 + $0x2a8] ss:$16 sps:$4 sm:$0xff]  }
 0x564   :  { %9869 = vmatpush1.bf16.msra.mxu0 %v11783_v3  ;;  %v11857_v3 = vld [vmem:[#allocation11 + $0x2c4] ss:$16 sps:$4 sm:$0xff]  }
 0x565   :  { %10033 = vmatpush1.bf16.msra.mxu1 %v11786_v59  ;;  %9870 = vmatprep.subr.bf16.mxu0 %v11791_v41  ;;  %v11860_v59 = vld [vmem:[#allocation11 + $0x2cc] ss:$16 sps:$4 sm:$0xff]   ;;  %v11855_v41 = vld [vmem:[#allocation11 + $0x2c0] ss:$16 sps:$4 sm:$0xff]  }
 0x566   :  { %10034 = vmatprep.subr.bf16.mxu1 %v11794_v42  ;;  %v11858_v42 = vld [vmem:[#allocation11 + $0x2c8] ss:$16 sps:$4 sm:$0xff]  }
 0x568   :  { %9871 = vmatpush1.bf16.msra.mxu0 %v11789_v43  ;;  %v11863_v43 = vld [vmem:[#allocation11 + $0x2e4] ss:$16 sps:$4 sm:$0xff]  }
 0x569   :  { %10035 = vmatpush1.bf16.msra.mxu1 %v11792_v56  ;;  %9872 = vmatprep.subr.bf16.mxu0 %v11797_v62  ;;  %v11866_v56 = vld [vmem:[#allocation11 + $0x2ec] ss:$16 sps:$4 sm:$0xff]   ;;  %v11861_v62 = vld [vmem:[#allocation11 + $0x2e0] ss:$16 sps:$4 sm:$0xff]  }
 0x56a   :  { %10036 = vmatprep.subr.bf16.mxu1 %v11800_v45  ;;  %v11864_v45 = vld [vmem:[#allocation11 + $0x2e8] ss:$16 sps:$4 sm:$0xff]  }
 0x56c   :  { %9873 = vmatpush1.bf16.msra.mxu0 %v11795_v4  ;;  %v11869_v4 = vld [vmem:[#allocation11 + $0x304] ss:$16 sps:$4 sm:$0xff]  }
 0x56d   :  { %10037 = vmatpush1.bf16.msra.mxu1 %v11798_v21  ;;  %9874 = vmatprep.subr.bf16.mxu0 %v11803_v20  ;;  %v11872_v21 = vld [vmem:[#allocation11 + $0x30c] ss:$16 sps:$4 sm:$0xff]   ;;  %v11867_v20 = vld [vmem:[#allocation11 + $0x300] ss:$16 sps:$4 sm:$0xff]  }
 0x56e   :  { %10038 = vmatprep.subr.bf16.mxu1 %v11806_v40  ;;  %v11870_v40 = vld [vmem:[#allocation11 + $0x308] ss:$16 sps:$4 sm:$0xff]  }
 0x570   :  { %9875 = vmatpush1.bf16.msra.mxu0 %v11801_v50  ;;  %v11875_v50 = vld [vmem:[#allocation11 + $0x324] ss:$16 sps:$4 sm:$0xff]  }
 0x571   :  { %10039 = vmatpush1.bf16.msra.mxu1 %v11804_v57  ;;  %9876 = vmatprep.subr.bf16.mxu0 %v11809_v27  ;;  %v11873_v57 = vld [vmem:[#allocation11 + $0x320] ss:$16 sps:$4 sm:$0xff]   ;;  %v11876_v27 = vld [vmem:[#allocation11 + $0x328] ss:$16 sps:$4 sm:$0xff]  }
 0x572   :  { %10040 = vmatprep.subr.bf16.mxu1 %v11812_v38  ;;  %v11881_v38 = vld [vmem:[#allocation11 + $0x344] ss:$16 sps:$4 sm:$0xff]  }
 0x574   :  { %9877 = vmatpush1.bf16.msra.mxu0 %v11807_v33  ;;  %v11879_v33 = vld [vmem:[#allocation11 + $0x340] ss:$16 sps:$4 sm:$0xff]  }
 0x575   :  { %10041 = vmatpush1.bf16.msra.mxu1 %v11810_v52  ;;  %9878 = vmatprep.subr.bf16.mxu0 %v11815_v47  ;;  %v11887_v52 = vld [vmem:[#allocation11 + $0x364] ss:$16 sps:$4 sm:$0xff]   ;;  %v11890_v47 = vld [vmem:[#allocation11 + $0x36c] ss:$16 sps:$4 sm:$0xff]  }
 0x576   :  { %10042 = vmatprep.subr.bf16.mxu1 %v11818_v55  ;;  %v11885_v55 = vld [vmem:[#allocation11 + $0x360] ss:$16 sps:$4 sm:$0xff]  }
 0x578   :  { %9879 = vmatpush1.bf16.msra.mxu0 %v11813_v12  ;;  %v11893_v12 = vld [vmem:[#allocation11 + $0x384] ss:$16 sps:$4 sm:$0xff]  }
 0x579   :  { %10043 = vmatpush1.bf16.msra.mxu1 %v11816_v61  ;;  %9889 = vmatprep.subr.bf16.mxu0 %v11821_v11  ;;  %v11891_v61 = vld [vmem:[#allocation11 + $0x380] ss:$16 sps:$4 sm:$0xff]   ;;  %v11894_v11 = vld [vmem:[#allocation11 + $0x388] ss:$16 sps:$4 sm:$0xff]  }
 0x57a   :  { %10053 = vmatprep.subr.bf16.mxu1 %v11824_v63  ;;  %v11899_v63 = vld [vmem:[#allocation11 + $0x3a4] ss:$16 sps:$4 sm:$0xff]  }
 0x57b   :  { %9881 = vmatmul.mubr.bf16.vlgmr.msra.gmra.mrb[24].mxu0 %v8282_v0 }
 0x57c   :  { %10045 = vmatmul.mubr.bf16.vlgmr.msra.gmra.mrb[24].mxu1 %v8282_v0  ;;  %9890 = vmatpush1.bf16.msra.mxu0 %v11819_v36  ;;  %v11897_v36 = vld [vmem:[#allocation11 + $0x3a0] ss:$16 sps:$4 sm:$0xff]   ;;  %v1813_v0 = vrot.slane %v12694_v30, %v12552_v39 }
 0x57d   :  { %9921 = vmatprep.mubr.bf16.mxu0 %v8285_v6  ;;  %10054 = vmatpush1.bf16.msra.mxu1 %v11822_v2  ;;  %v11900_v2 = vld [vmem:[#allocation11 + $0x3a8] ss:$16 sps:$4 sm:$0xff]  }
 0x57e   :  { %10085 = vmatprep.mubr.bf16.mxu1 %v8285_v6  ;;  %9891 = vmatprep.subr.bf16.mxu0 %v11827_v32  ;;  %v11905_v32 = vld [vmem:[#allocation11 + $0x3c4] ss:$16 sps:$4 sm:$0xff]   ;;  %v11908_v6 = vld [vmem:[#allocation11 + $0x3cc] ss:$16 sps:$4 sm:$0xff]  }
 0x57f   :  { %10055 = vmatprep.subr.bf16.mxu1 %v11830_v13  ;;  %v11903_v13 = vld [vmem:[#allocation11 + $0x3c0] ss:$16 sps:$4 sm:$0xff]  }
 0x580   :  { %9892 = vmatpush1.bf16.msra.mxu0 %v11825_v10  ;;  %v11562_v10 = vadd.f32 %v12672_v8, %v1813_v0  ;;  %v11918_v8 = vld [vmem:[#allocation11 + $0x408] ss:$16 sps:$4 sm:$0xff]   ;;  %v11975_v0 = vld [vmem:[#allocation11 + $0x540] ss:$16 sps:$4 sm:$0xff]  }
 0x581   :  { %10056 = vmatpush1.bf16.msra.mxu1 %v11828_v19  ;;  %9893 = vmatprep.subr.bf16.mxu0 %v11833_v54  ;;  %v11906_v19 = vld [vmem:[#allocation11 + $0x3c8] ss:$16 sps:$4 sm:$0xff]   ;;  %v11911_v54 = vld [vmem:[#allocation11 + $0x3e4] ss:$16 sps:$4 sm:$0xff]  }
 0x582   :  { %10057 = vmatprep.subr.bf16.mxu1 %v11836_v31  ;;  %v11914_v31 = vld [vmem:[#allocation11 + $0x3ec] ss:$16 sps:$4 sm:$0xff]  }
 0x584   :  { %9894 = vmatpush1.bf16.msra.mxu0 %v11831_v1  ;;  %v11909_v1 = vld [vmem:[#allocation11 + $0x3e0] ss:$16 sps:$4 sm:$0xff]  }
 0x585   :  { %10058 = vmatpush1.bf16.msra.mxu1 %v11834_v49  ;;  %9895 = vmatprep.subr.bf16.mxu0 %v11839_v5  ;;  %v8276_v49 = vmax.f32 %v11562_v10, 0.0  ;;  %v11912_v5 = vld [vmem:[#allocation11 + $0x3e8] ss:$16 sps:$4 sm:$0xff]  }
 0x586   :  { %10059 = vmatprep.subr.bf16.mxu1 %v11842_v23  ;;  %v11917_v23 = vld [vmem:[#allocation11 + $0x404] ss:$16 sps:$4 sm:$0xff]   ;;  %v11984_v10 = vld [vmem:[#allocation11 + $0x568] ss:$16 sps:$4 sm:$0xff]  }
 0x588   :  { %9896 = vmatpush1.bf16.msra.mxu0 %v11837_v25  ;;  %v11920_v25 = vld [vmem:[#allocation11 + $0x40c] ss:$16 sps:$4 sm:$0xff]  }
 0x589   :  { %10060 = vmatpush1.bf16.msra.mxu1 %v11840_v28  ;;  %9897 = vmatprep.subr.bf16.mxu0 %v11845_v29  ;;  %v11915_v28 = vld [vmem:[#allocation11 + $0x400] ss:$16 sps:$4 sm:$0xff]   ;;  %v8284_v29 = vpack.c.bf16 %v8276_v49, %v8276_v49  ;;  %v11995_v49 = vld [vmem:[#allocation11 + $0x5a4] ss:$16 sps:$4 sm:$0xff]  }
 0x58a   :  { %10061 = vmatprep.subr.bf16.mxu1 %v11848_v14  ;;  %v11923_v14 = vld [vmem:[#allocation11 + $0x424] ss:$16 sps:$4 sm:$0xff]  }
 0x58c   :  { %9898 = vmatpush1.bf16.msra.mxu0 %v11843_v35  ;;  %v11926_v35 = vld [vmem:[#allocation11 + $0x42c] ss:$16 sps:$4 sm:$0xff]  }
 0x58d   :  { %10062 = vmatpush1.bf16.msra.mxu1 %v11846_v48  ;;  %9899 = vmatprep.subr.bf16.mxu0 %v11851_v44  ;;  %v11921_v48 = vld [vmem:[#allocation11 + $0x420] ss:$16 sps:$4 sm:$0xff]   ;;  %v11924_v44 = vld [vmem:[#allocation11 + $0x428] ss:$16 sps:$4 sm:$0xff]  }
 0x58e   :  { %10063 = vmatprep.subr.bf16.mxu1 %v11854_v37  ;;  %v11929_v37 = vld [vmem:[#allocation11 + $0x444] ss:$16 sps:$4 sm:$0xff]  }
 0x590   :  { %9900 = vmatpush1.bf16.msra.mxu0 %v11849_v26  ;;  %v11932_v26 = vld [vmem:[#allocation11 + $0x44c] ss:$16 sps:$4 sm:$0xff]  }
 0x591   :  { %10064 = vmatpush1.bf16.msra.mxu1 %v11852_v24  ;;  %9901 = vmatprep.subr.bf16.mxu0 %v11857_v3  ;;  %v11927_v24 = vld [vmem:[#allocation11 + $0x440] ss:$16 sps:$4 sm:$0xff]   ;;  %v11930_v3 = vld [vmem:[#allocation11 + $0x448] ss:$16 sps:$4 sm:$0xff]  }
 0x592   :  { %10065 = vmatprep.subr.bf16.mxu1 %v11860_v59  ;;  %v11935_v59 = vld [vmem:[#allocation11 + $0x464] ss:$16 sps:$4 sm:$0xff]  }
 0x594   :  { %9902 = vmatpush1.bf16.msra.mxu0 %v11855_v41  ;;  %v11938_v41 = vld [vmem:[#allocation11 + $0x46c] ss:$16 sps:$4 sm:$0xff]  }
 0x595   :  { %10066 = vmatpush1.bf16.msra.mxu1 %v11858_v42  ;;  %9903 = vmatprep.subr.bf16.mxu0 %v11863_v43  ;;  %v11933_v42 = vld [vmem:[#allocation11 + $0x460] ss:$16 sps:$4 sm:$0xff]   ;;  %v11936_v43 = vld [vmem:[#allocation11 + $0x468] ss:$16 sps:$4 sm:$0xff]  }
 0x596   :  { %10067 = vmatprep.subr.bf16.mxu1 %v11866_v56  ;;  %v11941_v56 = vld [vmem:[#allocation11 + $0x484] ss:$16 sps:$4 sm:$0xff]  }
 0x598   :  { %9904 = vmatpush1.bf16.msra.mxu0 %v11861_v62  ;;  %v11944_v62 = vld [vmem:[#allocation11 + $0x48c] ss:$16 sps:$4 sm:$0xff]  }
 0x599   :  { %10068 = vmatpush1.bf16.msra.mxu1 %v11864_v45  ;;  %9905 = vmatprep.subr.bf16.mxu0 %v11869_v4  ;;  %v11939_v45 = vld [vmem:[#allocation11 + $0x480] ss:$16 sps:$4 sm:$0xff]   ;;  %v11942_v4 = vld [vmem:[#allocation11 + $0x488] ss:$16 sps:$4 sm:$0xff]  }
 0x59a   :  { %10069 = vmatprep.subr.bf16.mxu1 %v11872_v21  ;;  %v11947_v21 = vld [vmem:[#allocation11 + $0x4a4] ss:$16 sps:$4 sm:$0xff]  }
 0x59c   :  { %9906 = vmatpush1.bf16.msra.mxu0 %v11867_v20  ;;  %v11950_v20 = vld [vmem:[#allocation11 + $0x4ac] ss:$16 sps:$4 sm:$0xff]  }
 0x59d   :  { %10070 = vmatpush1.bf16.msra.mxu1 %v11870_v40  ;;  %9907 = vmatprep.subr.bf16.mxu0 %v11875_v50  ;;  %v11945_v40 = vld [vmem:[#allocation11 + $0x4a0] ss:$16 sps:$4 sm:$0xff]   ;;  %v11948_v50 = vld [vmem:[#allocation11 + $0x4a8] ss:$16 sps:$4 sm:$0xff]  }
 0x59e   :  { %10071 = vmatprep.subr.bf16.mxu1 %v11878_v16  ;;  %v11953_v16 = vld [vmem:[#allocation11 + $0x4c4] ss:$16 sps:$4 sm:$0xff]  }
 0x5a0   :  { %9908 = vmatpush1.bf16.msra.mxu0 %v11873_v57  ;;  %v11956_v57 = vld [vmem:[#allocation11 + $0x4cc] ss:$16 sps:$4 sm:$0xff]  }
 0x5a1   :  { %10072 = vmatpush1.bf16.msra.mxu1 %v11876_v27  ;;  %9909 = vmatprep.subr.bf16.mxu0 %v11881_v38  ;;  %v11951_v27 = vld [vmem:[#allocation11 + $0x4c0] ss:$16 sps:$4 sm:$0xff]   ;;  %v11954_v38 = vld [vmem:[#allocation11 + $0x4c8] ss:$16 sps:$4 sm:$0xff]  }
 0x5a2   :  { %10073 = vmatprep.subr.bf16.mxu1 %v11884_v51  ;;  %v11959_v51 = vld [vmem:[#allocation11 + $0x4e4] ss:$16 sps:$4 sm:$0xff]  }
 0x5a4   :  { %9910 = vmatpush1.bf16.msra.mxu0 %v11879_v33  ;;  %v11962_v33 = vld [vmem:[#allocation11 + $0x4ec] ss:$16 sps:$4 sm:$0xff]  }
 0x5a5   :  { %10074 = vmatpush1.bf16.msra.mxu1 %v11882_v53  ;;  %9911 = vmatprep.subr.bf16.mxu0 %v11887_v52  ;;  %v11957_v53 = vld [vmem:[#allocation11 + $0x4e0] ss:$16 sps:$4 sm:$0xff]   ;;  %v11960_v52 = vld [vmem:[#allocation11 + $0x4e8] ss:$16 sps:$4 sm:$0xff]  }
 0x5a6   :  { %10075 = vmatprep.subr.bf16.mxu1 %v11890_v47  ;;  %v11965_v47 = vld [vmem:[#allocation11 + $0x504] ss:$16 sps:$4 sm:$0xff]  }
 0x5a8   :  { %9912 = vmatpush1.bf16.msra.mxu0 %v11885_v55  ;;  %v11968_v55 = vld [vmem:[#allocation11 + $0x50c] ss:$16 sps:$4 sm:$0xff]  }
 0x5a9   :  { %10076 = vmatpush1.bf16.msra.mxu1 %v11888_v58  ;;  %9913 = vmatprep.subr.bf16.mxu0 %v11893_v12  ;;  %v11963_v58 = vld [vmem:[#allocation11 + $0x500] ss:$16 sps:$4 sm:$0xff]   ;;  %v11966_v12 = vld [vmem:[#allocation11 + $0x508] ss:$16 sps:$4 sm:$0xff]  }
 0x5aa   :  { %10077 = vmatprep.subr.bf16.mxu1 %v11896_v60  ;;  %v11971_v60 = vld [vmem:[#allocation11 + $0x524] ss:$16 sps:$4 sm:$0xff]  }
 0x5ac   :  { %9914 = vmatpush1.bf16.msra.mxu0 %v11891_v61  ;;  %v11974_v61 = vld [vmem:[#allocation11 + $0x52c] ss:$16 sps:$4 sm:$0xff]  }
 0x5ad   :  { %10078 = vmatpush1.bf16.msra.mxu1 %v11894_v11  ;;  %9915 = vmatprep.subr.bf16.mxu0 %v11899_v63  ;;  %v11969_v11 = vld [vmem:[#allocation11 + $0x520] ss:$16 sps:$4 sm:$0xff]   ;;  %v11972_v63 = vld [vmem:[#allocation11 + $0x528] ss:$16 sps:$4 sm:$0xff]  }
 0x5ae   :  { %10079 = vmatprep.subr.bf16.mxu1 %v11902_v46  ;;  %v11977_v46 = vld [vmem:[#allocation11 + $0x544] ss:$16 sps:$4 sm:$0xff]  }
 0x5b0   :  { %9916 = vmatpush1.bf16.msra.mxu0 %v11897_v36  ;;  %v11980_v36 = vld [vmem:[#allocation11 + $0x54c] ss:$16 sps:$4 sm:$0xff]  }
 0x5b1   :  { %10080 = vmatpush1.bf16.msra.mxu1 %v11900_v2  ;;  %9917 = vmatprep.subr.bf16.mxu0 %v11905_v32  ;;  %v11978_v2 = vld [vmem:[#allocation11 + $0x548] ss:$16 sps:$4 sm:$0xff]   ;;  %v11983_v32 = vld [vmem:[#allocation11 + $0x564] ss:$16 sps:$4 sm:$0xff]  }
 0x5b2   :  { %10081 = vmatprep.subr.bf16.mxu1 %v11908_v6  ;;  %v11986_v6 = vld [vmem:[#allocation11 + $0x56c] ss:$16 sps:$4 sm:$0xff]  }
 0x5b4   :  { %9918 = vmatpush1.bf16.msra.mxu0 %v11903_v13  ;;  %v11981_v13 = vld [vmem:[#allocation11 + $0x560] ss:$16 sps:$4 sm:$0xff]  }
 0x5b5   :  { %10082 = vmatpush1.bf16.msra.mxu1 %v11906_v19  ;;  %9919 = vmatprep.subr.bf16.mxu0 %v11911_v54  ;;  %v11989_v19 = vld [vmem:[#allocation11 + $0x584] ss:$16 sps:$4 sm:$0xff]   ;;  %v11992_v54 = vld [vmem:[#allocation11 + $0x58c] ss:$16 sps:$4 sm:$0xff]  }
 0x5b6   :  { %10083 = vmatprep.subr.bf16.mxu1 %v11914_v31  ;;  %v11987_v31 = vld [vmem:[#allocation11 + $0x580] ss:$16 sps:$4 sm:$0xff]  }
 0x5b8   :  { %9920 = vmatpush1.bf16.msra.mxu0 %v11909_v1  ;;  %v11990_v1 = vld [vmem:[#allocation11 + $0x588] ss:$16 sps:$4 sm:$0xff]  }
 0x5b9   :  { %10084 = vmatpush1.bf16.msra.mxu1 %v11912_v5  ;;  %9930 = vmatprep.subr.bf16.mxu0 %v11917_v23  ;;  %v11998_v5 = vld [vmem:[#allocation11 + $0x5ac] ss:$16 sps:$4 sm:$0xff]   ;;  %v11993_v23 = vld [vmem:[#allocation11 + $0x5a0] ss:$16 sps:$4 sm:$0xff]  }
 0x5ba   :  { %10094 = vmatprep.subr.bf16.mxu1 %v11920_v25  ;;  %v11996_v25 = vld [vmem:[#allocation11 + $0x5a8] ss:$16 sps:$4 sm:$0xff]  }
 0x5bb   :  { %9922 = vmatmul.mubr.bf16.vlgmr.msra.gmra.mrb[24].mxu0 %v8284_v29 }
 0x5bc   :  { %10086 = vmatmul.mubr.bf16.vlgmr.msra.gmra.mrb[24].mxu1 %v8284_v29  ;;  %9931 = vmatpush1.bf16.msra.mxu0 %v11915_v28  ;;  %v12001_v28 = vld [vmem:[#allocation11 + $0x5c4] ss:$16 sps:$4 sm:$0xff]   ;;  %v12004_v29 = vld [vmem:[#allocation11 + $0x5cc] ss:$16 sps:$4 sm:$0xff]  }
 0x5bd   :  { %10095 = vmatpush1.bf16.msra.mxu1 %v11918_v8  ;;  %9932 = vmatprep.subr.bf16.mxu0 %v11923_v14  ;;  %v11999_v8 = vld [vmem:[#allocation11 + $0x5c0] ss:$16 sps:$4 sm:$0xff]   ;;  %v12002_v14 = vld [vmem:[#allocation11 + $0x5c8] ss:$16 sps:$4 sm:$0xff]  }
 0x5be   :  { %10096 = vmatprep.subr.bf16.mxu1 %v11926_v35  ;;  %v12007_v35 = vld [vmem:[#allocation11 + $0x5e4] ss:$16 sps:$4 sm:$0xff]  }
 0x5c0   :  { %9933 = vmatpush1.bf16.msra.mxu0 %v11921_v48  ;;  %v12010_v48 = vld [vmem:[#allocation11 + $0x5ec] ss:$16 sps:$4 sm:$0xff]  }
 0x5c1   :  { %10097 = vmatpush1.bf16.msra.mxu1 %v11924_v44  ;;  %9934 = vmatprep.subr.bf16.mxu0 %v11929_v37  ;;  %v12005_v44 = vld [vmem:[#allocation11 + $0x5e0] ss:$16 sps:$4 sm:$0xff]   ;;  %v12008_v37 = vld [vmem:[#allocation11 + $0x5e8] ss:$16 sps:$4 sm:$0xff]  }
 0x5c2   :  { %10098 = vmatprep.subr.bf16.mxu1 %v11932_v26  ;;  %v12013_v26 = vld [vmem:[#allocation11 + $0x604] ss:$16 sps:$4 sm:$0xff]  }
 0x5c4   :  { %9935 = vmatpush1.bf16.msra.mxu0 %v11927_v24  ;;  %v12016_v24 = vld [vmem:[#allocation11 + $0x60c] ss:$16 sps:$4 sm:$0xff]  }
 0x5c5   :  { %10099 = vmatpush1.bf16.msra.mxu1 %v11930_v3  ;;  %9936 = vmatprep.subr.bf16.mxu0 %v11935_v59  ;;  %v1821_v3 = vrot.slane %v12694_v30, %v12532_v22  ;;  %v1825_v59 = vrot.slane %v12694_v30, %v12539_v34  ;;  %v12011_v34 = vld [vmem:[#allocation11 + $0x600] ss:$16 sps:$4 sm:$0xff]  }
 0x5c6   :  { %10100 = vmatprep.subr.bf16.mxu1 %v11938_v41  ;;  %v1833_v41 = vrot.slane %v12694_v30, %v12566_v9  ;;  %v12019_v9 = vld [vmem:[#allocation11 + $0x624] ss:$16 sps:$4 sm:$0xff]   ;;  %v12022_v30 = vld [vmem:[#allocation11 + $0x62c] ss:$16 sps:$4 sm:$0xff]  }
 0x5c8   :  { %9937 = vmatpush1.bf16.msra.mxu0 %v11933_v42 }
 0x5c9   :  { %10101 = vmatpush1.bf16.msra.mxu1 %v11936_v43  ;;  %9938 = vmatprep.subr.bf16.mxu0 %v11941_v56 }
 0x5ca   :  { %10102 = vmatprep.subr.bf16.mxu1 %v11944_v62 }
 0x5cc   :  { %9939 = vmatpush1.bf16.msra.mxu0 %v11939_v45 }
 0x5cd   :  { %10103 = vmatpush1.bf16.msra.mxu1 %v11942_v4  ;;  %9940 = vmatprep.subr.bf16.mxu0 %v11947_v21 }
 0x5ce   :  { %10104 = vmatprep.subr.bf16.mxu1 %v11950_v20 }
 0x5d0   :  { %9941 = vmatpush1.bf16.msra.mxu0 %v11945_v40 }
 0x5d1   :  { %10105 = vmatpush1.bf16.msra.mxu1 %v11948_v50  ;;  %9942 = vmatprep.subr.bf16.mxu0 %v11953_v16 }
 0x5d2   :  { %10106 = vmatprep.subr.bf16.mxu1 %v11956_v57 }
 0x5d4   :  { %9943 = vmatpush1.bf16.msra.mxu0 %v11951_v27 }
 0x5d5   :  { %10107 = vmatpush1.bf16.msra.mxu1 %v11954_v38  ;;  %9944 = vmatprep.subr.bf16.mxu0 %v11959_v51  ;;  %v12014_v51 = vld [vmem:[#allocation11 + $0x608] ss:$16 sps:$4 sm:$0xff]  }
 0x5d6   :  { %10108 = vmatprep.subr.bf16.mxu1 %v11962_v33 }
 0x5d8   :  { %9945 = vmatpush1.bf16.msra.mxu0 %v11957_v53 }
 0x5d9   :  { %10109 = vmatpush1.bf16.msra.mxu1 %v11960_v52  ;;  %9946 = vmatprep.subr.bf16.mxu0 %v11965_v47  ;;  %v12017_v52 = vld [vmem:[#allocation11 + $0x620] ss:$16 sps:$4 sm:$0xff]   ;;  %v12020_v47 = vld [vmem:[#allocation11 + $0x628] ss:$16 sps:$4 sm:$0xff]  }
 0x5da   :  { %10110 = vmatprep.subr.bf16.mxu1 %v11968_v55  ;;  %v12025_v55 = vld [vmem:[#allocation11 + $0x644] ss:$16 sps:$4 sm:$0xff]  }
 0x5dc   :  { %9947 = vmatpush1.bf16.msra.mxu0 %v11963_v58  ;;  %v12028_v58 = vld [vmem:[#allocation11 + $0x64c] ss:$16 sps:$4 sm:$0xff]  }
 0x5dd   :  { %10111 = vmatpush1.bf16.msra.mxu1 %v11966_v12  ;;  %9948 = vmatprep.subr.bf16.mxu0 %v11971_v60  ;;  %v12023_v12 = vld [vmem:[#allocation11 + $0x640] ss:$16 sps:$4 sm:$0xff]   ;;  %v12026_v60 = vld [vmem:[#allocation11 + $0x648] ss:$16 sps:$4 sm:$0xff]  }
 0x5de   :  { %10112 = vmatprep.subr.bf16.mxu1 %v11974_v61  ;;  %v12031_v61 = vld [vmem:[#allocation11 + $0x664] ss:$16 sps:$4 sm:$0xff]  }
 0x5e0   :  { %9949 = vmatpush1.bf16.msra.mxu0 %v11969_v11  ;;  %v12034_v11 = vld [vmem:[#allocation11 + $0x66c] ss:$16 sps:$4 sm:$0xff]  }
 0x5e1   :  { %10113 = vmatpush1.bf16.msra.mxu1 %v11972_v63  ;;  %9950 = vmatprep.subr.bf16.mxu0 %v11977_v46  ;;  %v12029_v63 = vld [vmem:[#allocation11 + $0x660] ss:$16 sps:$4 sm:$0xff]   ;;  %v12032_v46 = vld [vmem:[#allocation11 + $0x668] ss:$16 sps:$4 sm:$0xff]  }
 0x5e2   :  { %10114 = vmatprep.subr.bf16.mxu1 %v11980_v36  ;;  %v12037_v36 = vld [vmem:[#allocation11 + $0x684] ss:$16 sps:$4 sm:$0xff]  }
 0x5e4   :  { %9951 = vmatpush1.bf16.msra.mxu0 %v11975_v0  ;;  %v12040_v0 = vld [vmem:[#allocation11 + $0x68c] ss:$16 sps:$4 sm:$0xff]  }
 0x5e5   :  { %10115 = vmatpush1.bf16.msra.mxu1 %v11978_v2  ;;  %9952 = vmatprep.subr.bf16.mxu0 %v11983_v32  ;;  %v12035_v2 = vld [vmem:[#allocation11 + $0x680] ss:$16 sps:$4 sm:$0xff]   ;;  %v12038_v32 = vld [vmem:[#allocation11 + $0x688] ss:$16 sps:$4 sm:$0xff]  }
 0x5e6   :  { %10116 = vmatprep.subr.bf16.mxu1 %v11986_v6  ;;  %v12043_v6 = vld [vmem:[#allocation11 + $0x6a4] ss:$16 sps:$4 sm:$0xff]  }
 0x5e8   :  { %9953 = vmatpush1.bf16.msra.mxu0 %v11981_v13  ;;  %v12046_v13 = vld [vmem:[#allocation11 + $0x6ac] ss:$16 sps:$4 sm:$0xff]  }
 0x5e9   :  { %10117 = vmatpush1.bf16.msra.mxu1 %v11984_v10  ;;  %9954 = vmatprep.subr.bf16.mxu0 %v11989_v19  ;;  %v12041_v10 = vld [vmem:[#allocation11 + $0x6a0] ss:$16 sps:$4 sm:$0xff]   ;;  %v12044_v19 = vld [vmem:[#allocation11 + $0x6a8] ss:$16 sps:$4 sm:$0xff]  }
 0x5ea   :  { %10118 = vmatprep.subr.bf16.mxu1 %v11992_v54  ;;  %v12049_v54 = vld [vmem:[#allocation11 + $0x6c4] ss:$16 sps:$4 sm:$0xff]  }
 0x5ec   :  { %9955 = vmatpush1.bf16.msra.mxu0 %v11987_v31  ;;  %v12052_v31 = vld [vmem:[#allocation11 + $0x6cc] ss:$16 sps:$4 sm:$0xff]  }
 0x5ed   :  { %10119 = vmatpush1.bf16.msra.mxu1 %v11990_v1  ;;  %9956 = vmatprep.subr.bf16.mxu0 %v11995_v49  ;;  %v12047_v1 = vld [vmem:[#allocation11 + $0x6c0] ss:$16 sps:$4 sm:$0xff]   ;;  %v12050_v49 = vld [vmem:[#allocation11 + $0x6c8] ss:$16 sps:$4 sm:$0xff]  }
 0x5ee   :  { %10120 = vmatprep.subr.bf16.mxu1 %v11998_v5  ;;  %v12055_v5 = vld [vmem:[#allocation11 + $0x6e4] ss:$16 sps:$4 sm:$0xff]  }
 0x5f0   :  { %9957 = vmatpush1.bf16.msra.mxu0 %v11993_v23  ;;  %v12058_v23 = vld [vmem:[#allocation11 + $0x6ec] ss:$16 sps:$4 sm:$0xff]  }
 0x5f1   :  { %10121 = vmatpush1.bf16.msra.mxu1 %v11996_v25  ;;  %9958 = vmatprep.subr.bf16.mxu0 %v12001_v28  ;;  %v12053_v25 = vld [vmem:[#allocation11 + $0x6e0] ss:$16 sps:$4 sm:$0xff]   ;;  %v12056_v28 = vld [vmem:[#allocation11 + $0x6e8] ss:$16 sps:$4 sm:$0xff]  }
 0x5f2   :  { %10122 = vmatprep.subr.bf16.mxu1 %v12004_v29  ;;  %v12061_v29 = vld [vmem:[#allocation11 + $0x704] ss:$16 sps:$4 sm:$0xff]  }
 0x5f4   :  { %9959 = vmatpush1.bf16.msra.mxu0 %v11999_v8  ;;  %v12064_v8 = vld [vmem:[#allocation11 + $0x70c] ss:$16 sps:$4 sm:$0xff]  }
 0x5f5   :  { %10123 = vmatpush1.bf16.msra.mxu1 %v12002_v14  ;;  %9960 = vmatprep.subr.bf16.mxu0 %v12007_v35  ;;  %v12059_v14 = vld [vmem:[#allocation11 + $0x700] ss:$16 sps:$4 sm:$0xff]   ;;  %v12062_v35 = vld [vmem:[#allocation11 + $0x708] ss:$16 sps:$4 sm:$0xff]  }
 0x5f6   :  { %10124 = vmatprep.subr.bf16.mxu1 %v12010_v48  ;;  %v12067_v48 = vld [vmem:[#allocation11 + $0x724] ss:$16 sps:$4 sm:$0xff]  }
 0x5f8   :  { %9961 = vmatpush1.bf16.msra.mxu0 %v12005_v44  ;;  %v12070_v44 = vld [vmem:[#allocation11 + $0x72c] ss:$16 sps:$4 sm:$0xff]  }
 0x5f9   :  { %10125 = vmatpush1.bf16.msra.mxu1 %v12008_v37  ;;  %9971 = vmatprep.subr.bf16.mxu0 %v12013_v26  ;;  %v12065_v37 = vld [vmem:[#allocation11 + $0x720] ss:$16 sps:$4 sm:$0xff]   ;;  %v12068_v26 = vld [vmem:[#allocation11 + $0x728] ss:$16 sps:$4 sm:$0xff]  }
 0x5fa   :  { %10135 = vmatprep.subr.bf16.mxu1 %v12016_v24  ;;  %v12073_v24 = vld [vmem:[#allocation11 + $0x744] ss:$16 sps:$4 sm:$0xff]  }
 0x60e   :  { %v7939_v42 = vpop.f32.mrb[20].mxu0 }
 0x60f   :  { %v11564_v43 = vadd.f32 %v7939_v42, %v1821_v3  ;;  %v12716_v56 = vpop.f32.mrb[20].mxu1  ;;  %v7941_v62 = vpop.f32.mrb[21].mxu0  ;;  %v12076_v3 = vld [vmem:[#allocation11 + $0x74c] ss:$16 sps:$4 sm:$0xff]   ;;  %v12079_v42 = vld [vmem:[#allocation11 + $0x764] ss:$16 sps:$4 sm:$0xff]  }
 0x610   :  { %v11565_v45 = vadd.f32 %v7941_v62, %v1825_v59  ;;  %v8269_v4 = vpop.f32.mrb[21].mxu1  ;;  %v7943_v21 = vpop.f32.mrb[22].mxu0  ;;  %v12071_v59 = vld [vmem:[#allocation11 + $0x740] ss:$16 sps:$4 sm:$0xff]  }
 0x611   :  { %v8278_v20 = vmax.f32 %v11564_v43, 0.0  ;;  %v11567_v40 = vadd.f32 %v8269_v4, %v1833_v41  ;;  %v8271_v50 = vpop.f32.mrb[22].mxu1  ;;  %v7944_v16 = vpop.f32.mrb[23].mxu0  ;;  %v12074_v41 = vld [vmem:[#allocation11 + $0x748] ss:$16 sps:$4 sm:$0xff]  }
 0x612   :  { %v8279_v57 = vmax.f32 %v11565_v45, 0.0  ;;  %v8272_v22 = vpop.f32.mrb[23].mxu1  ;;  %v12082_v43 = vld [vmem:[#allocation11 + $0x76c] ss:$16 sps:$4 sm:$0xff]   ;;  %v12077_v62 = vld [vmem:[#allocation11 + $0x760] ss:$16 sps:$4 sm:$0xff]  }
 0x613   :  { %v8281_v27 = vmax.f32 %v11567_v40, 0.0  ;;  %v8286_v33 = vpack.c.bf16 %v8278_v20, %v8278_v20  ;;  %v12080_v45 = vld [vmem:[#allocation11 + $0x768] ss:$16 sps:$4 sm:$0xff]   ;;  %v12085_v4 = vld [vmem:[#allocation11 + $0x784] ss:$16 sps:$4 sm:$0xff]  }
 0x614   :  { %v8287_v38 = vpack.c.bf16 %v8279_v57, %v8279_v57  ;;  %v12088_v21 = vld [vmem:[#allocation11 + $0x78c] ss:$16 sps:$4 sm:$0xff]   ;;  %v12083_v20 = vld [vmem:[#allocation11 + $0x780] ss:$16 sps:$4 sm:$0xff]   ;;  %v12086_v40 = vld [vmem:[#allocation11 + $0x788] ss:$16 sps:$4 sm:$0xff]  }
 0x615   :  { %v8289_v53 = vpack.c.bf16 %v8281_v27, %v8281_v27  ;;  %v12091_v50 = vld [vmem:[#allocation11 + $0x7a4] ss:$16 sps:$4 sm:$0xff]   ;;  %v12094_v16 = vld [vmem:[#allocation11 + $0x7ac] ss:$16 sps:$4 sm:$0xff]   ;;  %v12089_v57 = vld [vmem:[#allocation11 + $0x7a0] ss:$16 sps:$4 sm:$0xff]  }
 0x616   :  { %9962 = vmatprep.mubr.bf16.mxu0 %v8287_v38  ;;  %10126 = vmatprep.mubr.bf16.mxu1 %v8287_v38  ;;  %v12092_v22 = vld [vmem:[#allocation11 + $0x7a8] ss:$16 sps:$4 sm:$0xff]  }
 0x617   :  { %9963 = vmatmul.mubr.bf16.vlgmr.msra.gmra.mrb[24].mxu0 %v8286_v33  ;;  %10127 = vmatmul.mubr.bf16.vlgmr.msra.gmra.mrb[24].mxu1 %v8286_v33  ;;  %v12113_v27 = vld [vmem:[#allocation10] sm:$0xff]  ;;  %v12095_v33 = vld [vmem:[#allocation11 + $0x7c0] ss:$16 sps:$4 sm:$0xff]  }
 0x618   :  { %9972 = vmatpush1.bf16.msra.mxu0 %v12011_v34  ;;  %10136 = vmatpush1.bf16.msra.mxu1 %v12014_v51  ;;  %v1829_v38 = vrot.slane %v12113_v27, %v12563_v7  ;;  %v12097_v34 = vld [vmem:[#allocation11 + $0x7c4] ss:$16 sps:$4 sm:$0xff]   ;;  %v12100_v51 = vld [vmem:[#allocation11 + $0x7cc] ss:$16 sps:$4 sm:$0xff]  }
 0x619   :  { %10003 = vmatprep.mubr.bf16.mxu0 %v8289_v53  ;;  %10167 = vmatprep.mubr.bf16.mxu1 %v8289_v53  ;;  %v12103_v53 = vld [vmem:[#allocation11 + $0x7e4] ss:$16 sps:$4 sm:$0xff]  }
 0x61a   :  { %9973 = vmatprep.subr.bf16.mxu0 %v12019_v9  ;;  %10137 = vmatprep.subr.bf16.mxu1 %v12022_v30  ;;  %v12098_v9 = vld [vmem:[#allocation11 + $0x7c8] ss:$16 sps:$4 sm:$0xff]   ;;  %v11566_v30 = vadd.f32 %v12716_v56, %v1829_v38 }
 0x61c   :  { %9974 = vmatpush1.bf16.msra.mxu0 %v12017_v52  ;;  %10138 = vmatpush1.bf16.msra.mxu1 %v12020_v47  ;;  %v12106_v52 = vld [vmem:[#allocation11 + $0x7ec] ss:$16 sps:$4 sm:$0xff]   ;;  %v12101_v47 = vld [vmem:[#allocation11 + $0x7e0] ss:$16 sps:$4 sm:$0xff]  }
 0x61d   :  { %9975 = vmatprep.subr.bf16.mxu0 %v12025_v55  ;;  %10139 = vmatprep.subr.bf16.mxu1 %v12028_v58  ;;  %v12104_v55 = vld [vmem:[#allocation11 + $0x7e8] ss:$16 sps:$4 sm:$0xff]   ;;  %v8280_v58 = vmax.f32 %v11566_v30, 0.0 }
 0x61f   :  { %v8288_v7 = vpack.c.bf16 %v8280_v58, %v8280_v58 }
 0x620   :  { %9976 = vmatpush1.bf16.msra.mxu0 %v12023_v12  ;;  %10140 = vmatpush1.bf16.msra.mxu1 %v12026_v60  ;;  %v8546_v12 = vld [vmem:[#allocation13] sm:$0xf] }
 0x621   :  { %9977 = vmatprep.subr.bf16.mxu0 %v12031_v61  ;;  %10141 = vmatprep.subr.bf16.mxu1 %v12034_v11  ;;  %v8551_v60 = vrot.slane %v8546_v12, %v12493_v15  ;;  %v8559_v56 = vrot.slane %v8546_v12, %v12552_v39  ;;  %v10180_v61 = vld [vmem:[#allocation14] sm:$0xf]  ;;  %v8555_v11 = vrot.slane %v8546_v12, %v12498_v17 }
 0x624   :  { %9978 = vmatpush1.bf16.msra.mxu0 %v12029_v63  ;;  %10142 = vmatpush1.bf16.msra.mxu1 %v12032_v46  ;;  %v8563_v63 = vrot.slane %v8546_v12, %v12501_v18 }
 0x625   :  { %9979 = vmatprep.subr.bf16.mxu0 %v12037_v36  ;;  %10143 = vmatprep.subr.bf16.mxu1 %v12040_v0 }
 0x628   :  { %9980 = vmatpush1.bf16.msra.mxu0 %v12035_v2  ;;  %10144 = vmatpush1.bf16.msra.mxu1 %v12038_v32  ;;  %v10185_v2 = vrot.slane %v10180_v61, %v12493_v15  ;;  %v10197_v15 = vrot.slane %v10180_v61, %v12501_v18 }
 0x629   :  { %9981 = vmatprep.subr.bf16.mxu0 %v12043_v6  ;;  %10145 = vmatprep.subr.bf16.mxu1 %v12046_v13 }
 0x62c   :  { %9982 = vmatpush1.bf16.msra.mxu0 %v12041_v10  ;;  %10146 = vmatpush1.bf16.msra.mxu1 %v12044_v19  ;;  %v10189_v19 = vrot.slane %v10180_v61, %v12498_v17 }
 0x62d   :  { %9983 = vmatprep.subr.bf16.mxu0 %v12049_v54  ;;  %10147 = vmatprep.subr.bf16.mxu1 %v12052_v31 }
 0x630   :  { %9984 = vmatpush1.bf16.msra.mxu0 %v12047_v1  ;;  %10148 = vmatpush1.bf16.msra.mxu1 %v12050_v49 }
 0x631   :  { %9985 = vmatprep.subr.bf16.mxu0 %v12055_v5  ;;  %10149 = vmatprep.subr.bf16.mxu1 %v12058_v23 }
 0x634   :  { %9986 = vmatpush1.bf16.msra.mxu0 %v12053_v25  ;;  %10150 = vmatpush1.bf16.msra.mxu1 %v12056_v28  ;;  %v10193_v28 = vrot.slane %v10180_v61, %v12552_v39 }
 0x635   :  { %9987 = vmatprep.subr.bf16.mxu0 %v12061_v29  ;;  %10151 = vmatprep.subr.bf16.mxu1 %v12064_v8 }
 0x638   :  { %9988 = vmatpush1.bf16.msra.mxu0 %v12059_v14  ;;  %10152 = vmatpush1.bf16.msra.mxu1 %v12062_v35 }
 0x639   :  { %9989 = vmatprep.subr.bf16.mxu0 %v12067_v48  ;;  %10153 = vmatprep.subr.bf16.mxu1 %v12070_v44 }
 0x63c   :  { %9990 = vmatpush1.bf16.msra.mxu0 %v12065_v37  ;;  %10154 = vmatpush1.bf16.msra.mxu1 %v12068_v26 }
 0x63d   :  { %9991 = vmatprep.subr.bf16.mxu0 %v12073_v24  ;;  %10155 = vmatprep.subr.bf16.mxu1 %v12076_v3  ;;  %v11559_v24 = vld [vmem:[#allocation2] ss:$0 sm:$0xff] }
 0x640   :  { %9992 = vmatpush1.bf16.msra.mxu0 %v12071_v59  ;;  %10156 = vmatpush1.bf16.msra.mxu1 %v12074_v41 }
 0x641   :  { %9993 = vmatprep.subr.bf16.mxu0 %v12079_v42  ;;  %10157 = vmatprep.subr.bf16.mxu1 %v12082_v43 }
 0x644   :  { %9994 = vmatpush1.bf16.msra.mxu0 %v12077_v62  ;;  %10158 = vmatpush1.bf16.msra.mxu1 %v12080_v45 }
 0x645   :  { %9995 = vmatprep.subr.bf16.mxu0 %v12085_v4  ;;  %10159 = vmatprep.subr.bf16.mxu1 %v12088_v21 }
 0x648   :  { %9996 = vmatpush1.bf16.msra.mxu0 %v12083_v20  ;;  %10160 = vmatpush1.bf16.msra.mxu1 %v12086_v40 }
 0x649   :  { %9997 = vmatprep.subr.bf16.mxu0 %v12091_v50  ;;  %10161 = vmatprep.subr.bf16.mxu1 %v12094_v16 }
 0x64c   :  { %9998 = vmatpush1.bf16.msra.mxu0 %v12089_v57  ;;  %10162 = vmatpush1.bf16.msra.mxu1 %v12092_v22 }
 0x64d   :  { %9999 = vmatprep.subr.bf16.mxu0 %v12097_v34  ;;  %10163 = vmatprep.subr.bf16.mxu1 %v12100_v51 }
 0x650   :  { %10000 = vmatpush1.bf16.msra.mxu0 %v12095_v33  ;;  %10164 = vmatpush1.bf16.msra.mxu1 %v12098_v9 }
 0x651   :  { %10001 = vmatprep.subr.bf16.mxu0 %v12103_v53  ;;  %10165 = vmatprep.subr.bf16.mxu1 %v12106_v52 }
 0x654   :  { %10002 = vmatpush1.bf16.msra.mxu0 %v12101_v47  ;;  %10166 = vmatpush1.bf16.msra.mxu1 %v12104_v55 }
 0x657   :  { %10004 = vmatmul.mubr.bf16.vlgmr.msra.gmra.mrb[24].mxu0 %v8288_v7  ;;  %10168 = vmatmul.mubr.bf16.vlgmr.msra.gmra.mrb[24].mxu1 %v8288_v7 }
 0x72a   :  { %v10005_v46 = vpop.f32.mrb[24].mxu0  ;;  %v10169_v36 = vpop.f32.mrb[24].mxu1 }
 0x72b   :  { %v11568_v0 = vadd.f32 %v10005_v46, %v8551_v60  ;;  %v11570_v32 = vadd.f32 %v10169_v36, %v8559_v56  ;;  %v10007_v6 = vpop.f32.mrb[25].mxu0  ;;  %v10171_v13 = vpop.f32.mrb[25].mxu1 }
 0x72c   :  { %v11569_v10 = vadd.f32 %v10007_v6, %v8555_v11  ;;  %v11571_v54 = vadd.f32 %v10171_v13, %v8563_v63  ;;  %v10009_v31 = vpop.f32.mrb[26].mxu0  ;;  %v10173_v1 = vpop.f32.mrb[26].mxu1 }
 0x72d   :  { %v10176_v49 = vmax.f32 %v11568_v0, 0.0  ;;  %v10010_v5 = vpop.f32.mrb[27].mxu0  ;;  %v10174_v23 = vpop.f32.mrb[27].mxu1  ;;  %v10178_v25 = vmax.f32 %v11570_v32, 0.0 }
 0x72e   :  { %v10177_v29 = vmax.f32 %v11569_v10, 0.0  ;;  %v10179_v35 = vmax.f32 %v11571_v54, 0.0 }
 0x72f   :  { %v10202_v8 = vmul.f32 %v10185_v2, %v10176_v49  ;;  %v10204_v48 = vmul.f32 %v10193_v28, %v10178_v25 }
 0x730   :  { %v10203_v14 = vmul.f32 %v10189_v19, %v10177_v29  ;;  %v10205_v37 = vmul.f32 %v10197_v15, %v10179_v35 }
 0x732   :  { %v10206_v44 = vadd.f32 %v10203_v14, %v10202_v8 }
 0x734   :  { %v10207_v26 = vadd.f32 %v10206_v44, %v10204_v48 }
 0x736   :  { %v10208_v17 = vadd.f32 %v10207_v26, %v10205_v37 }
 0x738   :  { %10209 = vadd.xlane.f32.xlu0 %v10208_v17 }
 0x7c5   :  { %v10210_v3 = vpop.xlane.xlu0 %10209 }
 0x7c6   :  { %v10218_v59 = vadd.f32 %v11559_v24, %v10210_v3 }
 0x7c8   :  { %v10219_v41 = vand.u32 2147483647, %v10218_v59  ;;  %vm10225_vm2 = vcmp.ge.f32.partialorder %v10218_v59, 0.0 }
 0x7ca   :  { %v10220_v42 = vsub.f32 0.0, %v10219_v41 }
 0x7cc   :  { %v10221_v43 = vmul.f32 1.442695, %v10220_v42 }
 0x7ce   :  { %12107 = vpow2.f32 %v10221_v43 }
 0x7d8   :  { %v12108_v39 = vpop.eup %12107 }
 0x7d9   :  { %v10223_v62 = vadd.f32 1.0, %v12108_v39 }
 0x7db   :  { %12109 = vrcp.f32 %v10223_v62 }
 0x7e5   :  { %v12110_v45 = vpop.eup %12109 }
 0x7e6   :  { %v10226_v4 = vsub.f32 1.0, %v12110_v45 }
 0x7e8   :  { %v10227_v18 = vsel %vm10225_vm2, %v12110_v45, %v10226_v4 }
 0x7e9   :  { %10229 = vst.msk [vmem:[%s12740_s9] sm:$0xff] %vm10228_vm1, %v10227_v18 }
 0x7ea   :  { %10234 = vsyncpa [#allocation4], 1 }
 0x7eb   :  { %10235 = vsyncpa [#allocation6], 1 }
 0x7ec   :  { %10236 = vsyncpa [#allocation9], 1 }
 0x7ed   :  { %10237 = vsyncpa [#allocation12], 1 }
 0x7ee   :  { %10238 = vsyncpa [#allocation15], 1 }

</bundles_post_ra>
